<compile_context>
chip_gen: v7x
topology: tpu7x:2x2x1
jax: 0.10.0
libtpu: 0.0.40
codegen_flags: <defaults>
</compile_context>

<pallas_src>
import numpy as np

import jax
import jax.numpy as jnp
from jax import lax
from jax.experimental import pallas as pl
from jax.experimental.pallas import tpu as pltpu


# ---------------------------------------------------------------------------
# One-time parameter preparation (hoisted out of the forward pass)
# ---------------------------------------------------------------------------
def _conv_block_diag(w_oihw, out_w):
    """Conv weight (Cout,Cin,5,5) -> (25, out_w*Cin, out_w*Cout) block-diagonal
    matrices so that, in the per-image (H, W*C) layout, each (kh,kw) tap of the
    convolution is a single dense 2-D matmul."""
    cout, cin, kh, kw = w_oihw.shape
    wk = jnp.transpose(w_oihw, (2, 3, 1, 0))               # (kh, kw, cin, cout)
    eye = jnp.eye(out_w, dtype=w_oihw.dtype)
    bd = jnp.einsum('ab,hwcd->hwacbd', eye, wk)            # (kh,kw,ow,cin,ow,cout)
    return bd.reshape(kh * kw, out_w * cin, out_w * cout)


def _row_select(n_out):
    """(n_out, 2*n_out-1) 0/1 matrix picking every even row (exact via MXU)."""
    m = np.zeros((n_out, 2 * n_out - 1), np.float32)
    m[np.arange(n_out), 2 * np.arange(n_out)] = 1.0
    return jnp.asarray(m)


def _col_select(n_w_out, c):
    """((2*n_w_out-1)*c, n_w_out*c) 0/1 matrix picking every even w-group of c
    channels (exact via MXU)."""
    m = np.zeros(((2 * n_w_out - 1) * c, n_w_out * c), np.float32)
    for pw in range(n_w_out):
        for ch in range(c):
            m[2 * pw * c + ch, pw * c + ch] = 1.0
    return jnp.asarray(m)


def prepare_params(params):
    (c1w, c1b, c2w, c2b, f1w, f1b, f2w, f2b, f3w, f3b) = params
    f32 = jnp.float32

    w1bd = _conv_block_diag(c1w, 28)                       # (25, 84, 168)
    b1t = jnp.tile(c1b, 28).reshape(1, 28 * 6)             # (1, 168)
    w2bd = _conv_block_diag(c2w, 10)                       # (25, 60, 160)
    b2t = jnp.tile(c2b, 10).reshape(1, 10 * 16)            # (1, 160)

    s1 = _row_select(14)                                   # (14, 27)
    t1 = _col_select(14, 6)                                # (162, 84)
    s2 = _row_select(5)                                    # (5, 9)
    t2 = _col_select(5, 16)                                # (144, 80)

    # fc1 columns permuted from torch's (c,h,w) flatten to our (h, w*16+c) layout.
    fw1 = f1w.reshape(120, 16, 5, 5).transpose(2, 3, 1, 0).reshape(5, 80, 120)
    fb1 = f1b.reshape(1, 120)
    fw2 = f2w.T                                            # (120, 84)
    fb2 = f2b.reshape(1, 84)
    # fc3 padded to 128 output lanes for a dense final store.
    fw3 = jnp.zeros((84, 128), f32).at[:, :10].set(f3w.T)
    fb3 = jnp.zeros((1, 128), f32).at[0, :10].set(f3b)

    return (w1bd, b1t, w2bd, b2t, s1, t1, s2, t2, fw1, fb1, fw2, fb2, fw3, fb3)


# ---------------------------------------------------------------------------
# Fused Pallas kernel: one grid step = one image, everything VMEM-resident
# ---------------------------------------------------------------------------
def _lenet_kernel(x_ref, w1_ref, b1_ref, w2_ref, b2_ref,
                  s1_ref, t1_ref, s2_ref, t2_ref,
                  fw1_ref, fb1_ref, fw2_ref, fb2_ref, fw3_ref, fb3_ref,
                  out_ref):
    f32 = jnp.float32
    x = x_ref[0]                                           # (32, 96): rows=H, cols=W*Cin

    # ---- conv1 (5x5, 3->6) + bias + ReLU ----
    acc = jnp.zeros((28, 28 * 6), f32)
    for kh in range(5):
        for kw in range(5):
            patch = x[kh:kh + 28, kw * 3:kw * 3 + 28 * 3]          # (28, 84)
            acc = acc + jnp.dot(patch, w1_ref[kh * 5 + kw],
                                preferred_element_type=f32)
    h1 = jnp.maximum(acc + b1_ref[...], 0.0)                       # (28, 168)

    # ---- maxpool 2x2 (adjacent-max, then exact 0/1 selection matmuls) ----
    rmax = jnp.maximum(h1[0:27, :], h1[1:28, :])                   # (27, 168)
    pr = jnp.dot(s1_ref[...], rmax, preferred_element_type=f32)    # (14, 168)
    cmax = jnp.maximum(pr[:, 0:162], pr[:, 6:168])                 # (14, 162)
    p1 = jnp.dot(cmax, t1_ref[...], preferred_element_type=f32)    # (14, 84)

    # ---- conv2 (5x5, 6->16) + bias + ReLU ----
    acc = jnp.zeros((10, 10 * 16), f32)
    for kh in range(5):
        for kw in range(5):
            patch = p1[kh:kh + 10, kw * 6:kw * 6 + 10 * 6]         # (10, 60)
            acc = acc + jnp.dot(patch, w2_ref[kh * 5 + kw],
                                preferred_element_type=f32)
    h2 = jnp.maximum(acc + b2_ref[...], 0.0)                       # (10, 160)

    # ---- maxpool 2x2 ----
    rmax = jnp.maximum(h2[0:9, :], h2[1:10, :])                    # (9, 160)
    pr = jnp.dot(s2_ref[...], rmax, preferred_element_type=f32)    # (5, 160)
    cmax = jnp.maximum(pr[:, 0:144], pr[:, 16:160])                # (5, 144)
    p2 = jnp.dot(cmax, t2_ref[...], preferred_element_type=f32)    # (5, 80)

    # ---- fc1 (400->120): weights pre-permuted to the (h, w*16+c) layout ----
    z = fb1_ref[...]                                               # (1, 120)
    for h in range(5):
        z = z + jnp.dot(p2[h:h + 1, :], fw1_ref[h],
                        preferred_element_type=f32)
    z = jnp.maximum(z, 0.0)

    # ---- fc2 (120->84) + ReLU, fc3 (84->10, zero-padded to 128 lanes) ----
    z = jnp.maximum(jnp.dot(z, fw2_ref[...], preferred_element_type=f32)
                    + fb2_ref[...], 0.0)                           # (1, 84)
    z = jnp.dot(z, fw3_ref[...], preferred_element_type=f32) + fb3_ref[...]  # (1, 128)

    out_ref[0] = z


def _full_spec(arr):
    nd = arr.ndim
    return pl.BlockSpec(arr.shape, lambda i, _nd=nd: (0,) * _nd)


_FLOPS_PER_IMAGE = 2 * (
    25 * 28 * 84 * 168 + 14 * 27 * 168 + 14 * 162 * 84 +
    25 * 10 * 60 * 160 + 5 * 9 * 160 + 5 * 144 * 80 +
    5 * 80 * 120 + 120 * 84 + 84 * 128)


def lenet_forward(x_nchw, prep):
    n, c, h, w = x_nchw.shape
    assert (c, h, w) == (3, 32, 32)
    # NCHW -> per-image (H, W*C) layout expected by the kernel.
    x3 = jnp.transpose(x_nchw, (0, 2, 3, 1)).reshape(n, 32, 32 * 3)

    bytes_accessed = (x3.size + sum(int(p.size) for p in prep) + n * 128) * 4
    out = pl.pallas_call(
        _lenet_kernel,
        out_shape=jax.ShapeDtypeStruct((n, 1, 128), jnp.float32),
        grid=(n,),
        in_specs=[pl.BlockSpec((1, 32, 96), lambda i: (i, 0, 0))]
                 + [_full_spec(p) for p in prep],
        out_specs=pl.BlockSpec((1, 1, 128), lambda i: (i, 0, 0)),
        compiler_params=pltpu.CompilerParams(
            dimension_semantics=("parallel",)),
        cost_estimate=pl.CostEstimate(
            flops=n * _FLOPS_PER_IMAGE, transcendentals=0,
            bytes_accessed=bytes_accessed),
    )(x3, *prep)
    return out.reshape(n, 128)[:, :10]


# ---------------------------------------------------------------------------
# Pure-JAX reference (high precision) for correctness check
# ---------------------------------------------------------------------------
def net_reference(x, params):
    (c1w, c1b, c2w, c2b, f1w, f1b, f2w, f2b, f3w, f3b) = params
    dn = ('NCHW', 'OIHW', 'NCHW')
    hp = lax.Precision.HIGHEST
    y = lax.conv_general_dilated(x, c1w, (1, 1), 'VALID',
                                 dimension_numbers=dn, precision=hp)
    y = jnp.maximum(y + c1b[None, :, None, None], 0.0)
    y = lax.reduce_window(y, -jnp.inf, lax.max, (1, 1, 2, 2), (1, 1, 2, 2), 'VALID')
    y = lax.conv_general_dilated(y, c2w, (1, 1), 'VALID',
                                 dimension_numbers=dn, precision=hp)
    y = jnp.maximum(y + c2b[None, :, None, None], 0.0)
    y = lax.reduce_window(y, -jnp.inf, lax.max, (1, 1, 2, 2), (1, 1, 2, 2), 'VALID')
    y = y.reshape(y.shape[0], -1)
    y = jnp.maximum(jnp.dot(y, f1w.T, precision=hp) + f1b, 0.0)
    y = jnp.maximum(jnp.dot(y, f2w.T, precision=hp) + f2b, 0.0)
    return jnp.dot(y, f3w.T, precision=hp) + f3b


# ---------------------------------------------------------------------------
# Deterministic parameter init (PyTorch default-style uniform bounds)
# ---------------------------------------------------------------------------
def init_params(key):
    ks = jax.random.split(key, 10)

    def u(k, shape, fan_in):
        bound = 1.0 / (fan_in ** 0.5)
        return jax.random.uniform(k, shape, jnp.float32, -bound, bound)

    c1w = u(ks[0], (6, 3, 5, 5), 3 * 25)
    c1b = u(ks[1], (6,), 3 * 25)
    c2w = u(ks[2], (16, 6, 5, 5), 6 * 25)
    c2b = u(ks[3], (16,), 6 * 25)
    f1w = u(ks[4], (120, 400), 400)
    f1b = u(ks[5], (120,), 400)
    f2w = u(ks[6], (84, 120), 120)
    f2b = u(ks[7], (84,), 120)
    f3w = u(ks[8], (10, 84), 84)
    f3b = u(ks[9], (10,), 84)
    return (c1w, c1b, c2w, c2b, f1w, f1b, f2w, f2b, f3w, f3b)


if __name__ == "__main__":
    key = jax.random.PRNGKey(0)
    pkey, xkey = jax.random.split(key)
    params = init_params(pkey)
    # batch=2, 3x32x32 input (required so the flatten gives 16*5*5 = 400 features)
    x = jax.random.normal(xkey, (2, 3, 32, 32), jnp.float32)

    prep = prepare_params(params)          # one-time weight preprocessing (hoisted)
    fwd = jax.jit(lenet_forward)
    out = jax.block_until_ready(fwd(x, prep))
    assert out.shape == (2, 10)

    ref = net_reference(x, params)
    err = float(jnp.max(jnp.abs(out - ref)))
    assert jnp.allclose(out, ref, rtol=1e-2, atol=1e-2), err

    print("KERNEL_OK")
</pallas_src>

<mosaic_0001>
module attributes {stable_mosaic.version = 11 : i64} {
  func.func @_lenet_kernel(%arg0: i32, %arg1: memref<1x32x96xf32, #tpu.memory_space<vmem>>, %arg2: memref<25x84x168xf32, #tpu.memory_space<vmem>>, %arg3: memref<1x168xf32, #tpu.memory_space<vmem>>, %arg4: memref<25x60x160xf32, #tpu.memory_space<vmem>>, %arg5: memref<1x160xf32, #tpu.memory_space<vmem>>, %arg6: memref<14x27xf32, #tpu.memory_space<vmem>>, %arg7: memref<162x84xf32, #tpu.memory_space<vmem>>, %arg8: memref<5x9xf32, #tpu.memory_space<vmem>>, %arg9: memref<144x80xf32, #tpu.memory_space<vmem>>, %arg10: memref<5x80x120xf32, #tpu.memory_space<vmem>>, %arg11: memref<1x120xf32, #tpu.memory_space<vmem>>, %arg12: memref<120x84xf32, #tpu.memory_space<vmem>>, %arg13: memref<1x84xf32, #tpu.memory_space<vmem>>, %arg14: memref<84x128xf32, #tpu.memory_space<vmem>>, %arg15: memref<1x128xf32, #tpu.memory_space<vmem>>, %arg16: memref<1x1x128xf32, #tpu.memory_space<vmem>>) attributes {dimension_semantics = [#tpu.dimension_semantics<parallel>], iteration_bounds = array<i64: 2>, scalar_prefetch = 0 : i64, scratch_operands = 0 : i64, tpu.core_type = #tpu.core_type<tc>, window_params = [{transform_indices = @transform_0, window_bounds = array<i64: 1, 32, 96>}, {pipeline_mode = #tpu.pipeline_mode<synchronous>, transform_indices = @transform_1, window_bounds = array<i64: 25, 84, 168>}, {pipeline_mode = #tpu.pipeline_mode<synchronous>, transform_indices = @transform_2, window_bounds = array<i64: 1, 168>}, {pipeline_mode = #tpu.pipeline_mode<synchronous>, transform_indices = @transform_3, window_bounds = array<i64: 25, 60, 160>}, {pipeline_mode = #tpu.pipeline_mode<synchronous>, transform_indices = @transform_4, window_bounds = array<i64: 1, 160>}, {pipeline_mode = #tpu.pipeline_mode<synchronous>, transform_indices = @transform_5, window_bounds = array<i64: 14, 27>}, {pipeline_mode = #tpu.pipeline_mode<synchronous>, transform_indices = @transform_6, window_bounds = array<i64: 162, 84>}, {pipeline_mode = #tpu.pipeline_mode<synchronous>, transform_indices = @transform_7, window_bounds = array<i64: 5, 9>}, {pipeline_mode = #tpu.pipeline_mode<synchronous>, transform_indices = @transform_8, window_bounds = array<i64: 144, 80>}, {pipeline_mode = #tpu.pipeline_mode<synchronous>, transform_indices = @transform_9, window_bounds = array<i64: 5, 80, 120>}, {pipeline_mode = #tpu.pipeline_mode<synchronous>, transform_indices = @transform_10, window_bounds = array<i64: 1, 120>}, {pipeline_mode = #tpu.pipeline_mode<synchronous>, transform_indices = @transform_11, window_bounds = array<i64: 120, 84>}, {pipeline_mode = #tpu.pipeline_mode<synchronous>, transform_indices = @transform_12, window_bounds = array<i64: 1, 84>}, {pipeline_mode = #tpu.pipeline_mode<synchronous>, transform_indices = @transform_13, window_bounds = array<i64: 84, 128>}, {pipeline_mode = #tpu.pipeline_mode<synchronous>, transform_indices = @transform_14, window_bounds = array<i64: 1, 128>}, {transform_indices = @transform_15, window_bounds = array<i64: 1, 1, 128>}]} {
    %c0 = arith.constant 0 : index
    %c0_0 = arith.constant 0 : index
    %c0_1 = arith.constant 0 : index
    %0 = vector.load %arg1[%c0, %c0_0, %c0_1] : memref<1x32x96xf32, #tpu.memory_space<vmem>>, vector<1x32x96xf32>
    %1 = vector.shape_cast %0 : vector<1x32x96xf32> to vector<32x96xf32>
    %cst = arith.constant 0.000000e+00 : f32
    %2 = vector.broadcast %cst : f32 to vector<28x168xf32>
    %3 = vector.extract_strided_slice %1 {offsets = [0, 0], sizes = [28, 84], strides = [1, 1]} : vector<32x96xf32> to vector<28x84xf32>
    %c0_2 = arith.constant 0 : index
    %c0_3 = arith.constant 0 : index
    %c0_4 = arith.constant 0 : index
    %4 = vector.load %arg2[%c0_2, %c0_3, %c0_4] : memref<25x84x168xf32, #tpu.memory_space<vmem>>, vector<1x84x168xf32>
    %5 = vector.shape_cast %4 : vector<1x84x168xf32> to vector<84x168xf32>
    %cst_5 = arith.constant dense<0.000000e+00> : vector<28x168xf32>
    %6 = tpu.matmul %3, %5, %cst_5 {dimension_numbers = #tpu.dot_dimension_numbers<[1], [0], [0], [1], [0, 0, 1, 1], [], []>} : vector<28x84xf32>, vector<84x168xf32>, vector<28x168xf32> -> vector<28x168xf32>
    %7 = arith.addf %2, %6 : vector<28x168xf32>
    %8 = vector.extract_strided_slice %1 {offsets = [0, 3], sizes = [28, 84], strides = [1, 1]} : vector<32x96xf32> to vector<28x84xf32>
    %c1 = arith.constant 1 : index
    %c0_6 = arith.constant 0 : index
    %c0_7 = arith.constant 0 : index
    %9 = vector.load %arg2[%c1, %c0_6, %c0_7] : memref<25x84x168xf32, #tpu.memory_space<vmem>>, vector<1x84x168xf32>
    %10 = vector.shape_cast %9 : vector<1x84x168xf32> to vector<84x168xf32>
    %cst_8 = arith.constant dense<0.000000e+00> : vector<28x168xf32>
    %11 = tpu.matmul %8, %10, %cst_8 {dimension_numbers = #tpu.dot_dimension_numbers<[1], [0], [0], [1], [0, 0, 1, 1], [], []>} : vector<28x84xf32>, vector<84x168xf32>, vector<28x168xf32> -> vector<28x168xf32>
    %12 = arith.addf %7, %11 : vector<28x168xf32>
    %13 = vector.extract_strided_slice %1 {offsets = [0, 6], sizes = [28, 84], strides = [1, 1]} : vector<32x96xf32> to vector<28x84xf32>
    %c2 = arith.constant 2 : index
    %c0_9 = arith.constant 0 : index
    %c0_10 = arith.constant 0 : index
    %14 = vector.load %arg2[%c2, %c0_9, %c0_10] : memref<25x84x168xf32, #tpu.memory_space<vmem>>, vector<1x84x168xf32>
    %15 = vector.shape_cast %14 : vector<1x84x168xf32> to vector<84x168xf32>
    %cst_11 = arith.constant dense<0.000000e+00> : vector<28x168xf32>
    %16 = tpu.matmul %13, %15, %cst_11 {dimension_numbers = #tpu.dot_dimension_numbers<[1], [0], [0], [1], [0, 0, 1, 1], [], []>} : vector<28x84xf32>, vector<84x168xf32>, vector<28x168xf32> -> vector<28x168xf32>
    %17 = arith.addf %12, %16 : vector<28x168xf32>
    %18 = vector.extract_strided_slice %1 {offsets = [0, 9], sizes = [28, 84], strides = [1, 1]} : vector<32x96xf32> to vector<28x84xf32>
    %c3 = arith.constant 3 : index
    %c0_12 = arith.constant 0 : index
    %c0_13 = arith.constant 0 : index
    %19 = vector.load %arg2[%c3, %c0_12, %c0_13] : memref<25x84x168xf32, #tpu.memory_space<vmem>>, vector<1x84x168xf32>
    %20 = vector.shape_cast %19 : vector<1x84x168xf32> to vector<84x168xf32>
    %cst_14 = arith.constant dense<0.000000e+00> : vector<28x168xf32>
    %21 = tpu.matmul %18, %20, %cst_14 {dimension_numbers = #tpu.dot_dimension_numbers<[1], [0], [0], [1], [0, 0, 1, 1], [], []>} : vector<28x84xf32>, vector<84x168xf32>, vector<28x168xf32> -> vector<28x168xf32>
    %22 = arith.addf %17, %21 : vector<28x168xf32>
    %23 = vector.extract_strided_slice %1 {offsets = [0, 12], sizes = [28, 84], strides = [1, 1]} : vector<32x96xf32> to vector<28x84xf32>
    %c4 = arith.constant 4 : index
    %c0_15 = arith.constant 0 : index
    %c0_16 = arith.constant 0 : index
    %24 = vector.load %arg2[%c4, %c0_15, %c0_16] : memref<25x84x168xf32, #tpu.memory_space<vmem>>, vector<1x84x168xf32>
    %25 = vector.shape_cast %24 : vector<1x84x168xf32> to vector<84x168xf32>
    %cst_17 = arith.constant dense<0.000000e+00> : vector<28x168xf32>
    %26 = tpu.matmul %23, %25, %cst_17 {dimension_numbers = #tpu.dot_dimension_numbers<[1], [0], [0], [1], [0, 0, 1, 1], [], []>} : vector<28x84xf32>, vector<84x168xf32>, vector<28x168xf32> -> vector<28x168xf32>
    %27 = arith.addf %22, %26 : vector<28x168xf32>
    %28 = vector.extract_strided_slice %1 {offsets = [1, 0], sizes = [28, 84], strides = [1, 1]} : vector<32x96xf32> to vector<28x84xf32>
    %c5 = arith.constant 5 : index
    %c0_18 = arith.constant 0 : index
    %c0_19 = arith.constant 0 : index
    %29 = vector.load %arg2[%c5, %c0_18, %c0_19] : memref<25x84x168xf32, #tpu.memory_space<vmem>>, vector<1x84x168xf32>
    %30 = vector.shape_cast %29 : vector<1x84x168xf32> to vector<84x168xf32>
    %cst_20 = arith.constant dense<0.000000e+00> : vector<28x168xf32>
    %31 = tpu.matmul %28, %30, %cst_20 {dimension_numbers = #tpu.dot_dimension_numbers<[1], [0], [0], [1], [0, 0, 1, 1], [], []>} : vector<28x84xf32>, vector<84x168xf32>, vector<28x168xf32> -> vector<28x168xf32>
    %32 = arith.addf %27, %31 : vector<28x168xf32>
    %33 = vector.extract_strided_slice %1 {offsets = [1, 3], sizes = [28, 84], strides = [1, 1]} : vector<32x96xf32> to vector<28x84xf32>
    %c6 = arith.constant 6 : index
    %c0_21 = arith.constant 0 : index
    %c0_22 = arith.constant 0 : index
    %34 = vector.load %arg2[%c6, %c0_21, %c0_22] : memref<25x84x168xf32, #tpu.memory_space<vmem>>, vector<1x84x168xf32>
    %35 = vector.shape_cast %34 : vector<1x84x168xf32> to vector<84x168xf32>
    %cst_23 = arith.constant dense<0.000000e+00> : vector<28x168xf32>
    %36 = tpu.matmul %33, %35, %cst_23 {dimension_numbers = #tpu.dot_dimension_numbers<[1], [0], [0], [1], [0, 0, 1, 1], [], []>} : vector<28x84xf32>, vector<84x168xf32>, vector<28x168xf32> -> vector<28x168xf32>
    %37 = arith.addf %32, %36 : vector<28x168xf32>
    %38 = vector.extract_strided_slice %1 {offsets = [1, 6], sizes = [28, 84], strides = [1, 1]} : vector<32x96xf32> to vector<28x84xf32>
    %c7 = arith.constant 7 : index
    %c0_24 = arith.constant 0 : index
    %c0_25 = arith.constant 0 : index
    %39 = vector.load %arg2[%c7, %c0_24, %c0_25] : memref<25x84x168xf32, #tpu.memory_space<vmem>>, vector<1x84x168xf32>
    %40 = vector.shape_cast %39 : vector<1x84x168xf32> to vector<84x168xf32>
    %cst_26 = arith.constant dense<0.000000e+00> : vector<28x168xf32>
    %41 = tpu.matmul %38, %40, %cst_26 {dimension_numbers = #tpu.dot_dimension_numbers<[1], [0], [0], [1], [0, 0, 1, 1], [], []>} : vector<28x84xf32>, vector<84x168xf32>, vector<28x168xf32> -> vector<28x168xf32>
    %42 = arith.addf %37, %41 : vector<28x168xf32>
    %43 = vector.extract_strided_slice %1 {offsets = [1, 9], sizes = [28, 84], strides = [1, 1]} : vector<32x96xf32> to vector<28x84xf32>
    %c8 = arith.constant 8 : index
    %c0_27 = arith.constant 0 : index
    %c0_28 = arith.constant 0 : index
    %44 = vector.load %arg2[%c8, %c0_27, %c0_28] : memref<25x84x168xf32, #tpu.memory_space<vmem>>, vector<1x84x168xf32>
    %45 = vector.shape_cast %44 : vector<1x84x168xf32> to vector<84x168xf32>
    %cst_29 = arith.constant dense<0.000000e+00> : vector<28x168xf32>
    %46 = tpu.matmul %43, %45, %cst_29 {dimension_numbers = #tpu.dot_dimension_numbers<[1], [0], [0], [1], [0, 0, 1, 1], [], []>} : vector<28x84xf32>, vector<84x168xf32>, vector<28x168xf32> -> vector<28x168xf32>
    %47 = arith.addf %42, %46 : vector<28x168xf32>
    %48 = vector.extract_strided_slice %1 {offsets = [1, 12], sizes = [28, 84], strides = [1, 1]} : vector<32x96xf32> to vector<28x84xf32>
    %c9 = arith.constant 9 : index
    %c0_30 = arith.constant 0 : index
    %c0_31 = arith.constant 0 : index
    %49 = vector.load %arg2[%c9, %c0_30, %c0_31] : memref<25x84x168xf32, #tpu.memory_space<vmem>>, vector<1x84x168xf32>
    %50 = vector.shape_cast %49 : vector<1x84x168xf32> to vector<84x168xf32>
    %cst_32 = arith.constant dense<0.000000e+00> : vector<28x168xf32>
    %51 = tpu.matmul %48, %50, %cst_32 {dimension_numbers = #tpu.dot_dimension_numbers<[1], [0], [0], [1], [0, 0, 1, 1], [], []>} : vector<28x84xf32>, vector<84x168xf32>, vector<28x168xf32> -> vector<28x168xf32>
    %52 = arith.addf %47, %51 : vector<28x168xf32>
    %53 = vector.extract_strided_slice %1 {offsets = [2, 0], sizes = [28, 84], strides = [1, 1]} : vector<32x96xf32> to vector<28x84xf32>
    %c10 = arith.constant 10 : index
    %c0_33 = arith.constant 0 : index
    %c0_34 = arith.constant 0 : index
    %54 = vector.load %arg2[%c10, %c0_33, %c0_34] : memref<25x84x168xf32, #tpu.memory_space<vmem>>, vector<1x84x168xf32>
    %55 = vector.shape_cast %54 : vector<1x84x168xf32> to vector<84x168xf32>
    %cst_35 = arith.constant dense<0.000000e+00> : vector<28x168xf32>
    %56 = tpu.matmul %53, %55, %cst_35 {dimension_numbers = #tpu.dot_dimension_numbers<[1], [0], [0], [1], [0, 0, 1, 1], [], []>} : vector<28x84xf32>, vector<84x168xf32>, vector<28x168xf32> -> vector<28x168xf32>
    %57 = arith.addf %52, %56 : vector<28x168xf32>
    %58 = vector.extract_strided_slice %1 {offsets = [2, 3], sizes = [28, 84], strides = [1, 1]} : vector<32x96xf32> to vector<28x84xf32>
    %c11 = arith.constant 11 : index
    %c0_36 = arith.constant 0 : index
    %c0_37 = arith.constant 0 : index
    %59 = vector.load %arg2[%c11, %c0_36, %c0_37] : memref<25x84x168xf32, #tpu.memory_space<vmem>>, vector<1x84x168xf32>
    %60 = vector.shape_cast %59 : vector<1x84x168xf32> to vector<84x168xf32>
    %cst_38 = arith.constant dense<0.000000e+00> : vector<28x168xf32>
    %61 = tpu.matmul %58, %60, %cst_38 {dimension_numbers = #tpu.dot_dimension_numbers<[1], [0], [0], [1], [0, 0, 1, 1], [], []>} : vector<28x84xf32>, vector<84x168xf32>, vector<28x168xf32> -> vector<28x168xf32>
    %62 = arith.addf %57, %61 : vector<28x168xf32>
    %63 = vector.extract_strided_slice %1 {offsets = [2, 6], sizes = [28, 84], strides = [1, 1]} : vector<32x96xf32> to vector<28x84xf32>
    %c12 = arith.constant 12 : index
    %c0_39 = arith.constant 0 : index
    %c0_40 = arith.constant 0 : index
    %64 = vector.load %arg2[%c12, %c0_39, %c0_40] : memref<25x84x168xf32, #tpu.memory_space<vmem>>, vector<1x84x168xf32>
    %65 = vector.shape_cast %64 : vector<1x84x168xf32> to vector<84x168xf32>
    %cst_41 = arith.constant dense<0.000000e+00> : vector<28x168xf32>
    %66 = tpu.matmul %63, %65, %cst_41 {dimension_numbers = #tpu.dot_dimension_numbers<[1], [0], [0], [1], [0, 0, 1, 1], [], []>} : vector<28x84xf32>, vector<84x168xf32>, vector<28x168xf32> -> vector<28x168xf32>
    %67 = arith.addf %62, %66 : vector<28x168xf32>
    %68 = vector.extract_strided_slice %1 {offsets = [2, 9], sizes = [28, 84], strides = [1, 1]} : vector<32x96xf32> to vector<28x84xf32>
    %c13 = arith.constant 13 : index
    %c0_42 = arith.constant 0 : index
    %c0_43 = arith.constant 0 : index
    %69 = vector.load %arg2[%c13, %c0_42, %c0_43] : memref<25x84x168xf32, #tpu.memory_space<vmem>>, vector<1x84x168xf32>
    %70 = vector.shape_cast %69 : vector<1x84x168xf32> to vector<84x168xf32>
    %cst_44 = arith.constant dense<0.000000e+00> : vector<28x168xf32>
    %71 = tpu.matmul %68, %70, %cst_44 {dimension_numbers = #tpu.dot_dimension_numbers<[1], [0], [0], [1], [0, 0, 1, 1], [], []>} : vector<28x84xf32>, vector<84x168xf32>, vector<28x168xf32> -> vector<28x168xf32>
    %72 = arith.addf %67, %71 : vector<28x168xf32>
    %73 = vector.extract_strided_slice %1 {offsets = [2, 12], sizes = [28, 84], strides = [1, 1]} : vector<32x96xf32> to vector<28x84xf32>
    %c14 = arith.constant 14 : index
    %c0_45 = arith.constant 0 : index
    %c0_46 = arith.constant 0 : index
    %74 = vector.load %arg2[%c14, %c0_45, %c0_46] : memref<25x84x168xf32, #tpu.memory_space<vmem>>, vector<1x84x168xf32>
    %75 = vector.shape_cast %74 : vector<1x84x168xf32> to vector<84x168xf32>
    %cst_47 = arith.constant dense<0.000000e+00> : vector<28x168xf32>
    %76 = tpu.matmul %73, %75, %cst_47 {dimension_numbers = #tpu.dot_dimension_numbers<[1], [0], [0], [1], [0, 0, 1, 1], [], []>} : vector<28x84xf32>, vector<84x168xf32>, vector<28x168xf32> -> vector<28x168xf32>
    %77 = arith.addf %72, %76 : vector<28x168xf32>
    %78 = vector.extract_strided_slice %1 {offsets = [3, 0], sizes = [28, 84], strides = [1, 1]} : vector<32x96xf32> to vector<28x84xf32>
    %c15 = arith.constant 15 : index
    %c0_48 = arith.constant 0 : index
    %c0_49 = arith.constant 0 : index
    %79 = vector.load %arg2[%c15, %c0_48, %c0_49] : memref<25x84x168xf32, #tpu.memory_space<vmem>>, vector<1x84x168xf32>
    %80 = vector.shape_cast %79 : vector<1x84x168xf32> to vector<84x168xf32>
    %cst_50 = arith.constant dense<0.000000e+00> : vector<28x168xf32>
    %81 = tpu.matmul %78, %80, %cst_50 {dimension_numbers = #tpu.dot_dimension_numbers<[1], [0], [0], [1], [0, 0, 1, 1], [], []>} : vector<28x84xf32>, vector<84x168xf32>, vector<28x168xf32> -> vector<28x168xf32>
    %82 = arith.addf %77, %81 : vector<28x168xf32>
    %83 = vector.extract_strided_slice %1 {offsets = [3, 3], sizes = [28, 84], strides = [1, 1]} : vector<32x96xf32> to vector<28x84xf32>
    %c16 = arith.constant 16 : index
    %c0_51 = arith.constant 0 : index
    %c0_52 = arith.constant 0 : index
    %84 = vector.load %arg2[%c16, %c0_51, %c0_52] : memref<25x84x168xf32, #tpu.memory_space<vmem>>, vector<1x84x168xf32>
    %85 = vector.shape_cast %84 : vector<1x84x168xf32> to vector<84x168xf32>
    %cst_53 = arith.constant dense<0.000000e+00> : vector<28x168xf32>
    %86 = tpu.matmul %83, %85, %cst_53 {dimension_numbers = #tpu.dot_dimension_numbers<[1], [0], [0], [1], [0, 0, 1, 1], [], []>} : vector<28x84xf32>, vector<84x168xf32>, vector<28x168xf32> -> vector<28x168xf32>
    %87 = arith.addf %82, %86 : vector<28x168xf32>
    %88 = vector.extract_strided_slice %1 {offsets = [3, 6], sizes = [28, 84], strides = [1, 1]} : vector<32x96xf32> to vector<28x84xf32>
    %c17 = arith.constant 17 : index
    %c0_54 = arith.constant 0 : index
    %c0_55 = arith.constant 0 : index
    %89 = vector.load %arg2[%c17, %c0_54, %c0_55] : memref<25x84x168xf32, #tpu.memory_space<vmem>>, vector<1x84x168xf32>
    %90 = vector.shape_cast %89 : vector<1x84x168xf32> to vector<84x168xf32>
    %cst_56 = arith.constant dense<0.000000e+00> : vector<28x168xf32>
    %91 = tpu.matmul %88, %90, %cst_56 {dimension_numbers = #tpu.dot_dimension_numbers<[1], [0], [0], [1], [0, 0, 1, 1], [], []>} : vector<28x84xf32>, vector<84x168xf32>, vector<28x168xf32> -> vector<28x168xf32>
    %92 = arith.addf %87, %91 : vector<28x168xf32>
    %93 = vector.extract_strided_slice %1 {offsets = [3, 9], sizes = [28, 84], strides = [1, 1]} : vector<32x96xf32> to vector<28x84xf32>
    %c18 = arith.constant 18 : index
    %c0_57 = arith.constant 0 : index
    %c0_58 = arith.constant 0 : index
    %94 = vector.load %arg2[%c18, %c0_57, %c0_58] : memref<25x84x168xf32, #tpu.memory_space<vmem>>, vector<1x84x168xf32>
    %95 = vector.shape_cast %94 : vector<1x84x168xf32> to vector<84x168xf32>
    %cst_59 = arith.constant dense<0.000000e+00> : vector<28x168xf32>
    %96 = tpu.matmul %93, %95, %cst_59 {dimension_numbers = #tpu.dot_dimension_numbers<[1], [0], [0], [1], [0, 0, 1, 1], [], []>} : vector<28x84xf32>, vector<84x168xf32>, vector<28x168xf32> -> vector<28x168xf32>
    %97 = arith.addf %92, %96 : vector<28x168xf32>
    %98 = vector.extract_strided_slice %1 {offsets = [3, 12], sizes = [28, 84], strides = [1, 1]} : vector<32x96xf32> to vector<28x84xf32>
    %c19 = arith.constant 19 : index
    %c0_60 = arith.constant 0 : index
    %c0_61 = arith.constant 0 : index
    %99 = vector.load %arg2[%c19, %c0_60, %c0_61] : memref<25x84x168xf32, #tpu.memory_space<vmem>>, vector<1x84x168xf32>
    %100 = vector.shape_cast %99 : vector<1x84x168xf32> to vector<84x168xf32>
    %cst_62 = arith.constant dense<0.000000e+00> : vector<28x168xf32>
    %101 = tpu.matmul %98, %100, %cst_62 {dimension_numbers = #tpu.dot_dimension_numbers<[1], [0], [0], [1], [0, 0, 1, 1], [], []>} : vector<28x84xf32>, vector<84x168xf32>, vector<28x168xf32> -> vector<28x168xf32>
    %102 = arith.addf %97, %101 : vector<28x168xf32>
    %103 = vector.extract_strided_slice %1 {offsets = [4, 0], sizes = [28, 84], strides = [1, 1]} : vector<32x96xf32> to vector<28x84xf32>
    %c20 = arith.constant 20 : index
    %c0_63 = arith.constant 0 : index
    %c0_64 = arith.constant 0 : index
    %104 = vector.load %arg2[%c20, %c0_63, %c0_64] : memref<25x84x168xf32, #tpu.memory_space<vmem>>, vector<1x84x168xf32>
    %105 = vector.shape_cast %104 : vector<1x84x168xf32> to vector<84x168xf32>
    %cst_65 = arith.constant dense<0.000000e+00> : vector<28x168xf32>
    %106 = tpu.matmul %103, %105, %cst_65 {dimension_numbers = #tpu.dot_dimension_numbers<[1], [0], [0], [1], [0, 0, 1, 1], [], []>} : vector<28x84xf32>, vector<84x168xf32>, vector<28x168xf32> -> vector<28x168xf32>
    %107 = arith.addf %102, %106 : vector<28x168xf32>
    %108 = vector.extract_strided_slice %1 {offsets = [4, 3], sizes = [28, 84], strides = [1, 1]} : vector<32x96xf32> to vector<28x84xf32>
    %c21 = arith.constant 21 : index
    %c0_66 = arith.constant 0 : index
    %c0_67 = arith.constant 0 : index
    %109 = vector.load %arg2[%c21, %c0_66, %c0_67] : memref<25x84x168xf32, #tpu.memory_space<vmem>>, vector<1x84x168xf32>
    %110 = vector.shape_cast %109 : vector<1x84x168xf32> to vector<84x168xf32>
    %cst_68 = arith.constant dense<0.000000e+00> : vector<28x168xf32>
    %111 = tpu.matmul %108, %110, %cst_68 {dimension_numbers = #tpu.dot_dimension_numbers<[1], [0], [0], [1], [0, 0, 1, 1], [], []>} : vector<28x84xf32>, vector<84x168xf32>, vector<28x168xf32> -> vector<28x168xf32>
    %112 = arith.addf %107, %111 : vector<28x168xf32>
    %113 = vector.extract_strided_slice %1 {offsets = [4, 6], sizes = [28, 84], strides = [1, 1]} : vector<32x96xf32> to vector<28x84xf32>
    %c22 = arith.constant 22 : index
    %c0_69 = arith.constant 0 : index
    %c0_70 = arith.constant 0 : index
    %114 = vector.load %arg2[%c22, %c0_69, %c0_70] : memref<25x84x168xf32, #tpu.memory_space<vmem>>, vector<1x84x168xf32>
    %115 = vector.shape_cast %114 : vector<1x84x168xf32> to vector<84x168xf32>
    %cst_71 = arith.constant dense<0.000000e+00> : vector<28x168xf32>
    %116 = tpu.matmul %113, %115, %cst_71 {dimension_numbers = #tpu.dot_dimension_numbers<[1], [0], [0], [1], [0, 0, 1, 1], [], []>} : vector<28x84xf32>, vector<84x168xf32>, vector<28x168xf32> -> vector<28x168xf32>
    %117 = arith.addf %112, %116 : vector<28x168xf32>
    %118 = vector.extract_strided_slice %1 {offsets = [4, 9], sizes = [28, 84], strides = [1, 1]} : vector<32x96xf32> to vector<28x84xf32>
    %c23 = arith.constant 23 : index
    %c0_72 = arith.constant 0 : index
    %c0_73 = arith.constant 0 : index
    %119 = vector.load %arg2[%c23, %c0_72, %c0_73] : memref<25x84x168xf32, #tpu.memory_space<vmem>>, vector<1x84x168xf32>
    %120 = vector.shape_cast %119 : vector<1x84x168xf32> to vector<84x168xf32>
    %cst_74 = arith.constant dense<0.000000e+00> : vector<28x168xf32>
    %121 = tpu.matmul %118, %120, %cst_74 {dimension_numbers = #tpu.dot_dimension_numbers<[1], [0], [0], [1], [0, 0, 1, 1], [], []>} : vector<28x84xf32>, vector<84x168xf32>, vector<28x168xf32> -> vector<28x168xf32>
    %122 = arith.addf %117, %121 : vector<28x168xf32>
    %123 = vector.extract_strided_slice %1 {offsets = [4, 12], sizes = [28, 84], strides = [1, 1]} : vector<32x96xf32> to vector<28x84xf32>
    %c24 = arith.constant 24 : index
    %c0_75 = arith.constant 0 : index
    %c0_76 = arith.constant 0 : index
    %124 = vector.load %arg2[%c24, %c0_75, %c0_76] : memref<25x84x168xf32, #tpu.memory_space<vmem>>, vector<1x84x168xf32>
    %125 = vector.shape_cast %124 : vector<1x84x168xf32> to vector<84x168xf32>
    %cst_77 = arith.constant dense<0.000000e+00> : vector<28x168xf32>
    %126 = tpu.matmul %123, %125, %cst_77 {dimension_numbers = #tpu.dot_dimension_numbers<[1], [0], [0], [1], [0, 0, 1, 1], [], []>} : vector<28x84xf32>, vector<84x168xf32>, vector<28x168xf32> -> vector<28x168xf32>
    %127 = arith.addf %122, %126 : vector<28x168xf32>
    %c0_78 = arith.constant 0 : index
    %c0_79 = arith.constant 0 : index
    %128 = vector.load %arg3[%c0_78, %c0_79] : memref<1x168xf32, #tpu.memory_space<vmem>>, vector<1x168xf32>
    %129 = vector.broadcast %128 : vector<1x168xf32> to vector<28x168xf32>
    %130 = arith.addf %127, %129 : vector<28x168xf32>
    %cst_80 = arith.constant 0.000000e+00 : f32
    %131 = vector.broadcast %cst_80 : f32 to vector<28x168xf32>
    %132 = arith.maximumf %130, %131 : vector<28x168xf32>
    %133 = vector.extract_strided_slice %132 {offsets = [0, 0], sizes = [27, 168], strides = [1, 1]} : vector<28x168xf32> to vector<27x168xf32>
    %134 = vector.extract_strided_slice %132 {offsets = [1, 0], sizes = [27, 168], strides = [1, 1]} : vector<28x168xf32> to vector<27x168xf32>
    %135 = arith.maximumf %133, %134 : vector<27x168xf32>
    %c0_81 = arith.constant 0 : index
    %c0_82 = arith.constant 0 : index
    %136 = vector.load %arg6[%c0_81, %c0_82] : memref<14x27xf32, #tpu.memory_space<vmem>>, vector<14x27xf32>
    %cst_83 = arith.constant dense<0.000000e+00> : vector<14x168xf32>
    %137 = tpu.matmul %136, %135, %cst_83 {dimension_numbers = #tpu.dot_dimension_numbers<[1], [0], [0], [1], [0, 0, 1, 1], [], []>} : vector<14x27xf32>, vector<27x168xf32>, vector<14x168xf32> -> vector<14x168xf32>
    %138 = vector.extract_strided_slice %137 {offsets = [0, 0], sizes = [14, 162], strides = [1, 1]} : vector<14x168xf32> to vector<14x162xf32>
    %139 = vector.extract_strided_slice %137 {offsets = [0, 6], sizes = [14, 162], strides = [1, 1]} : vector<14x168xf32> to vector<14x162xf32>
    %140 = arith.maximumf %138, %139 : vector<14x162xf32>
    %c0_84 = arith.constant 0 : index
    %c0_85 = arith.constant 0 : index
    %141 = vector.load %arg7[%c0_84, %c0_85] : memref<162x84xf32, #tpu.memory_space<vmem>>, vector<162x84xf32>
    %cst_86 = arith.constant dense<0.000000e+00> : vector<14x84xf32>
    %142 = tpu.matmul %140, %141, %cst_86 {dimension_numbers = #tpu.dot_dimension_numbers<[1], [0], [0], [1], [0, 0, 1, 1], [], []>} : vector<14x162xf32>, vector<162x84xf32>, vector<14x84xf32> -> vector<14x84xf32>
    %cst_87 = arith.constant 0.000000e+00 : f32
    %143 = vector.broadcast %cst_87 : f32 to vector<10x160xf32>
    %144 = vector.extract_strided_slice %142 {offsets = [0, 0], sizes = [10, 60], strides = [1, 1]} : vector<14x84xf32> to vector<10x60xf32>
    %c0_88 = arith.constant 0 : index
    %c0_89 = arith.constant 0 : index
    %c0_90 = arith.constant 0 : index
    %145 = vector.load %arg4[%c0_88, %c0_89, %c0_90] : memref<25x60x160xf32, #tpu.memory_space<vmem>>, vector<1x60x160xf32>
    %146 = vector.shape_cast %145 : vector<1x60x160xf32> to vector<60x160xf32>
    %cst_91 = arith.constant dense<0.000000e+00> : vector<10x160xf32>
    %147 = tpu.matmul %144, %146, %cst_91 {dimension_numbers = #tpu.dot_dimension_numbers<[1], [0], [0], [1], [0, 0, 1, 1], [], []>} : vector<10x60xf32>, vector<60x160xf32>, vector<10x160xf32> -> vector<10x160xf32>
    %148 = arith.addf %143, %147 : vector<10x160xf32>
    %149 = vector.extract_strided_slice %142 {offsets = [0, 6], sizes = [10, 60], strides = [1, 1]} : vector<14x84xf32> to vector<10x60xf32>
    %c1_92 = arith.constant 1 : index
    %c0_93 = arith.constant 0 : index
    %c0_94 = arith.constant 0 : index
    %150 = vector.load %arg4[%c1_92, %c0_93, %c0_94] : memref<25x60x160xf32, #tpu.memory_space<vmem>>, vector<1x60x160xf32>
    %151 = vector.shape_cast %150 : vector<1x60x160xf32> to vector<60x160xf32>
    %cst_95 = arith.constant dense<0.000000e+00> : vector<10x160xf32>
    %152 = tpu.matmul %149, %151, %cst_95 {dimension_numbers = #tpu.dot_dimension_numbers<[1], [0], [0], [1], [0, 0, 1, 1], [], []>} : vector<10x60xf32>, vector<60x160xf32>, vector<10x160xf32> -> vector<10x160xf32>
    %153 = arith.addf %148, %152 : vector<10x160xf32>
    %154 = vector.extract_strided_slice %142 {offsets = [0, 12], sizes = [10, 60], strides = [1, 1]} : vector<14x84xf32> to vector<10x60xf32>
    %c2_96 = arith.constant 2 : index
    %c0_97 = arith.constant 0 : index
    %c0_98 = arith.constant 0 : index
    %155 = vector.load %arg4[%c2_96, %c0_97, %c0_98] : memref<25x60x160xf32, #tpu.memory_space<vmem>>, vector<1x60x160xf32>
    %156 = vector.shape_cast %155 : vector<1x60x160xf32> to vector<60x160xf32>
    %cst_99 = arith.constant dense<0.000000e+00> : vector<10x160xf32>
    %157 = tpu.matmul %154, %156, %cst_99 {dimension_numbers = #tpu.dot_dimension_numbers<[1], [0], [0], [1], [0, 0, 1, 1], [], []>} : vector<10x60xf32>, vector<60x160xf32>, vector<10x160xf32> -> vector<10x160xf32>
    %158 = arith.addf %153, %157 : vector<10x160xf32>
    %159 = vector.extract_strided_slice %142 {offsets = [0, 18], sizes = [10, 60], strides = [1, 1]} : vector<14x84xf32> to vector<10x60xf32>
    %c3_100 = arith.constant 3 : index
    %c0_101 = arith.constant 0 : index
    %c0_102 = arith.constant 0 : index
    %160 = vector.load %arg4[%c3_100, %c0_101, %c0_102] : memref<25x60x160xf32, #tpu.memory_space<vmem>>, vector<1x60x160xf32>
    %161 = vector.shape_cast %160 : vector<1x60x160xf32> to vector<60x160xf32>
    %cst_103 = arith.constant dense<0.000000e+00> : vector<10x160xf32>
    %162 = tpu.matmul %159, %161, %cst_103 {dimension_numbers = #tpu.dot_dimension_numbers<[1], [0], [0], [1], [0, 0, 1, 1], [], []>} : vector<10x60xf32>, vector<60x160xf32>, vector<10x160xf32> -> vector<10x160xf32>
    %163 = arith.addf %158, %162 : vector<10x160xf32>
    %164 = vector.extract_strided_slice %142 {offsets = [0, 24], sizes = [10, 60], strides = [1, 1]} : vector<14x84xf32> to vector<10x60xf32>
    %c4_104 = arith.constant 4 : index
    %c0_105 = arith.constant 0 : index
    %c0_106 = arith.constant 0 : index
    %165 = vector.load %arg4[%c4_104, %c0_105, %c0_106] : memref<25x60x160xf32, #tpu.memory_space<vmem>>, vector<1x60x160xf32>
    %166 = vector.shape_cast %165 : vector<1x60x160xf32> to vector<60x160xf32>
    %cst_107 = arith.constant dense<0.000000e+00> : vector<10x160xf32>
    %167 = tpu.matmul %164, %166, %cst_107 {dimension_numbers = #tpu.dot_dimension_numbers<[1], [0], [0], [1], [0, 0, 1, 1], [], []>} : vector<10x60xf32>, vector<60x160xf32>, vector<10x160xf32> -> vector<10x160xf32>
    %168 = arith.addf %163, %167 : vector<10x160xf32>
    %169 = vector.extract_strided_slice %142 {offsets = [1, 0], sizes = [10, 60], strides = [1, 1]} : vector<14x84xf32> to vector<10x60xf32>
    %c5_108 = arith.constant 5 : index
    %c0_109 = arith.constant 0 : index
    %c0_110 = arith.constant 0 : index
    %170 = vector.load %arg4[%c5_108, %c0_109, %c0_110] : memref<25x60x160xf32, #tpu.memory_space<vmem>>, vector<1x60x160xf32>
    %171 = vector.shape_cast %170 : vector<1x60x160xf32> to vector<60x160xf32>
    %cst_111 = arith.constant dense<0.000000e+00> : vector<10x160xf32>
    %172 = tpu.matmul %169, %171, %cst_111 {dimension_numbers = #tpu.dot_dimension_numbers<[1], [0], [0], [1], [0, 0, 1, 1], [], []>} : vector<10x60xf32>, vector<60x160xf32>, vector<10x160xf32> -> vector<10x160xf32>
    %173 = arith.addf %168, %172 : vector<10x160xf32>
    %174 = vector.extract_strided_slice %142 {offsets = [1, 6], sizes = [10, 60], strides = [1, 1]} : vector<14x84xf32> to vector<10x60xf32>
    %c6_112 = arith.constant 6 : index
    %c0_113 = arith.constant 0 : index
    %c0_114 = arith.constant 0 : index
    %175 = vector.load %arg4[%c6_112, %c0_113, %c0_114] : memref<25x60x160xf32, #tpu.memory_space<vmem>>, vector<1x60x160xf32>
    %176 = vector.shape_cast %175 : vector<1x60x160xf32> to vector<60x160xf32>
    %cst_115 = arith.constant dense<0.000000e+00> : vector<10x160xf32>
    %177 = tpu.matmul %174, %176, %cst_115 {dimension_numbers = #tpu.dot_dimension_numbers<[1], [0], [0], [1], [0, 0, 1, 1], [], []>} : vector<10x60xf32>, vector<60x160xf32>, vector<10x160xf32> -> vector<10x160xf32>
    %178 = arith.addf %173, %177 : vector<10x160xf32>
    %179 = vector.extract_strided_slice %142 {offsets = [1, 12], sizes = [10, 60], strides = [1, 1]} : vector<14x84xf32> to vector<10x60xf32>
    %c7_116 = arith.constant 7 : index
    %c0_117 = arith.constant 0 : index
    %c0_118 = arith.constant 0 : index
    %180 = vector.load %arg4[%c7_116, %c0_117, %c0_118] : memref<25x60x160xf32, #tpu.memory_space<vmem>>, vector<1x60x160xf32>
    %181 = vector.shape_cast %180 : vector<1x60x160xf32> to vector<60x160xf32>
    %cst_119 = arith.constant dense<0.000000e+00> : vector<10x160xf32>
    %182 = tpu.matmul %179, %181, %cst_119 {dimension_numbers = #tpu.dot_dimension_numbers<[1], [0], [0], [1], [0, 0, 1, 1], [], []>} : vector<10x60xf32>, vector<60x160xf32>, vector<10x160xf32> -> vector<10x160xf32>
    %183 = arith.addf %178, %182 : vector<10x160xf32>
    %184 = vector.extract_strided_slice %142 {offsets = [1, 18], sizes = [10, 60], strides = [1, 1]} : vector<14x84xf32> to vector<10x60xf32>
    %c8_120 = arith.constant 8 : index
    %c0_121 = arith.constant 0 : index
    %c0_122 = arith.constant 0 : index
    %185 = vector.load %arg4[%c8_120, %c0_121, %c0_122] : memref<25x60x160xf32, #tpu.memory_space<vmem>>, vector<1x60x160xf32>
    %186 = vector.shape_cast %185 : vector<1x60x160xf32> to vector<60x160xf32>
    %cst_123 = arith.constant dense<0.000000e+00> : vector<10x160xf32>
    %187 = tpu.matmul %184, %186, %cst_123 {dimension_numbers = #tpu.dot_dimension_numbers<[1], [0], [0], [1], [0, 0, 1, 1], [], []>} : vector<10x60xf32>, vector<60x160xf32>, vector<10x160xf32> -> vector<10x160xf32>
    %188 = arith.addf %183, %187 : vector<10x160xf32>
    %189 = vector.extract_strided_slice %142 {offsets = [1, 24], sizes = [10, 60], strides = [1, 1]} : vector<14x84xf32> to vector<10x60xf32>
    %c9_124 = arith.constant 9 : index
    %c0_125 = arith.constant 0 : index
    %c0_126 = arith.constant 0 : index
    %190 = vector.load %arg4[%c9_124, %c0_125, %c0_126] : memref<25x60x160xf32, #tpu.memory_space<vmem>>, vector<1x60x160xf32>
    %191 = vector.shape_cast %190 : vector<1x60x160xf32> to vector<60x160xf32>
    %cst_127 = arith.constant dense<0.000000e+00> : vector<10x160xf32>
    %192 = tpu.matmul %189, %191, %cst_127 {dimension_numbers = #tpu.dot_dimension_numbers<[1], [0], [0], [1], [0, 0, 1, 1], [], []>} : vector<10x60xf32>, vector<60x160xf32>, vector<10x160xf32> -> vector<10x160xf32>
    %193 = arith.addf %188, %192 : vector<10x160xf32>
    %194 = vector.extract_strided_slice %142 {offsets = [2, 0], sizes = [10, 60], strides = [1, 1]} : vector<14x84xf32> to vector<10x60xf32>
    %c10_128 = arith.constant 10 : index
    %c0_129 = arith.constant 0 : index
    %c0_130 = arith.constant 0 : index
    %195 = vector.load %arg4[%c10_128, %c0_129, %c0_130] : memref<25x60x160xf32, #tpu.memory_space<vmem>>, vector<1x60x160xf32>
    %196 = vector.shape_cast %195 : vector<1x60x160xf32> to vector<60x160xf32>
    %cst_131 = arith.constant dense<0.000000e+00> : vector<10x160xf32>
    %197 = tpu.matmul %194, %196, %cst_131 {dimension_numbers = #tpu.dot_dimension_numbers<[1], [0], [0], [1], [0, 0, 1, 1], [], []>} : vector<10x60xf32>, vector<60x160xf32>, vector<10x160xf32> -> vector<10x160xf32>
    %198 = arith.addf %193, %197 : vector<10x160xf32>
    %199 = vector.extract_strided_slice %142 {offsets = [2, 6], sizes = [10, 60], strides = [1, 1]} : vector<14x84xf32> to vector<10x60xf32>
    %c11_132 = arith.constant 11 : index
    %c0_133 = arith.constant 0 : index
    %c0_134 = arith.constant 0 : index
    %200 = vector.load %arg4[%c11_132, %c0_133, %c0_134] : memref<25x60x160xf32, #tpu.memory_space<vmem>>, vector<1x60x160xf32>
    %201 = vector.shape_cast %200 : vector<1x60x160xf32> to vector<60x160xf32>
    %cst_135 = arith.constant dense<0.000000e+00> : vector<10x160xf32>
    %202 = tpu.matmul %199, %201, %cst_135 {dimension_numbers = #tpu.dot_dimension_numbers<[1], [0], [0], [1], [0, 0, 1, 1], [], []>} : vector<10x60xf32>, vector<60x160xf32>, vector<10x160xf32> -> vector<10x160xf32>
    %203 = arith.addf %198, %202 : vector<10x160xf32>
    %204 = vector.extract_strided_slice %142 {offsets = [2, 12], sizes = [10, 60], strides = [1, 1]} : vector<14x84xf32> to vector<10x60xf32>
    %c12_136 = arith.constant 12 : index
    %c0_137 = arith.constant 0 : index
    %c0_138 = arith.constant 0 : index
    %205 = vector.load %arg4[%c12_136, %c0_137, %c0_138] : memref<25x60x160xf32, #tpu.memory_space<vmem>>, vector<1x60x160xf32>
    %206 = vector.shape_cast %205 : vector<1x60x160xf32> to vector<60x160xf32>
    %cst_139 = arith.constant dense<0.000000e+00> : vector<10x160xf32>
    %207 = tpu.matmul %204, %206, %cst_139 {dimension_numbers = #tpu.dot_dimension_numbers<[1], [0], [0], [1], [0, 0, 1, 1], [], []>} : vector<10x60xf32>, vector<60x160xf32>, vector<10x160xf32> -> vector<10x160xf32>
    %208 = arith.addf %203, %207 : vector<10x160xf32>
    %209 = vector.extract_strided_slice %142 {offsets = [2, 18], sizes = [10, 60], strides = [1, 1]} : vector<14x84xf32> to vector<10x60xf32>
    %c13_140 = arith.constant 13 : index
    %c0_141 = arith.constant 0 : index
    %c0_142 = arith.constant 0 : index
    %210 = vector.load %arg4[%c13_140, %c0_141, %c0_142] : memref<25x60x160xf32, #tpu.memory_space<vmem>>, vector<1x60x160xf32>
    %211 = vector.shape_cast %210 : vector<1x60x160xf32> to vector<60x160xf32>
    %cst_143 = arith.constant dense<0.000000e+00> : vector<10x160xf32>
    %212 = tpu.matmul %209, %211, %cst_143 {dimension_numbers = #tpu.dot_dimension_numbers<[1], [0], [0], [1], [0, 0, 1, 1], [], []>} : vector<10x60xf32>, vector<60x160xf32>, vector<10x160xf32> -> vector<10x160xf32>
    %213 = arith.addf %208, %212 : vector<10x160xf32>
    %214 = vector.extract_strided_slice %142 {offsets = [2, 24], sizes = [10, 60], strides = [1, 1]} : vector<14x84xf32> to vector<10x60xf32>
    %c14_144 = arith.constant 14 : index
    %c0_145 = arith.constant 0 : index
    %c0_146 = arith.constant 0 : index
    %215 = vector.load %arg4[%c14_144, %c0_145, %c0_146] : memref<25x60x160xf32, #tpu.memory_space<vmem>>, vector<1x60x160xf32>
    %216 = vector.shape_cast %215 : vector<1x60x160xf32> to vector<60x160xf32>
    %cst_147 = arith.constant dense<0.000000e+00> : vector<10x160xf32>
    %217 = tpu.matmul %214, %216, %cst_147 {dimension_numbers = #tpu.dot_dimension_numbers<[1], [0], [0], [1], [0, 0, 1, 1], [], []>} : vector<10x60xf32>, vector<60x160xf32>, vector<10x160xf32> -> vector<10x160xf32>
    %218 = arith.addf %213, %217 : vector<10x160xf32>
    %219 = vector.extract_strided_slice %142 {offsets = [3, 0], sizes = [10, 60], strides = [1, 1]} : vector<14x84xf32> to vector<10x60xf32>
    %c15_148 = arith.constant 15 : index
    %c0_149 = arith.constant 0 : index
    %c0_150 = arith.constant 0 : index
    %220 = vector.load %arg4[%c15_148, %c0_149, %c0_150] : memref<25x60x160xf32, #tpu.memory_space<vmem>>, vector<1x60x160xf32>
    %221 = vector.shape_cast %220 : vector<1x60x160xf32> to vector<60x160xf32>
    %cst_151 = arith.constant dense<0.000000e+00> : vector<10x160xf32>
    %222 = tpu.matmul %219, %221, %cst_151 {dimension_numbers = #tpu.dot_dimension_numbers<[1], [0], [0], [1], [0, 0, 1, 1], [], []>} : vector<10x60xf32>, vector<60x160xf32>, vector<10x160xf32> -> vector<10x160xf32>
    %223 = arith.addf %218, %222 : vector<10x160xf32>
    %224 = vector.extract_strided_slice %142 {offsets = [3, 6], sizes = [10, 60], strides = [1, 1]} : vector<14x84xf32> to vector<10x60xf32>
    %c16_152 = arith.constant 16 : index
    %c0_153 = arith.constant 0 : index
    %c0_154 = arith.constant 0 : index
    %225 = vector.load %arg4[%c16_152, %c0_153, %c0_154] : memref<25x60x160xf32, #tpu.memory_space<vmem>>, vector<1x60x160xf32>
    %226 = vector.shape_cast %225 : vector<1x60x160xf32> to vector<60x160xf32>
    %cst_155 = arith.constant dense<0.000000e+00> : vector<10x160xf32>
    %227 = tpu.matmul %224, %226, %cst_155 {dimension_numbers = #tpu.dot_dimension_numbers<[1], [0], [0], [1], [0, 0, 1, 1], [], []>} : vector<10x60xf32>, vector<60x160xf32>, vector<10x160xf32> -> vector<10x160xf32>
    %228 = arith.addf %223, %227 : vector<10x160xf32>
    %229 = vector.extract_strided_slice %142 {offsets = [3, 12], sizes = [10, 60], strides = [1, 1]} : vector<14x84xf32> to vector<10x60xf32>
    %c17_156 = arith.constant 17 : index
    %c0_157 = arith.constant 0 : index
    %c0_158 = arith.constant 0 : index
    %230 = vector.load %arg4[%c17_156, %c0_157, %c0_158] : memref<25x60x160xf32, #tpu.memory_space<vmem>>, vector<1x60x160xf32>
    %231 = vector.shape_cast %230 : vector<1x60x160xf32> to vector<60x160xf32>
    %cst_159 = arith.constant dense<0.000000e+00> : vector<10x160xf32>
    %232 = tpu.matmul %229, %231, %cst_159 {dimension_numbers = #tpu.dot_dimension_numbers<[1], [0], [0], [1], [0, 0, 1, 1], [], []>} : vector<10x60xf32>, vector<60x160xf32>, vector<10x160xf32> -> vector<10x160xf32>
    %233 = arith.addf %228, %232 : vector<10x160xf32>
    %234 = vector.extract_strided_slice %142 {offsets = [3, 18], sizes = [10, 60], strides = [1, 1]} : vector<14x84xf32> to vector<10x60xf32>
    %c18_160 = arith.constant 18 : index
    %c0_161 = arith.constant 0 : index
    %c0_162 = arith.constant 0 : index
    %235 = vector.load %arg4[%c18_160, %c0_161, %c0_162] : memref<25x60x160xf32, #tpu.memory_space<vmem>>, vector<1x60x160xf32>
    %236 = vector.shape_cast %235 : vector<1x60x160xf32> to vector<60x160xf32>
    %cst_163 = arith.constant dense<0.000000e+00> : vector<10x160xf32>
    %237 = tpu.matmul %234, %236, %cst_163 {dimension_numbers = #tpu.dot_dimension_numbers<[1], [0], [0], [1], [0, 0, 1, 1], [], []>} : vector<10x60xf32>, vector<60x160xf32>, vector<10x160xf32> -> vector<10x160xf32>
    %238 = arith.addf %233, %237 : vector<10x160xf32>
    %239 = vector.extract_strided_slice %142 {offsets = [3, 24], sizes = [10, 60], strides = [1, 1]} : vector<14x84xf32> to vector<10x60xf32>
    %c19_164 = arith.constant 19 : index
    %c0_165 = arith.constant 0 : index
    %c0_166 = arith.constant 0 : index
    %240 = vector.load %arg4[%c19_164, %c0_165, %c0_166] : memref<25x60x160xf32, #tpu.memory_space<vmem>>, vector<1x60x160xf32>
    %241 = vector.shape_cast %240 : vector<1x60x160xf32> to vector<60x160xf32>
    %cst_167 = arith.constant dense<0.000000e+00> : vector<10x160xf32>
    %242 = tpu.matmul %239, %241, %cst_167 {dimension_numbers = #tpu.dot_dimension_numbers<[1], [0], [0], [1], [0, 0, 1, 1], [], []>} : vector<10x60xf32>, vector<60x160xf32>, vector<10x160xf32> -> vector<10x160xf32>
    %243 = arith.addf %238, %242 : vector<10x160xf32>
    %244 = vector.extract_strided_slice %142 {offsets = [4, 0], sizes = [10, 60], strides = [1, 1]} : vector<14x84xf32> to vector<10x60xf32>
    %c20_168 = arith.constant 20 : index
    %c0_169 = arith.constant 0 : index
    %c0_170 = arith.constant 0 : index
    %245 = vector.load %arg4[%c20_168, %c0_169, %c0_170] : memref<25x60x160xf32, #tpu.memory_space<vmem>>, vector<1x60x160xf32>
    %246 = vector.shape_cast %245 : vector<1x60x160xf32> to vector<60x160xf32>
    %cst_171 = arith.constant dense<0.000000e+00> : vector<10x160xf32>
    %247 = tpu.matmul %244, %246, %cst_171 {dimension_numbers = #tpu.dot_dimension_numbers<[1], [0], [0], [1], [0, 0, 1, 1], [], []>} : vector<10x60xf32>, vector<60x160xf32>, vector<10x160xf32> -> vector<10x160xf32>
    %248 = arith.addf %243, %247 : vector<10x160xf32>
    %249 = vector.extract_strided_slice %142 {offsets = [4, 6], sizes = [10, 60], strides = [1, 1]} : vector<14x84xf32> to vector<10x60xf32>
    %c21_172 = arith.constant 21 : index
    %c0_173 = arith.constant 0 : index
    %c0_174 = arith.constant 0 : index
    %250 = vector.load %arg4[%c21_172, %c0_173, %c0_174] : memref<25x60x160xf32, #tpu.memory_space<vmem>>, vector<1x60x160xf32>
    %251 = vector.shape_cast %250 : vector<1x60x160xf32> to vector<60x160xf32>
    %cst_175 = arith.constant dense<0.000000e+00> : vector<10x160xf32>
    %252 = tpu.matmul %249, %251, %cst_175 {dimension_numbers = #tpu.dot_dimension_numbers<[1], [0], [0], [1], [0, 0, 1, 1], [], []>} : vector<10x60xf32>, vector<60x160xf32>, vector<10x160xf32> -> vector<10x160xf32>
    %253 = arith.addf %248, %252 : vector<10x160xf32>
    %254 = vector.extract_strided_slice %142 {offsets = [4, 12], sizes = [10, 60], strides = [1, 1]} : vector<14x84xf32> to vector<10x60xf32>
    %c22_176 = arith.constant 22 : index
    %c0_177 = arith.constant 0 : index
    %c0_178 = arith.constant 0 : index
    %255 = vector.load %arg4[%c22_176, %c0_177, %c0_178] : memref<25x60x160xf32, #tpu.memory_space<vmem>>, vector<1x60x160xf32>
    %256 = vector.shape_cast %255 : vector<1x60x160xf32> to vector<60x160xf32>
    %cst_179 = arith.constant dense<0.000000e+00> : vector<10x160xf32>
    %257 = tpu.matmul %254, %256, %cst_179 {dimension_numbers = #tpu.dot_dimension_numbers<[1], [0], [0], [1], [0, 0, 1, 1], [], []>} : vector<10x60xf32>, vector<60x160xf32>, vector<10x160xf32> -> vector<10x160xf32>
    %258 = arith.addf %253, %257 : vector<10x160xf32>
    %259 = vector.extract_strided_slice %142 {offsets = [4, 18], sizes = [10, 60], strides = [1, 1]} : vector<14x84xf32> to vector<10x60xf32>
    %c23_180 = arith.constant 23 : index
    %c0_181 = arith.constant 0 : index
    %c0_182 = arith.constant 0 : index
    %260 = vector.load %arg4[%c23_180, %c0_181, %c0_182] : memref<25x60x160xf32, #tpu.memory_space<vmem>>, vector<1x60x160xf32>
    %261 = vector.shape_cast %260 : vector<1x60x160xf32> to vector<60x160xf32>
    %cst_183 = arith.constant dense<0.000000e+00> : vector<10x160xf32>
    %262 = tpu.matmul %259, %261, %cst_183 {dimension_numbers = #tpu.dot_dimension_numbers<[1], [0], [0], [1], [0, 0, 1, 1], [], []>} : vector<10x60xf32>, vector<60x160xf32>, vector<10x160xf32> -> vector<10x160xf32>
    %263 = arith.addf %258, %262 : vector<10x160xf32>
    %264 = vector.extract_strided_slice %142 {offsets = [4, 24], sizes = [10, 60], strides = [1, 1]} : vector<14x84xf32> to vector<10x60xf32>
    %c24_184 = arith.constant 24 : index
    %c0_185 = arith.constant 0 : index
    %c0_186 = arith.constant 0 : index
    %265 = vector.load %arg4[%c24_184, %c0_185, %c0_186] : memref<25x60x160xf32, #tpu.memory_space<vmem>>, vector<1x60x160xf32>
    %266 = vector.shape_cast %265 : vector<1x60x160xf32> to vector<60x160xf32>
    %cst_187 = arith.constant dense<0.000000e+00> : vector<10x160xf32>
    %267 = tpu.matmul %264, %266, %cst_187 {dimension_numbers = #tpu.dot_dimension_numbers<[1], [0], [0], [1], [0, 0, 1, 1], [], []>} : vector<10x60xf32>, vector<60x160xf32>, vector<10x160xf32> -> vector<10x160xf32>
    %268 = arith.addf %263, %267 : vector<10x160xf32>
    %c0_188 = arith.constant 0 : index
    %c0_189 = arith.constant 0 : index
    %269 = vector.load %arg5[%c0_188, %c0_189] : memref<1x160xf32, #tpu.memory_space<vmem>>, vector<1x160xf32>
    %270 = vector.broadcast %269 : vector<1x160xf32> to vector<10x160xf32>
    %271 = arith.addf %268, %270 : vector<10x160xf32>
    %cst_190 = arith.constant 0.000000e+00 : f32
    %272 = vector.broadcast %cst_190 : f32 to vector<10x160xf32>
    %273 = arith.maximumf %271, %272 : vector<10x160xf32>
    %274 = vector.extract_strided_slice %273 {offsets = [0, 0], sizes = [9, 160], strides = [1, 1]} : vector<10x160xf32> to vector<9x160xf32>
    %275 = vector.extract_strided_slice %273 {offsets = [1, 0], sizes = [9, 160], strides = [1, 1]} : vector<10x160xf32> to vector<9x160xf32>
    %276 = arith.maximumf %274, %275 : vector<9x160xf32>
    %c0_191 = arith.constant 0 : index
    %c0_192 = arith.constant 0 : index
    %277 = vector.load %arg8[%c0_191, %c0_192] : memref<5x9xf32, #tpu.memory_space<vmem>>, vector<5x9xf32>
    %cst_193 = arith.constant dense<0.000000e+00> : vector<5x160xf32>
    %278 = tpu.matmul %277, %276, %cst_193 {dimension_numbers = #tpu.dot_dimension_numbers<[1], [0], [0], [1], [0, 0, 1, 1], [], []>} : vector<5x9xf32>, vector<9x160xf32>, vector<5x160xf32> -> vector<5x160xf32>
    %279 = vector.extract_strided_slice %278 {offsets = [0, 0], sizes = [5, 144], strides = [1, 1]} : vector<5x160xf32> to vector<5x144xf32>
    %280 = vector.extract_strided_slice %278 {offsets = [0, 16], sizes = [5, 144], strides = [1, 1]} : vector<5x160xf32> to vector<5x144xf32>
    %281 = arith.maximumf %279, %280 : vector<5x144xf32>
    %c0_194 = arith.constant 0 : index
    %c0_195 = arith.constant 0 : index
    %282 = vector.load %arg9[%c0_194, %c0_195] : memref<144x80xf32, #tpu.memory_space<vmem>>, vector<144x80xf32>
    %cst_196 = arith.constant dense<0.000000e+00> : vector<5x80xf32>
    %283 = tpu.matmul %281, %282, %cst_196 {dimension_numbers = #tpu.dot_dimension_numbers<[1], [0], [0], [1], [0, 0, 1, 1], [], []>} : vector<5x144xf32>, vector<144x80xf32>, vector<5x80xf32> -> vector<5x80xf32>
    %c0_197 = arith.constant 0 : index
    %c0_198 = arith.constant 0 : index
    %284 = vector.load %arg11[%c0_197, %c0_198] : memref<1x120xf32, #tpu.memory_space<vmem>>, vector<1x120xf32>
    %285 = vector.extract_strided_slice %283 {offsets = [0, 0], sizes = [1, 80], strides = [1, 1]} : vector<5x80xf32> to vector<1x80xf32>
    %c0_199 = arith.constant 0 : index
    %c0_200 = arith.constant 0 : index
    %c0_201 = arith.constant 0 : index
    %286 = vector.load %arg10[%c0_199, %c0_200, %c0_201] : memref<5x80x120xf32, #tpu.memory_space<vmem>>, vector<1x80x120xf32>
    %287 = vector.shape_cast %286 : vector<1x80x120xf32> to vector<80x120xf32>
    %cst_202 = arith.constant dense<0.000000e+00> : vector<1x120xf32>
    %288 = tpu.matmul %285, %287, %cst_202 {dimension_numbers = #tpu.dot_dimension_numbers<[1], [0], [0], [1], [0, 0, 1, 1], [], []>} : vector<1x80xf32>, vector<80x120xf32>, vector<1x120xf32> -> vector<1x120xf32>
    %289 = arith.addf %284, %288 : vector<1x120xf32>
    %290 = vector.extract_strided_slice %283 {offsets = [1, 0], sizes = [1, 80], strides = [1, 1]} : vector<5x80xf32> to vector<1x80xf32>
    %c1_203 = arith.constant 1 : index
    %c0_204 = arith.constant 0 : index
    %c0_205 = arith.constant 0 : index
    %291 = vector.load %arg10[%c1_203, %c0_204, %c0_205] : memref<5x80x120xf32, #tpu.memory_space<vmem>>, vector<1x80x120xf32>
    %292 = vector.shape_cast %291 : vector<1x80x120xf32> to vector<80x120xf32>
    %cst_206 = arith.constant dense<0.000000e+00> : vector<1x120xf32>
    %293 = tpu.matmul %290, %292, %cst_206 {dimension_numbers = #tpu.dot_dimension_numbers<[1], [0], [0], [1], [0, 0, 1, 1], [], []>} : vector<1x80xf32>, vector<80x120xf32>, vector<1x120xf32> -> vector<1x120xf32>
    %294 = arith.addf %289, %293 : vector<1x120xf32>
    %295 = vector.extract_strided_slice %283 {offsets = [2, 0], sizes = [1, 80], strides = [1, 1]} : vector<5x80xf32> to vector<1x80xf32>
    %c2_207 = arith.constant 2 : index
    %c0_208 = arith.constant 0 : index
    %c0_209 = arith.constant 0 : index
    %296 = vector.load %arg10[%c2_207, %c0_208, %c0_209] : memref<5x80x120xf32, #tpu.memory_space<vmem>>, vector<1x80x120xf32>
    %297 = vector.shape_cast %296 : vector<1x80x120xf32> to vector<80x120xf32>
    %cst_210 = arith.constant dense<0.000000e+00> : vector<1x120xf32>
    %298 = tpu.matmul %295, %297, %cst_210 {dimension_numbers = #tpu.dot_dimension_numbers<[1], [0], [0], [1], [0, 0, 1, 1], [], []>} : vector<1x80xf32>, vector<80x120xf32>, vector<1x120xf32> -> vector<1x120xf32>
    %299 = arith.addf %294, %298 : vector<1x120xf32>
    %300 = vector.extract_strided_slice %283 {offsets = [3, 0], sizes = [1, 80], strides = [1, 1]} : vector<5x80xf32> to vector<1x80xf32>
    %c3_211 = arith.constant 3 : index
    %c0_212 = arith.constant 0 : index
    %c0_213 = arith.constant 0 : index
    %301 = vector.load %arg10[%c3_211, %c0_212, %c0_213] : memref<5x80x120xf32, #tpu.memory_space<vmem>>, vector<1x80x120xf32>
    %302 = vector.shape_cast %301 : vector<1x80x120xf32> to vector<80x120xf32>
    %cst_214 = arith.constant dense<0.000000e+00> : vector<1x120xf32>
    %303 = tpu.matmul %300, %302, %cst_214 {dimension_numbers = #tpu.dot_dimension_numbers<[1], [0], [0], [1], [0, 0, 1, 1], [], []>} : vector<1x80xf32>, vector<80x120xf32>, vector<1x120xf32> -> vector<1x120xf32>
    %304 = arith.addf %299, %303 : vector<1x120xf32>
    %305 = vector.extract_strided_slice %283 {offsets = [4, 0], sizes = [1, 80], strides = [1, 1]} : vector<5x80xf32> to vector<1x80xf32>
    %c4_215 = arith.constant 4 : index
    %c0_216 = arith.constant 0 : index
    %c0_217 = arith.constant 0 : index
    %306 = vector.load %arg10[%c4_215, %c0_216, %c0_217] : memref<5x80x120xf32, #tpu.memory_space<vmem>>, vector<1x80x120xf32>
    %307 = vector.shape_cast %306 : vector<1x80x120xf32> to vector<80x120xf32>
    %cst_218 = arith.constant dense<0.000000e+00> : vector<1x120xf32>
    %308 = tpu.matmul %305, %307, %cst_218 {dimension_numbers = #tpu.dot_dimension_numbers<[1], [0], [0], [1], [0, 0, 1, 1], [], []>} : vector<1x80xf32>, vector<80x120xf32>, vector<1x120xf32> -> vector<1x120xf32>
    %309 = arith.addf %304, %308 : vector<1x120xf32>
    %cst_219 = arith.constant 0.000000e+00 : f32
    %310 = vector.broadcast %cst_219 : f32 to vector<1x120xf32>
    %311 = arith.maximumf %309, %310 : vector<1x120xf32>
    %c0_220 = arith.constant 0 : index
    %c0_221 = arith.constant 0 : index
    %312 = vector.load %arg12[%c0_220, %c0_221] : memref<120x84xf32, #tpu.memory_space<vmem>>, vector<120x84xf32>
    %cst_222 = arith.constant dense<0.000000e+00> : vector<1x84xf32>
    %313 = tpu.matmul %311, %312, %cst_222 {dimension_numbers = #tpu.dot_dimension_numbers<[1], [0], [0], [1], [0, 0, 1, 1], [], []>} : vector<1x120xf32>, vector<120x84xf32>, vector<1x84xf32> -> vector<1x84xf32>
    %c0_223 = arith.constant 0 : index
    %c0_224 = arith.constant 0 : index
    %314 = vector.load %arg13[%c0_223, %c0_224] : memref<1x84xf32, #tpu.memory_space<vmem>>, vector<1x84xf32>
    %315 = arith.addf %313, %314 : vector<1x84xf32>
    %cst_225 = arith.constant 0.000000e+00 : f32
    %316 = vector.broadcast %cst_225 : f32 to vector<1x84xf32>
    %317 = arith.maximumf %315, %316 : vector<1x84xf32>
    %c0_226 = arith.constant 0 : index
    %c0_227 = arith.constant 0 : index
    %318 = vector.load %arg14[%c0_226, %c0_227] : memref<84x128xf32, #tpu.memory_space<vmem>>, vector<84x128xf32>
    %cst_228 = arith.constant dense<0.000000e+00> : vector<1x128xf32>
    %319 = tpu.matmul %317, %318, %cst_228 {dimension_numbers = #tpu.dot_dimension_numbers<[1], [0], [0], [1], [0, 0, 1, 1], [], []>} : vector<1x84xf32>, vector<84x128xf32>, vector<1x128xf32> -> vector<1x128xf32>
    %c0_229 = arith.constant 0 : index
    %c0_230 = arith.constant 0 : index
    %320 = vector.load %arg15[%c0_229, %c0_230] : memref<1x128xf32, #tpu.memory_space<vmem>>, vector<1x128xf32>
    %321 = arith.addf %319, %320 : vector<1x128xf32>
    %c0_231 = arith.constant 0 : index
    %c0_232 = arith.constant 0 : index
    %c0_233 = arith.constant 0 : index
    %322 = vector.load %arg16[%c0_231, %c0_232, %c0_233] : memref<1x1x128xf32, #tpu.memory_space<vmem>>, vector<1x1x128xf32>
    %323 = vector.shape_cast %322 : vector<1x1x128xf32> to vector<1x128xf32>
    %324 = vector.shape_cast %321 : vector<1x128xf32> to vector<1x1x128xf32>
    tpu.vector_store %arg16[%c0_231, %c0_232, %c0_233], %324 {strides = array<i32>} : memref<1x1x128xf32, #tpu.memory_space<vmem>>, vector<1x1x128xf32>,
    return
  }
  func.func @transform_0(%arg0: i32) -> (i32, i32, i32) {
    %c0_i32 = arith.constant 0 : i32
    %c0_i32_0 = arith.constant 0 : i32
    %c0_i32_1 = arith.constant 0 : i32
    return %arg0, %c0_i32, %c0_i32_0 : i32, i32, i32
  }
  func.func @transform_1(%arg0: i32) -> (i32, i32, i32) {
    %c0_i32 = arith.constant 0 : i32
    %c0_i32_0 = arith.constant 0 : i32
    %c0_i32_1 = arith.constant 0 : i32
    %c0_i32_2 = arith.constant 0 : i32
    return %c0_i32, %c0_i32_0, %c0_i32_1 : i32, i32, i32
  }
  func.func @transform_2(%arg0: i32) -> (i32, i32) {
    %c0_i32 = arith.constant 0 : i32
    %c0_i32_0 = arith.constant 0 : i32
    %c0_i32_1 = arith.constant 0 : i32
    return %c0_i32, %c0_i32_0 : i32, i32
  }
  func.func @transform_3(%arg0: i32) -> (i32, i32, i32) {
    %c0_i32 = arith.constant 0 : i32
    %c0_i32_0 = arith.constant 0 : i32
    %c0_i32_1 = arith.constant 0 : i32
    %c0_i32_2 = arith.constant 0 : i32
    return %c0_i32, %c0_i32_0, %c0_i32_1 : i32, i32, i32
  }
  func.func @transform_4(%arg0: i32) -> (i32, i32) {
    %c0_i32 = arith.constant 0 : i32
    %c0_i32_0 = arith.constant 0 : i32
    %c0_i32_1 = arith.constant 0 : i32
    return %c0_i32, %c0_i32_0 : i32, i32
  }
  func.func @transform_5(%arg0: i32) -> (i32, i32) {
    %c0_i32 = arith.constant 0 : i32
    %c0_i32_0 = arith.constant 0 : i32
    %c0_i32_1 = arith.constant 0 : i32
    return %c0_i32, %c0_i32_0 : i32, i32
  }
  func.func @transform_6(%arg0: i32) -> (i32, i32) {
    %c0_i32 = arith.constant 0 : i32
    %c0_i32_0 = arith.constant 0 : i32
    %c0_i32_1 = arith.constant 0 : i32
    return %c0_i32, %c0_i32_0 : i32, i32
  }
  func.func @transform_7(%arg0: i32) -> (i32, i32) {
    %c0_i32 = arith.constant 0 : i32
    %c0_i32_0 = arith.constant 0 : i32
    %c0_i32_1 = arith.constant 0 : i32
    return %c0_i32, %c0_i32_0 : i32, i32
  }
  func.func @transform_8(%arg0: i32) -> (i32, i32) {
    %c0_i32 = arith.constant 0 : i32
    %c0_i32_0 = arith.constant 0 : i32
    %c0_i32_1 = arith.constant 0 : i32
    return %c0_i32, %c0_i32_0 : i32, i32
  }
  func.func @transform_9(%arg0: i32) -> (i32, i32, i32) {
    %c0_i32 = arith.constant 0 : i32
    %c0_i32_0 = arith.constant 0 : i32
    %c0_i32_1 = arith.constant 0 : i32
    %c0_i32_2 = arith.constant 0 : i32
    return %c0_i32, %c0_i32_0, %c0_i32_1 : i32, i32, i32
  }
  func.func @transform_10(%arg0: i32) -> (i32, i32) {
    %c0_i32 = arith.constant 0 : i32
    %c0_i32_0 = arith.constant 0 : i32
    %c0_i32_1 = arith.constant 0 : i32
    return %c0_i32, %c0_i32_0 : i32, i32
  }
  func.func @transform_11(%arg0: i32) -> (i32, i32) {
    %c0_i32 = arith.constant 0 : i32
    %c0_i32_0 = arith.constant 0 : i32
    %c0_i32_1 = arith.constant 0 : i32
    return %c0_i32, %c0_i32_0 : i32, i32
  }
  func.func @transform_12(%arg0: i32) -> (i32, i32) {
    %c0_i32 = arith.constant 0 : i32
    %c0_i32_0 = arith.constant 0 : i32
    %c0_i32_1 = arith.constant 0 : i32
    return %c0_i32, %c0_i32_0 : i32, i32
  }
  func.func @transform_13(%arg0: i32) -> (i32, i32) {
    %c0_i32 = arith.constant 0 : i32
    %c0_i32_0 = arith.constant 0 : i32
    %c0_i32_1 = arith.constant 0 : i32
    return %c0_i32, %c0_i32_0 : i32, i32
  }
  func.func @transform_14(%arg0: i32) -> (i32, i32) {
    %c0_i32 = arith.constant 0 : i32
    %c0_i32_0 = arith.constant 0 : i32
    %c0_i32_1 = arith.constant 0 : i32
    return %c0_i32, %c0_i32_0 : i32, i32
  }
  func.func @transform_15(%arg0: i32) -> (i32, i32, i32) {
    %c0_i32 = arith.constant 0 : i32
    %c0_i32_0 = arith.constant 0 : i32
    %c0_i32_1 = arith.constant 0 : i32
    return %arg0, %c0_i32, %c0_i32_0 : i32, i32, i32
  }
}

</mosaic_0001>

<bundles_post_ra>
// kernel: lenet_forward.1
= control target key start
LH: loop header
LB: loop body
LE: loop exit
PB: predicated region body
PF: predicated region fallthrough
CT: control target
= control target key end

     0   :  { %s15404_s0 = inlined_call_operand.vmem [shape: f32[2,32,96], index: 0, kind: input, shape index: {}]   ;;  %s15405_s1 = inlined_call_operand.vmem [shape: f32[25,84,168], index: 1, kind: input, shape index: {}]   ;;  %s15406_s2 = inlined_call_operand.vmem [shape: f32[1,168], index: 2, kind: input, shape index: {}]   ;;  %s15407_s3 = inlined_call_operand.vmem [shape: f32[25,60,160], index: 3, kind: input, shape index: {}]   ;;  %s15408_s4 = inlined_call_operand.vmem [shape: f32[1,160], index: 4, kind: input, shape index: {}]   ;;  %s15409_s5 = inlined_call_operand.vmem [shape: f32[14,27], index: 5, kind: input, shape index: {}]   ;;  %s15410_s6 = inlined_call_operand.vmem [shape: f32[162,84], index: 6, kind: input, shape index: {}]   ;;  %s15411_s7 = inlined_call_operand.vmem [shape: f32[5,9], index: 7, kind: input, shape index: {}]   ;;  %s15412_s8 = inlined_call_operand.vmem [shape: f32[144,80], index: 8, kind: input, shape index: {}]   ;;  %s15413_s9 = inlined_call_operand.vmem [shape: f32[5,80,120], index: 9, kind: input, shape index: {}]   ;;  %s15414_s10 = inlined_call_operand.vmem [shape: f32[1,120], index: 10, kind: input, shape index: {}]   ;;  %s15415_s11 = inlined_call_operand.vmem [shape: f32[120,84], index: 11, kind: input, shape index: {}]   ;;  %s15416_s12 = inlined_call_operand.vmem [shape: f32[1,84], index: 12, kind: input, shape index: {}]   ;;  %s15417_s13 = inlined_call_operand.vmem [shape: f32[84,128], index: 13, kind: input, shape index: {}]   ;;  %s15418_s14 = inlined_call_operand.vmem [shape: f32[1,128], index: 14, kind: input, shape index: {}]   ;;  %s15419_s15 = inlined_call_operand.hbm [shape: f32[2,1,128], index: 15, kind: output, shape index: {}]  }
   0x1   :  { %15437 = sst [smem:[#allocation12_spill]] %s15404_s0 }
   0x2   :  { %15438 = sst [smem:[#allocation13_spill]] %s15418_s14 }
   0x3   :  { %15439 = sst [smem:[#allocation14_spill]] %s15419_s15 }
   0x4   :  { %20 = vsyncpa [#allocation3], 0 }
   0x5   :  { %22 = vsyncpa [#allocation3 + $0x1], 0  ;;  %s11129_s18 = smov 0   ;;  %s11131_s19 = smov 0  }
   0x6   :  { %s11133_s20 = smov 0   ;;  %s11135_s21 = smov 0  }
   0x7 LB: > { %15440 = sst [smem:[#allocation5_spill]] %s11023_s18  ;;  %s11150_s22 = sadd.s32 4294967295, %s11035_s21   ;;  %s11035_s21 = sphi %s11135_s21, %s15462_s21   ;;  %s11031_s20 = sphi %s11133_s20, %s15464_s20   ;;  %s11027_s19 = sphi %s11131_s19, %s15466_s19   ;;  %s11023_s18 = sphi %s11129_s18, %s15465_s18  }
   0x8   : > { %15441 = sst [smem:[#allocation6_spill]] %s11031_s20  ;;  %s8001_s23 = sadd.s32 4294967294, %s11035_s21  }
   0x9   : > { %15442 = sst [smem:[#allocation7_spill]] %s11035_s21  ;;  %s11154_s24 = sadd.s32 1, %s11035_s21  }
   0xa   : > { %15443 = sst [smem:[#allocation8_spill]] %s11154_s24  ;;  %s355_s25 = sadd.s32 1, %s11031_s20 }
   0xb   : > { %s352_s26 = ssub.s32 %s11035_s21, %s11154_s24  ;;  %p365_p0 = scmp.ne.s32.totalorder %s11031_s20, %s11027_s19 }
   0xc   : > { %p353_p1 = scmp.eq.s32.totalorder %s352_s26, 0  ;;  %p366_p2 = scmp.eq.s32.totalorder %s11150_s22, 1 }
   0xd   : > { %p371_p3 = scmp.ne.s32.totalorder %s11027_s19, %s11023_s18  ;;  %p372_p4 = scmp.eq.s32.totalorder %s8001_s23, 1 }
   0xe   : > { %s11165_s27 = scalar_select %p353_p1, %s11031_s20, %s355_s25  }
   0xf   : > { %p11167_p5 = por %p366_p2, %p365_p0  ;;  %p11171_p6 = por %p372_p4, %p371_p3 }
  0x10   : > { %15444 = sst [smem:[#allocation9_spill]] %s11165_s27  ;;  %p8004_p7 = scmp.ge.s32.totalorder %s11035_s21, 1 }
  0x11   : > { %s15445_s28 = scalar_select %p11167_p5, 1, 0 }
  0x12   : > { %s15447_s29 = scalar_select %p11171_p6, 1, 0 }
  0x13   : > { %15446 = sst [smem:[#allocation10_spill]] %s15445_s28  ;;  %p440_p8 = scmp.lt.s32.totalorder %s11035_s21, 3 }
  0x14   : > { %15448 = sst [smem:[#allocation11_spill]] %s15447_s29 }
  0x15   : > { %p441_p9 = pnand %p8004_p7, %p440_p8 }
  0x16   : > { %p487_p10 = scmp.lt.s32.totalorder (!%p441_p9), %s11150_s22, 1  ;;  %v8008_v0 = vld [vmem:[%s15405_s1 + $0xb8] sm:$0xff] (!%p441_p9)  ;;  %v8010_v1 = vld [vmem:[%s15405_s1 + $0xc8] sm:$0xff] (!%p441_p9)  ;;  %v8007_v2 = vld [vmem:[%s15405_s1 + $0xb0] sm:$0xff] (!%p441_p9)  ;;  %v11037_v12 = vmov (!%p441_p9), 0.0   ;;  %s15449_s0 = sld [smem:[#allocation12_spill]] (!%p441_p9) }
  0x17   : > { %444 = sbr.rel (%p441_p9) target bundleno = 3475 (0xd93), region = 80  ;;  %v9488_v3 = vpack.c.bf16 (!%p441_p9), %v8010_v1, %v8008_v0  ;;  %v8009_v4 = vld [vmem:[%s15405_s1 + $0xc0] sm:$0xff] (!%p441_p9)  ;;  %v8012_v5 = vld [vmem:[%s15405_s1 + $0xd8] sm:$0xff] (!%p441_p9)  ;;  %v8014_v6 = vld [vmem:[%s15405_s1 + $0xe8] sm:$0xff] (!%p441_p9)  ;;  %633 = vmatprep.mubr.f32.mxu0 (!%p441_p9), %v11037_v12  ;;  %4172 = vmatprep.mubr.f32.mxu1 (!%p441_p9), %v11037_v12  ;;  %s15431_s30 = smov (!%p441_p9), 125   ;;  %vm562_vm0 = vcmask (!%p441_p9), 1043456  }
  0x18   : > { %v9490_v7 = vpack.c.bf16 (!%p441_p9), %v8009_v4, %v8007_v2  ;;  %v9492_v8 = vpack.c.bf16 (!%p441_p9), %v8014_v6, %v8012_v5  ;;  %v8011_v9 = vld [vmem:[%s15405_s1 + $0xd0] sm:$0xff] (!%p441_p9)  ;;  %v8013_v10 = vld [vmem:[%s15405_s1 + $0xe0] sm:$0xff] (!%p441_p9)  ;;  %v8016_v11 = vld [vmem:[%s15405_s1 + $0xf8] sm:$0xff] (!%p441_p9)  ;;  %s15427_s20 = smov (!%p441_p9), 122   ;;  %s15425_s27 = smov (!%p441_p9), 119   ;;  %vm1210_vm1 = vcmask (!%p441_p9), 1046528  }
  0x19   : > { %9489 = vmatprep.subr.bf16.mxu0 (!%p441_p9), %v9488_v3  ;;  %v8018_v13 = vld [vmem:[%s15405_s1 + $0x108] sm:$0xff] (!%p441_p9)  ;;  %v9494_v14 = vpack.c.bf16 (!%p441_p9), %v8013_v10, %v8011_v9  ;;  %v8015_v16 = vld [vmem:[%s15405_s1 + $0xf0] sm:$0xff] (!%p441_p9)  ;;  %v8017_v17 = vld [vmem:[%s15405_s1 + $0x100] sm:$0xff] (!%p441_p9)  ;;  %vm553_vm2 = vcmask (!%p441_p9), 687104   ;;  %vm1920_vm3 = vcmask (!%p441_p9), 1045504   ;;  %s15451_s17 = smov (!%p441_p9), 119  }
  0x1a   : > { %9491 = vmatpush1.bf16.msra.mxu0 (!%p441_p9), %v9490_v7  ;;  %v9496_v15 = vpack.c.bf16 (!%p441_p9), %v8018_v13, %v8016_v11  ;;  %v8020_v18 = vld [vmem:[%s15405_s1 + $0x118] sm:$0xff] (!%p441_p9)  ;;  %v8022_v21 = vld [vmem:[%s15405_s1 + $0x128] sm:$0xff] (!%p441_p9)  ;;  %v9498_v24 = vpack.c.bf16 (!%p441_p9), %v8017_v17, %v8015_v16  ;;  %v8019_v26 = vld [vmem:[%s15405_s1 + $0x110] sm:$0xff] (!%p441_p9)  ;;  %s15452_s25 = smov (!%p441_p9), 116   ;;  %vm2630_vm4 = vcmask (!%p441_p9), 1044480   ;;  %vm4101_vm5 = vcmask (!%p441_p9), 1042432  }
  0x1b   : > { %9493 = vmatprep.subr.bf16.mxu0 (!%p441_p9), %v9492_v8  ;;  %v9500_v25 = vpack.c.bf16 (!%p441_p9), %v8022_v21, %v8020_v18  ;;  %v8021_v27 = vld [vmem:[%s15405_s1 + $0x120] sm:$0xff] (!%p441_p9)  ;;  %v8024_v28 = vld [vmem:[%s15405_s1 + $0x138] sm:$0xff] (!%p441_p9)  ;;  %v8026_v29 = vld [vmem:[%s15405_s1 + $0x148] sm:$0xff] (!%p441_p9)  ;;  %vm11042_vm6 = vmmov (!%p441_p9), 1   ;;  %vm4094_vm8 = vcmask (!%p441_p9), 220160   ;;  %vm4236_vm9 = vcmask (!%p441_p9), 1041408  }
  0x1c   : > { %v9502_v30 = vpack.c.bf16 (!%p441_p9), %v8021_v27, %v8019_v26  ;;  %v9504_v31 = vpack.c.bf16 (!%p441_p9), %v8026_v29, %v8024_v28  ;;  %v8023_v32 = vld [vmem:[%s15405_s1 + $0x130] sm:$0xff] (!%p441_p9)  ;;  %v8025_v33 = vld [vmem:[%s15405_s1 + $0x140] sm:$0xff] (!%p441_p9)  ;;  %v8028_v35 = vld [vmem:[%s15405_s1 + $0x158] sm:$0xf] (!%p441_p9)  ;;  %vm4197_vm10 = vcmask (!%p441_p9), 998400   ;;  %vm4229_vm11 = vcmask (!%p441_p9), 277504  }
  0x1d   : > { %v9506_v34 = vpack.c.bf16 (!%p441_p9), %v8025_v33, %v8023_v32  ;;  %v497_v36 = vld [vmem:[%s15405_s1 + $0x8] sm:$0xff] (!%p441_p9)  ;;  %v499_v37 = vld [vmem:[%s15405_s1 + $0x18] sm:$0xff] (!%p441_p9)  ;;  %v8027_v38 = vld [vmem:[%s15405_s1 + $0x150] sm:$0xf] (!%p441_p9)  ;;  %vm4354_vm13 = vcmask (!%p441_p9), 490496   ;;  %vm7144_vm14 = vcmask (!%p441_p9), 1040384  }
  0x1e   : > { %s488_s16 = scalar_select %p487_p10, %s11150_s22, 1  ;;  %9495 = vmatpush1.bf16.msra.mxu0 %v9494_v14  ;;  %v9508_v39 = vpack.c.bf16 %v499_v37, %v497_v36  ;;  %v496_v47 = vld [vmem:[%s15405_s1] sm:$0xff]  ;;  %v498_v48 = vld [vmem:[%s15405_s1 + $0x10] sm:$0xff]  ;;  %v501_v49 = vld [vmem:[%s15405_s1 + $0x28] sm:$0xff] }
  0x1f   : > { %9497 = vmatprep.subr.bf16.mxu0 %v9496_v15  ;;  %v503_v50 = vld [vmem:[%s15405_s1 + $0x38] sm:$0xff]  ;;  %v9510_v51 = vpack.c.bf16 %v498_v48, %v496_v47  ;;  %v500_v55 = vld [vmem:[%s15405_s1 + $0x20] sm:$0xff]  ;;  %v502_v56 = vld [vmem:[%s15405_s1 + $0x30] sm:$0xff]  ;;  %s485_s28 = sand.u32 1, %s11027_s19   ;;  %s9228_s26 = sshll.u32 %s11150_s22, 4 }
  0x20   : > { %s9231_s29 = sshll.u32 %s488_s16, 5  ;;  %s15429_s16 = smov 116   ;;  %v9512_v54 = vpack.c.bf16 %v503_v50, %v501_v49  ;;  %v505_v58 = vld [vmem:[%s15405_s1 + $0x48] sm:$0xff]  ;;  %v507_v59 = vld [vmem:[%s15405_s1 + $0x58] sm:$0xff]  ;;  %v9514_v61 = vpack.c.bf16 %v502_v56, %v500_v55  ;;  %v504_v63 = vld [vmem:[%s15405_s1 + $0x40] sm:$0xff] }
  0x21   : > { %s11214_s23 = scalar_lea.vmem %s15449_s0, %s9231_s29  ;;  %v9516_v62 = vpack.c.bf16 %v507_v59, %v505_v58  ;;  %v506_v0 = vld [vmem:[%s15405_s1 + $0x50] sm:$0xff]  ;;  %v509_v2 = vld [vmem:[%s15405_s1 + $0x68] sm:$0xff]  ;;  %v511_v3 = vld [vmem:[%s15405_s1 + $0x78] sm:$0xff]  ;;  %s15450_s29 = smov 122  }
  0x22   : > { %v11226_v19 = vld [vmem:[%s11214_s23] sm:$0xff]  ;;  %v11229_v20 = vld [vmem:[%s11214_s23 + $0x10] sm:$0xff]  ;;  %v11239_v22 = vld [vmem:[%s11214_s23 + $0x8] sm:$0xff]  ;;  %9499 = vmatpush1.bf16.msra.mxu0 %v9498_v24  ;;  %v9518_v5 = vpack.c.bf16 %v506_v0, %v504_v63  ;;  %v9520_v6 = vpack.c.bf16 %v511_v3, %v509_v2  ;;  %s486_s18 = scalar_lea.vmem [#allocation2], %s485_s28  ;;  %s7934_s21 = scalar_lea.sflag [#allocation3], %s485_s28 }
  0x23   : > { %545 = vrot.lane.b32.xlu0 %v11226_v19, %s15431_s30  ;;  %549 = vrot.lane.b32.xlu1 %v11229_v20, %s15431_s30  ;;  %v11242_v23 = vld [vmem:[%s11214_s23 + $0x18] sm:$0xff]  ;;  %v1211_v40 = vrot.slane %v11226_v19, 1  ;;  %v1212_v41 = vrot.slane %v11239_v22, 1  ;;  %v1214_v42 = vrot.slane %v11229_v20, 1  ;;  %v1921_v52 = vrot.slane %v11226_v19, 2  ;;  %v508_v7 = vld [vmem:[%s15405_s1 + $0x60] sm:$0xff]  ;;  %vm9993_vm7 = vmpackc.low %vm4101_vm5, %vm11042_vm6 }
  0x24   : > { %9501 = vmatprep.subr.bf16.mxu0 %v9500_v25  ;;  %v11314_v45 = vrot.slane %v11242_v23, 1  ;;  %v1922_v53 = vrot.slane %v11239_v22, 2  ;;  %v510_v8 = vld [vmem:[%s15405_s1 + $0x70] sm:$0xff]  ;;  %v513_v9 = vld [vmem:[%s15405_s1 + $0x88] sm:$0xff]  ;;  %v515_v10 = vld [vmem:[%s15405_s1 + $0x98] sm:$0xff]  ;;  %v1924_v11 = vrot.slane %v11229_v20, 2 }
  0x25   : > { %v11308_v43 = vsel %vm1210_vm1, %v1211_v40, %v1212_v41  ;;  %v11311_v44 = vsel %vm1210_vm1, %v1212_v41, %v1214_v42  ;;  %v9522_v13 = vpack.c.bf16 %v510_v8, %v508_v7  ;;  %v9524_v16 = vpack.c.bf16 %v515_v10, %v513_v9  ;;  %v512_v17 = vld [vmem:[%s15405_s1 + $0x80] sm:$0xff]  ;;  %v514_v18 = vld [vmem:[%s15405_s1 + $0x90] sm:$0xff]  ;;  %v517_v26 = vld [vmem:[%s15405_s1 + $0xa8] sm:$0xf]  ;;  %s7946_s24 = sshll.u32 %s486_s18, 4  ;;  %s11048_s22 = smov [#allocation2]   ;;  %s15364_s24 = int_to_ptr.vmem [resolvable:$true] %s7946_s24 }
  0x26   : > { %9503 = vmatpush1.bf16.msra.mxu0 %v9502_v30  ;;  %v11322_v46 = vsel %vm1210_vm1, %v1214_v42, %v11314_v45  ;;  %v11379_v60 = vsel %vm1920_vm3, %v1921_v52, %v1922_v53  ;;  %v11415_v15 = vsel %vm1920_vm3, %v1922_v53, %v1924_v11  ;;  %v11426_v21 = vrot.slane %v11242_v23, 2  ;;  %v8042_v27 = vld [vmem:[%s15405_s1 + $0x168] sm:$0xff]  ;;  %v8044_v28 = vld [vmem:[%s15405_s1 + $0x178] sm:$0xff]  ;;  %v8041_v29 = vld [vmem:[%s15405_s1 + $0x160] sm:$0xff] }
  0x27   : > { %547 = vrot.lane.b32.xlu0 %v11239_v22, %s15431_s30  ;;  %551 = vrot.lane.b32.xlu1 %v11242_v23, %s15431_s30  ;;  %v9526_v24 = vpack.c.bf16 %v514_v18, %v512_v17  ;;  %v8043_v30 = vld [vmem:[%s15405_s1 + $0x170] sm:$0xff]  ;;  %v8048_v32 = vld [vmem:[%s15405_s1 + $0x198] sm:$0xff]  ;;  %vm13496_vm12 = vmpackc.low %vm562_vm0, %vm11042_vm6  ;;  %vm11047_vm5 = vmmov 0  }
  0x28   : > { %9505 = vmatprep.subr.bf16.mxu0 %v9504_v31  ;;  %v11432_v25 = vsel %vm1920_vm3, %v1924_v11, %v11426_v21  ;;  %v8046_v31 = vld [vmem:[%s15405_s1 + $0x188] sm:$0xff]  ;;  %v516_v33 = vld [vmem:[%s15405_s1 + $0xa0] sm:$0xf]  ;;  %v8052_v40 = vld [vmem:[%s15405_s1 + $0x1b8] sm:$0xff] }
  0x29   : > { %v9532_v36 = vpack.c.bf16 %v8048_v32, %v8046_v31  ;;  %v8045_v37 = vld [vmem:[%s15405_s1 + $0x180] sm:$0xff]  ;;  %v8051_v48 = vld [vmem:[%s15405_s1 + $0x1b0] sm:$0xff]  ;;  %v8054_v49 = vld [vmem:[%s15405_s1 + $0x1c8] sm:$0xff] }
  0x2a   : > { %9507 = vmatpush1.bf16.msra.mxu0 %v9506_v34  ;;  %v9528_v34 = vpack.c.bf16 %v8044_v28, %v8042_v27  ;;  %v8049_v47 = vld [vmem:[%s15405_s1 + $0x1a0] sm:$0xff]  ;;  %v8056_v50 = vld [vmem:[%s15405_s1 + $0x1d8] sm:$0xff]  ;;  %v8058_v55 = vld [vmem:[%s15405_s1 + $0x1e8] sm:$0xff] }
  0x2b   : > { %784 = vrot.lane.b32.xlu0 %v11226_v19, %s15427_s20  ;;  %786 = vrot.lane.b32.xlu1 %v11239_v22, %s15427_s20  ;;  %v9540_v52 = vpack.c.bf16 %v8056_v50, %v8054_v49  ;;  %v8053_v53 = vld [vmem:[%s15405_s1 + $0x1c0] sm:$0xff]  ;;  %v8060_v56 = vld [vmem:[%s15405_s1 + $0x1f8] sm:$0xff]  ;;  %vm10479_vm15 = vmpackc.low %vm7144_vm14, %vm11042_vm6  ;;  %vm7337_vm6 = vcmask 654336  }
  0x2c   : > { %8029 = vmatprep.subr.msk.mxu0 %vm562_vm0, %v8028_v35  ;;  %v9530_v35 = vpack.c.bf16 %v8043_v30, %v8041_v29  ;;  %v9544_v58 = vpack.c.bf16 %v8060_v56, %v8058_v55  ;;  %v8057_v59 = vld [vmem:[%s15405_s1 + $0x1e0] sm:$0xff]  ;;  %v8062_v63 = vld [vmem:[%s15405_s1 + $0x208] sm:$0xf]  ;;  %v8070_v0 = vld [vmem:[%s15405_s1 + $0x218] sm:$0xff] }
  0x2d   : > { %v8069_v2 = vld [vmem:[%s15405_s1 + $0x210] sm:$0xff]  ;;  %v8071_v3 = vld [vmem:[%s15405_s1 + $0x220] sm:$0xff]  ;;  %v8082_v28 = vld [vmem:[%s15405_s1 + $0x278] sm:$0xff] }
  0x2e   : > { %8030 = vmatpush1.msk.msra.mxu0 %vm562_vm0, %v8027_v38  ;;  %v8047_v38 = vld [vmem:[%s15405_s1 + $0x190] sm:$0xff]  ;;  %v9550_v9 = vpack.c.bf16 %v8071_v3, %v8069_v2  ;;  %v8079_v27 = vld [vmem:[%s15405_s1 + $0x260] sm:$0xff]  ;;  %v8084_v29 = vld [vmem:[%s15405_s1 + $0x288] sm:$0xff] }
  0x2f   : > { %788 = vrot.lane.b32.xlu0 %v11229_v20, %s15427_s20  ;;  %790 = vrot.lane.b32.xlu1 %v11242_v23, %s15427_s20  ;;  %v9534_v41 = vpack.c.bf16 %v8047_v38, %v8045_v37  ;;  %v8073_v11 = vld [vmem:[%s15405_s1 + $0x230] sm:$0xff]  ;;  %v9560_v32 = vpack.c.bf16 %v8084_v29, %v8082_v28  ;;  %v8100_v49 = vld [vmem:[%s15405_s1 + $0x2d8] sm:$0xff] }
  0x30   : > { %9509 = vmatprep.subr.bf16.mxu0 %v9508_v39  ;;  %v8050_v39 = vld [vmem:[%s15405_s1 + $0x1a8] sm:$0xff]  ;;  %v8097_v50 = vld [vmem:[%s15405_s1 + $0x2c0] sm:$0xff]  ;;  %v8126_v29 = vld [vmem:[%s15405_s1 + $0x378] sm:$0xff] }
  0x31   : > { %v9536_v42 = vpack.c.bf16 %v8052_v40, %v8050_v39  ;;  %v8085_v40 = vld [vmem:[%s15405_s1 + $0x290] sm:$0xff]  ;;  %v8105_v3 = vld [vmem:[%s15405_s1 + $0x300] sm:$0xff]  ;;  %v8118_v28 = vld [vmem:[%s15405_s1 + $0x368] sm:$0xf] }
  0x33   : > { %926 = vrot.lane.b32.xlu0 %v11226_v19, %s15425_s27  ;;  %928 = vrot.lane.b32.xlu1 %v11239_v22, %s15425_s27 }
  0x37   : > { %930 = vrot.lane.b32.xlu0 %v11229_v20, %s15425_s27  ;;  %932 = vrot.lane.b32.xlu1 %v11242_v23, %s15425_s27 }
  0x3b   : > { %1068 = vrot.lane.b32.xlu0 %v11226_v19, %s15429_s16  ;;  %1070 = vrot.lane.b32.xlu1 %v11239_v22, %s15429_s16 }
  0x3f   : > { %1072 = vrot.lane.b32.xlu0 %v11229_v20, %s15429_s16  ;;  %1074 = vrot.lane.b32.xlu1 %v11242_v23, %s15429_s16 }
  0x43   : > { %1352 = vrot.lane.b32.xlu0 %v11308_v43, %s15431_s30  ;;  %1354 = vrot.lane.b32.xlu1 %v11311_v44, %s15431_s30 }
  0x47   : > { %1356 = vrot.lane.b32.xlu0 %v11322_v46, %s15431_s30  ;;  %1358 = vrot.lane.b32.xlu1 %v11314_v45, %s15431_s30 }
  0x4b   : > { %1494 = vrot.lane.b32.xlu0 %v11308_v43, %s15427_s20  ;;  %1496 = vrot.lane.b32.xlu1 %v11311_v44, %s15427_s20 }
  0x4f   : > { %1498 = vrot.lane.b32.xlu0 %v11322_v46, %s15427_s20  ;;  %1500 = vrot.lane.b32.xlu1 %v11314_v45, %s15427_s20  ;;  %s15453_s20 = smov 125  }
  0x53   : > { %1636 = vrot.lane.b32.xlu0 %v11308_v43, %s15425_s27  ;;  %1638 = vrot.lane.b32.xlu1 %v11311_v44, %s15425_s27 }
  0x57   : > { %1640 = vrot.lane.b32.xlu0 %v11322_v46, %s15425_s27  ;;  %1642 = vrot.lane.b32.xlu1 %v11314_v45, %s15425_s27 }
  0x5b   : > { %1778 = vrot.lane.b32.xlu0 %v11308_v43, %s15429_s16  ;;  %1780 = vrot.lane.b32.xlu1 %v11311_v44, %s15429_s16 }
  0x5f   : > { %1782 = vrot.lane.b32.xlu0 %v11322_v46, %s15429_s16  ;;  %1784 = vrot.lane.b32.xlu1 %v11314_v45, %s15429_s16  ;;  %s11045_s16 = smov 104  }
  0x63   : > { %2062 = vrot.lane.b32.xlu0 %v11379_v60, %s15431_s30  ;;  %2064 = vrot.lane.b32.xlu1 %v11415_v15, %s15431_s30 }
  0x67   : > { %2066 = vrot.lane.b32.xlu0 %v11432_v25, %s15431_s30  ;;  %2068 = vrot.lane.b32.xlu1 %v11426_v21, %s15431_s30  ;;  %s11044_s30 = smov 110  }
  0x6b   : > { %2204 = vrot.lane.b32.xlu0 %v11379_v60, %s15450_s29  ;;  %2206 = vrot.lane.b32.xlu1 %v11415_v15, %s15450_s29 }
  0x6f   : > { %2208 = vrot.lane.b32.xlu0 %v11432_v25, %s15450_s29  ;;  %2210 = vrot.lane.b32.xlu1 %v11426_v21, %s15450_s29 }
  0x73   : > { %2346 = vrot.lane.b32.xlu0 %v11379_v60, %s15451_s17  ;;  %2348 = vrot.lane.b32.xlu1 %v11415_v15, %s15451_s17 }
  0x77   : > { %2350 = vrot.lane.b32.xlu0 %v11432_v25, %s15451_s17  ;;  %2352 = vrot.lane.b32.xlu1 %v11426_v21, %s15451_s17 }
  0x7b   : > { %2488 = vrot.lane.b32.xlu0 %v11379_v60, %s15452_s25  ;;  %2490 = vrot.lane.b32.xlu1 %v11415_v15, %s15452_s25 }
  0x7f   : > { %2492 = vrot.lane.b32.xlu0 %v11432_v25, %s15452_s25  ;;  %2494 = vrot.lane.b32.xlu1 %v11426_v21, %s15452_s25 }
  0x95   : > { %v546_v57 = vpop.permute.xlu0 %545  ;;  %v550_v4 = vpop.permute.xlu1 %549 }
  0x96   : > { %8031 = vmatmul.mubr.msk.f32.vlgmr.msra.gmra.mrb[0].mxu0 %vm553_vm2, %v546_v57 }
  0x97   : > { %9511 = vmatpush1.bf16.msra.mxu0 %v9510_v51  ;;  %639 = vmatprep.mubr.f32.mxu0 %v11037_v12  ;;  %v9538_v51 = vpack.c.bf16 %v8051_v48, %v8049_v47  ;;  %v8090_v47 = vld [vmem:[%s15405_s1 + $0x2b8] sm:$0xf]  ;;  %v8098_v48 = vld [vmem:[%s15405_s1 + $0x2c8] sm:$0xff] }
  0x98   : > { %9513 = vmatprep.subr.bf16.mxu0 %v9512_v54  ;;  %v8055_v54 = vld [vmem:[%s15405_s1 + $0x1d0] sm:$0xff]  ;;  %v9568_v55 = vpack.c.bf16 %v8100_v49, %v8098_v48 }
  0x99   : > { %v548_v1 = vpop.permute.xlu0 %547  ;;  %v552_v14 = vpop.permute.xlu1 %551  ;;  %v9542_v57 = vpack.c.bf16 %v8055_v54, %v8053_v53  ;;  %v8104_v53 = vld [vmem:[%s15405_s1 + $0x2f8] sm:$0xff]  ;;  %v8089_v54 = vld [vmem:[%s15405_s1 + $0x2b0] sm:$0xf] }
  0x9a   : > { %8032 = vmatmul.mubr.msk.f32.gmra.mrb[2].mxu0 %vm553_vm2, %v548_v1  ;;  %v8072_v1 = vld [vmem:[%s15405_s1 + $0x228] sm:$0xff] }
  0x9b   : > { %9515 = vmatpush1.bf16.msra.mxu0 %v9514_v61  ;;  %645 = vmatprep.mubr.f32.mxu0 %v11037_v12  ;;  %v8059_v61 = vld [vmem:[%s15405_s1 + $0x1f0] sm:$0xff]  ;;  %v9548_v7 = vpack.c.bf16 %v8072_v1, %v8070_v0 }
  0x9c   : > { %9517 = vmatprep.subr.bf16.mxu0 %v9516_v62  ;;  %v9546_v62 = vpack.c.bf16 %v8059_v61, %v8057_v59  ;;  %v8101_v59 = vld [vmem:[%s15405_s1 + $0x2e0] sm:$0xff]  ;;  %v8103_v61 = vld [vmem:[%s15405_s1 + $0x2f0] sm:$0xff] }
  0x9d   : > { %v785_v8 = vpop.permute.xlu0 %784  ;;  %v787_v18 = vpop.permute.xlu1 %786  ;;  %v9574_v0 = vpack.c.bf16 %v8103_v61, %v8101_v59  ;;  %v8139_v59 = vld [vmem:[%s15405_s1 + $0x3e0] sm:$0xff]  ;;  %v8142_v61 = vld [vmem:[%s15405_s1 + $0x3f8] sm:$0xff] }
  0x9e   : > { %8033 = vmatmul.mubr.msk.f32.gmra.mrb[4].mxu0 %vm553_vm2, %v550_v4  ;;  %v8074_v4 = vld [vmem:[%s15405_s1 + $0x238] sm:$0xff] }
  0x9f   : > { %9519 = vmatpush1.bf16.msra.mxu0 %v9518_v5  ;;  %651 = vmatprep.mubr.f32.mxu0 %v11037_v12  ;;  %v8076_v5 = vld [vmem:[%s15405_s1 + $0x248] sm:$0xff] }
  0xa0   : > { %9521 = vmatprep.subr.bf16.mxu0 %v9520_v6  ;;  %v8061_v6 = vld [vmem:[%s15405_s1 + $0x200] sm:$0xf]  ;;  %v9552_v10 = vpack.c.bf16 %v8076_v5, %v8074_v4  ;;  %v8107_v4 = vld [vmem:[%s15405_s1 + $0x310] sm:$0xff]  ;;  %v8110_v5 = vld [vmem:[%s15405_s1 + $0x328] sm:$0xff] }
  0xa1   : > { %v789_v31 = vpop.permute.xlu0 %788  ;;  %v791_v38 = vpop.permute.xlu1 %790 }
  0xa2   : > { %8034 = vmatmul.mubr.msk.f32.gmra.mrb[6].mxu0 %vm553_vm2, %v552_v14  ;;  %v8078_v14 = vld [vmem:[%s15405_s1 + $0x258] sm:$0xff] }
  0xa3   : > { %9523 = vmatpush1.bf16.msra.mxu0 %v9522_v13  ;;  %736 = vmatprep.mubr.f32.mxu0 %v11037_v12  ;;  %v8075_v13 = vld [vmem:[%s15405_s1 + $0x240] sm:$0xff] }
  0xa4   : > { %9525 = vmatprep.subr.bf16.mxu0 %v9524_v16  ;;  %v8080_v16 = vld [vmem:[%s15405_s1 + $0x268] sm:$0xff]  ;;  %v9554_v17 = vpack.c.bf16 %v8075_v13, %v8073_v11  ;;  %v8111_v11 = vld [vmem:[%s15405_s1 + $0x330] sm:$0xff] }
  0xa5   : > { %v927_v56 = vpop.permute.xlu0 %926  ;;  %v929_v1 = vpop.permute.xlu1 %928  ;;  %v8114_v13 = vld [vmem:[%s15405_s1 + $0x348] sm:$0xff] }
  0xa7   : > { %9527 = vmatpush1.bf16.msra.mxu0 %v9526_v24  ;;  %v9556_v24 = vpack.c.bf16 %v8080_v16, %v8078_v14  ;;  %v8116_v14 = vld [vmem:[%s15405_s1 + $0x358] sm:$0xff] }
  0xa8   : > { %8035 = vmatprep.subr.msk.mxu0 %vm562_vm0, %v517_v26  ;;  %v8077_v26 = vld [vmem:[%s15405_s1 + $0x250] sm:$0xff] }
  0xa9   : > { %v9558_v30 = vpack.c.bf16 %v8079_v27, %v8077_v26  ;;  %v8115_v26 = vld [vmem:[%s15405_s1 + $0x350] sm:$0xff] }
  0xab   : > { %8036 = vmatpush1.msk.msra.mxu0 %vm562_vm0, %v516_v33  ;;  %v8081_v33 = vld [vmem:[%s15405_s1 + $0x270] sm:$0xff] }
  0xac   : > { %9529 = vmatprep.subr.bf16.mxu0 %v9528_v34  ;;  %8037 = vmatmul.mubr.msk.f32.vlgmr.msra.gmra.mrb[0].mxu0 %vm553_vm2, %v11226_v19  ;;  %v8083_v34 = vld [vmem:[%s15405_s1 + $0x280] sm:$0xff] }
  0xad   : > { %9531 = vmatpush1.bf16.msra.mxu0 %v9530_v35  ;;  %742 = vmatprep.mubr.f32.mxu0 %v11037_v12  ;;  %v8086_v35 = vld [vmem:[%s15405_s1 + $0x298] sm:$0xff]  ;;  %v9562_v37 = vpack.c.bf16 %v8083_v34, %v8081_v33  ;;  %v8132_v34 = vld [vmem:[%s15405_s1 + $0x3a8] sm:$0xff] }
  0xae   : > { %9533 = vmatprep.subr.bf16.mxu0 %v9532_v36  ;;  %v8088_v36 = vld [vmem:[%s15405_s1 + $0x2a8] sm:$0xff]  ;;  %v8130_v33 = vld [vmem:[%s15405_s1 + $0x398] sm:$0xff] }
  0xaf   : > { %v9564_v39 = vpack.c.bf16 %v8088_v36, %v8086_v35  ;;  %v8117_v35 = vld [vmem:[%s15405_s1 + $0x360] sm:$0xf] }
  0xb0   : > { %8038 = vmatmul.mubr.msk.f32.gmra.mrb[2].mxu0 %vm553_vm2, %v11239_v22 }
  0xb1   : > { %9535 = vmatpush1.bf16.msra.mxu0 %v9534_v41  ;;  %748 = vmatprep.mubr.f32.mxu0 %v11037_v12  ;;  %v8087_v41 = vld [vmem:[%s15405_s1 + $0x2a0] sm:$0xff] }
  0xb2   : > { %9537 = vmatprep.subr.bf16.mxu0 %v9536_v42  ;;  %v9566_v42 = vpack.c.bf16 %v8087_v41, %v8085_v40  ;;  %v8129_v40 = vld [vmem:[%s15405_s1 + $0x390] sm:$0xff]  ;;  %v8131_v41 = vld [vmem:[%s15405_s1 + $0x3a0] sm:$0xff] }
  0xb3   : > { %v9594_v48 = vpack.c.bf16 %v8131_v41, %v8129_v40 }
  0xb4   : > { %8039 = vmatmul.mubr.msk.f32.gmra.mrb[4].mxu0 %vm553_vm2, %v11229_v20 }
  0xb5   : > { %9539 = vmatpush1.bf16.msra.mxu0 %v9538_v51  ;;  %754 = vmatprep.mubr.f32.mxu0 %v11037_v12  ;;  %v8099_v51 = vld [vmem:[%s15405_s1 + $0x2d0] sm:$0xff] }
  0xb6   : > { %9541 = vmatprep.subr.bf16.mxu0 %v9540_v52  ;;  %v8102_v52 = vld [vmem:[%s15405_s1 + $0x2e8] sm:$0xff] }
  0xb8   : > { %8040 = vmatmul.mubr.msk.f32.gmra.mrb[6].mxu0 %vm553_vm2, %v11242_v23 }
  0xb9   : > { %9543 = vmatpush1.bf16.msra.mxu0 %v9542_v57  ;;  %870 = vmatprep.mubr.f32.mxu0 %v11037_v12  ;;  %v9570_v57 = vpack.c.bf16 %v8099_v51, %v8097_v50  ;;  %v8133_v51 = vld [vmem:[%s15405_s1 + $0x3b0] sm:$0xff] }
  0xba   : > { %9545 = vmatprep.subr.bf16.mxu0 %v9544_v58  ;;  %v9572_v58 = vpack.c.bf16 %v8104_v53, %v8102_v52  ;;  %v8135_v52 = vld [vmem:[%s15405_s1 + $0x3c0] sm:$0xff]  ;;  %v8138_v53 = vld [vmem:[%s15405_s1 + $0x3d8] sm:$0xff] }
  0xbd   : > { %9547 = vmatpush1.bf16.msra.mxu0 %v9546_v62  ;;  %v8106_v62 = vld [vmem:[%s15405_s1 + $0x308] sm:$0xff] }
  0xbe   : > { %8063 = vmatprep.subr.msk.mxu0 %vm562_vm0, %v8062_v63  ;;  %v8108_v63 = vld [vmem:[%s15405_s1 + $0x318] sm:$0xff] }
  0xbf   : > { %v9576_v2 = vpack.c.bf16 %v8108_v63, %v8106_v62  ;;  %v8144_v62 = vld [vmem:[%s15405_s1 + $0x408] sm:$0xff] }
  0xc1   : > { %8064 = vmatpush1.msk.msra.mxu0 %vm562_vm0, %v8061_v6  ;;  %v8112_v6 = vld [vmem:[%s15405_s1 + $0x338] sm:$0xff] }
  0xc2   : > { %9549 = vmatprep.subr.bf16.mxu0 %v9548_v7  ;;  %8065 = vmatmul.mubr.msk.f32.vlgmr.msra.gmra.mrb[0].mxu0 %vm553_vm2, %v785_v8  ;;  %v9578_v7 = vpack.c.bf16 %v8107_v4, %v8105_v3  ;;  %v931_v8 = vpop.permute.xlu0 %930  ;;  %v8143_v3 = vld [vmem:[%s15405_s1 + $0x400] sm:$0xff] }
  0xc3   : > { %9551 = vmatpush1.bf16.msra.mxu0 %v9550_v9  ;;  %876 = vmatprep.mubr.f32.mxu0 %v11037_v12  ;;  %v9580_v9 = vpack.c.bf16 %v8112_v6, %v8110_v5  ;;  %v8146_v5 = vld [vmem:[%s15405_s1 + $0x418] sm:$0xf]  ;;  %v8154_v6 = vld [vmem:[%s15405_s1 + $0x428] sm:$0xff] }
  0xc4   : > { %9553 = vmatprep.subr.bf16.mxu0 %v9552_v10  ;;  %v8109_v10 = vld [vmem:[%s15405_s1 + $0x320] sm:$0xff] }
  0xc5   : > { %v9582_v16 = vpack.c.bf16 %v8111_v11, %v8109_v10  ;;  %v8158_v10 = vld [vmem:[%s15405_s1 + $0x448] sm:$0xff]  ;;  %v8160_v11 = vld [vmem:[%s15405_s1 + $0x458] sm:$0xff] }
  0xc6   : > { %8066 = vmatmul.mubr.msk.f32.gmra.mrb[2].mxu0 %vm553_vm2, %v787_v18  ;;  %v9584_v18 = vpack.c.bf16 %v8116_v14, %v8114_v13  ;;  %v8145_v13 = vld [vmem:[%s15405_s1 + $0x410] sm:$0xf] }
  0xc7   : > { %9555 = vmatpush1.bf16.msra.mxu0 %v9554_v17  ;;  %882 = vmatprep.mubr.f32.mxu0 %v11037_v12  ;;  %v933_v17 = vpop.permute.xlu1 %932 }
  0xc8   : > { %9557 = vmatprep.subr.bf16.mxu0 %v9556_v24  ;;  %v8113_v24 = vld [vmem:[%s15405_s1 + $0x340] sm:$0xff] }
  0xc9   : > { %v9586_v27 = vpack.c.bf16 %v8115_v26, %v8113_v24  ;;  %v9612_v24 = vpack.c.bf16 %v8160_v11, %v8158_v10  ;;  %v8157_v26 = vld [vmem:[%s15405_s1 + $0x440] sm:$0xff]  ;;  %v8193_v11 = vld [vmem:[%s15405_s1 + $0x530] sm:$0xff] }
  0xca   : > { %8067 = vmatmul.mubr.msk.f32.gmra.mrb[4].mxu0 %vm553_vm2, %v789_v31  ;;  %v8125_v31 = vld [vmem:[%s15405_s1 + $0x370] sm:$0xff] }
  0xcb   : > { %9559 = vmatpush1.bf16.msra.mxu0 %v9558_v30  ;;  %888 = vmatprep.mubr.f32.mxu0 %v11037_v12  ;;  %v8128_v30 = vld [vmem:[%s15405_s1 + $0x388] sm:$0xff]  ;;  %v1071_v49 = vpop.permute.xlu1 %1070 }
  0xcc   : > { %9561 = vmatprep.subr.bf16.mxu0 %v9560_v32  ;;  %v8127_v32 = vld [vmem:[%s15405_s1 + $0x380] sm:$0xff]  ;;  %v9588_v36 = vpack.c.bf16 %v8128_v30, %v8126_v29 }
  0xce   : > { %8068 = vmatmul.mubr.msk.f32.gmra.mrb[6].mxu0 %vm553_vm2, %v791_v38  ;;  %v9590_v38 = vpack.c.bf16 %v8127_v32, %v8125_v31  ;;  %v8161_v31 = vld [vmem:[%s15405_s1 + $0x460] sm:$0xff]  ;;  %v8163_v32 = vld [vmem:[%s15405_s1 + $0x470] sm:$0xff] }
  0xcf   : > { %9563 = vmatpush1.bf16.msra.mxu0 %v9562_v37  ;;  %1012 = vmatprep.mubr.f32.mxu0 %v11037_v12  ;;  %v1069_v37 = vpop.permute.xlu0 %1068 }
  0xd0   : > { %9565 = vmatprep.subr.bf16.mxu0 %v9564_v39  ;;  %v9592_v39 = vpack.c.bf16 %v8132_v34, %v8130_v33  ;;  %v8168_v33 = vld [vmem:[%s15405_s1 + $0x498] sm:$0xff]  ;;  %v9618_v34 = vpack.c.bf16 %v8163_v32, %v8161_v31  ;;  %v8209_v31 = vld [vmem:[%s15405_s1 + $0x580] sm:$0xff]  ;;  %v8211_v32 = vld [vmem:[%s15405_s1 + $0x590] sm:$0xff] }
  0xd3   : > { %9567 = vmatpush1.bf16.msra.mxu0 %v9566_v42  ;;  %v8134_v42 = vld [vmem:[%s15405_s1 + $0x3b8] sm:$0xff] }
  0xd4   : > { %8091 = vmatprep.subr.msk.mxu0 %vm562_vm0, %v8090_v47  ;;  %v8136_v47 = vld [vmem:[%s15405_s1 + $0x3c8] sm:$0xff] }
  0xd5   : > { %v9596_v50 = vpack.c.bf16 %v8136_v47, %v8134_v42  ;;  %v8169_v47 = vld [vmem:[%s15405_s1 + $0x4a0] sm:$0xff] }
  0xd7   : > { %8092 = vmatpush1.msk.msra.mxu0 %vm562_vm0, %v8089_v54  ;;  %v8140_v54 = vld [vmem:[%s15405_s1 + $0x3e8] sm:$0xff] }
  0xd8   : > { %9569 = vmatprep.subr.bf16.mxu0 %v9568_v55  ;;  %8093 = vmatmul.mubr.msk.f32.vlgmr.msra.gmra.mrb[0].mxu0 %vm553_vm2, %v927_v56  ;;  %v9598_v55 = vpack.c.bf16 %v8135_v52, %v8133_v51  ;;  %v1073_v56 = vpop.permute.xlu0 %1072  ;;  %v8181_v51 = vld [vmem:[%s15405_s1 + $0x4d0] sm:$0xff]  ;;  %v8183_v52 = vld [vmem:[%s15405_s1 + $0x4e0] sm:$0xff] }
  0xd9   : > { %9571 = vmatpush1.bf16.msra.mxu0 %v9570_v57  ;;  %1018 = vmatprep.mubr.f32.mxu0 %v11037_v12  ;;  %v9600_v57 = vpack.c.bf16 %v8140_v54, %v8138_v53  ;;  %v8186_v53 = vld [vmem:[%s15405_s1 + $0x4f8] sm:$0xff]  ;;  %v8188_v54 = vld [vmem:[%s15405_s1 + $0x508] sm:$0xff] }
  0xda   : > { %9573 = vmatprep.subr.bf16.mxu0 %v9572_v58  ;;  %v8137_v58 = vld [vmem:[%s15405_s1 + $0x3d0] sm:$0xff] }
  0xdb   : > { %v9602_v63 = vpack.c.bf16 %v8139_v59, %v8137_v58  ;;  %v9630_v58 = vpack.c.bf16 %v8183_v52, %v8181_v51  ;;  %v9632_v59 = vpack.c.bf16 %v8188_v54, %v8186_v53  ;;  %v8224_v51 = vld [vmem:[%s15405_s1 + $0x5f8] sm:$0xff] }
  0xdc   : > { %8094 = vmatmul.mubr.msk.f32.gmra.mrb[2].mxu0 %vm553_vm2, %v929_v1  ;;  %v9604_v1 = vpack.c.bf16 %v8144_v62, %v8142_v61  ;;  %v8185_v61 = vld [vmem:[%s15405_s1 + $0x4f0] sm:$0xff]  ;;  %v8187_v62 = vld [vmem:[%s15405_s1 + $0x500] sm:$0xff] }
  0xdd   : > { %9575 = vmatpush1.bf16.msra.mxu0 %v9574_v0  ;;  %1024 = vmatprep.mubr.f32.mxu0 %v11037_v12  ;;  %v1075_v0 = vpop.permute.xlu1 %1074 }
  0xde   : > { %9577 = vmatprep.subr.bf16.mxu0 %v9576_v2  ;;  %v8141_v2 = vld [vmem:[%s15405_s1 + $0x3f0] sm:$0xff] }
  0xdf   : > { %v9606_v4 = vpack.c.bf16 %v8143_v3, %v8141_v2 }
  0xe0   : > { %8095 = vmatmul.mubr.msk.f32.gmra.mrb[4].mxu0 %vm553_vm2, %v931_v8  ;;  %v8153_v8 = vld [vmem:[%s15405_s1 + $0x420] sm:$0xff] }
  0xe1   : > { %9579 = vmatpush1.bf16.msra.mxu0 %v9578_v7  ;;  %1030 = vmatprep.mubr.f32.mxu0 %v11037_v12  ;;  %v8156_v7 = vld [vmem:[%s15405_s1 + $0x438] sm:$0xff]  ;;  %v1355_v2 = vpop.permute.xlu1 %1354 }
  0xe2   : > { %9581 = vmatprep.subr.bf16.mxu0 %v9580_v9  ;;  %v8155_v9 = vld [vmem:[%s15405_s1 + $0x430] sm:$0xff]  ;;  %v9608_v14 = vpack.c.bf16 %v8156_v7, %v8154_v6  ;;  %v8194_v6 = vld [vmem:[%s15405_s1 + $0x538] sm:$0xff]  ;;  %v8196_v7 = vld [vmem:[%s15405_s1 + $0x548] sm:$0xff] }
  0xe3   : > { %v9640_v10 = vpack.c.bf16 %v8196_v7, %v8194_v6  ;;  %v8239_v6 = vld [vmem:[%s15405_s1 + $0x640] sm:$0xff]  ;;  %v8242_v7 = vld [vmem:[%s15405_s1 + $0x658] sm:$0xff] }
  0xe4   : > { %8096 = vmatmul.mubr.msk.f32.gmra.mrb[6].mxu0 %vm553_vm2, %v933_v17  ;;  %v2631_v17 = vrot.slane %v11226_v19, 3  ;;  %v8164_v19 = vld [vmem:[%s15405_s1 + $0x478] sm:$0xff] }
  0xe5   : > { %9583 = vmatpush1.bf16.msra.mxu0 %v9582_v16  ;;  %1154 = vmatprep.mubr.f32.mxu0 %v11037_v12  ;;  %v9610_v16 = vpack.c.bf16 %v8155_v9, %v8153_v8 }
  0xe6   : > { %9585 = vmatprep.subr.bf16.mxu0 %v9584_v18  ;;  %v2632_v18 = vrot.slane %v11239_v22, 3 }
  0xe8   : > { %v11811_v22 = vsel %vm2630_vm4, %v2631_v17, %v2632_v18 }
  0xe9   : > { %9587 = vmatpush1.bf16.msra.mxu0 %v9586_v27  ;;  %v8159_v27 = vld [vmem:[%s15405_s1 + $0x450] sm:$0xff]  ;;  %2772 = vrot.lane.b32.xlu0 %v11811_v22, %s15453_s20 }
  0xea   : > { %8119 = vmatprep.subr.msk.mxu0 %vm562_vm0, %v8118_v28  ;;  %v8162_v28 = vld [vmem:[%s15405_s1 + $0x468] sm:$0xff]  ;;  %v9614_v29 = vpack.c.bf16 %v8159_v27, %v8157_v26  ;;  %v8197_v26 = vld [vmem:[%s15405_s1 + $0x550] sm:$0xff]  ;;  %v8199_v27 = vld [vmem:[%s15405_s1 + $0x560] sm:$0xff] }
  0xeb   : > { %v9616_v30 = vpack.c.bf16 %v8164_v19, %v8162_v28  ;;  %v9646_v28 = vpack.c.bf16 %v8199_v27, %v8197_v26  ;;  %v8202_v19 = vld [vmem:[%s15405_s1 + $0x578] sm:$0xf] }
  0xed   : > { %8120 = vmatpush1.msk.msra.mxu0 %vm562_vm0, %v8117_v35 }
  0xee   : > { %9589 = vmatprep.subr.bf16.mxu0 %v9588_v36  ;;  %8121 = vmatmul.mubr.msk.f32.vlgmr.msra.gmra.mrb[0].mxu0 %vm553_vm2, %v1069_v37  ;;  %v8165_v36 = vld [vmem:[%s15405_s1 + $0x480] sm:$0xff]  ;;  %v8167_v37 = vld [vmem:[%s15405_s1 + $0x490] sm:$0xff] }
  0xef   : > { %9591 = vmatpush1.bf16.msra.mxu0 %v9590_v38  ;;  %1160 = vmatprep.mubr.f32.mxu0 %v11037_v12  ;;  %v8170_v38 = vld [vmem:[%s15405_s1 + $0x4a8] sm:$0xff]  ;;  %v9622_v40 = vpack.c.bf16 %v8167_v37, %v8165_v36  ;;  %v9650_v37 = vpack.c.bf16 %v8211_v32, %v8209_v31 }
  0xf0   : > { %9593 = vmatprep.subr.bf16.mxu0 %v9592_v39  ;;  %v2634_v39 = vrot.slane %v11229_v20, 3  ;;  %v8171_v20 = vld [vmem:[%s15405_s1 + $0x4b0] sm:$0xff]  ;;  %v8252_v31 = vld [vmem:[%s15405_s1 + $0x6a8] sm:$0xff] }
  0xf2   : > { %8122 = vmatmul.mubr.msk.f32.gmra.mrb[2].mxu0 %vm553_vm2, %v1071_v49  ;;  %v11850_v41 = vsel %vm2630_vm4, %v2632_v18, %v2634_v39  ;;  %v1359_v18 = vpop.permute.xlu1 %1358 }
  0xf3   : > { %9595 = vmatpush1.bf16.msra.mxu0 %v9594_v48  ;;  %1166 = vmatprep.mubr.f32.mxu0 %v11037_v12  ;;  %v9626_v48 = vpack.c.bf16 %v8171_v20, %v8169_v47 }
  0xf4   : > { %9597 = vmatprep.subr.bf16.mxu0 %v9596_v50  ;;  %2774 = vrot.lane.b32.xlu1 %v11850_v41, %s15453_s20  ;;  %v8184_v50 = vld [vmem:[%s15405_s1 + $0x4e8] sm:$0xff] }
  0xf6   : > { %8123 = vmatmul.mubr.msk.f32.gmra.mrb[4].mxu0 %vm553_vm2, %v1073_v56  ;;  %v1497_v20 = vpop.permute.xlu1 %1496 }
  0xf7   : > { %9599 = vmatpush1.bf16.msra.mxu0 %v9598_v55  ;;  %1172 = vmatprep.mubr.f32.mxu0 %v11037_v12  ;;  %v8173_v55 = vld [vmem:[%s15405_s1 + $0x4c0] sm:$0xf] }
  0xf8   : > { %9601 = vmatprep.subr.bf16.mxu0 %v9600_v57  ;;  %v1353_v57 = vpop.permute.xlu0 %1352 }
  0xfa   : > { %8124 = vmatmul.mubr.msk.f32.gmra.mrb[6].mxu0 %vm553_vm2, %v1075_v0  ;;  %v8192_v0 = vld [vmem:[%s15405_s1 + $0x528] sm:$0xff] }
  0xfb   : > { %9603 = vmatpush1.bf16.msra.mxu0 %v9602_v63  ;;  %1296 = vmatprep.mubr.f32.mxu0 %v11037_v12  ;;  %v8190_v63 = vld [vmem:[%s15405_s1 + $0x518] sm:$0xff] }
  0xfc   : > { %9605 = vmatprep.subr.bf16.mxu0 %v9604_v1  ;;  %v9634_v1 = vpack.c.bf16 %v8187_v62, %v8185_v61  ;;  %v9636_v3 = vpack.c.bf16 %v8192_v0, %v8190_v63  ;;  %v1357_v9 = vpop.permute.xlu0 %1356  ;;  %v1501_v61 = vpop.permute.xlu1 %1500  ;;  %v8225_v63 = vld [vmem:[%s15405_s1 + $0x600] sm:$0xff]  ;;  %v8227_v0 = vld [vmem:[%s15405_s1 + $0x610] sm:$0xff] }
  0xff   : > { %9607 = vmatpush1.bf16.msra.mxu0 %v9606_v4  ;;  %v8189_v4 = vld [vmem:[%s15405_s1 + $0x510] sm:$0xff] }
 0x100   : > { %8147 = vmatprep.subr.msk.mxu0 %vm562_vm0, %v8146_v5  ;;  %v8191_v5 = vld [vmem:[%s15405_s1 + $0x520] sm:$0xff]  ;;  %v1495_v36 = vpop.permute.xlu0 %1494  ;;  %v1639_v27 = vpop.permute.xlu1 %1638 }
 0x101   : > { %v9638_v8 = vpack.c.bf16 %v8191_v5, %v8189_v4  ;;  %v8240_v4 = vld [vmem:[%s15405_s1 + $0x648] sm:$0xff]  ;;  %v8237_v5 = vld [vmem:[%s15405_s1 + $0x630] sm:$0xff] }
 0x103   : > { %8148 = vmatpush1.msk.msra.mxu0 %vm562_vm0, %v8145_v13  ;;  %v8195_v13 = vld [vmem:[%s15405_s1 + $0x540] sm:$0xff] }
 0x104   : > { %9609 = vmatprep.subr.bf16.mxu0 %v9608_v14  ;;  %8149 = vmatmul.mubr.msk.f32.vlgmr.msra.gmra.mrb[0].mxu0 %vm553_vm2, %v11308_v43  ;;  %v8166_v43 = vld [vmem:[%s15405_s1 + $0x488] sm:$0xff]  ;;  %v8198_v14 = vld [vmem:[%s15405_s1 + $0x558] sm:$0xff]  ;;  %v9642_v17 = vpack.c.bf16 %v8195_v13, %v8193_v11  ;;  %v1499_v53 = vpop.permute.xlu0 %1498  ;;  %v9670_v13 = vpack.c.bf16 %v8239_v6, %v8237_v5 }
 0x105   : > { %9611 = vmatpush1.bf16.msra.mxu0 %v9610_v16  ;;  %1302 = vmatprep.mubr.f32.mxu0 %v11037_v12  ;;  %v9620_v35 = vpack.c.bf16 %v8168_v33, %v8166_v43  ;;  %v8200_v16 = vld [vmem:[%s15405_s1 + $0x568] sm:$0xff]  ;;  %v8216_v33 = vld [vmem:[%s15405_s1 + $0x5b8] sm:$0xff] }
 0x106   : > { %9613 = vmatprep.subr.bf16.mxu0 %v9612_v24  ;;  %v9644_v24 = vpack.c.bf16 %v8200_v16, %v8198_v14  ;;  %v8214_v43 = vld [vmem:[%s15405_s1 + $0x5a8] sm:$0xff]  ;;  %v8241_v16 = vld [vmem:[%s15405_s1 + $0x650] sm:$0xff]  ;;  %v8280_v5 = vld [vmem:[%s15405_s1 + $0x758] sm:$0xff] }
 0x108   : > { %8150 = vmatmul.mubr.msk.f32.gmra.mrb[2].mxu0 %vm553_vm2, %v11311_v44  ;;  %v8172_v44 = vld [vmem:[%s15405_s1 + $0x4b8] sm:$0xff]  ;;  %v1637_v11 = vpop.permute.xlu0 %1636 }
 0x109   : > { %9615 = vmatpush1.bf16.msra.mxu0 %v9614_v29  ;;  %1308 = vmatprep.mubr.f32.mxu0 %v11037_v12  ;;  %v9624_v42 = vpack.c.bf16 %v8172_v44, %v8170_v38  ;;  %v8210_v29 = vld [vmem:[%s15405_s1 + $0x588] sm:$0xff]  ;;  %v9652_v38 = vpack.c.bf16 %v8216_v33, %v8214_v43  ;;  %v8213_v44 = vld [vmem:[%s15405_s1 + $0x5a0] sm:$0xff] }
 0x10a   : > { %9617 = vmatprep.subr.bf16.mxu0 %v9616_v30  ;;  %v8212_v30 = vld [vmem:[%s15405_s1 + $0x598] sm:$0xff] }
 0x10c   : > { %8151 = vmatmul.mubr.msk.f32.gmra.mrb[4].mxu0 %vm553_vm2, %v11322_v46  ;;  %v11861_v46 = vrot.slane %v11242_v23, 3  ;;  %v8174_v23 = vld [vmem:[%s15405_s1 + $0x4c8] sm:$0xf]  ;;  %v1641_v43 = vpop.permute.xlu0 %1640 }
 0x10d   : > { %9619 = vmatpush1.bf16.msra.mxu0 %v9618_v34  ;;  %1314 = vmatprep.mubr.f32.mxu0 %v11037_v12  ;;  %v8201_v34 = vld [vmem:[%s15405_s1 + $0x570] sm:$0xf] }
 0x10e   : > { %9621 = vmatprep.subr.bf16.mxu0 %v9620_v35  ;;  %v11868_v49 = vsel %vm2630_vm4, %v2634_v39, %v11861_v46  ;;  %2778 = vrot.lane.b32.xlu1 %v11861_v46, %s15453_s20  ;;  %v9648_v35 = vpack.c.bf16 %v8212_v30, %v8210_v29  ;;  %v8215_v39 = vld [vmem:[%s15405_s1 + $0x5b0] sm:$0xff]  ;;  %v8247_v29 = vld [vmem:[%s15405_s1 + $0x680] sm:$0xff]  ;;  %v8250_v30 = vld [vmem:[%s15405_s1 + $0x698] sm:$0xff] }
 0x10f   : > { %2776 = vrot.lane.b32.xlu0 %v11868_v49, %s15453_s20  ;;  %v9654_v47 = vpack.c.bf16 %v8215_v39, %v8213_v44  ;;  %v9680_v33 = vpack.c.bf16 %v8252_v31, %v8250_v30  ;;  %v1643_v44 = vpop.permute.xlu1 %1642  ;;  %v8295_v30 = vld [vmem:[%s15405_s1 + $0x7a0] sm:$0xff]  ;;  %v8298_v31 = vld [vmem:[%s15405_s1 + $0x7b8] sm:$0xff] }
 0x110   : > { %8152 = vmatmul.mubr.msk.f32.gmra.mrb[6].mxu0 %vm553_vm2, %v11314_v45  ;;  %v8182_v45 = vld [vmem:[%s15405_s1 + $0x4d8] sm:$0xff] }
 0x111   : > { %9623 = vmatpush1.bf16.msra.mxu0 %v9622_v40  ;;  %1438 = vmatprep.mubr.f32.mxu0 %v11037_v12  ;;  %v9628_v56 = vpack.c.bf16 %v8184_v50, %v8182_v45  ;;  %v8218_v40 = vld [vmem:[%s15405_s1 + $0x5c8] sm:$0xff]  ;;  %v8219_v45 = vld [vmem:[%s15405_s1 + $0x5d0] sm:$0xff] }
 0x112   : > { %9625 = vmatprep.subr.bf16.mxu0 %v9624_v42  ;;  %2916 = vrot.lane.b32.xlu1 %v11850_v41, %s15450_s29  ;;  %v8220_v42 = vld [vmem:[%s15405_s1 + $0x5d8] sm:$0xff]  ;;  %v8222_v50 = vld [vmem:[%s15405_s1 + $0x5e8] sm:$0xff] }
 0x113   : > { %2914 = vrot.lane.b32.xlu0 %v11811_v22, %s15450_s29  ;;  %v9660_v54 = vpack.c.bf16 %v8224_v51, %v8222_v50  ;;  %v8267_v50 = vld [vmem:[%s15405_s1 + $0x6f0] sm:$0xff]  ;;  %v8270_v51 = vld [vmem:[%s15405_s1 + $0x708] sm:$0xff] }
 0x115   : > { %9627 = vmatpush1.bf16.msra.mxu0 %v9626_v48  ;;  %v9656_v48 = vpack.c.bf16 %v8220_v42, %v8218_v40  ;;  %v8253_v40 = vld [vmem:[%s15405_s1 + $0x6b0] sm:$0xff]  ;;  %v8255_v42 = vld [vmem:[%s15405_s1 + $0x6c0] sm:$0xff] }
 0x116   : > { %8175 = vmatprep.subr.msk.mxu0 %vm562_vm0, %v8174_v23  ;;  %2920 = vrot.lane.b32.xlu1 %v11861_v46, %s15450_s29  ;;  %v8217_v23 = vld [vmem:[%s15405_s1 + $0x5c0] sm:$0xff] }
 0x117   : > { %2918 = vrot.lane.b32.xlu0 %v11868_v49, %s15450_s29  ;;  %v9658_v52 = vpack.c.bf16 %v8219_v45, %v8217_v23  ;;  %v8268_v23 = vld [vmem:[%s15405_s1 + $0x6f8] sm:$0xff]  ;;  %v8265_v45 = vld [vmem:[%s15405_s1 + $0x6e0] sm:$0xff] }
 0x119   : > { %8176 = vmatpush1.msk.msra.mxu0 %vm562_vm0, %v8173_v55  ;;  %v8221_v55 = vld [vmem:[%s15405_s1 + $0x5e0] sm:$0xff] }
 0x11a   : > { %9629 = vmatprep.subr.bf16.mxu0 %v9628_v56  ;;  %8177 = vmatmul.mubr.msk.f32.vlgmr.msra.gmra.mrb[0].mxu0 %vm553_vm2, %v1353_v57  ;;  %v8223_v56 = vld [vmem:[%s15405_s1 + $0x5f0] sm:$0xff]  ;;  %v8226_v57 = vld [vmem:[%s15405_s1 + $0x608] sm:$0xff] }
 0x11b   : > { %9631 = vmatpush1.bf16.msra.mxu0 %v9630_v58  ;;  %1444 = vmatprep.mubr.f32.mxu0 %v11037_v12  ;;  %v8228_v58 = vld [vmem:[%s15405_s1 + $0x618] sm:$0xff] }
 0x11c   : > { %9633 = vmatprep.subr.bf16.mxu0 %v9632_v59  ;;  %3056 = vrot.lane.b32.xlu0 %v11811_v22, %s15451_s17  ;;  %v9662_v59 = vpack.c.bf16 %v8223_v56, %v8221_v55  ;;  %v9664_v62 = vpack.c.bf16 %v8228_v58, %v8226_v57  ;;  %v1779_v55 = vpop.permute.xlu0 %1778  ;;  %v9690_v56 = vpack.c.bf16 %v8267_v50, %v8265_v45  ;;  %v8269_v58 = vld [vmem:[%s15405_s1 + $0x700] sm:$0xff]  ;;  %v8301_v45 = vld [vmem:[%s15405_s1 + $0x7d0] sm:$0xff] }
 0x11d   : > { %3058 = vrot.lane.b32.xlu1 %v11850_v41, %s15451_s17  ;;  %v8303_v50 = vld [vmem:[%s15405_s1 + $0x7e0] sm:$0xff] }
 0x11e   : > { %8178 = vmatmul.mubr.msk.f32.gmra.mrb[2].mxu0 %vm553_vm2, %v1355_v2  ;;  %v8230_v2 = vld [vmem:[%s15405_s1 + $0x628] sm:$0xf] }
 0x11f   : > { %9635 = vmatpush1.bf16.msra.mxu0 %v9634_v1  ;;  %1450 = vmatprep.mubr.f32.mxu0 %v11037_v12  ;;  %v9666_v1 = vpack.c.bf16 %v8227_v0, %v8225_v63  ;;  %v1781_v0 = vpop.permute.xlu1 %1780 }
 0x120   : > { %9637 = vmatprep.subr.bf16.mxu0 %v9636_v3  ;;  %3060 = vrot.lane.b32.xlu0 %v11868_v49, %s15451_s17  ;;  %v8238_v3 = vld [vmem:[%s15405_s1 + $0x638] sm:$0xff] }
 0x121   : > { %3062 = vrot.lane.b32.xlu1 %v11861_v46, %s15451_s17 }
 0x122   : > { %8179 = vmatmul.mubr.msk.f32.gmra.mrb[4].mxu0 %vm553_vm2, %v1357_v9  ;;  %v8229_v9 = vld [vmem:[%s15405_s1 + $0x620] sm:$0xf] }
 0x123   : > { %9639 = vmatpush1.bf16.msra.mxu0 %v9638_v8  ;;  %1456 = vmatprep.mubr.f32.mxu0 %v11037_v12  ;;  %v8244_v8 = vld [vmem:[%s15405_s1 + $0x668] sm:$0xff] }
 0x124   : > { %9641 = vmatprep.subr.bf16.mxu0 %v9640_v10  ;;  %3198 = vrot.lane.b32.xlu0 %v11811_v22, %s15452_s25  ;;  %v9668_v10 = vpack.c.bf16 %v8240_v4, %v8238_v3  ;;  %v9672_v14 = vpack.c.bf16 %v8244_v8, %v8242_v7  ;;  %v8275_v3 = vld [vmem:[%s15405_s1 + $0x730] sm:$0xff]  ;;  %v8278_v4 = vld [vmem:[%s15405_s1 + $0x748] sm:$0xff]  ;;  %v1783_v7 = vpop.permute.xlu0 %1782 }
 0x125   : > { %3200 = vrot.lane.b32.xlu1 %v11850_v41, %s15452_s25  ;;  %v9700_v8 = vpack.c.bf16 %v8280_v5, %v8278_v4  ;;  %v8314_v4 = vld [vmem:[%s15405_s1 + $0x838] sm:$0xf] }
 0x126   : > { %8180 = vmatmul.mubr.msk.f32.gmra.mrb[6].mxu0 %vm553_vm2, %v1359_v18  ;;  %v8246_v18 = vld [vmem:[%s15405_s1 + $0x678] sm:$0xff] }
 0x127   : > { %9643 = vmatpush1.bf16.msra.mxu0 %v9642_v17  ;;  %1580 = vmatprep.mubr.f32.mxu0 %v11037_v12  ;;  %v8243_v17 = vld [vmem:[%s15405_s1 + $0x660] sm:$0xff]  ;;  %v8324_v5 = vld [vmem:[%s15405_s1 + $0x858] sm:$0xff] }
 0x128   : > { %9645 = vmatprep.subr.bf16.mxu0 %v9644_v24  ;;  %3202 = vrot.lane.b32.xlu0 %v11868_v49, %s15452_s25  ;;  %v8248_v24 = vld [vmem:[%s15405_s1 + $0x688] sm:$0xff]  ;;  %v9674_v26 = vpack.c.bf16 %v8243_v17, %v8241_v16  ;;  %v1785_v16 = vpop.permute.xlu1 %1784 }
 0x129   : > { %3204 = vrot.lane.b32.xlu1 %v11861_v46, %s15452_s25 }
 0x12b   : > { %9647 = vmatpush1.bf16.msra.mxu0 %v9646_v28  ;;  %v9676_v28 = vpack.c.bf16 %v8248_v24, %v8246_v18  ;;  %v8281_v18 = vld [vmem:[%s15405_s1 + $0x760] sm:$0xff]  ;;  %v8283_v24 = vld [vmem:[%s15405_s1 + $0x770] sm:$0xff] }
 0x12c   : > { %8203 = vmatprep.subr.msk.mxu0 %vm562_vm0, %v8202_v19  ;;  %v8245_v19 = vld [vmem:[%s15405_s1 + $0x670] sm:$0xff] }
 0x12d   : > { %v9678_v32 = vpack.c.bf16 %v8247_v29, %v8245_v19  ;;  %v8296_v19 = vld [vmem:[%s15405_s1 + $0x7a8] sm:$0xff]  ;;  %v8293_v29 = vld [vmem:[%s15405_s1 + $0x790] sm:$0xff] }
 0x12f   : > { %8204 = vmatpush1.msk.msra.mxu0 %vm562_vm0, %v8201_v34  ;;  %v8249_v34 = vld [vmem:[%s15405_s1 + $0x690] sm:$0xff] }
 0x130   : > { %9649 = vmatprep.subr.bf16.mxu0 %v9648_v35  ;;  %8205 = vmatmul.mubr.msk.f32.vlgmr.msra.gmra.mrb[0].mxu0 %vm553_vm2, %v1495_v36  ;;  %v8251_v35 = vld [vmem:[%s15405_s1 + $0x6a0] sm:$0xff]  ;;  %v8254_v36 = vld [vmem:[%s15405_s1 + $0x6b8] sm:$0xff] }
 0x131   : > { %9651 = vmatpush1.bf16.msra.mxu0 %v9650_v37  ;;  %1586 = vmatprep.mubr.f32.mxu0 %v11037_v12  ;;  %v8256_v37 = vld [vmem:[%s15405_s1 + $0x6c8] sm:$0xff] }
 0x132   : > { %9653 = vmatprep.subr.bf16.mxu0 %v9652_v38  ;;  %v9682_v38 = vpack.c.bf16 %v8251_v35, %v8249_v34  ;;  %v9684_v39 = vpack.c.bf16 %v8256_v37, %v8254_v36  ;;  %v9710_v34 = vpack.c.bf16 %v8295_v30, %v8293_v29  ;;  %v10969_v35 = vld [vmem:[%s11214_s23] sm:$0xff]  ;;  %v10970_v37 = vld [vmem:[%s11214_s23 + $0x8] sm:$0xff]  ;;  %v8331_v30 = vld [vmem:[%s15405_s1 + $0x890] sm:$0xff] }
 0x133   : > { %v3340_v36 = vrot.slane %v10969_v35, 4  ;;  %v8329_v29 = vld [vmem:[%s15405_s1 + $0x880] sm:$0xff] }
 0x134   : > { %8206 = vmatmul.mubr.msk.f32.gmra.mrb[2].mxu0 %vm553_vm2, %v1497_v20  ;;  %v8258_v20 = vld [vmem:[%s15405_s1 + $0x6d8] sm:$0xf]  ;;  %v8333_v35 = vld [vmem:[%s15405_s1 + $0x8a0] sm:$0xff] }
 0x135   : > { %9655 = vmatpush1.bf16.msra.mxu0 %v9654_v47  ;;  %1592 = vmatprep.mubr.f32.mxu0 %v11037_v12  ;;  %v9686_v47 = vpack.c.bf16 %v8255_v42, %v8253_v40  ;;  %v8299_v40 = vld [vmem:[%s15405_s1 + $0x7c0] sm:$0xff]  ;;  %v8302_v42 = vld [vmem:[%s15405_s1 + $0x7d8] sm:$0xff] }
 0x136   : > { %9657 = vmatprep.subr.bf16.mxu0 %v9656_v48  ;;  %v8266_v48 = vld [vmem:[%s15405_s1 + $0x6e8] sm:$0xff] }
 0x138   : > { %8207 = vmatmul.mubr.msk.f32.gmra.mrb[4].mxu0 %vm553_vm2, %v1499_v53  ;;  %v8257_v53 = vld [vmem:[%s15405_s1 + $0x6d0] sm:$0xf] }
 0x139   : > { %9659 = vmatpush1.bf16.msra.mxu0 %v9658_v52  ;;  %1598 = vmatprep.mubr.f32.mxu0 %v11037_v12  ;;  %v8272_v52 = vld [vmem:[%s15405_s1 + $0x718] sm:$0xff] }
 0x13a   : > { %9661 = vmatprep.subr.bf16.mxu0 %v9660_v54  ;;  %v9688_v54 = vpack.c.bf16 %v8268_v23, %v8266_v48  ;;  %v9692_v57 = vpack.c.bf16 %v8272_v52, %v8270_v51  ;;  %v8308_v51 = vld [vmem:[%s15405_s1 + $0x808] sm:$0xff]  ;;  %v9718_v52 = vpack.c.bf16 %v8303_v50, %v8301_v45  ;;  %v8350_v45 = vld [vmem:[%s15405_s1 + $0x8f8] sm:$0xff] }
 0x13b   : > { %v8352_v50 = vld [vmem:[%s15405_s1 + $0x908] sm:$0xff] }
 0x13c   : > { %8208 = vmatmul.mubr.msk.f32.gmra.mrb[6].mxu0 %vm553_vm2, %v1501_v61  ;;  %v8274_v61 = vld [vmem:[%s15405_s1 + $0x728] sm:$0xff] }
 0x13d   : > { %9663 = vmatpush1.bf16.msra.mxu0 %v9662_v59  ;;  %1722 = vmatprep.mubr.f32.mxu0 %v11037_v12  ;;  %v8271_v59 = vld [vmem:[%s15405_s1 + $0x710] sm:$0xff] }
 0x13e   : > { %9665 = vmatprep.subr.bf16.mxu0 %v9664_v62  ;;  %v8276_v62 = vld [vmem:[%s15405_s1 + $0x738] sm:$0xff]  ;;  %v9694_v63 = vpack.c.bf16 %v8271_v59, %v8269_v58 }
 0x141   : > { %9667 = vmatpush1.bf16.msra.mxu0 %v9666_v1  ;;  %v9696_v1 = vpack.c.bf16 %v8276_v62, %v8274_v61 }
 0x142   : > { %8231 = vmatprep.subr.msk.mxu0 %vm562_vm0, %v8230_v2  ;;  %v8273_v2 = vld [vmem:[%s15405_s1 + $0x720] sm:$0xff] }
 0x143   : > { %v9698_v6 = vpack.c.bf16 %v8275_v3, %v8273_v2 }
 0x145   : > { %8232 = vmatpush1.msk.msra.mxu0 %vm562_vm0, %v8229_v9  ;;  %v8277_v9 = vld [vmem:[%s15405_s1 + $0x740] sm:$0xff] }
 0x146   : > { %9669 = vmatprep.subr.bf16.mxu0 %v9668_v10  ;;  %8233 = vmatmul.mubr.msk.f32.vlgmr.msra.gmra.mrb[0].mxu0 %vm553_vm2, %v1637_v11  ;;  %v8279_v10 = vld [vmem:[%s15405_s1 + $0x750] sm:$0xff]  ;;  %v8282_v11 = vld [vmem:[%s15405_s1 + $0x768] sm:$0xff] }
 0x147   : > { %9671 = vmatpush1.bf16.msra.mxu0 %v9670_v13  ;;  %1728 = vmatprep.mubr.f32.mxu0 %v11037_v12  ;;  %v8284_v13 = vld [vmem:[%s15405_s1 + $0x778] sm:$0xff] }
 0x148   : > { %9673 = vmatprep.subr.bf16.mxu0 %v9672_v14  ;;  %v9702_v14 = vpack.c.bf16 %v8279_v10, %v8277_v9  ;;  %v9704_v17 = vpack.c.bf16 %v8284_v13, %v8282_v11  ;;  %v8328_v9 = vld [vmem:[%s15405_s1 + $0x878] sm:$0xff]  ;;  %v8313_v10 = vld [vmem:[%s15405_s1 + $0x830] sm:$0xf]  ;;  %v2063_v13 = vpop.permute.xlu0 %2062 }
 0x14a   : > { %8234 = vmatmul.mubr.msk.f32.gmra.mrb[2].mxu0 %vm553_vm2, %v1639_v27  ;;  %v8286_v27 = vld [vmem:[%s15405_s1 + $0x788] sm:$0xf] }
 0x14b   : > { %9675 = vmatpush1.bf16.msra.mxu0 %v9674_v26  ;;  %1734 = vmatprep.mubr.f32.mxu0 %v11037_v12  ;;  %v9706_v26 = vpack.c.bf16 %v8283_v24, %v8281_v18  ;;  %v8327_v18 = vld [vmem:[%s15405_s1 + $0x870] sm:$0xff]  ;;  %v8330_v24 = vld [vmem:[%s15405_s1 + $0x888] sm:$0xff] }
 0x14c   : > { %9677 = vmatprep.subr.bf16.mxu0 %v9676_v28  ;;  %v8294_v28 = vld [vmem:[%s15405_s1 + $0x798] sm:$0xff] }
 0x14e   : > { %8235 = vmatmul.mubr.msk.f32.gmra.mrb[4].mxu0 %vm553_vm2, %v1641_v43  ;;  %v8285_v43 = vld [vmem:[%s15405_s1 + $0x780] sm:$0xf] }
 0x14f   : > { %9679 = vmatpush1.bf16.msra.mxu0 %v9678_v32  ;;  %1740 = vmatprep.mubr.f32.mxu0 %v11037_v12  ;;  %v8300_v32 = vld [vmem:[%s15405_s1 + $0x7c8] sm:$0xff] }
 0x150   : > { %9681 = vmatprep.subr.bf16.mxu0 %v9680_v33  ;;  %v9708_v33 = vpack.c.bf16 %v8296_v19, %v8294_v28  ;;  %v2065_v28 = vpop.permute.xlu1 %2064 }
 0x152   : > { %8236 = vmatmul.mubr.msk.f32.gmra.mrb[6].mxu0 %vm553_vm2, %v1643_v44  ;;  %v9712_v44 = vpack.c.bf16 %v8300_v32, %v8298_v31  ;;  %v8334_v31 = vld [vmem:[%s15405_s1 + $0x8a8] sm:$0xff]  ;;  %v8336_v32 = vld [vmem:[%s15405_s1 + $0x8b8] sm:$0xff] }
 0x153   : > { %9683 = vmatpush1.bf16.msra.mxu0 %v9682_v38  ;;  %1864 = vmatprep.mubr.f32.mxu0 %v11037_v12  ;;  %v3341_v38 = vrot.slane %v10970_v37, 4  ;;  %v8338_v37 = vld [vmem:[%s15405_s1 + $0x8c8] sm:$0xff] }
 0x154   : > { %9685 = vmatprep.subr.bf16.mxu0 %v9684_v39  ;;  %v8297_v39 = vld [vmem:[%s15405_s1 + $0x7b0] sm:$0xff] }
 0x155   : > { %v9714_v48 = vpack.c.bf16 %v8299_v40, %v8297_v39  ;;  %v2069_v39 = vpop.permute.xlu1 %2068 }
 0x157   : > { %9687 = vmatpush1.bf16.msra.mxu0 %v9686_v47  ;;  %v8304_v47 = vld [vmem:[%s15405_s1 + $0x7e8] sm:$0xff] }
 0x158   : > { %8259 = vmatprep.subr.msk.mxu0 %vm562_vm0, %v8258_v20  ;;  %v12243_v20 = vsel %vm562_vm0, %v3340_v36, %v3341_v38  ;;  %v9716_v23 = vpack.c.bf16 %v8304_v47, %v8302_v42  ;;  %v8335_v36 = vld [vmem:[%s15405_s1 + $0x8b0] sm:$0xff]  ;;  %v8337_v42 = vld [vmem:[%s15405_s1 + $0x8c0] sm:$0xff] }
 0x159   : > { %3481 = vrot.lane.b32.xlu0 %v12243_v20, %s15453_s20  ;;  %v8339_v47 = vld [vmem:[%s15405_s1 + $0x8d0] sm:$0xff] }
 0x15b   : > { %8260 = vmatpush1.msk.msra.mxu0 %vm562_vm0, %v8257_v53 }
 0x15c   : > { %9689 = vmatprep.subr.bf16.mxu0 %v9688_v54  ;;  %8261 = vmatmul.mubr.msk.f32.vlgmr.msra.gmra.mrb[0].mxu0 %vm553_vm2, %v1779_v55  ;;  %v8305_v54 = vld [vmem:[%s15405_s1 + $0x7f0] sm:$0xff]  ;;  %v8307_v55 = vld [vmem:[%s15405_s1 + $0x800] sm:$0xff] }
 0x15d   : > { %9691 = vmatpush1.bf16.msra.mxu0 %v9690_v56  ;;  %1870 = vmatprep.mubr.f32.mxu0 %v11037_v12  ;;  %v8310_v56 = vld [vmem:[%s15405_s1 + $0x818] sm:$0xff]  ;;  %v9722_v59 = vpack.c.bf16 %v8307_v55, %v8305_v54  ;;  %v8341_v54 = vld [vmem:[%s15405_s1 + $0x8e0] sm:$0xf]  ;;  %v9748_v55 = vpack.c.bf16 %v8352_v50, %v8350_v45  ;;  %v8387_v45 = vld [vmem:[%s15405_s1 + $0x9f0] sm:$0xff] }
 0x15e   : > { %9693 = vmatprep.subr.bf16.mxu0 %v9692_v57  ;;  %v10971_v57 = vld [vmem:[%s11214_s23 + $0x10] sm:$0xff]  ;;  %v8390_v50 = vld [vmem:[%s15405_s1 + $0xa08] sm:$0xff] }
 0x15f   : > { %v3343_v58 = vrot.slane %v10971_v57, 4 }
 0x160   : > { %8262 = vmatmul.mubr.msk.f32.gmra.mrb[2].mxu0 %vm553_vm2, %v1781_v0  ;;  %v8311_v0 = vld [vmem:[%s15405_s1 + $0x820] sm:$0xff] }
 0x161   : > { %9695 = vmatpush1.bf16.msra.mxu0 %v9694_v63  ;;  %1876 = vmatprep.mubr.f32.mxu0 %v11037_v12  ;;  %v12282_v61 = vsel %vm562_vm0, %v3341_v38, %v3343_v58  ;;  %v8309_v63 = vld [vmem:[%s15405_s1 + $0x810] sm:$0xff]  ;;  %v8340_v38 = vld [vmem:[%s15405_s1 + $0x8d8] sm:$0xff] }
 0x162   : > { %9697 = vmatprep.subr.bf16.mxu0 %v9696_v1  ;;  %3483 = vrot.lane.b32.xlu1 %v12282_v61, %s15453_s20  ;;  %v9726_v2 = vpack.c.bf16 %v8311_v0, %v8309_v63  ;;  %v9744_v40 = vpack.c.bf16 %v8340_v38, %v8338_v37  ;;  %v8360_v63 = vld [vmem:[%s15405_s1 + $0x948] sm:$0xff]  ;;  %v8381_v38 = vld [vmem:[%s15405_s1 + $0x9c0] sm:$0xff] }
 0x164   : > { %8263 = vmatmul.mubr.msk.f32.gmra.mrb[4].mxu0 %vm553_vm2, %v1783_v7  ;;  %v8323_v7 = vld [vmem:[%s15405_s1 + $0x850] sm:$0xff] }
 0x165   : > { %9699 = vmatpush1.bf16.msra.mxu0 %v9698_v6  ;;  %1882 = vmatprep.mubr.f32.mxu0 %v11037_v12  ;;  %v8321_v6 = vld [vmem:[%s15405_s1 + $0x840] sm:$0xff] }
 0x166   : > { %9701 = vmatprep.subr.bf16.mxu0 %v9700_v8  ;;  %v8326_v8 = vld [vmem:[%s15405_s1 + $0x868] sm:$0xff] }
 0x168   : > { %8264 = vmatmul.mubr.msk.f32.gmra.mrb[6].mxu0 %vm553_vm2, %v1785_v16  ;;  %v9732_v16 = vpack.c.bf16 %v8328_v9, %v8326_v8 }
 0x169   : > { %9703 = vmatpush1.bf16.msra.mxu0 %v9702_v14  ;;  %2006 = vmatprep.mubr.f32.mxu0 %v11037_v12  ;;  %v9730_v14 = vpack.c.bf16 %v8323_v7, %v8321_v6  ;;  %v8364_v6 = vld [vmem:[%s15405_s1 + $0x968] sm:$0xff] }
 0x16a   : > { %9705 = vmatprep.subr.bf16.mxu0 %v9704_v17  ;;  %v8325_v17 = vld [vmem:[%s15405_s1 + $0x860] sm:$0xff] }
 0x16d   : > { %9707 = vmatpush1.bf16.msra.mxu0 %v9706_v26  ;;  %v8332_v26 = vld [vmem:[%s15405_s1 + $0x898] sm:$0xff] }
 0x16e   : > { %8287 = vmatprep.subr.msk.mxu0 %vm562_vm0, %v8286_v27  ;;  %v9734_v27 = vpack.c.bf16 %v8327_v18, %v8325_v17  ;;  %v9736_v19 = vpack.c.bf16 %v8332_v26, %v8330_v24  ;;  %v8365_v24 = vld [vmem:[%s15405_s1 + $0x970] sm:$0xff]  ;;  %v8367_v26 = vld [vmem:[%s15405_s1 + $0x980] sm:$0xff] }
 0x171   : > { %8288 = vmatpush1.msk.msra.mxu0 %vm562_vm0, %v8285_v43  ;;  %v9738_v43 = vpack.c.bf16 %v8331_v30, %v8329_v29  ;;  %v8380_v29 = vld [vmem:[%s15405_s1 + $0x9b8] sm:$0xff]  ;;  %v8377_v30 = vld [vmem:[%s15405_s1 + $0x9a0] sm:$0xff] }
 0x172   : > { %9709 = vmatprep.subr.bf16.mxu0 %v9708_v33  ;;  %8289 = vmatmul.mubr.msk.f32.vlgmr.msra.gmra.mrb[0].mxu0 %vm553_vm2, %v11379_v60  ;;  %v8306_v60 = vld [vmem:[%s15405_s1 + $0x7f8] sm:$0xff]  ;;  %v2067_v33 = vpop.permute.xlu0 %2066 }
 0x173   : > { %9711 = vmatpush1.bf16.msra.mxu0 %v9710_v34  ;;  %2012 = vmatprep.mubr.f32.mxu0 %v11037_v12  ;;  %v9720_v53 = vpack.c.bf16 %v8308_v51, %v8306_v60  ;;  %v9740_v34 = vpack.c.bf16 %v8336_v32, %v8334_v31  ;;  %v8349_v60 = vld [vmem:[%s15405_s1 + $0x8f0] sm:$0xff]  ;;  %v8351_v51 = vld [vmem:[%s15405_s1 + $0x900] sm:$0xff]  ;;  %v8382_v32 = vld [vmem:[%s15405_s1 + $0x9c8] sm:$0xff] }
 0x174   : > { %9713 = vmatprep.subr.bf16.mxu0 %v9712_v44  ;;  %v9742_v44 = vpack.c.bf16 %v8335_v36, %v8333_v35  ;;  %v8379_v31 = vld [vmem:[%s15405_s1 + $0x9b0] sm:$0xff] }
 0x175   : > { %v9770_v36 = vpack.c.bf16 %v8379_v31, %v8377_v30  ;;  %v8420_v30 = vld [vmem:[%s15405_s1 + $0xac8] sm:$0xff] }
 0x176   : > { %8290 = vmatmul.mubr.msk.f32.gmra.mrb[2].mxu0 %vm553_vm2, %v11415_v15  ;;  %v8312_v15 = vld [vmem:[%s15405_s1 + $0x828] sm:$0xff] }
 0x177   : > { %9715 = vmatpush1.bf16.msra.mxu0 %v9714_v48  ;;  %2018 = vmatprep.mubr.f32.mxu0 %v11037_v12  ;;  %v9724_v62 = vpack.c.bf16 %v8312_v15, %v8310_v56  ;;  %v9746_v48 = vpack.c.bf16 %v8339_v47, %v8337_v42  ;;  %v2205_v56 = vpop.permute.xlu0 %2204  ;;  %v9750_v15 = vpack.c.bf16 %v8351_v51, %v8349_v60  ;;  %v8392_v60 = vld [vmem:[%s15405_s1 + $0xa18] sm:$0xff] }
 0x178   : > { %9717 = vmatprep.subr.bf16.mxu0 %v9716_v23  ;;  %v8342_v23 = vld [vmem:[%s15405_s1 + $0x8e8] sm:$0xf] }
 0x17a   : > { %8291 = vmatmul.mubr.msk.f32.gmra.mrb[4].mxu0 %vm553_vm2, %v11432_v25  ;;  %v10972_v25 = vld [vmem:[%s11214_s23 + $0x18] sm:$0xff]  ;;  %s15458_s23 = sld [smem:[#allocation14_spill]] }
 0x17b   : > { %9719 = vmatpush1.bf16.msra.mxu0 %v9718_v52  ;;  %2024 = vmatprep.mubr.f32.mxu0 %v11037_v12  ;;  %v12293_v1 = vrot.slane %v10972_v25, 4  ;;  %v8354_v52 = vld [vmem:[%s15405_s1 + $0x918] sm:$0xff]  ;;  %v2207_v25 = vpop.permute.xlu1 %2206  ;;  %v2209_v8 = vpop.permute.xlu0 %2208 }
 0x17c   : > { %9721 = vmatprep.subr.bf16.mxu0 %v9720_v53  ;;  %v8356_v53 = vld [vmem:[%s15405_s1 + $0x928] sm:$0xff] }
 0x17d   : > { %v12300_v3 = vsel %vm562_vm0, %v3343_v58, %v12293_v1  ;;  %3487 = vrot.lane.b32.xlu1 %v12293_v1, %s15453_s20  ;;  %v9752_v57 = vpack.c.bf16 %v8356_v53, %v8354_v52  ;;  %v8353_v58 = vld [vmem:[%s15405_s1 + $0x910] sm:$0xff]  ;;  %v9780_v53 = vpack.c.bf16 %v8392_v60, %v8390_v50  ;;  %v8438_v60 = vld [vmem:[%s15405_s1 + $0xb28] sm:$0xff] }
 0x17e   : > { %8292 = vmatmul.mubr.msk.f32.gmra.mrb[6].mxu0 %vm553_vm2, %v11426_v21  ;;  %3485 = vrot.lane.b32.xlu0 %v12300_v3, %s15453_s20  ;;  %v8322_v21 = vld [vmem:[%s15405_s1 + $0x848] sm:$0xff]  ;;  %v8435_v50 = vld [vmem:[%s15405_s1 + $0xb10] sm:$0xff] }
 0x17f   : > { %9723 = vmatpush1.bf16.msra.mxu0 %v9722_v59  ;;  %2148 = vmatprep.mubr.f32.mxu0 %v11037_v12  ;;  %v9728_v11 = vpack.c.bf16 %v8324_v5, %v8322_v21  ;;  %v8355_v59 = vld [vmem:[%s15405_s1 + $0x920] sm:$0xff]  ;;  %v8362_v5 = vld [vmem:[%s15405_s1 + $0x958] sm:$0xff]  ;;  %v2211_v17 = vpop.permute.xlu1 %2210  ;;  %v2347_v35 = vpop.permute.xlu0 %2346 }
 0x180   : > { %9725 = vmatprep.subr.bf16.mxu0 %v9724_v62  ;;  %v8358_v62 = vld [vmem:[%s15405_s1 + $0x938] sm:$0xff]  ;;  %v9754_v0 = vpack.c.bf16 %v8355_v59, %v8353_v58  ;;  %v8359_v21 = vld [vmem:[%s15405_s1 + $0x940] sm:$0xff]  ;;  %v9760_v9 = vpack.c.bf16 %v8364_v6, %v8362_v5  ;;  %s15362_s15 = scalar_lea.hbm %s15458_s23, %s9228_s26 }
 0x181   : > { %3625 = vrot.lane.b32.xlu1 %v12282_v61, %s15450_s29  ;;  %v8407_v5 = vld [vmem:[%s15405_s1 + $0xa60] sm:$0xff]  ;;  %v8410_v6 = vld [vmem:[%s15405_s1 + $0xa78] sm:$0xff] }
 0x182   : > { %3623 = vrot.lane.b32.xlu0 %v12243_v20, %s15450_s29 }
 0x183   : > { %9727 = vmatpush1.bf16.msra.mxu0 %v9726_v2  ;;  %v9756_v2 = vpack.c.bf16 %v8360_v63, %v8358_v62  ;;  %v2349_v47 = vpop.permute.xlu1 %2348  ;;  %v2351_v52 = vpop.permute.xlu0 %2350  ;;  %v8393_v62 = vld [vmem:[%s15405_s1 + $0xa20] sm:$0xff]  ;;  %v8395_v63 = vld [vmem:[%s15405_s1 + $0xa30] sm:$0xff] }
 0x184   : > { %8315 = vmatprep.subr.msk.mxu0 %vm562_vm0, %v8314_v4  ;;  %v8357_v4 = vld [vmem:[%s15405_s1 + $0x930] sm:$0xff] }
 0x185   : > { %3629 = vrot.lane.b32.xlu1 %v12293_v1, %s15450_s29  ;;  %v9758_v7 = vpack.c.bf16 %v8359_v21, %v8357_v4  ;;  %v8408_v4 = vld [vmem:[%s15405_s1 + $0xa68] sm:$0xff]  ;;  %v8405_v21 = vld [vmem:[%s15405_s1 + $0xa50] sm:$0xff] }
 0x186   : > { %3627 = vrot.lane.b32.xlu0 %v12300_v3, %s15450_s29 }
 0x187   : > { %8316 = vmatpush1.msk.msra.mxu0 %vm562_vm0, %v8313_v10  ;;  %v8361_v10 = vld [vmem:[%s15405_s1 + $0x950] sm:$0xff]  ;;  %v2353_v58 = vpop.permute.xlu1 %2352 }
 0x188   : > { %9729 = vmatprep.subr.bf16.mxu0 %v9728_v11  ;;  %8317 = vmatmul.mubr.msk.f32.vlgmr.msra.gmra.mrb[0].mxu0 %vm553_vm2, %v2063_v13  ;;  %v8363_v11 = vld [vmem:[%s15405_s1 + $0x960] sm:$0xff]  ;;  %v8366_v13 = vld [vmem:[%s15405_s1 + $0x978] sm:$0xff] }
 0x189   : > { %9731 = vmatpush1.bf16.msra.mxu0 %v9730_v14  ;;  %2154 = vmatprep.mubr.f32.mxu0 %v11037_v12  ;;  %v8368_v14 = vld [vmem:[%s15405_s1 + $0x988] sm:$0xff] }
 0x18a   : > { %9733 = vmatprep.subr.bf16.mxu0 %v9732_v16  ;;  %3765 = vrot.lane.b32.xlu0 %v12243_v20, %s15451_s17  ;;  %v9762_v16 = vpack.c.bf16 %v8363_v11, %v8361_v10  ;;  %v9764_v18 = vpack.c.bf16 %v8368_v14, %v8366_v13  ;;  %v2489_v10 = vpop.permute.xlu0 %2488  ;;  %v9790_v11 = vpack.c.bf16 %v8407_v5, %v8405_v21  ;;  %v8409_v14 = vld [vmem:[%s15405_s1 + $0xa70] sm:$0xff]  ;;  %v8445_v21 = vld [vmem:[%s15405_s1 + $0xb60] sm:$0xff] }
 0x18b   : > { %3767 = vrot.lane.b32.xlu1 %v12282_v61, %s15451_s17  ;;  %v8447_v5 = vld [vmem:[%s15405_s1 + $0xb70] sm:$0xff] }
 0x18c   : > { %8318 = vmatmul.mubr.msk.f32.gmra.mrb[2].mxu0 %vm553_vm2, %v2065_v28  ;;  %v8370_v28 = vld [vmem:[%s15405_s1 + $0x998] sm:$0xf] }
 0x18d   : > { %9735 = vmatpush1.bf16.msra.mxu0 %v9734_v27  ;;  %2160 = vmatprep.mubr.f32.mxu0 %v11037_v12  ;;  %v9766_v27 = vpack.c.bf16 %v8367_v26, %v8365_v24  ;;  %v2491_v26 = vpop.permute.xlu1 %2490 }
 0x18e   : > { %9737 = vmatprep.subr.bf16.mxu0 %v9736_v19  ;;  %3769 = vrot.lane.b32.xlu0 %v12300_v3, %s15451_s17  ;;  %v8378_v19 = vld [vmem:[%s15405_s1 + $0x9a8] sm:$0xff] }
 0x18f   : > { %3771 = vrot.lane.b32.xlu1 %v12293_v1, %s15451_s17  ;;  %s15457_s17 = sld [smem:[#allocation13_spill]] }
 0x190   : > { %8319 = vmatmul.mubr.msk.f32.gmra.mrb[4].mxu0 %vm553_vm2, %v2067_v33  ;;  %v8369_v33 = vld [vmem:[%s15405_s1 + $0x990] sm:$0xf] }
 0x191   : > { %9739 = vmatpush1.bf16.msra.mxu0 %v9738_v43  ;;  %2166 = vmatprep.mubr.f32.mxu0 %v11037_v12  ;;  %v8384_v43 = vld [vmem:[%s15405_s1 + $0x9d8] sm:$0xff] }
 0x192   : > { %9741 = vmatprep.subr.bf16.mxu0 %v9740_v34  ;;  %3907 = vrot.lane.b32.xlu0 %v12243_v20, %s15452_s25  ;;  %v9768_v34 = vpack.c.bf16 %v8380_v29, %v8378_v19  ;;  %v9772_v37 = vpack.c.bf16 %v8384_v43, %v8382_v32  ;;  %v8415_v19 = vld [vmem:[%s15405_s1 + $0xaa0] sm:$0xff]  ;;  %v8418_v29 = vld [vmem:[%s15405_s1 + $0xab8] sm:$0xff]  ;;  %v2493_v32 = vpop.permute.xlu0 %2492 }
 0x193   : > { %3909 = vrot.lane.b32.xlu1 %v12282_v61, %s15452_s25  ;;  %v9800_v43 = vpack.c.bf16 %v8420_v30, %v8418_v29  ;;  %v8465_v29 = vld [vmem:[%s15405_s1 + $0xbd0] sm:$0xff]  ;;  %v8467_v30 = vld [vmem:[%s15405_s1 + $0xbe0] sm:$0xff] }
 0x194   : > { %8320 = vmatmul.mubr.msk.f32.gmra.mrb[6].mxu0 %vm553_vm2, %v2069_v39  ;;  %v8386_v39 = vld [vmem:[%s15405_s1 + $0x9e8] sm:$0xff] }
 0x195   : > { %9743 = vmatpush1.bf16.msra.mxu0 %v9742_v44  ;;  %2290 = vmatprep.mubr.f32.mxu0 %v11037_v12  ;;  %v8383_v44 = vld [vmem:[%s15405_s1 + $0x9d0] sm:$0xff] }
 0x196   : > { %9745 = vmatprep.subr.bf16.mxu0 %v9744_v40  ;;  %3911 = vrot.lane.b32.xlu0 %v12300_v3, %s15452_s25  ;;  %v8388_v40 = vld [vmem:[%s15405_s1 + $0x9f8] sm:$0xff]  ;;  %v9774_v42 = vpack.c.bf16 %v8383_v44, %v8381_v38  ;;  %v2495_v38 = vpop.permute.xlu1 %2494 }
 0x197   : > { %3913 = vrot.lane.b32.xlu1 %v12293_v1, %s15452_s25 }
 0x199   : > { %9747 = vmatpush1.bf16.msra.mxu0 %v9746_v48  ;;  %v9776_v48 = vpack.c.bf16 %v8388_v40, %v8386_v39  ;;  %v8421_v39 = vld [vmem:[%s15405_s1 + $0xad0] sm:$0xff]  ;;  %v8423_v40 = vld [vmem:[%s15405_s1 + $0xae0] sm:$0xff] }
 0x19a   : > { %8343 = vmatprep.subr.msk.mxu0 %vm562_vm0, %v8342_v23  ;;  %v8385_v23 = vld [vmem:[%s15405_s1 + $0x9e0] sm:$0xff] }
 0x19b   : > { %v9778_v51 = vpack.c.bf16 %v8387_v45, %v8385_v23  ;;  %v8436_v23 = vld [vmem:[%s15405_s1 + $0xb18] sm:$0xff]  ;;  %v8433_v45 = vld [vmem:[%s15405_s1 + $0xb00] sm:$0xff] }
 0x19d   : > { %8344 = vmatpush1.msk.msra.mxu0 %vm562_vm0, %v8341_v54  ;;  %v8389_v54 = vld [vmem:[%s15405_s1 + $0xa00] sm:$0xff] }
 0x19e   : > { %9749 = vmatprep.subr.bf16.mxu0 %v9748_v55  ;;  %8345 = vmatmul.mubr.msk.f32.vlgmr.msra.gmra.mrb[0].mxu0 %vm553_vm2, %v2205_v56  ;;  %v8391_v55 = vld [vmem:[%s15405_s1 + $0xa10] sm:$0xff]  ;;  %v8394_v56 = vld [vmem:[%s15405_s1 + $0xa28] sm:$0xff] }
 0x19f   : > { %9751 = vmatpush1.bf16.msra.mxu0 %v9750_v15  ;;  %2296 = vmatprep.mubr.f32.mxu0 %v11037_v12  ;;  %v8396_v15 = vld [vmem:[%s15405_s1 + $0xa38] sm:$0xff] }
 0x1a0   : > { %9753 = vmatprep.subr.bf16.mxu0 %v9752_v57  ;;  %v9782_v57 = vpack.c.bf16 %v8391_v55, %v8389_v54  ;;  %v9784_v59 = vpack.c.bf16 %v8396_v15, %v8394_v56  ;;  %v9810_v54 = vpack.c.bf16 %v8435_v50, %v8433_v45  ;;  %v8437_v56 = vld [vmem:[%s15405_s1 + $0xb20] sm:$0xff]  ;;  %v8439_v15 = vld [vmem:[%s15405_s1 + $0xb30] sm:$0xff] }
 0x1a2   : > { %8346 = vmatmul.mubr.msk.f32.gmra.mrb[2].mxu0 %vm553_vm2, %v2207_v25  ;;  %v8398_v25 = vld [vmem:[%s15405_s1 + $0xa48] sm:$0xf] }
 0x1a3   : > { %9755 = vmatpush1.bf16.msra.mxu0 %v9754_v0  ;;  %2302 = vmatprep.mubr.f32.mxu0 %v11037_v12  ;;  %v9786_v0 = vpack.c.bf16 %v8395_v63, %v8393_v62  ;;  %v8441_v63 = vld [vmem:[%s15405_s1 + $0xb40] sm:$0xff] }
 0x1a4   : > { %9757 = vmatprep.subr.bf16.mxu0 %v9756_v2  ;;  %v8406_v2 = vld [vmem:[%s15405_s1 + $0xa58] sm:$0xff] }
 0x1a6   : > { %8347 = vmatmul.mubr.msk.f32.gmra.mrb[4].mxu0 %vm553_vm2, %v2209_v8  ;;  %v8397_v8 = vld [vmem:[%s15405_s1 + $0xa40] sm:$0xf] }
 0x1a7   : > { %9759 = vmatpush1.bf16.msra.mxu0 %v9758_v7  ;;  %2308 = vmatprep.mubr.f32.mxu0 %v11037_v12  ;;  %v8412_v7 = vld [vmem:[%s15405_s1 + $0xa88] sm:$0xff] }
 0x1a8   : > { %9761 = vmatprep.subr.bf16.mxu0 %v9760_v9  ;;  %v9788_v9 = vpack.c.bf16 %v8408_v4, %v8406_v2  ;;  %v9792_v13 = vpack.c.bf16 %v8412_v7, %v8410_v6  ;;  %v8450_v6 = vld [vmem:[%s15405_s1 + $0xb88] sm:$0xff]  ;;  %v9822_v7 = vpack.c.bf16 %v8447_v5, %v8445_v21  ;;  %v8500_v5 = vld [vmem:[%s15405_s1 + $0xcb8] sm:$0xff] }
 0x1a9   : > { %v8498_v21 = vld [vmem:[%s15405_s1 + $0xca8] sm:$0xff] }
 0x1aa   : > { %8348 = vmatmul.mubr.msk.f32.gmra.mrb[6].mxu0 %vm553_vm2, %v2211_v17  ;;  %v8414_v17 = vld [vmem:[%s15405_s1 + $0xa98] sm:$0xff] }
 0x1ab   : > { %9763 = vmatpush1.bf16.msra.mxu0 %v9762_v16  ;;  %2432 = vmatprep.mubr.f32.mxu0 %v11037_v12  ;;  %v8411_v16 = vld [vmem:[%s15405_s1 + $0xa80] sm:$0xff] }
 0x1ac   : > { %9765 = vmatprep.subr.bf16.mxu0 %v9764_v18  ;;  %v8416_v18 = vld [vmem:[%s15405_s1 + $0xaa8] sm:$0xff]  ;;  %v9794_v24 = vpack.c.bf16 %v8411_v16, %v8409_v14  ;;  %v8463_v16 = vld [vmem:[%s15405_s1 + $0xbc0] sm:$0xff] }
 0x1ad   : > { %v8464_v14 = vld [vmem:[%s15405_s1 + $0xbc8] sm:$0xff] }
 0x1af   : > { %9767 = vmatpush1.bf16.msra.mxu0 %v9766_v27  ;;  %v9796_v27 = vpack.c.bf16 %v8416_v18, %v8414_v17  ;;  %v8466_v17 = vld [vmem:[%s15405_s1 + $0xbd8] sm:$0xff]  ;;  %v8468_v18 = vld [vmem:[%s15405_s1 + $0xbe8] sm:$0xff] }
 0x1b0   : > { %8371 = vmatprep.subr.msk.mxu0 %vm562_vm0, %v8370_v28  ;;  %v8413_v28 = vld [vmem:[%s15405_s1 + $0xa90] sm:$0xff] }
 0x1b1   : > { %v9798_v31 = vpack.c.bf16 %v8415_v19, %v8413_v28  ;;  %v9832_v19 = vpack.c.bf16 %v8468_v18, %v8466_v17  ;;  %v8506_v17 = vld [vmem:[%s15405_s1 + $0xce8] sm:$0xff]  ;;  %v8508_v18 = vld [vmem:[%s15405_s1 + $0xcf8] sm:$0xff] }
 0x1b3   : > { %8372 = vmatpush1.msk.msra.mxu0 %vm562_vm0, %v8369_v33  ;;  %v8417_v33 = vld [vmem:[%s15405_s1 + $0xab0] sm:$0xff] }
 0x1b4   : > { %9769 = vmatprep.subr.bf16.mxu0 %v9768_v34  ;;  %8373 = vmatmul.mubr.msk.f32.vlgmr.msra.gmra.mrb[0].mxu0 %vm553_vm2, %v2347_v35  ;;  %v8419_v34 = vld [vmem:[%s15405_s1 + $0xac0] sm:$0xff]  ;;  %v8422_v35 = vld [vmem:[%s15405_s1 + $0xad8] sm:$0xff] }
 0x1b5   : > { %9771 = vmatpush1.bf16.msra.mxu0 %v9770_v36  ;;  %2438 = vmatprep.mubr.f32.mxu0 %v11037_v12  ;;  %v8424_v36 = vld [vmem:[%s15405_s1 + $0xae8] sm:$0xff] }
 0x1b6   : > { %9773 = vmatprep.subr.bf16.mxu0 %v9772_v37  ;;  %v9802_v37 = vpack.c.bf16 %v8419_v34, %v8417_v33  ;;  %v9804_v44 = vpack.c.bf16 %v8424_v36, %v8422_v35  ;;  %v2775_v33 = vpop.permute.xlu1 %2774  ;;  %v8469_v35 = vld [vmem:[%s15405_s1 + $0xbf0] sm:$0xff]  ;;  %v8471_v36 = vld [vmem:[%s15405_s1 + $0xc00] sm:$0xff] }
 0x1b8   : > { %8374 = vmatmul.mubr.msk.f32.gmra.mrb[2].mxu0 %vm553_vm2, %v2349_v47  ;;  %v8426_v47 = vld [vmem:[%s15405_s1 + $0xaf8] sm:$0xf] }
 0x1b9   : > { %9775 = vmatpush1.bf16.msra.mxu0 %v9774_v42  ;;  %2444 = vmatprep.mubr.f32.mxu0 %v11037_v12  ;;  %v9806_v42 = vpack.c.bf16 %v8423_v40, %v8421_v39 }
 0x1ba   : > { %9777 = vmatprep.subr.bf16.mxu0 %v9776_v48  ;;  %v8434_v48 = vld [vmem:[%s15405_s1 + $0xb08] sm:$0xff]  ;;  %v2779_v50 = vpop.permute.xlu1 %2778 }
 0x1bc   : > { %8375 = vmatmul.mubr.msk.f32.gmra.mrb[4].mxu0 %vm553_vm2, %v2351_v52  ;;  %v8425_v52 = vld [vmem:[%s15405_s1 + $0xaf0] sm:$0xf] }
 0x1bd   : > { %9779 = vmatpush1.bf16.msra.mxu0 %v9778_v51  ;;  %2450 = vmatprep.mubr.f32.mxu0 %v11037_v12  ;;  %v8440_v51 = vld [vmem:[%s15405_s1 + $0xb38] sm:$0xff] }
 0x1be   : > { %9781 = vmatprep.subr.bf16.mxu0 %v9780_v53  ;;  %v9808_v53 = vpack.c.bf16 %v8436_v23, %v8434_v48  ;;  %v9812_v55 = vpack.c.bf16 %v8440_v51, %v8438_v60  ;;  %v8478_v48 = vld [vmem:[%s15405_s1 + $0xc38] sm:$0xff]  ;;  %v8480_v23 = vld [vmem:[%s15405_s1 + $0xc48] sm:$0xff]  ;;  %v8477_v51 = vld [vmem:[%s15405_s1 + $0xc30] sm:$0xff] }
 0x1bf   : > { %v9844_v60 = vpack.c.bf16 %v8480_v23, %v8478_v48  ;;  %v8528_v48 = vld [vmem:[%s15405_s1 + $0xd68] sm:$0xff] }
 0x1c0   : > { %8376 = vmatmul.mubr.msk.f32.gmra.mrb[6].mxu0 %vm553_vm2, %v2353_v58  ;;  %v8444_v58 = vld [vmem:[%s15405_s1 + $0xb58] sm:$0xff] }
 0x1c1   : > { %9783 = vmatpush1.bf16.msra.mxu0 %v9782_v57  ;;  %2574 = vmatprep.mubr.f32.mxu0 %v11037_v12  ;;  %v8442_v57 = vld [vmem:[%s15405_s1 + $0xb48] sm:$0xff] }
 0x1c2   : > { %9785 = vmatprep.subr.bf16.mxu0 %v9784_v59  ;;  %v9814_v59 = vpack.c.bf16 %v8439_v15, %v8437_v56  ;;  %v9816_v62 = vpack.c.bf16 %v8444_v58, %v8442_v57  ;;  %v8492_v56 = vld [vmem:[%s15405_s1 + $0xc78] sm:$0xff]  ;;  %v8489_v15 = vld [vmem:[%s15405_s1 + $0xc60] sm:$0xff]  ;;  %v8491_v57 = vld [vmem:[%s15405_s1 + $0xc70] sm:$0xff] }
 0x1c3   : > { %v8494_v58 = vld [vmem:[%s15405_s1 + $0xc88] sm:$0xff] }
 0x1c5   : > { %9787 = vmatpush1.bf16.msra.mxu0 %v9786_v0  ;;  %v8443_v0 = vld [vmem:[%s15405_s1 + $0xb50] sm:$0xff] }
 0x1c6   : > { %8399 = vmatprep.subr.msk.mxu0 %vm562_vm0, %v8398_v25  ;;  %v8446_v25 = vld [vmem:[%s15405_s1 + $0xb68] sm:$0xff]  ;;  %v9818_v2 = vpack.c.bf16 %v8443_v0, %v8441_v63 }
 0x1c9   : > { %8400 = vmatpush1.msk.msra.mxu0 %vm562_vm0, %v8397_v8 }
 0x1ca   : > { %9789 = vmatprep.subr.bf16.mxu0 %v9788_v9  ;;  %8401 = vmatmul.mubr.msk.f32.vlgmr.msra.gmra.mrb[0].mxu0 %vm553_vm2, %v2489_v10  ;;  %v8449_v9 = vld [vmem:[%s15405_s1 + $0xb80] sm:$0xff]  ;;  %v8451_v10 = vld [vmem:[%s15405_s1 + $0xb90] sm:$0xff] }
 0x1cb   : > { %9791 = vmatpush1.bf16.msra.mxu0 %v9790_v11  ;;  %2580 = vmatprep.mubr.f32.mxu0 %v11037_v12  ;;  %v9826_v11 = vpack.c.bf16 %v8451_v10, %v8449_v9  ;;  %v8499_v9 = vld [vmem:[%s15405_s1 + $0xcb0] sm:$0xff]  ;;  %v8502_v10 = vld [vmem:[%s15405_s1 + $0xcc8] sm:$0xff] }
 0x1cc   : > { %9793 = vmatprep.subr.bf16.mxu0 %v9792_v13  ;;  %v8462_v13 = vld [vmem:[%s15405_s1 + $0xbb8] sm:$0xff] }
 0x1ce   : > { %8402 = vmatmul.mubr.msk.f32.gmra.mrb[2].mxu0 %vm553_vm2, %v2491_v26  ;;  %v9828_v26 = vpack.c.bf16 %v8464_v14, %v8462_v13 }
 0x1cf   : > { %9795 = vmatpush1.bf16.msra.mxu0 %v9794_v24  ;;  %2586 = vmatprep.mubr.f32.mxu0 %v11037_v12  ;;  %v8453_v24 = vld [vmem:[%s15405_s1 + $0xba0] sm:$0xf] }
 0x1d0   : > { %9797 = vmatprep.subr.bf16.mxu0 %v9796_v27  ;;  %v2773_v27 = vpop.permute.xlu0 %2772 }
 0x1d2   : > { %8403 = vmatmul.mubr.msk.f32.gmra.mrb[4].mxu0 %vm553_vm2, %v2493_v32  ;;  %v8472_v32 = vld [vmem:[%s15405_s1 + $0xc08] sm:$0xff] }
 0x1d3   : > { %9799 = vmatpush1.bf16.msra.mxu0 %v9798_v31  ;;  %2592 = vmatprep.mubr.f32.mxu0 %v11037_v12  ;;  %v8470_v31 = vld [vmem:[%s15405_s1 + $0xbf8] sm:$0xff] }
 0x1d4   : > { %9801 = vmatprep.subr.bf16.mxu0 %v9800_v43  ;;  %v9834_v43 = vpack.c.bf16 %v8467_v30, %v8465_v29  ;;  %v9836_v34 = vpack.c.bf16 %v8472_v32, %v8470_v31  ;;  %v2777_v39 = vpop.permute.xlu0 %2776  ;;  %v8510_v30 = vld [vmem:[%s15405_s1 + $0xd08] sm:$0xf]  ;;  %v8518_v31 = vld [vmem:[%s15405_s1 + $0xd18] sm:$0xff] }
 0x1d5   : > { %v8520_v32 = vld [vmem:[%s15405_s1 + $0xd28] sm:$0xff] }
 0x1d6   : > { %8404 = vmatmul.mubr.msk.f32.gmra.mrb[6].mxu0 %vm553_vm2, %v2495_v38  ;;  %v8476_v38 = vld [vmem:[%s15405_s1 + $0xc28] sm:$0xff] }
 0x1d7   : > { %9803 = vmatpush1.bf16.msra.mxu0 %v9802_v37  ;;  %2716 = vmatprep.mubr.f32.mxu0 %v11037_v12  ;;  %v8474_v37 = vld [vmem:[%s15405_s1 + $0xc18] sm:$0xff] }
 0x1d8   : > { %9805 = vmatprep.subr.bf16.mxu0 %v9804_v44  ;;  %v9838_v44 = vpack.c.bf16 %v8471_v36, %v8469_v35  ;;  %v9840_v40 = vpack.c.bf16 %v8476_v38, %v8474_v37  ;;  %v2915_v0 = vpop.permute.xlu0 %2914  ;;  %v8524_v35 = vld [vmem:[%s15405_s1 + $0xd48] sm:$0xff]  ;;  %v8509_v36 = vld [vmem:[%s15405_s1 + $0xd00] sm:$0xf]  ;;  %v9868_v37 = vpack.c.bf16 %v8520_v32, %v8518_v31 }
 0x1db   : > { %9807 = vmatpush1.bf16.msra.mxu0 %v9806_v42  ;;  %v8473_v42 = vld [vmem:[%s15405_s1 + $0xc10] sm:$0xff] }
 0x1dc   : > { %8427 = vmatprep.subr.msk.mxu0 %vm562_vm0, %v8426_v47  ;;  %v8475_v47 = vld [vmem:[%s15405_s1 + $0xc20] sm:$0xff]  ;;  %v2919_v13 = vpop.permute.xlu0 %2918 }
 0x1dd   : > { %v9842_v45 = vpack.c.bf16 %v8475_v47, %v8473_v42  ;;  %v8523_v42 = vld [vmem:[%s15405_s1 + $0xd40] sm:$0xff]  ;;  %v8526_v47 = vld [vmem:[%s15405_s1 + $0xd58] sm:$0xff] }
 0x1df   : > { %8428 = vmatpush1.msk.msra.mxu0 %vm562_vm0, %v8425_v52  ;;  %v8479_v52 = vld [vmem:[%s15405_s1 + $0xc40] sm:$0xff] }
 0x1e0   : > { %9809 = vmatprep.subr.bf16.mxu0 %v9808_v53  ;;  %8429 = vmatmul.mubr.msk.f32.vlgmr.msra.gmra.mrb[0].mxu0 %vm553_vm2, %v11811_v22  ;;  %v8448_v22 = vld [vmem:[%s15405_s1 + $0xb78] sm:$0xff]  ;;  %v9846_v53 = vpack.c.bf16 %v8479_v52, %v8477_v51  ;;  %v3057_v38 = vpop.permute.xlu0 %3056  ;;  %v8527_v51 = vld [vmem:[%s15405_s1 + $0xd60] sm:$0xff] }
 0x1e1   : > { %9811 = vmatpush1.bf16.msra.mxu0 %v9810_v54  ;;  %2722 = vmatprep.mubr.f32.mxu0 %v11037_v12  ;;  %v9820_v4 = vpack.c.bf16 %v8448_v22, %v8446_v25  ;;  %v8482_v54 = vld [vmem:[%s15405_s1 + $0xc58] sm:$0xf]  ;;  %v9850_v25 = vpack.c.bf16 %v8491_v57, %v8489_v15  ;;  %v8529_v15 = vld [vmem:[%s15405_s1 + $0xd70] sm:$0xff]  ;;  %v8531_v57 = vld [vmem:[%s15405_s1 + $0xd80] sm:$0xff] }
 0x1e2   : > { %9813 = vmatprep.subr.bf16.mxu0 %v9812_v55  ;;  %v8490_v55 = vld [vmem:[%s15405_s1 + $0xc68] sm:$0xff]  ;;  %v8530_v52 = vld [vmem:[%s15405_s1 + $0xd78] sm:$0xff] }
 0x1e3   : > { %v9848_v63 = vpack.c.bf16 %v8492_v56, %v8490_v55 }
 0x1e4   : > { %8430 = vmatmul.mubr.msk.f32.gmra.mrb[2].mxu0 %vm553_vm2, %v11850_v41  ;;  %v8452_v41 = vld [vmem:[%s15405_s1 + $0xb98] sm:$0xff]  ;;  %v3061_v55 = vpop.permute.xlu0 %3060 }
 0x1e5   : > { %9815 = vmatpush1.bf16.msra.mxu0 %v9814_v59  ;;  %2728 = vmatprep.mubr.f32.mxu0 %v11037_v12  ;;  %v9824_v8 = vpack.c.bf16 %v8452_v41, %v8450_v6  ;;  %v8496_v59 = vld [vmem:[%s15405_s1 + $0xc98] sm:$0xff]  ;;  %v2917_v41 = vpop.permute.xlu1 %2916 }
 0x1e6   : > { %9817 = vmatprep.subr.bf16.mxu0 %v9816_v62  ;;  %v8481_v62 = vld [vmem:[%s15405_s1 + $0xc50] sm:$0xf]  ;;  %v9852_v22 = vpack.c.bf16 %v8496_v59, %v8494_v58  ;;  %v8534_v58 = vld [vmem:[%s15405_s1 + $0xd98] sm:$0xff]  ;;  %v8536_v59 = vld [vmem:[%s15405_s1 + $0xda8] sm:$0xff] }
 0x1e8   : > { %8431 = vmatmul.mubr.msk.f32.gmra.mrb[4].mxu0 %vm553_vm2, %v11868_v49  ;;  %v8454_v49 = vld [vmem:[%s15405_s1 + $0xba8] sm:$0xf] }
 0x1e9   : > { %9819 = vmatpush1.bf16.msra.mxu0 %v9818_v2  ;;  %2734 = vmatprep.mubr.f32.mxu0 %v11037_v12  ;;  %v8493_v2 = vld [vmem:[%s15405_s1 + $0xc80] sm:$0xff] }
 0x1ea   : > { %9821 = vmatprep.subr.bf16.mxu0 %v9820_v4  ;;  %v8495_v4 = vld [vmem:[%s15405_s1 + $0xc90] sm:$0xff] }
 0x1eb   : > { %v9854_v6 = vpack.c.bf16 %v8495_v4, %v8493_v2  ;;  %v8538_v4 = vld [vmem:[%s15405_s1 + $0xdb8] sm:$0xf] }
 0x1ec   : > { %8432 = vmatmul.mubr.msk.f32.gmra.mrb[6].mxu0 %vm553_vm2, %v11861_v46  ;;  %v8461_v46 = vld [vmem:[%s15405_s1 + $0xbb0] sm:$0xff] }
 0x1ed   : > { %9823 = vmatpush1.bf16.msra.mxu0 %v9822_v7  ;;  %2858 = vmatprep.mubr.f32.mxu0 %v11037_v12  ;;  %v9830_v28 = vpack.c.bf16 %v8463_v16, %v8461_v46  ;;  %v9856_v7 = vpack.c.bf16 %v8500_v5, %v8498_v21  ;;  %v8501_v46 = vld [vmem:[%s15405_s1 + $0xcc0] sm:$0xff]  ;;  %v8503_v16 = vld [vmem:[%s15405_s1 + $0xcd0] sm:$0xff]  ;;  %v8546_v21 = vld [vmem:[%s15405_s1 + $0xdc8] sm:$0xff] }
 0x1ee   : > { %9825 = vmatprep.subr.bf16.mxu0 %v9824_v8  ;;  %v8497_v8 = vld [vmem:[%s15405_s1 + $0xca0] sm:$0xff]  ;;  %v8548_v5 = vld [vmem:[%s15405_s1 + $0xdd8] sm:$0xff] }
 0x1f1   : > { %9827 = vmatpush1.bf16.msra.mxu0 %v9826_v11  ;;  %v8504_v11 = vld [vmem:[%s15405_s1 + $0xcd8] sm:$0xff] }
 0x1f2   : > { %8455 = vmatprep.subr.msk.mxu0 %vm562_vm0, %v8454_v49  ;;  %v9858_v49 = vpack.c.bf16 %v8499_v9, %v8497_v8  ;;  %v9860_v14 = vpack.c.bf16 %v8504_v11, %v8502_v10  ;;  %v8552_v8 = vld [vmem:[%s15405_s1 + $0xdf8] sm:$0xff]  ;;  %v8537_v9 = vld [vmem:[%s15405_s1 + $0xdb0] sm:$0xf]  ;;  %v9888_v10 = vpack.c.bf16 %v8548_v5, %v8546_v21  ;;  %v3199_v11 = vpop.permute.xlu0 %3198 }
 0x1f3   : > { %v8590_v21 = vld [vmem:[%s15405_s1 + $0xef8] sm:$0xff] }
 0x1f5   : > { %8456 = vmatpush1.msk.msra.mxu0 %vm562_vm0, %v8453_v24  ;;  %v9862_v24 = vpack.c.bf16 %v8503_v16, %v8501_v46  ;;  %v8551_v46 = vld [vmem:[%s15405_s1 + $0xdf0] sm:$0xff]  ;;  %v8554_v16 = vld [vmem:[%s15405_s1 + $0xe08] sm:$0xff] }
 0x1f6   : > { %9829 = vmatprep.subr.bf16.mxu0 %v9828_v26  ;;  %8457 = vmatmul.mubr.msk.f32.vlgmr.msra.gmra.mrb[0].mxu0 %vm553_vm2, %v2773_v27  ;;  %v2921_v26 = vpop.permute.xlu1 %2920  ;;  %v9864_v27 = vpack.c.bf16 %v8508_v18, %v8506_v17  ;;  %v8556_v17 = vld [vmem:[%s15405_s1 + $0xe18] sm:$0xff]  ;;  %v3203_v31 = vpop.permute.xlu0 %3202 }
 0x1f7   : > { %9831 = vmatpush1.bf16.msra.mxu0 %v9830_v28  ;;  %2864 = vmatprep.mubr.f32.mxu0 %v11037_v12  ;;  %v8505_v28 = vld [vmem:[%s15405_s1 + $0xce0] sm:$0xff] }
 0x1f8   : > { %9833 = vmatprep.subr.bf16.mxu0 %v9832_v19  ;;  %v8507_v19 = vld [vmem:[%s15405_s1 + $0xcf0] sm:$0xff] }
 0x1f9   : > { %v9866_v29 = vpack.c.bf16 %v8507_v19, %v8505_v28  ;;  %v8555_v28 = vld [vmem:[%s15405_s1 + $0xe10] sm:$0xff]  ;;  %v8558_v19 = vld [vmem:[%s15405_s1 + $0xe28] sm:$0xff] }
 0x1fa   : > { %8458 = vmatmul.mubr.msk.f32.gmra.mrb[2].mxu0 %vm553_vm2, %v2775_v33  ;;  %v8519_v33 = vld [vmem:[%s15405_s1 + $0xd20] sm:$0xff] }
 0x1fb   : > { %9835 = vmatpush1.bf16.msra.mxu0 %v9834_v43  ;;  %2870 = vmatprep.mubr.f32.mxu0 %v11037_v12  ;;  %v8517_v43 = vld [vmem:[%s15405_s1 + $0xd10] sm:$0xff] }
 0x1fc   : > { %9837 = vmatprep.subr.bf16.mxu0 %v9836_v34  ;;  %v8522_v34 = vld [vmem:[%s15405_s1 + $0xd38] sm:$0xff] }
 0x1fe   : > { %8459 = vmatmul.mubr.msk.f32.gmra.mrb[4].mxu0 %vm553_vm2, %v2777_v39  ;;  %v9872_v39 = vpack.c.bf16 %v8524_v35, %v8522_v34  ;;  %v8562_v34 = vld [vmem:[%s15405_s1 + $0xe48] sm:$0xff]  ;;  %v8564_v35 = vld [vmem:[%s15405_s1 + $0xe58] sm:$0xff] }
 0x1ff   : > { %9839 = vmatpush1.bf16.msra.mxu0 %v9838_v44  ;;  %2876 = vmatprep.mubr.f32.mxu0 %v11037_v12  ;;  %v9870_v44 = vpack.c.bf16 %v8519_v33, %v8517_v43  ;;  %v8557_v43 = vld [vmem:[%s15405_s1 + $0xe20] sm:$0xff]  ;;  %v8559_v33 = vld [vmem:[%s15405_s1 + $0xe30] sm:$0xff] }
 0x200   : > { %9841 = vmatprep.subr.bf16.mxu0 %v9840_v40  ;;  %v8521_v40 = vld [vmem:[%s15405_s1 + $0xd30] sm:$0xff] }
 0x201   : > { %v9874_v23 = vpack.c.bf16 %v8523_v42, %v8521_v40  ;;  %v8566_v42 = vld [vmem:[%s15405_s1 + $0xe68] sm:$0xf] }
 0x202   : > { %8460 = vmatmul.mubr.msk.f32.gmra.mrb[6].mxu0 %vm553_vm2, %v2779_v50  ;;  %v9876_v50 = vpack.c.bf16 %v8528_v48, %v8526_v47  ;;  %v8574_v47 = vld [vmem:[%s15405_s1 + $0xe78] sm:$0xff]  ;;  %v8576_v48 = vld [vmem:[%s15405_s1 + $0xe88] sm:$0xff] }
 0x203   : > { %9843 = vmatpush1.bf16.msra.mxu0 %v9842_v45  ;;  %3000 = vmatprep.mubr.f32.mxu0 %v11037_v12  ;;  %v3059_v45 = vpop.permute.xlu1 %3058 }
 0x204   : > { %9845 = vmatprep.subr.bf16.mxu0 %v9844_v60  ;;  %v8525_v60 = vld [vmem:[%s15405_s1 + $0xd50] sm:$0xff] }
 0x207   : > { %9847 = vmatpush1.bf16.msra.mxu0 %v9846_v53  ;;  %v8532_v53 = vld [vmem:[%s15405_s1 + $0xd88] sm:$0xff] }
 0x208   : > { %8483 = vmatprep.subr.msk.mxu0 %vm562_vm0, %v8482_v54  ;;  %v9878_v54 = vpack.c.bf16 %v8527_v51, %v8525_v60  ;;  %v9880_v56 = vpack.c.bf16 %v8532_v53, %v8530_v52  ;;  %v8580_v60 = vld [vmem:[%s15405_s1 + $0xea8] sm:$0xff]  ;;  %v8565_v51 = vld [vmem:[%s15405_s1 + $0xe60] sm:$0xf]  ;;  %v9908_v52 = vpack.c.bf16 %v8576_v48, %v8574_v47 }
 0x209   : > { %v8617_v48 = vld [vmem:[%s15405_s1 + $0xfa0] sm:$0xff] }
 0x20b   : > { %8484 = vmatpush1.msk.msra.mxu0 %vm562_vm0, %v8481_v62  ;;  %v9882_v62 = vpack.c.bf16 %v8531_v57, %v8529_v15  ;;  %v8582_v15 = vld [vmem:[%s15405_s1 + $0xeb8] sm:$0xff]  ;;  %v8584_v57 = vld [vmem:[%s15405_s1 + $0xec8] sm:$0xff] }
 0x20c   : > { %9849 = vmatprep.subr.bf16.mxu0 %v9848_v63  ;;  %8485 = vmatmul.mubr.msk.f32.vlgmr.msra.gmra.mrb[0].mxu0 %vm553_vm2, %v2915_v0  ;;  %v3063_v63 = vpop.permute.xlu1 %3062  ;;  %v9884_v0 = vpack.c.bf16 %v8536_v59, %v8534_v58  ;;  %v9916_v59 = vpack.c.bf16 %v8584_v57, %v8582_v15 }
 0x20d   : > { %9851 = vmatpush1.bf16.msra.mxu0 %v9850_v25  ;;  %3006 = vmatprep.mubr.f32.mxu0 %v11037_v12  ;;  %v8533_v25 = vld [vmem:[%s15405_s1 + $0xd90] sm:$0xff] }
 0x20e   : > { %9853 = vmatprep.subr.bf16.mxu0 %v9852_v22  ;;  %v8535_v22 = vld [vmem:[%s15405_s1 + $0xda0] sm:$0xff] }
 0x20f   : > { %v9886_v2 = vpack.c.bf16 %v8535_v22, %v8533_v25 }
 0x210   : > { %8486 = vmatmul.mubr.msk.f32.gmra.mrb[2].mxu0 %vm553_vm2, %v2917_v41  ;;  %v8547_v41 = vld [vmem:[%s15405_s1 + $0xdd0] sm:$0xff] }
 0x211   : > { %9855 = vmatpush1.bf16.msra.mxu0 %v9854_v6  ;;  %3012 = vmatprep.mubr.f32.mxu0 %v11037_v12  ;;  %v8545_v6 = vld [vmem:[%s15405_s1 + $0xdc0] sm:$0xff] }
 0x212   : > { %9857 = vmatprep.subr.bf16.mxu0 %v9856_v7  ;;  %v8550_v7 = vld [vmem:[%s15405_s1 + $0xde8] sm:$0xff] }
 0x214   : > { %8487 = vmatmul.mubr.msk.f32.gmra.mrb[4].mxu0 %vm553_vm2, %v2919_v13  ;;  %v9892_v13 = vpack.c.bf16 %v8552_v8, %v8550_v7  ;;  %v8591_v7 = vld [vmem:[%s15405_s1 + $0xf00] sm:$0xff] }
 0x215   : > { %9859 = vmatpush1.bf16.msra.mxu0 %v9858_v49  ;;  %3018 = vmatprep.mubr.f32.mxu0 %v11037_v12  ;;  %v9890_v49 = vpack.c.bf16 %v8547_v41, %v8545_v6  ;;  %v8589_v41 = vld [vmem:[%s15405_s1 + $0xef0] sm:$0xff] }
 0x216   : > { %9861 = vmatprep.subr.bf16.mxu0 %v9860_v14  ;;  %v8549_v14 = vld [vmem:[%s15405_s1 + $0xde0] sm:$0xff]  ;;  %v9926_v8 = vpack.c.bf16 %v8591_v7, %v8589_v41 }
 0x217   : > { %v9894_v18 = vpack.c.bf16 %v8551_v46, %v8549_v14  ;;  %v8593_v14 = vld [vmem:[%s15405_s1 + $0xf10] sm:$0xf] }
 0x218   : > { %8488 = vmatmul.mubr.msk.f32.gmra.mrb[6].mxu0 %vm553_vm2, %v2921_v26  ;;  %v9896_v26 = vpack.c.bf16 %v8556_v17, %v8554_v16  ;;  %v3482_v16 = vpop.permute.xlu0 %3481 }
 0x219   : > { %9863 = vmatpush1.bf16.msra.mxu0 %v9862_v24  ;;  %3142 = vmatprep.mubr.f32.mxu0 %v11037_v12  ;;  %v3201_v24 = vpop.permute.xlu1 %3200 }
 0x21a   : > { %9865 = vmatprep.subr.bf16.mxu0 %v9864_v27  ;;  %v8553_v27 = vld [vmem:[%s15405_s1 + $0xe00] sm:$0xff] }
 0x21d   : > { %9867 = vmatpush1.bf16.msra.mxu0 %v9866_v29  ;;  %v8560_v29 = vld [vmem:[%s15405_s1 + $0xe38] sm:$0xff] }
 0x21e   : > { %8511 = vmatprep.subr.msk.mxu0 %vm562_vm0, %v8510_v30  ;;  %v9898_v30 = vpack.c.bf16 %v8555_v28, %v8553_v27  ;;  %v9900_v32 = vpack.c.bf16 %v8560_v29, %v8558_v19  ;;  %v8610_v27 = vld [vmem:[%s15405_s1 + $0xf68] sm:$0xff]  ;;  %v8612_v28 = vld [vmem:[%s15405_s1 + $0xf78] sm:$0xff] }
 0x221   : > { %8512 = vmatpush1.msk.msra.mxu0 %vm562_vm0, %v8509_v36  ;;  %v9902_v36 = vpack.c.bf16 %v8559_v33, %v8557_v43  ;;  %v8614_v43 = vld [vmem:[%s15405_s1 + $0xf88] sm:$0xff]  ;;  %v8616_v33 = vld [vmem:[%s15405_s1 + $0xf98] sm:$0xff] }
 0x222   : > { %9869 = vmatprep.subr.bf16.mxu0 %v9868_v37  ;;  %8513 = vmatmul.mubr.msk.f32.vlgmr.msra.gmra.mrb[0].mxu0 %vm553_vm2, %v3057_v38  ;;  %v3205_v37 = vpop.permute.xlu1 %3204  ;;  %v9904_v38 = vpack.c.bf16 %v8564_v35, %v8562_v34  ;;  %v3486_v35 = vpop.permute.xlu0 %3485 }
 0x223   : > { %9871 = vmatpush1.bf16.msra.mxu0 %v9870_v44  ;;  %3148 = vmatprep.mubr.f32.mxu0 %v11037_v12  ;;  %v8561_v44 = vld [vmem:[%s15405_s1 + $0xe40] sm:$0xff] }
 0x224   : > { %9873 = vmatprep.subr.bf16.mxu0 %v9872_v39  ;;  %v8563_v39 = vld [vmem:[%s15405_s1 + $0xe50] sm:$0xff] }
 0x225   : > { %v9906_v40 = vpack.c.bf16 %v8563_v39, %v8561_v44  ;;  %v8618_v44 = vld [vmem:[%s15405_s1 + $0xfa8] sm:$0xff]  ;;  %v8620_v39 = vld [vmem:[%s15405_s1 + $0xfb8] sm:$0xff] }
 0x226   : > { %8514 = vmatmul.mubr.msk.f32.gmra.mrb[2].mxu0 %vm553_vm2, %v3059_v45  ;;  %v8575_v45 = vld [vmem:[%s15405_s1 + $0xe80] sm:$0xff]  ;;  %v3484_v29 = vpop.permute.xlu1 %3483  ;;  %v9944_v47 = vpack.c.bf16 %v8620_v39, %v8618_v44  ;;  %v3624_v57 = vpop.permute.xlu0 %3623  ;;  %v8667_v39 = vld [vmem:[%s15405_s1 + $0x10d0] sm:$0xff] }
 0x227   : > { %9875 = vmatpush1.bf16.msra.mxu0 %v9874_v23  ;;  %3154 = vmatprep.mubr.f32.mxu0 %v11037_v12  ;;  %v8573_v23 = vld [vmem:[%s15405_s1 + $0xe70] sm:$0xff]  ;;  %v8665_v44 = vld [vmem:[%s15405_s1 + $0x10c0] sm:$0xff] }
 0x228   : > { %9877 = vmatprep.subr.bf16.mxu0 %v9876_v50  ;;  %v8578_v50 = vld [vmem:[%s15405_s1 + $0xe98] sm:$0xff]  ;;  %v9910_v53 = vpack.c.bf16 %v8575_v45, %v8573_v23  ;;  %v8619_v23 = vld [vmem:[%s15405_s1 + $0xfb0] sm:$0xff] }
 0x229   : > { %v9946_v45 = vpack.c.bf16 %v8619_v23, %v8617_v48 }
 0x22a   : > { %8515 = vmatmul.mubr.msk.f32.gmra.mrb[4].mxu0 %vm553_vm2, %v3061_v55  ;;  %v8577_v55 = vld [vmem:[%s15405_s1 + $0xe90] sm:$0xff]  ;;  %v3628_v41 = vpop.permute.xlu0 %3627 }
 0x22b   : > { %9879 = vmatpush1.bf16.msra.mxu0 %v9878_v54  ;;  %3160 = vmatprep.mubr.f32.mxu0 %v11037_v12  ;;  %v9912_v54 = vpack.c.bf16 %v8580_v60, %v8578_v50  ;;  %v8622_v50 = vld [vmem:[%s15405_s1 + $0xfc8] sm:$0xf]  ;;  %v8630_v60 = vld [vmem:[%s15405_s1 + $0xfd8] sm:$0xff] }
 0x22c   : > { %9881 = vmatprep.subr.bf16.mxu0 %v9880_v56  ;;  %v8579_v56 = vld [vmem:[%s15405_s1 + $0xea0] sm:$0xff] }
 0x22d   : > { %v9914_v58 = vpack.c.bf16 %v8579_v56, %v8577_v55  ;;  %v8636_v55 = vld [vmem:[%s15405_s1 + $0x1008] sm:$0xff]  ;;  %v8621_v56 = vld [vmem:[%s15405_s1 + $0xfc0] sm:$0xf] }
 0x22e   : > { %8516 = vmatmul.mubr.msk.f32.gmra.mrb[6].mxu0 %vm553_vm2, %v3063_v63  ;;  %v8583_v63 = vld [vmem:[%s15405_s1 + $0xec0] sm:$0xff] }
 0x22f   : > { %9883 = vmatpush1.bf16.msra.mxu0 %v9882_v62  ;;  %3284 = vmatprep.mubr.f32.mxu0 %v11037_v12  ;;  %v8581_v62 = vld [vmem:[%s15405_s1 + $0xeb0] sm:$0xff] }
 0x230   : > { %9885 = vmatprep.subr.bf16.mxu0 %v9884_v0  ;;  %v8586_v0 = vld [vmem:[%s15405_s1 + $0xed8] sm:$0xff]  ;;  %v9918_v25 = vpack.c.bf16 %v8583_v63, %v8581_v62  ;;  %v8633_v62 = vld [vmem:[%s15405_s1 + $0xff0] sm:$0xff]  ;;  %v8635_v63 = vld [vmem:[%s15405_s1 + $0x1000] sm:$0xff] }
 0x233   : > { %9887 = vmatpush1.bf16.msra.mxu0 %v9886_v2  ;;  %v8585_v2 = vld [vmem:[%s15405_s1 + $0xed0] sm:$0xff] }
 0x234   : > { %8539 = vmatprep.subr.msk.mxu0 %vm562_vm0, %v8538_v4  ;;  %v8587_v4 = vld [vmem:[%s15405_s1 + $0xee0] sm:$0xff] }
 0x235   : > { %v9922_v5 = vpack.c.bf16 %v8587_v4, %v8585_v2  ;;  %v8637_v4 = vld [vmem:[%s15405_s1 + $0x1010] sm:$0xff] }
 0x237   : > { %8540 = vmatpush1.msk.msra.mxu0 %vm562_vm0, %v8537_v9  ;;  %v8602_v9 = vld [vmem:[%s15405_s1 + $0xf28] sm:$0xff] }
 0x238   : > { %9889 = vmatprep.subr.bf16.mxu0 %v9888_v10  ;;  %8541 = vmatmul.mubr.msk.f32.vlgmr.msra.gmra.mrb[0].mxu0 %vm553_vm2, %v3199_v11  ;;  %v8604_v10 = vld [vmem:[%s15405_s1 + $0xf38] sm:$0xff]  ;;  %v8603_v11 = vld [vmem:[%s15405_s1 + $0xf30] sm:$0xff] }
 0x239   : > { %9891 = vmatpush1.bf16.msra.mxu0 %v9890_v49  ;;  %3290 = vmatprep.mubr.f32.mxu0 %v11037_v12  ;;  %v8606_v49 = vld [vmem:[%s15405_s1 + $0xf48] sm:$0xff]  ;;  %v9928_v46 = vpack.c.bf16 %v8604_v10, %v8602_v9  ;;  %v8646_v9 = vld [vmem:[%s15405_s1 + $0x1058] sm:$0xff] }
 0x23a   : > { %9893 = vmatprep.subr.bf16.mxu0 %v9892_v13  ;;  %v8608_v13 = vld [vmem:[%s15405_s1 + $0xf58] sm:$0xff]  ;;  %v8648_v10 = vld [vmem:[%s15405_s1 + $0x1068] sm:$0xff] }
 0x23c   : > { %8542 = vmatmul.mubr.msk.f32.gmra.mrb[2].mxu0 %vm553_vm2, %v3201_v24  ;;  %v8605_v24 = vld [vmem:[%s15405_s1 + $0xf40] sm:$0xff] }
 0x23d   : > { %9895 = vmatpush1.bf16.msra.mxu0 %v9894_v18  ;;  %3296 = vmatprep.mubr.f32.mxu0 %v11037_v12  ;;  %v9932_v18 = vpack.c.bf16 %v8608_v13, %v8606_v49  ;;  %v9964_v49 = vpack.c.bf16 %v8648_v10, %v8646_v9  ;;  %v8645_v13 = vld [vmem:[%s15405_s1 + $0x1050] sm:$0xff] }
 0x23e   : > { %9897 = vmatprep.subr.bf16.mxu0 %v9896_v26  ;;  %v8607_v26 = vld [vmem:[%s15405_s1 + $0xf50] sm:$0xff] }
 0x23f   : > { %v9934_v19 = vpack.c.bf16 %v8607_v26, %v8605_v24  ;;  %v8657_v24 = vld [vmem:[%s15405_s1 + $0x1080] sm:$0xff]  ;;  %v8659_v26 = vld [vmem:[%s15405_s1 + $0x1090] sm:$0xff] }
 0x240   : > { %8543 = vmatmul.mubr.msk.f32.gmra.mrb[4].mxu0 %vm553_vm2, %v3203_v31  ;;  %v8609_v31 = vld [vmem:[%s15405_s1 + $0xf60] sm:$0xff] }
 0x241   : > { %9899 = vmatpush1.bf16.msra.mxu0 %v9898_v30  ;;  %3302 = vmatprep.mubr.f32.mxu0 %v11037_v12  ;;  %v9936_v30 = vpack.c.bf16 %v8612_v28, %v8610_v27  ;;  %v8662_v27 = vld [vmem:[%s15405_s1 + $0x10a8] sm:$0xff]  ;;  %v8664_v28 = vld [vmem:[%s15405_s1 + $0x10b8] sm:$0xff] }
 0x242   : > { %9901 = vmatprep.subr.bf16.mxu0 %v9900_v32  ;;  %v8611_v32 = vld [vmem:[%s15405_s1 + $0xf70] sm:$0xff] }
 0x243   : > { %v9938_v34 = vpack.c.bf16 %v8611_v32, %v8609_v31  ;;  %v9970_v31 = vpack.c.bf16 %v8659_v26, %v8657_v24  ;;  %v9972_v32 = vpack.c.bf16 %v8664_v28, %v8662_v27 }
 0x244   : > { %8544 = vmatmul.mubr.msk.f32.gmra.mrb[6].mxu0 %vm553_vm2, %v3205_v37  ;;  %v8613_v37 = vld [vmem:[%s15405_s1 + $0xf80] sm:$0xff] }
 0x245   : > { %9903 = vmatpush1.bf16.msra.mxu0 %v9902_v36  ;;  %3425 = vmatprep.mubr.f32.mxu0 %v11037_v12  ;;  %v9940_v36 = vpack.c.bf16 %v8616_v33, %v8614_v43  ;;  %v8661_v43 = vld [vmem:[%s15405_s1 + $0x10a0] sm:$0xff]  ;;  %v8663_v33 = vld [vmem:[%s15405_s1 + $0x10b0] sm:$0xff] }
 0x246   : > { %9905 = vmatprep.subr.bf16.mxu0 %v9904_v38  ;;  %v8615_v38 = vld [vmem:[%s15405_s1 + $0xf90] sm:$0xff] }
 0x249   : > { %9907 = vmatpush1.bf16.msra.mxu0 %v9906_v40  ;;  %v9942_v40 = vpack.c.bf16 %v8615_v38, %v8613_v37 }
 0x24a   : > { %8567 = vmatprep.subr.msk.mxu0 %vm562_vm0, %v8566_v42  ;;  %v3488_v42 = vpop.permute.xlu1 %3487 }
 0x24d   : > { %8568 = vmatpush1.msk.msra.mxu0 %vm562_vm0, %v8565_v51  ;;  %v8632_v51 = vld [vmem:[%s15405_s1 + $0xfe8] sm:$0xff] }
 0x24e   : > { %9909 = vmatprep.subr.bf16.mxu0 %v9908_v52  ;;  %8569 = vmatmul.mubr.msk.f32.vlgmr.msra.gmra.mrb[0].mxu0 %vm553_vm2, %v12243_v20  ;;  %v8588_v20 = vld [vmem:[%s15405_s1 + $0xee8] sm:$0xff]  ;;  %v8629_v52 = vld [vmem:[%s15405_s1 + $0xfd0] sm:$0xff]  ;;  %v9948_v15 = vpack.c.bf16 %v8632_v51, %v8630_v60  ;;  %v8676_v51 = vld [vmem:[%s15405_s1 + $0x1118] sm:$0xff] }
 0x24f   : > { %9911 = vmatpush1.bf16.msra.mxu0 %v9910_v53  ;;  %3431 = vmatprep.mubr.f32.mxu0 %v11037_v12  ;;  %v9920_v22 = vpack.c.bf16 %v8588_v20, %v8586_v0  ;;  %v8631_v53 = vld [vmem:[%s15405_s1 + $0xfe0] sm:$0xff]  ;;  %v8638_v0 = vld [vmem:[%s15405_s1 + $0x1018] sm:$0xff]  ;;  %v8640_v20 = vld [vmem:[%s15405_s1 + $0x1028] sm:$0xff] }
 0x250   : > { %9913 = vmatprep.subr.bf16.mxu0 %v9912_v54  ;;  %v8634_v54 = vld [vmem:[%s15405_s1 + $0xff8] sm:$0xff]  ;;  %v9956_v2 = vpack.c.bf16 %v8640_v20, %v8638_v0  ;;  %v8674_v60 = vld [vmem:[%s15405_s1 + $0x1108] sm:$0xff]  ;;  %v4028_v20 = vlaneseq }
 0x252   : > { %8570 = vmatmul.mubr.msk.f32.gmra.mrb[2].mxu0 %vm553_vm2, %v12282_v61  ;;  %v8592_v61 = vld [vmem:[%s15405_s1 + $0xf08] sm:$0xff] }
 0x253   : > { %9915 = vmatpush1.bf16.msra.mxu0 %v9914_v58  ;;  %3437 = vmatprep.mubr.f32.mxu0 %v11037_v12  ;;  %v9924_v6 = vpack.c.bf16 %v8592_v61, %v8590_v21  ;;  %v9950_v58 = vpack.c.bf16 %v8631_v53, %v8629_v52  ;;  %v8639_v21 = vld [vmem:[%s15405_s1 + $0x1020] sm:$0xff]  ;;  %v8642_v61 = vld [vmem:[%s15405_s1 + $0x1038] sm:$0xff] }
 0x254   : > { %9917 = vmatprep.subr.bf16.mxu0 %v9916_v59  ;;  %v9952_v59 = vpack.c.bf16 %v8636_v55, %v8634_v54  ;;  %v9984_v54 = vpack.c.bf16 %v8676_v51, %v8674_v60  ;;  %v8673_v55 = vld [vmem:[%s15405_s1 + $0x1100] sm:$0xff] }
 0x256   : > { %8571 = vmatmul.mubr.msk.f32.gmra.mrb[4].mxu0 %vm553_vm2, %v12300_v3  ;;  %v8594_v3 = vld [vmem:[%s15405_s1 + $0xf18] sm:$0xf] }
 0x257   : > { %9919 = vmatpush1.bf16.msra.mxu0 %v9918_v25  ;;  %3443 = vmatprep.mubr.f32.mxu0 %v11037_v12  ;;  %v9954_v25 = vpack.c.bf16 %v8635_v63, %v8633_v62 }
 0x258   : > { %9921 = vmatprep.subr.bf16.mxu0 %v9920_v22  ;;  %v3626_v22 = vpop.permute.xlu1 %3625 }
 0x25a   : > { %8572 = vmatmul.mubr.msk.f32.gmra.mrb[6].mxu0 %vm553_vm2, %v12293_v1  ;;  %v8601_v1 = vld [vmem:[%s15405_s1 + $0xf20] sm:$0xff] }
 0x25b   : > { %9923 = vmatpush1.bf16.msra.mxu0 %v9922_v5  ;;  %3567 = vmatprep.mubr.f32.mxu0 %v11037_v12  ;;  %v9930_v17 = vpack.c.bf16 %v8603_v11, %v8601_v1  ;;  %v8644_v5 = vld [vmem:[%s15405_s1 + $0x1048] sm:$0xff] }
 0x25c   : > { %9925 = vmatprep.subr.bf16.mxu0 %v9924_v6  ;;  %v9958_v6 = vpack.c.bf16 %v8639_v21, %v8637_v4  ;;  %v9960_v7 = vpack.c.bf16 %v8644_v5, %v8642_v61  ;;  %v3630_v11 = vpop.permute.xlu1 %3629 }
 0x25f   : > { %9927 = vmatpush1.bf16.msra.mxu0 %v9926_v8  ;;  %v8641_v8 = vld [vmem:[%s15405_s1 + $0x1030] sm:$0xff] }
 0x260   : > { %8595 = vmatprep.subr.msk.mxu0 %vm562_vm0, %v8594_v3  ;;  %v8643_v3 = vld [vmem:[%s15405_s1 + $0x1040] sm:$0xff]  ;;  %v3768_v37 = vpop.permute.xlu1 %3767 }
 0x261   : > { %v9962_v1 = vpack.c.bf16 %v8643_v3, %v8641_v8 }
 0x263   : > { %8596 = vmatpush1.msk.msra.mxu0 %vm562_vm0, %v8593_v14  ;;  %v8647_v14 = vld [vmem:[%s15405_s1 + $0x1060] sm:$0xff] }
 0x264   : > { %9929 = vmatprep.subr.bf16.mxu0 %v9928_v46  ;;  %8597 = vmatmul.mubr.msk.f32.vlgmr.msra.gmra.mrb[0].mxu0 %vm553_vm2, %v3482_v16  ;;  %v9966_v46 = vpack.c.bf16 %v8647_v14, %v8645_v13  ;;  %v8650_v16 = vld [vmem:[%s15405_s1 + $0x1078] sm:$0xf]  ;;  %v3772_v53 = vpop.permute.xlu1 %3771 }
 0x265   : > { %9931 = vmatpush1.bf16.msra.mxu0 %v9930_v17  ;;  %3573 = vmatprep.mubr.f32.mxu0 %v11037_v12  ;;  %v8658_v17 = vld [vmem:[%s15405_s1 + $0x1088] sm:$0xff] }
 0x266   : > { %9933 = vmatprep.subr.bf16.mxu0 %v9932_v18  ;;  %v8660_v18 = vld [vmem:[%s15405_s1 + $0x1098] sm:$0xff] }
 0x268   : > { %8598 = vmatmul.mubr.msk.f32.gmra.mrb[2].mxu0 %vm553_vm2, %v3484_v29  ;;  %v9968_v29 = vpack.c.bf16 %v8660_v18, %v8658_v17  ;;  %v3910_v62 = vpop.permute.xlu1 %3909 }
 0x269   : > { %9935 = vmatpush1.bf16.msra.mxu0 %v9934_v19  ;;  %3579 = vmatprep.mubr.f32.mxu0 %v11037_v12  ;;  %v8649_v19 = vld [vmem:[%s15405_s1 + $0x1070] sm:$0xf] }
 0x26a   : > { %9937 = vmatprep.subr.bf16.mxu0 %v9936_v30  ;;  %v3766_v30 = vpop.permute.xlu0 %3765 }
 0x26c   : > { %8599 = vmatmul.mubr.msk.f32.gmra.mrb[4].mxu0 %vm553_vm2, %v3486_v35  ;;  %v8668_v35 = vld [vmem:[%s15405_s1 + $0x10d8] sm:$0xff]  ;;  %v3914_v0 = vpop.permute.xlu1 %3913 }
 0x26d   : > { %9939 = vmatpush1.bf16.msra.mxu0 %v9938_v34  ;;  %3585 = vmatprep.mubr.f32.mxu0 %v11037_v12  ;;  %v8666_v34 = vld [vmem:[%s15405_s1 + $0x10c8] sm:$0xff] }
 0x26e   : > { %9941 = vmatprep.subr.bf16.mxu0 %v9940_v36  ;;  %v9974_v36 = vpack.c.bf16 %v8663_v33, %v8661_v43  ;;  %v9976_v38 = vpack.c.bf16 %v8668_v35, %v8666_v34  ;;  %v3770_v48 = vpop.permute.xlu0 %3769 }
 0x270   : > { %8600 = vmatmul.mubr.msk.f32.gmra.mrb[6].mxu0 %vm553_vm2, %v3488_v42  ;;  %v8672_v42 = vld [vmem:[%s15405_s1 + $0x10f8] sm:$0xff] }
 0x271   : > { %9943 = vmatpush1.bf16.msra.mxu0 %v9942_v40  ;;  %3709 = vmatprep.mubr.f32.mxu0 %v11037_v12  ;;  %v8670_v40 = vld [vmem:[%s15405_s1 + $0x10e8] sm:$0xff] }
 0x272   : > { %9945 = vmatprep.subr.bf16.mxu0 %v9944_v47  ;;  %v9978_v47 = vpack.c.bf16 %v8667_v39, %v8665_v44  ;;  %v9980_v23 = vpack.c.bf16 %v8672_v42, %v8670_v40 }
 0x275   : > { %9947 = vmatpush1.bf16.msra.mxu0 %v9946_v45  ;;  %v8669_v45 = vld [vmem:[%s15405_s1 + $0x10e0] sm:$0xff] }
 0x276   : > { %8623 = vmatprep.subr.msk.mxu0 %vm562_vm0, %v8622_v50  ;;  %v8671_v50 = vld [vmem:[%s15405_s1 + $0x10f0] sm:$0xff] }
 0x277   : > { %v9982_v52 = vpack.c.bf16 %v8671_v50, %v8669_v45 }
 0x279   : > { %8624 = vmatpush1.msk.msra.mxu0 %vm562_vm0, %v8621_v56  ;;  %v8675_v56 = vld [vmem:[%s15405_s1 + $0x1110] sm:$0xff] }
 0x27a   : > { %9949 = vmatprep.subr.bf16.mxu0 %v9948_v15  ;;  %8625 = vmatmul.mubr.msk.f32.vlgmr.msra.gmra.mrb[0].mxu0 %vm553_vm2, %v3624_v57  ;;  %v9986_v15 = vpack.c.bf16 %v8675_v56, %v8673_v55  ;;  %v8678_v57 = vld [vmem:[%s15405_s1 + $0x1128] sm:$0xf] }
 0x27b   : > { %9951 = vmatpush1.bf16.msra.mxu0 %v9950_v58  ;;  %3715 = vmatprep.mubr.f32.mxu0 %v11037_v12  ;;  %v8677_v58 = vld [vmem:[%s15405_s1 + $0x1120] sm:$0xf] }
 0x27c   : > { %9953 = vmatprep.subr.bf16.mxu0 %v9952_v59  ;;  %v3908_v59 = vpop.permute.xlu0 %3907 }
 0x27e   : > { %8626 = vmatmul.mubr.msk.f32.gmra.mrb[2].mxu0 %vm553_vm2, %v3626_v22 }
 0x27f   : > { %9955 = vmatpush1.bf16.msra.mxu0 %v9954_v25  ;;  %3721 = vmatprep.mubr.f32.mxu0 %v11037_v12  ;;  %v13341_v25 = vshrl.u32 %v4028_v20, 7 }
 0x280   : > { %9957 = vmatprep.subr.bf16.mxu0 %v9956_v2  ;;  %v3912_v63 = vpop.permute.xlu0 %3911  ;;  %v4026_v2 = vld [vmem:[%s15406_s2] sm:$0x3] }
 0x281   : > { %v4030_v22 = vsub.s32 0, %v13341_v25  ;;  %v4034_v4 = vsub.s32 1, %v13341_v25 }
 0x282   : > { %8627 = vmatmul.mubr.msk.f32.gmra.mrb[4].mxu0 %vm553_vm2, %v3628_v41 }
 0x283   : > { %9959 = vmatpush1.bf16.msra.mxu0 %v9958_v6  ;;  %3727 = vmatprep.mubr.f32.mxu0 %v11037_v12  ;;  %v4031_v21 = vrot.slane %v4026_v2, %v4030_v22  ;;  %v4035_v61 = vrot.slane %v4026_v2, %v4034_v4  ;;  %v4211_v2 = vld [vmem:[%s15410_s6 + $0x18] sm:$0xff] }
 0x284   : > { %9961 = vmatprep.subr.bf16.mxu0 %v9960_v7 }
 0x286   : > { %8628 = vmatmul.mubr.msk.f32.gmra.mrb[6].mxu0 %vm553_vm2, %v3630_v11 }
 0x287   : > { %9963 = vmatpush1.bf16.msra.mxu0 %v9962_v1  ;;  %3851 = vmatprep.mubr.f32.mxu0 %v11037_v12 }
 0x288   : > { %9965 = vmatprep.subr.bf16.mxu0 %v9964_v49 }
 0x28b   : > { %9967 = vmatpush1.bf16.msra.mxu0 %v9966_v46 }
 0x28c   : > { %8651 = vmatprep.subr.msk.mxu0 %vm562_vm0, %v8650_v16 }
 0x28f   : > { %8652 = vmatpush1.msk.msra.mxu0 %vm562_vm0, %v8649_v19 }
 0x290   : > { %9969 = vmatprep.subr.bf16.mxu0 %v9968_v29  ;;  %8653 = vmatmul.mubr.msk.f32.vlgmr.msra.gmra.mrb[0].mxu0 %vm553_vm2, %v3766_v30 }
 0x291   : > { %9971 = vmatpush1.bf16.msra.mxu0 %v9970_v31  ;;  %3857 = vmatprep.mubr.f32.mxu0 %v11037_v12 }
 0x292   : > { %9973 = vmatprep.subr.bf16.mxu0 %v9972_v32 }
 0x294   : > { %8654 = vmatmul.mubr.msk.f32.gmra.mrb[2].mxu0 %vm553_vm2, %v3768_v37 }
 0x295   : > { %9975 = vmatpush1.bf16.msra.mxu0 %v9974_v36  ;;  %3863 = vmatprep.mubr.f32.mxu0 %v11037_v12 }
 0x296   : > { %9977 = vmatprep.subr.bf16.mxu0 %v9976_v38 }
 0x298   : > { %8655 = vmatmul.mubr.msk.f32.gmra.mrb[4].mxu0 %vm553_vm2, %v3770_v48 }
 0x299   : > { %9979 = vmatpush1.bf16.msra.mxu0 %v9978_v47  ;;  %3869 = vmatprep.mubr.f32.mxu0 %v11037_v12 }
 0x29a   : > { %9981 = vmatprep.subr.bf16.mxu0 %v9980_v23 }
 0x29c   : > { %8656 = vmatmul.mubr.msk.f32.gmra.mrb[6].mxu0 %vm553_vm2, %v3772_v53 }
 0x29d   : > { %9983 = vmatpush1.bf16.msra.mxu0 %v9982_v52  ;;  %3993 = vmatprep.mubr.f32.mxu0 %v11037_v12 }
 0x29e   : > { %9985 = vmatprep.subr.bf16.mxu0 %v9984_v54 }
 0x2a1   : > { %9987 = vmatpush1.bf16.msra.mxu0 %v9986_v15 }
 0x2a2   : > { %8679 = vmatprep.subr.msk.mxu0 %vm562_vm0, %v8678_v57  ;;  %v4092_v57 = vld [vmem:[%s15409_s5] sm:$0xff] }
 0x2a5   : > { %8680 = vmatpush1.msk.msra.mxu0 %vm562_vm0, %v8677_v58  ;;  %v4093_v58 = vld [vmem:[%s15409_s5 + $0x8] sm:$0x3f] }
 0x2a6   : > { %8681 = vmatmul.mubr.msk.f32.vlgmr.msra.gmra.mrb[0].mxu0 %vm553_vm2, %v3908_v59  ;;  %v4208_v59 = vld [vmem:[%s15410_s6] sm:$0xff] }
 0x2a7   : > { %3999 = vmatprep.mubr.f32.mxu0 %v11037_v12 }
 0x2aa   : > { %8682 = vmatmul.mubr.msk.f32.gmra.mrb[2].mxu0 %vm553_vm2, %v3910_v62  ;;  %v4209_v62 = vld [vmem:[%s15410_s6 + $0x8] sm:$0xff] }
 0x2ab   : > { %4005 = vmatprep.mubr.f32.mxu0 %v11037_v12  ;;  %v9999_v20 = vpack.c.bf16 %v4209_v62, %v4208_v59  ;;  %v8700_v62 = vld [vmem:[%s15407_s3 + $0xc0] sm:$0xff] }
 0x2ae   : > { %8683 = vmatmul.mubr.msk.f32.gmra.mrb[4].mxu0 %vm553_vm2, %v3912_v63  ;;  %v4210_v63 = vld [vmem:[%s15410_s6 + $0x10] sm:$0xff] }
 0x2af   : > { %4011 = vmatprep.mubr.f32.mxu0 %v11037_v12 }
 0x2b2   : > { %8684 = vmatmul.mubr.msk.f32.gmra.mrb[6].mxu0 %vm553_vm2, %v3914_v0  ;;  %v11043_v0 = vmov 0.0|0.0  }
 0x2b3   : > { %10586 = vmatprep.subr.bf16.mxu0 %v11043_v0  ;;  %9460 = vmatprep.mubr.msk.f32.mxu0 %vm11047_vm5, %v11037_v12 }
 0x379   : > { %v3995_v5 = vpop.f32.mrb[0].mxu0 }
 0x37a   : > { %v4038_v6 = vadd.f32 %v4031_v21, %v3995_v5  ;;  %v3997_v41 = vpop.f32.mrb[1].mxu0  ;;  %v4213_v5 = vld [vmem:[%s15410_s6 + $0x28] sm:$0xff] }
 0x37b   : > { %v4039_v7 = vadd.f32 %v4035_v61, %v3997_v41  ;;  %v4214_v41 = vld [vmem:[%s15410_s6 + $0x30] sm:$0xff] }
 0x37c   : > { %v4046_v3 = vmax.f32 %v4038_v6, 0.0 }
 0x37d   : > { %v4001_v8 = vpop.f32.mrb[2].mxu0  ;;  %v4047_v1 = vmax.f32 %v4039_v7, 0.0  ;;  %v4215_v7 = vld [vmem:[%s15410_s6 + $0x38] sm:$0xff] }
 0x37e   : > { %v4040_v9 = vadd.f32 %v4031_v21, %v4001_v8  ;;  %v4003_v10 = vpop.f32.mrb[3].mxu0  ;;  %v4062_v46 = vrot.slane %v4046_v3, 1  ;;  %v10008_v8 = vpack.c.bf16 %v4215_v7, %v4214_v41  ;;  %v4316_v7 = vld [vmem:[%s15407_s3 + $0x8] sm:$0xff] }
 0x37f   : > { %v4041_v11 = vadd.f32 %v4035_v61, %v4003_v10  ;;  %v4065_v24 = vrot.slane %v4047_v1, 1 }
 0x380   : > { %v4048_v49 = vmax.f32 %v4040_v9, 0.0  ;;  %v4217_v9 = vld [vmem:[%s15410_s6 + $0x48] sm:$0xff] }
 0x381   : > { %v4049_v13 = vmax.f32 %v4041_v11, 0.0  ;;  %v4007_v14 = vpop.f32.mrb[4].mxu0  ;;  %v4219_v11 = vld [vmem:[%s15410_s6 + $0x58] sm:$0xff] }
 0x382   : > { %v4063_v16 = vrot.slane %v4048_v49, 1  ;;  %v4042_v17 = vadd.f32 %v4031_v21, %v4007_v14  ;;  %v4009_v18 = vpop.f32.mrb[5].mxu0  ;;  %v4221_v14 = vld [vmem:[%s15410_s6 + $0x68] sm:$0xff] }
 0x383   : > { %v4066_v26 = vrot.slane %v4049_v13, 1  ;;  %v4043_v27 = vadd.f32 %v4035_v61, %v4009_v18 }
 0x384   : > { %v4050_v28 = vmax.f32 %v4042_v17, 0.0  ;;  %v4064_v19 = vsel %vm1210_vm1, %v4062_v46, %v4063_v16  ;;  %v4223_v17 = vld [vmem:[%s15410_s6 + $0x78] sm:$0xff] }
 0x385   : > { %v4051_v29 = vmax.f32 %v4043_v27, 0.0  ;;  %v4013_v30 = vpop.f32.mrb[6].mxu0  ;;  %v4067_v31 = vsel %vm1210_vm1, %v4065_v24, %v4066_v26  ;;  %v4084_v32 = vmax.f32 %v4046_v3, %v4064_v19  ;;  %v4216_v3 = vld [vmem:[%s15410_s6 + $0x40] sm:$0xff]  ;;  %v4227_v19 = vld [vmem:[%s15410_s6 + $0x98] sm:$0xff] }
 0x386   : > { %v4068_v43 = vrot.slane %v4050_v28, 1  ;;  %v4044_v33 = vadd.f32 %v4031_v21, %v4013_v30  ;;  %v4015_v34 = vpop.f32.mrb[7].mxu0  ;;  %v4085_v35 = vmax.f32 %v4047_v1, %v4067_v31  ;;  %v10002_v21 = vpack.c.bf16 %v4211_v2, %v4210_v63  ;;  %v4218_v1 = vld [vmem:[%s15410_s6 + $0x50] sm:$0xff]  ;;  %v4224_v24 = vld [vmem:[%s15410_s6 + $0x80] sm:$0xff]  ;;  %v8707_v2 = vld [vmem:[%s15407_s3 + $0xf8] sm:$0xf] }
 0x387   : > { %v4070_v36 = vrot.slane %v4051_v29, 1  ;;  %v4045_v37 = vadd.f32 %v4035_v61, %v4015_v34  ;;  %v4212_v61 = vld [vmem:[%s15410_s6 + $0x20] sm:$0xff]  ;;  %v10011_v10 = vpack.c.bf16 %v4217_v9, %v4216_v3  ;;  %v8702_v63 = vld [vmem:[%s15407_s3 + $0xd0] sm:$0xff] }
 0x388   : > { %v4052_v38 = vmax.f32 %v4044_v33, 0.0  ;;  %v4069_v44 = vsel %vm1210_vm1, %v4063_v16, %v4068_v43  ;;  %v10005_v6 = vpack.c.bf16 %v4213_v5, %v4212_v61  ;;  %v4222_v16 = vld [vmem:[%s15410_s6 + $0x70] sm:$0xff]  ;;  %v4228_v30 = vld [vmem:[%s15410_s6 + $0xa0] sm:$0x3] }
 0x389   : > { %v4053_v39 = vmax.f32 %v4045_v37, 0.0  ;;  %v4071_v40 = vsel %vm1210_vm1, %v4066_v26, %v4070_v36  ;;  %v4086_v42 = vmax.f32 %v4048_v49, %v4069_v44  ;;  %v10014_v49 = vpack.c.bf16 %v4219_v11, %v4218_v1  ;;  %v4225_v26 = vld [vmem:[%s15410_s6 + $0x88] sm:$0xff]  ;;  %v8704_v5 = vld [vmem:[%s15407_s3 + $0xe0] sm:$0xff] }
 0x38a   : > { %v4072_v47 = vrot.slane %v4052_v38, 1  ;;  %v4087_v48 = vmax.f32 %v4049_v13, %v4071_v40  ;;  %v4220_v13 = vld [vmem:[%s15410_s6 + $0x60] sm:$0xff]  ;;  %v10020_v18 = vpack.c.bf16 %v4223_v17, %v4222_v16  ;;  %v10023_v27 = vpack.c.bf16 %v4225_v26, %v4224_v24 }
 0x38b   : > { %v4074_v23 = vrot.slane %v4053_v39, 1  ;;  %v9990_v45 = vpack.c.bf16 %v4086_v42, %v4084_v32  ;;  %v10017_v46 = vpack.c.bf16 %v4221_v14, %v4220_v13 }
 0x38c   : > { %v4073_v50 = vsel %vm1210_vm1, %v4068_v43, %v4072_v47  ;;  %v4090_v60 = vmax.f32 %v4052_v38, %v4072_v47  ;;  %v9988_v51 = vpack.c.bf16 %v4087_v48, %v4085_v35  ;;  %v8693_v48 = vld [vmem:[%s15407_s3 + $0x88] sm:$0xff] }
 0x38d   : > { %v4088_v52 = vmax.f32 %v4050_v28, %v4073_v50  ;;  %v4075_v53 = vsel %vm1210_vm1, %v4070_v36, %v4074_v23  ;;  %v4091_v54 = vmax.f32 %v4053_v39, %v4074_v23  ;;  %v4226_v28 = vld [vmem:[%s15410_s6 + $0x90] sm:$0xff]  ;;  %v8695_v23 = vld [vmem:[%s15407_s3 + $0x98] sm:$0xff] }
 0x38e   : > { %v4089_v55 = vmax.f32 %v4051_v29, %v4075_v53  ;;  %9989 = vmatprep.subr.bf16.mxu1 %v9988_v51  ;;  %v10026_v29 = vpack.c.bf16 %v4227_v19, %v4226_v28  ;;  %v10028_v50 = vpack.c.bf16 %v8695_v23, %v8693_v48  ;;  %v8697_v51 = vld [vmem:[%s15407_s3 + $0xa8] sm:$0xff] }
 0x38f   : > { %v9995_v56 = vpack.c.bf16 %v4090_v60, %v4088_v52  ;;  %9991 = vmatpush1.bf16.msra.mxu1 %v9990_v45  ;;  %v8692_v45 = vld [vmem:[%s15407_s3 + $0x80] sm:$0xff]  ;;  %v8694_v60 = vld [vmem:[%s15407_s3 + $0x90] sm:$0xff]  ;;  %v8699_v52 = vld [vmem:[%s15407_s3 + $0xb8] sm:$0xff] }
 0x390   : > { %v9992_v15 = vpack.c.bf16 %v4091_v54, %v4089_v55  ;;  %v10030_v53 = vpack.c.bf16 %v8694_v60, %v8692_v45  ;;  %v10032_v54 = vpack.c.bf16 %v8699_v52, %v8697_v51  ;;  %v8696_v55 = vld [vmem:[%s15407_s3 + $0xa0] sm:$0xff]  ;;  %v4328_v23 = vld [vmem:[%s15407_s3 + $0x68] sm:$0xff]  ;;  %v4330_v45 = vld [vmem:[%s15407_s3 + $0x78] sm:$0xf] }
 0x391   : > { %v10058_v60 = vpack.c.bf16 %v4330_v45, %v4328_v23  ;;  %v4327_v51 = vld [vmem:[%s15407_s3 + $0x60] sm:$0xff]  ;;  %v4329_v52 = vld [vmem:[%s15407_s3 + $0x70] sm:$0xf]  ;;  %v8749_v23 = vld [vmem:[%s15407_s3 + $0x1e8] sm:$0xff] }
 0x392   : > { %9994 = vmatprep.subr.msk.bf16.mxu1 %vm9993_vm7, %v9992_v15  ;;  %v8701_v15 = vld [vmem:[%s15407_s3 + $0xc8] sm:$0xff]  ;;  %v8751_v45 = vld [vmem:[%s15407_s3 + $0x1f8] sm:$0xf] }
 0x393   : > { %9997 = vmatpush1.bf16.msk.msra.mxu1 %vm9993_vm7, %v9995_v56  ;;  %v8698_v56 = vld [vmem:[%s15407_s3 + $0xb0] sm:$0xff]  ;;  %vm7769_vm7 = vcmask 982016  }
 0x394   : > { %9998 = vmatprep.subr.bf16.mxu1 %v11043_v0 }
 0x396   : > { %8687 = vmatmul.mubr.msk.f32.vlgmr.msra.gmra.mrb[0].mxu1 %vm4094_vm8, %v4092_v57  ;;  %v8703_v57 = vld [vmem:[%s15407_s3 + $0xd8] sm:$0xff] }
 0x397   : > { %4178 = vmatprep.mubr.f32.mxu1 %v11037_v12  ;;  %10000 = vmatpush1.bf16.msra.mxu1 %v9999_v20  ;;  %v10036_v59 = vpack.c.bf16 %v8703_v57, %v8701_v15  ;;  %v8705_v20 = vld [vmem:[%s15407_s3 + $0xe8] sm:$0xff]  ;;  %v8716_v15 = vld [vmem:[%s15407_s3 + $0x100] sm:$0xff]  ;;  %v8718_v57 = vld [vmem:[%s15407_s3 + $0x110] sm:$0xff] }
 0x398   : > { %10001 = vmatprep.subr.bf16.mxu1 %v11043_v0  ;;  %v10040_v61 = vpack.c.bf16 %v8707_v2, %v8705_v20  ;;  %v8720_v20 = vld [vmem:[%s15407_s3 + $0x120] sm:$0xff]  ;;  %v8722_v2 = vld [vmem:[%s15407_s3 + $0x130] sm:$0xff] }
 0x39a   : > { %8688 = vmatmul.mubr.msk.f32.gmra.mrb[2].mxu1 %vm4094_vm8, %v4093_v58  ;;  %v10034_v58 = vpack.c.bf16 %v8698_v56, %v8696_v55  ;;  %v10061_v55 = vpack.c.bf16 %v4329_v52, %v4327_v51  ;;  %v8748_v51 = vld [vmem:[%s15407_s3 + $0x1e0] sm:$0xff]  ;;  %v8750_v52 = vld [vmem:[%s15407_s3 + $0x1f0] sm:$0xf] }
 0x39b   : > { %10003 = vmatpush1.bf16.msra.mxu1 %v10002_v21  ;;  %v10038_v21 = vpack.c.bf16 %v8702_v63, %v8700_v62  ;;  %v10066_v62 = vpack.c.bf16 %v8718_v57, %v8716_v15  ;;  %v8756_v15 = vld [vmem:[%s15407_s3 + $0x200] sm:$0xff]  ;;  %v8758_v57 = vld [vmem:[%s15407_s3 + $0x210] sm:$0xff] }
 0x39c   : > { %10004 = vmatprep.subr.bf16.mxu1 %v11043_v0 }
 0x39f   : > { %10006 = vmatpush1.bf16.msra.mxu1 %v10005_v6  ;;  %v8706_v6 = vld [vmem:[%s15407_s3 + $0xf0] sm:$0xf] }
 0x3a0   : > { %10007 = vmatprep.subr.bf16.mxu1 %v11043_v0  ;;  %v10043_v3 = vpack.c.bf16 %v8706_v6, %v8704_v5  ;;  %v10070_v5 = vpack.c.bf16 %v8722_v2, %v8720_v20  ;;  %v8760_v20 = vld [vmem:[%s15407_s3 + $0x220] sm:$0xff]  ;;  %v8762_v2 = vld [vmem:[%s15407_s3 + $0x230] sm:$0xff] }
 0x3a3   : > { %10009 = vmatpush1.bf16.msra.mxu1 %v10008_v8  ;;  %v4318_v8 = vld [vmem:[%s15407_s3 + $0x18] sm:$0xff] }
 0x3a4   : > { %10010 = vmatprep.subr.bf16.mxu1 %v11043_v0  ;;  %v10046_v9 = vpack.c.bf16 %v4318_v8, %v4316_v7  ;;  %v8724_v7 = vld [vmem:[%s15407_s3 + $0x140] sm:$0xff]  ;;  %v8726_v8 = vld [vmem:[%s15407_s3 + $0x150] sm:$0xff] }
 0x3a7   : > { %10012 = vmatpush1.bf16.msra.mxu1 %v10011_v10 }
 0x3a8   : > { %10013 = vmatprep.subr.bf16.mxu1 %v11043_v0 }
 0x3ab   : > { %10015 = vmatpush1.bf16.msra.mxu1 %v10014_v49 }
 0x3ac   : > { %10016 = vmatprep.subr.bf16.mxu1 %v11043_v0 }
 0x3af   : > { %10018 = vmatpush1.bf16.msra.mxu1 %v10017_v46 }
 0x3b0   : > { %10019 = vmatprep.subr.bf16.mxu1 %v11043_v0 }
 0x3b3   : > { %10021 = vmatpush1.bf16.msra.mxu1 %v10020_v18 }
 0x3b4   : > { %10022 = vmatprep.subr.bf16.mxu1 %v11043_v0 }
 0x3b7   : > { %10024 = vmatpush1.bf16.msra.mxu1 %v10023_v27 }
 0x3b8   : > { %10025 = vmatprep.subr.bf16.mxu1 %v11043_v0 }
 0x3bb   : > { %10027 = vmatpush1.bf16.msra.mxu1 %v10026_v29 }
 0x3bc   : > { %4280 = vmatprep.subr.mxu1 %v11037_v12 }
 0x3bf   : > { %8689 = vmatpush1.msk.msra.mxu1 %vm4236_vm9, %v4228_v30  ;;  %v4315_v30 = vld [vmem:[%s15407_s3] sm:$0xff] }
 0x3c0   : > { %10029 = vmatprep.subr.bf16.mxu1 %v10028_v50 }
 0x469   : > { %v4174_v31 = vpop.f32.mrb[0].mxu1 }
 0x46a   : > { %4189 = vrot.lane.b32.xlu0 %v4174_v31, %s15450_s29  ;;  %v4176_v32 = vpop.f32.mrb[1].mxu1 }
 0x46b   : > { %4191 = vrot.lane.b32.xlu1 %v4176_v32, %s15450_s29 }
 0x46d   : > { %v4180_v43 = vpop.f32.mrb[2].mxu1 }
 0x46e   : > { %v4182_v33 = vpop.f32.mrb[3].mxu1  ;;  %4193 = vrot.lane.b32.xlu0 %v4180_v43, %s15450_s29 }
 0x46f   : > { %4195 = vrot.lane.b32.xlu1 %v4182_v33, %s15450_s29 }
 0x4dc   : > { %v4190_v34 = vpop.permute.xlu0 %4189 }
 0x4dd   : > { %v4192_v35 = vpop.permute.xlu1 %4191 }
 0x4de   : > { %v4198_v36 = vsel %vm4197_vm10, %v4190_v34, %v4192_v35  ;;  %v4205_v37 = vmax.f32 %v4176_v32, %v4192_v35  ;;  %v4320_v32 = vld [vmem:[%s15407_s3 + $0x28] sm:$0xff]  ;;  %v4319_v35 = vld [vmem:[%s15407_s3 + $0x20] sm:$0xff] }
 0x4df   : > { %v4204_v38 = vmax.f32 %v4174_v31, %v4198_v36  ;;  %v4317_v31 = vld [vmem:[%s15407_s3 + $0x10] sm:$0xff] }
 0x4e0   : > { %8690 = vmatprep.mubr.msk.f32.mxu1 %vm4229_vm11, %v4205_v37  ;;  %v4194_v44 = vpop.permute.xlu0 %4193  ;;  %v4321_v36 = vld [vmem:[%s15407_s3 + $0x30] sm:$0xff] }
 0x4e1   : > { %4305 = vmatmul.mubr.f32.vlgmr.msra.gmra.mrb[4].mxu1 %v4204_v38  ;;  %v4196_v39 = vpop.permute.xlu1 %4195  ;;  %v4324_v38 = vld [vmem:[%s15407_s3 + $0x48] sm:$0xff] }
 0x4e2   : > { %v4199_v40 = vsel %vm4197_vm10, %v4194_v44, %v4196_v39  ;;  %v4207_v42 = vmax.f32 %v4182_v33, %v4196_v39  ;;  %10031 = vmatpush1.bf16.msra.mxu1 %v10030_v53  ;;  %v10048_v33 = vpack.c.bf16 %v4317_v31, %v4315_v30  ;;  %v4326_v44 = vld [vmem:[%s15407_s3 + $0x58] sm:$0xff]  ;;  %v10052_v39 = vpack.c.bf16 %v4321_v36, %v4319_v35  ;;  %v8717_v53 = vld [vmem:[%s15407_s3 + $0x108] sm:$0xff]  ;;  %v8736_v30 = vld [vmem:[%s15407_s3 + $0x180] sm:$0xff] }
 0x4e3   : > { %v4206_v47 = vmax.f32 %v4180_v43, %v4199_v40  ;;  %10033 = vmatprep.subr.bf16.mxu1 %v10032_v54  ;;  %v4322_v43 = vld [vmem:[%s15407_s3 + $0x38] sm:$0xff]  ;;  %v10054_v40 = vpack.c.bf16 %v4326_v44, %v4324_v38  ;;  %v8738_v31 = vld [vmem:[%s15407_s3 + $0x190] sm:$0xff]  ;;  %v8740_v35 = vld [vmem:[%s15407_s3 + $0x1a0] sm:$0xff] }
 0x4e4   : > { %8691 = vmatprep.mubr.msk.f32.mxu1 %vm4229_vm11, %v4207_v42  ;;  %v10050_v34 = vpack.c.bf16 %v4322_v43, %v4320_v32  ;;  %v4323_v42 = vld [vmem:[%s15407_s3 + $0x40] sm:$0xff]  ;;  %v8719_v54 = vld [vmem:[%s15407_s3 + $0x118] sm:$0xff]  ;;  %v8741_v32 = vld [vmem:[%s15407_s3 + $0x1a8] sm:$0xff] }
 0x4e5   : > { %4310 = vmatmul.mubr.f32.gmra.mrb[6].mxu1 %v4206_v47  ;;  %v4325_v47 = vld [vmem:[%s15407_s3 + $0x50] sm:$0xff]  ;;  %v10064_v56 = vpack.c.bf16 %v8719_v54, %v8717_v53  ;;  %v8743_v43 = vld [vmem:[%s15407_s3 + $0x1b8] sm:$0xff]  ;;  %v8745_v38 = vld [vmem:[%s15407_s3 + $0x1c8] sm:$0xff] }
 0x4e6   : > { %4429 = vmatprep.mubr.f32.mxu1 %v11037_v12  ;;  %10035 = vmatpush1.bf16.msra.mxu1 %v10034_v58  ;;  %v10056_v50 = vpack.c.bf16 %v4325_v47, %v4323_v42  ;;  %v8721_v58 = vld [vmem:[%s15407_s3 + $0x128] sm:$0xff]  ;;  %v8742_v36 = vld [vmem:[%s15407_s3 + $0x1b0] sm:$0xff]  ;;  %v8747_v44 = vld [vmem:[%s15407_s3 + $0x1d8] sm:$0xff] }
 0x4e7   : > { %10037 = vmatprep.subr.bf16.mxu1 %v10036_v59  ;;  %v8723_v59 = vld [vmem:[%s15407_s3 + $0x138] sm:$0xff]  ;;  %v8744_v42 = vld [vmem:[%s15407_s3 + $0x1c0] sm:$0xff]  ;;  %v8746_v47 = vld [vmem:[%s15407_s3 + $0x1d0] sm:$0xff] }
 0x4e8   : > { %v10068_v63 = vpack.c.bf16 %v8723_v59, %v8721_v58  ;;  %v8757_v53 = vld [vmem:[%s15407_s3 + $0x208] sm:$0xff]  ;;  %v8759_v54 = vld [vmem:[%s15407_s3 + $0x218] sm:$0xff] }
 0x4e9   : > { %v8761_v58 = vld [vmem:[%s15407_s3 + $0x228] sm:$0xff]  ;;  %v8763_v59 = vld [vmem:[%s15407_s3 + $0x238] sm:$0xff] }
 0x4ea   : > { %10039 = vmatpush1.bf16.msra.mxu1 %v10038_v21  ;;  %v8725_v21 = vld [vmem:[%s15407_s3 + $0x148] sm:$0xff] }
 0x4eb   : > { %10042 = vmatprep.subr.msk.bf16.mxu1 %vm13496_vm12, %v10040_v61  ;;  %v8727_v61 = vld [vmem:[%s15407_s3 + $0x158] sm:$0xff] }
 0x4ec   : > { %v10072_v6 = vpack.c.bf16 %v8727_v61, %v8725_v21  ;;  %v8765_v61 = vld [vmem:[%s15407_s3 + $0x248] sm:$0xff] }
 0x4ee   : > { %10045 = vmatpush1.bf16.msk.msra.mxu1 %vm13496_vm12, %v10043_v3  ;;  %v8729_v3 = vld [vmem:[%s15407_s3 + $0x168] sm:$0xff] }
 0x4ef   : > { %10047 = vmatprep.subr.bf16.mxu1 %v10046_v9  ;;  %v8731_v9 = vld [vmem:[%s15407_s3 + $0x178] sm:$0xf] }
 0x5b4   : > { %v13510_v10 = vpop.f32.mrb[4].mxu1 }
 0x5b5   : > { %4350 = vrot.lane.b32.xlu0 %v13510_v10, %s15450_s29  ;;  %v4308_v1 = vpop.f32.mrb[5].mxu1  ;;  %v4882_v14 = vrot.slane %v13510_v10, 1  ;;  %v5441_v17 = vrot.slane %v13510_v10, 2  ;;  %v6000_v26 = vrot.slane %v13510_v10, 3  ;;  %v6559_v19 = vrot.slane %v13510_v10, 4 }
 0x5b6   : > { %v10076_v1 = vpack.c.bf16 %v8731_v9, %v8729_v3  ;;  %v8766_v3 = vld [vmem:[%s15407_s3 + $0x250] sm:$0xff] }
 0x5b8   : > { %v13514_v11 = vpop.f32.mrb[6].mxu1 }
 0x5b9   : > { %4546 = vrot.lane.b32.xlu0 %v13510_v10, %s15452_s25  ;;  %4352 = vrot.lane.b32.xlu1 %v13514_v11, %s15450_s29  ;;  %v4313_v49 = vpop.f32.mrb[7].mxu1  ;;  %v13525_v13 = vrot.slane %v13514_v11, 1  ;;  %v13549_v16 = vrot.slane %v13514_v11, 2  ;;  %v13573_v24 = vrot.slane %v13514_v11, 3  ;;  %v13597_v28 = vrot.slane %v13514_v11, 4 }
 0x5ba   : > { %v8728_v49 = vld [vmem:[%s15407_s3 + $0x160] sm:$0xff] }
 0x5bb   : > { %v13534_v46 = vsel %vm1210_vm1, %v4882_v14, %v13525_v13  ;;  %v13558_v18 = vsel %vm1920_vm3, %v5441_v17, %v13549_v16  ;;  %v13582_v27 = vsel %vm2630_vm4, %v6000_v26, %v13573_v24  ;;  %v13606_v29 = vsel %vm562_vm0, %v6559_v19, %v13597_v28  ;;  %v8730_v14 = vld [vmem:[%s15407_s3 + $0x170] sm:$0xf]  ;;  %v8737_v17 = vld [vmem:[%s15407_s3 + $0x188] sm:$0xff] }
 0x5bc   : > { %v10079_v26 = vpack.c.bf16 %v8730_v14, %v8728_v49  ;;  %vm7140_vm3 = vcmask 72704   ;;  %vm7252_vm4 = vcmask 130048  }
 0x5bd   : > { %4658 = vrot.lane.b32.xlu0 %v13510_v10, %s11044_s30  ;;  %4548 = vrot.lane.b32.xlu1 %v13514_v11, %s15452_s25 }
 0x5c1   : > { %4770 = vrot.lane.b32.xlu0 %v13510_v10, %s11045_s16  ;;  %4660 = vrot.lane.b32.xlu1 %v13514_v11, %s11044_s30 }
 0x5c5   : > { %4772 = vrot.lane.b32.xlu1 %v13514_v11, %s11045_s16  ;;  %4993 = vrot.lane.b32.xlu0 %v13534_v46, %s15450_s29 }
 0x5c9   : > { %4995 = vrot.lane.b32.xlu1 %v13525_v13, %s15450_s29  ;;  %5105 = vrot.lane.b32.xlu0 %v13534_v46, %s15452_s25 }
 0x5cd   : > { %5107 = vrot.lane.b32.xlu1 %v13525_v13, %s15452_s25  ;;  %5217 = vrot.lane.b32.xlu0 %v13534_v46, %s11044_s30 }
 0x5d1   : > { %5219 = vrot.lane.b32.xlu1 %v13525_v13, %s11044_s30  ;;  %5329 = vrot.lane.b32.xlu0 %v13534_v46, %s11045_s16 }
 0x5d5   : > { %5331 = vrot.lane.b32.xlu1 %v13525_v13, %s11045_s16  ;;  %5552 = vrot.lane.b32.xlu0 %v13558_v18, %s15450_s29 }
 0x5d9   : > { %5554 = vrot.lane.b32.xlu1 %v13549_v16, %s15450_s29  ;;  %5664 = vrot.lane.b32.xlu0 %v13558_v18, %s15452_s25 }
 0x5dd   : > { %5666 = vrot.lane.b32.xlu1 %v13549_v16, %s15452_s25  ;;  %5776 = vrot.lane.b32.xlu0 %v13558_v18, %s11044_s30 }
 0x5e1   : > { %5778 = vrot.lane.b32.xlu1 %v13549_v16, %s11044_s30  ;;  %5888 = vrot.lane.b32.xlu0 %v13558_v18, %s11045_s16 }
 0x5e5   : > { %5890 = vrot.lane.b32.xlu1 %v13549_v16, %s11045_s16  ;;  %6111 = vrot.lane.b32.xlu0 %v13582_v27, %s15450_s29 }
 0x5e9   : > { %6113 = vrot.lane.b32.xlu1 %v13573_v24, %s15450_s29  ;;  %6223 = vrot.lane.b32.xlu0 %v13582_v27, %s15452_s25 }
 0x5ed   : > { %6225 = vrot.lane.b32.xlu1 %v13573_v24, %s15452_s25  ;;  %6335 = vrot.lane.b32.xlu0 %v13582_v27, %s11044_s30 }
 0x5f1   : > { %6337 = vrot.lane.b32.xlu1 %v13573_v24, %s11044_s30  ;;  %6447 = vrot.lane.b32.xlu0 %v13582_v27, %s11045_s16 }
 0x5f5   : > { %6449 = vrot.lane.b32.xlu1 %v13573_v24, %s11045_s16  ;;  %6670 = vrot.lane.b32.xlu0 %v13606_v29, %s15450_s29 }
 0x5f9   : > { %6672 = vrot.lane.b32.xlu1 %v13597_v28, %s15450_s29  ;;  %6782 = vrot.lane.b32.xlu0 %v13606_v29, %s15452_s25 }
 0x5fd   : > { %6784 = vrot.lane.b32.xlu1 %v13597_v28, %s15452_s25  ;;  %6894 = vrot.lane.b32.xlu0 %v13606_v29, %s11044_s30  ;;  %s11046_s25 = smov 112  }
 0x601   : > { %6896 = vrot.lane.b32.xlu1 %v13597_v28, %s11044_s30  ;;  %7006 = vrot.lane.b32.xlu0 %v13606_v29, %s11045_s16  ;;  %s10973_s30 = scalar_lea.vmem %s15364_s24, 16 }
 0x602   : > { %p10974_p11 = scmp.ne.s32.totalorder %s15364_s24, %s10973_s30 }
 0x604   : > { %p10975_p12 = pnand %p10974_p11, %p11167_p5 }
 0x605   : > { %7008 = vrot.lane.b32.xlu1 %v13597_v28, %s11045_s16  ;;  %s10977_s16 = sshll.u32 %s11048_s22, 4  ;;  %s10978_s16 = int_to_ptr.vmem [resolvable:$false] %s10977_s16 }
 0x606   : > { %p10976_p13 = pneg %p10975_p12  ;;  %s10979_s14 = scalar_lea.vmem %s10978_s16, 32 }
 0x607   : > { %p10980_p0 = scmp.lt.s32.totalorder %s15364_s24, %s10978_s16  ;;  %p10981_p1 = scmp.lt.s32.totalorder %s10979_s14, %s10973_s30 }
 0x609   : > { %p10982_p2 = por %p10981_p1, %p10980_p0 }
 0x60b   : > { %p10983_p3 = pnand %p10982_p2, %p10976_p13 }
 0x627   : > { %v4351_v37 = vpop.permute.xlu0 %4350 }
 0x628   : > { %8710 = vmatmul.mubr.msk.f32.vlgmr.msra.gmra.mrb[8].mxu1 %vm4354_vm13, %v4351_v37 }
 0x629   : > { %10049 = vmatpush1.bf16.msra.mxu1 %v10048_v33  ;;  %4435 = vmatprep.mubr.f32.mxu1 %v11037_v12  ;;  %v10084_v33 = vpack.c.bf16 %v8738_v31, %v8736_v30 }
 0x62a   : > { %10051 = vmatprep.subr.bf16.mxu1 %v10050_v34  ;;  %v10086_v34 = vpack.c.bf16 %v8743_v43, %v8741_v32  ;;  %v8776_v32 = vld [vmem:[%s15407_s3 + $0x280] sm:$0xff]  ;;  %v8778_v43 = vld [vmem:[%s15407_s3 + $0x290] sm:$0xff] }
 0x62b   : > { %v4353_v48 = vpop.permute.xlu1 %4352  ;;  %v4547_v37 = vpop.permute.xlu0 %4546 }
 0x62c   : > { %8711 = vmatmul.mubr.msk.f32.gmra.mrb[10].mxu1 %vm4354_vm13, %v4353_v48 }
 0x62d   : > { %10053 = vmatpush1.bf16.msra.mxu1 %v10052_v39  ;;  %4516 = vmatprep.mubr.f32.mxu1 %v11037_v12  ;;  %v10088_v39 = vpack.c.bf16 %v8742_v36, %v8740_v35  ;;  %v10120_v35 = vpack.c.bf16 %v8778_v43, %v8776_v32  ;;  %v8821_v32 = vld [vmem:[%s15407_s3 + $0x3a8] sm:$0xff]  ;;  %v8823_v43 = vld [vmem:[%s15407_s3 + $0x3b8] sm:$0xff] }
 0x62e   : > { %10055 = vmatprep.subr.bf16.mxu1 %v10054_v40  ;;  %v10090_v40 = vpack.c.bf16 %v8747_v44, %v8745_v38  ;;  %v8782_v38 = vld [vmem:[%s15407_s3 + $0x2b0] sm:$0xff] }
 0x62f   : > { %v4549_v48 = vpop.permute.xlu1 %4548  ;;  %v4659_v21 = vpop.permute.xlu0 %4658 }
 0x631   : > { %10057 = vmatpush1.bf16.msra.mxu1 %v10056_v50  ;;  %v10092_v50 = vpack.c.bf16 %v8746_v47, %v8744_v42 }
 0x632   : > { %10060 = vmatprep.subr.msk.bf16.mxu1 %vm13496_vm12, %v10058_v60  ;;  %v10094_v60 = vpack.c.bf16 %v8751_v45, %v8749_v23  ;;  %v8786_v23 = vld [vmem:[%s15407_s3 + $0x2d0] sm:$0xff] }
 0x633   : > { %v4661_v9 = vpop.permute.xlu1 %4660  ;;  %v4771_v44 = vpop.permute.xlu0 %4770 }
 0x635   : > { %10063 = vmatpush1.bf16.msk.msra.mxu1 %vm13496_vm12, %v10061_v55  ;;  %v10097_v55 = vpack.c.bf16 %v8750_v52, %v8748_v51 }
 0x636   : > { %10065 = vmatprep.subr.bf16.mxu1 %v10064_v56  ;;  %v10100_v56 = vpack.c.bf16 %v8759_v54, %v8757_v53  ;;  %v8788_v53 = vld [vmem:[%s15407_s3 + $0x2e0] sm:$0xff]  ;;  %v8790_v54 = vld [vmem:[%s15407_s3 + $0x2f0] sm:$0xf] }
 0x637   : > { %v4773_v45 = vpop.permute.xlu1 %4772 }
 0x638   : > { %8714 = vmatmul.mubr.msk.f32.vlgmr.msra.gmra.mrb[8].mxu1 %vm4354_vm13, %v13510_v10  ;;  %v10074_v10 = vpack.c.bf16 %v8726_v8, %v8724_v7  ;;  %v8764_v8 = vld [vmem:[%s15407_s3 + $0x240] sm:$0xff] }
 0x639   : > { %10067 = vmatpush1.bf16.msra.mxu1 %v10066_v62  ;;  %4522 = vmatprep.mubr.f32.mxu1 %v11037_v12  ;;  %v10102_v62 = vpack.c.bf16 %v8758_v57, %v8756_v15  ;;  %v10110_v49 = vpack.c.bf16 %v8766_v3, %v8764_v8  ;;  %v10133_v15 = vpack.c.bf16 %v8790_v54, %v8788_v53  ;;  %v8804_v3 = vld [vmem:[%s15407_s3 + $0x340] sm:$0xff]  ;;  %v8837_v53 = vld [vmem:[%s15407_s3 + $0x408] sm:$0xff]  ;;  %v8839_v54 = vld [vmem:[%s15407_s3 + $0x418] sm:$0xff] }
 0x63a   : > { %10069 = vmatprep.subr.bf16.mxu1 %v10068_v63  ;;  %v10104_v63 = vpack.c.bf16 %v8763_v59, %v8761_v58  ;;  %v8796_v58 = vld [vmem:[%s15407_s3 + $0x300] sm:$0xff]  ;;  %v8798_v59 = vld [vmem:[%s15407_s3 + $0x310] sm:$0xff] }
 0x63c   : > { %8715 = vmatmul.mubr.msk.f32.gmra.mrb[10].mxu1 %vm4354_vm13, %v13514_v11  ;;  %v8739_v11 = vld [vmem:[%s15407_s3 + $0x198] sm:$0xff] }
 0x63d   : > { %10071 = vmatpush1.bf16.msra.mxu1 %v10070_v5  ;;  %4624 = vmatprep.mubr.f32.mxu1 %v11037_v12  ;;  %v10082_v19 = vpack.c.bf16 %v8739_v11, %v8737_v17  ;;  %v8767_v5 = vld [vmem:[%s15407_s3 + $0x258] sm:$0xff]  ;;  %v8768_v17 = vld [vmem:[%s15407_s3 + $0x260] sm:$0xff]  ;;  %v8770_v11 = vld [vmem:[%s15407_s3 + $0x270] sm:$0xf] }
 0x63e   : > { %10073 = vmatprep.subr.bf16.mxu1 %v10072_v6  ;;  %v10106_v6 = vpack.c.bf16 %v8762_v2, %v8760_v20  ;;  %v10108_v7 = vpack.c.bf16 %v8767_v5, %v8765_v61  ;;  %v10115_v30 = vpack.c.bf16 %v8770_v11, %v8768_v17  ;;  %v10138_v20 = vpack.c.bf16 %v8798_v59, %v8796_v58  ;;  %v8802_v61 = vld [vmem:[%s15407_s3 + $0x330] sm:$0xff]  ;;  %v8805_v5 = vld [vmem:[%s15407_s3 + $0x348] sm:$0xff]  ;;  %v8843_v59 = vld [vmem:[%s15407_s3 + $0x438] sm:$0xff] }
 0x63f   : > { %v8810_v17 = vld [vmem:[%s15407_s3 + $0x370] sm:$0xf]  ;;  %v8817_v11 = vld [vmem:[%s15407_s3 + $0x388] sm:$0xff] }
 0x640   : > { %v8841_v58 = vld [vmem:[%s15407_s3 + $0x428] sm:$0xff] }
 0x641   : > { %10075 = vmatpush1.bf16.msra.mxu1 %v10074_v10  ;;  %v8769_v10 = vld [vmem:[%s15407_s3 + $0x268] sm:$0xff] }
 0x642   : > { %10078 = vmatprep.subr.msk.bf16.mxu1 %vm13496_vm12, %v10076_v1  ;;  %v8771_v1 = vld [vmem:[%s15407_s3 + $0x278] sm:$0xf] }
 0x643   : > { %v10112_v14 = vpack.c.bf16 %v8771_v1, %v8769_v10  ;;  %v8809_v10 = vld [vmem:[%s15407_s3 + $0x368] sm:$0xff] }
 0x645   : > { %10081 = vmatpush1.bf16.msk.msra.mxu1 %vm13496_vm12, %v10079_v26  ;;  %v8777_v26 = vld [vmem:[%s15407_s3 + $0x288] sm:$0xff] }
 0x646   : > { %10083 = vmatprep.subr.bf16.mxu1 %v10082_v19  ;;  %v8779_v19 = vld [vmem:[%s15407_s3 + $0x298] sm:$0xff] }
 0x647   : > { %v10118_v31 = vpack.c.bf16 %v8779_v19, %v8777_v26 }
 0x648   : > { %8734 = vmatmul.mubr.msk.f32.vlgmr.msra.gmra.mrb[8].mxu1 %vm4354_vm13, %v4547_v37  ;;  %v8780_v37 = vld [vmem:[%s15407_s3 + $0x2a0] sm:$0xff] }
 0x649   : > { %10085 = vmatpush1.bf16.msra.mxu1 %v10084_v33  ;;  %4630 = vmatprep.mubr.f32.mxu1 %v11037_v12  ;;  %v8781_v33 = vld [vmem:[%s15407_s3 + $0x2a8] sm:$0xff]  ;;  %v10124_v42 = vpack.c.bf16 %v8782_v38, %v8780_v37  ;;  %v4994_v37 = vpop.permute.xlu0 %4993 }
 0x64a   : > { %10087 = vmatprep.subr.bf16.mxu1 %v10086_v34  ;;  %v8783_v34 = vld [vmem:[%s15407_s3 + $0x2b8] sm:$0xff]  ;;  %v8825_v38 = vld [vmem:[%s15407_s3 + $0x3c8] sm:$0xff] }
 0x64b   : > { %v10122_v36 = vpack.c.bf16 %v8783_v34, %v8781_v33  ;;  %v10158_v34 = vpack.c.bf16 %v8823_v43, %v8821_v32  ;;  %v8861_v32 = vld [vmem:[%s15407_s3 + $0x4a8] sm:$0xff]  ;;  %v8863_v43 = vld [vmem:[%s15407_s3 + $0x4b8] sm:$0xff] }
 0x64c   : > { %8735 = vmatmul.mubr.msk.f32.gmra.mrb[10].mxu1 %vm4354_vm13, %v4549_v48  ;;  %v8784_v48 = vld [vmem:[%s15407_s3 + $0x2c0] sm:$0xff] }
 0x64d   : > { %10089 = vmatpush1.bf16.msra.mxu1 %v10088_v39  ;;  %4736 = vmatprep.mubr.f32.mxu1 %v11037_v12  ;;  %v8785_v39 = vld [vmem:[%s15407_s3 + $0x2c8] sm:$0xff]  ;;  %v10128_v51 = vpack.c.bf16 %v8786_v23, %v8784_v48  ;;  %v4996_v48 = vpop.permute.xlu1 %4995 }
 0x64e   : > { %10091 = vmatprep.subr.bf16.mxu1 %v10090_v40  ;;  %v8787_v40 = vld [vmem:[%s15407_s3 + $0x2d8] sm:$0xff]  ;;  %v8829_v23 = vld [vmem:[%s15407_s3 + $0x3e8] sm:$0xff] }
 0x64f   : > { %v10126_v47 = vpack.c.bf16 %v8787_v40, %v8785_v39 }
 0x651   : > { %10093 = vmatpush1.bf16.msra.mxu1 %v10092_v50  ;;  %v8789_v50 = vld [vmem:[%s15407_s3 + $0x2e8] sm:$0xff] }
 0x652   : > { %10096 = vmatprep.subr.msk.bf16.mxu1 %vm13496_vm12, %v10094_v60  ;;  %v8791_v60 = vld [vmem:[%s15407_s3 + $0x2f8] sm:$0xf] }
 0x653   : > { %v10130_v52 = vpack.c.bf16 %v8791_v60, %v8789_v50 }
 0x655   : > { %10099 = vmatpush1.bf16.msk.msra.mxu1 %vm13496_vm12, %v10097_v55  ;;  %v8797_v55 = vld [vmem:[%s15407_s3 + $0x308] sm:$0xff] }
 0x656   : > { %10101 = vmatprep.subr.bf16.mxu1 %v10100_v56  ;;  %v8799_v56 = vld [vmem:[%s15407_s3 + $0x318] sm:$0xff] }
 0x657   : > { %v10136_v57 = vpack.c.bf16 %v8799_v56, %v8797_v55  ;;  %v10172_v56 = vpack.c.bf16 %v8839_v54, %v8837_v53  ;;  %v8877_v53 = vld [vmem:[%s15407_s3 + $0x508] sm:$0xff]  ;;  %v8879_v54 = vld [vmem:[%s15407_s3 + $0x518] sm:$0xff] }
 0x658   : > { %8754 = vmatmul.mubr.msk.f32.vlgmr.msra.gmra.mrb[8].mxu1 %vm4354_vm13, %v4659_v21  ;;  %v8800_v21 = vld [vmem:[%s15407_s3 + $0x320] sm:$0xff] }
 0x659   : > { %10103 = vmatpush1.bf16.msra.mxu1 %v10102_v62  ;;  %4742 = vmatprep.mubr.f32.mxu1 %v11037_v12  ;;  %v8801_v62 = vld [vmem:[%s15407_s3 + $0x328] sm:$0xff] }
 0x65a   : > { %10105 = vmatprep.subr.bf16.mxu1 %v10104_v63  ;;  %v8803_v63 = vld [vmem:[%s15407_s3 + $0x338] sm:$0xff] }
 0x65b   : > { %v10140_v2 = vpack.c.bf16 %v8803_v63, %v8801_v62  ;;  %v10176_v63 = vpack.c.bf16 %v8843_v59, %v8841_v58  ;;  %v8881_v58 = vld [vmem:[%s15407_s3 + $0x528] sm:$0xff]  ;;  %v8883_v59 = vld [vmem:[%s15407_s3 + $0x538] sm:$0xff] }
 0x65c   : > { %8755 = vmatmul.mubr.msk.f32.gmra.mrb[10].mxu1 %vm4354_vm13, %v4661_v9  ;;  %v8806_v9 = vld [vmem:[%s15407_s3 + $0x350] sm:$0xff] }
 0x65d   : > { %10107 = vmatpush1.bf16.msra.mxu1 %v10106_v6  ;;  %4848 = vmatprep.mubr.f32.mxu1 %v11037_v12  ;;  %v8807_v6 = vld [vmem:[%s15407_s3 + $0x358] sm:$0xff]  ;;  %v10146_v1 = vpack.c.bf16 %v8806_v9, %v8804_v3  ;;  %v8846_v3 = vld [vmem:[%s15407_s3 + $0x450] sm:$0xff]  ;;  %v5108_v9 = vpop.permute.xlu1 %5107 }
 0x65e   : > { %10109 = vmatprep.subr.bf16.mxu1 %v10108_v7  ;;  %v10142_v7 = vpack.c.bf16 %v8802_v61, %v8800_v21  ;;  %v10144_v8 = vpack.c.bf16 %v8807_v6, %v8805_v5  ;;  %v5106_v21 = vpop.permute.xlu0 %5105  ;;  %v8845_v61 = vld [vmem:[%s15407_s3 + $0x448] sm:$0xff]  ;;  %v8847_v5 = vld [vmem:[%s15407_s3 + $0x458] sm:$0xff] }
 0x661   : > { %10111 = vmatpush1.bf16.msra.mxu1 %v10110_v49 }
 0x662   : > { %10114 = vmatprep.subr.msk.bf16.mxu1 %vm13496_vm12, %v10112_v14  ;;  %v8808_v14 = vld [vmem:[%s15407_s3 + $0x360] sm:$0xff] }
 0x663   : > { %v10151_v26 = vpack.c.bf16 %v8810_v17, %v8808_v14  ;;  %v8848_v14 = vld [vmem:[%s15407_s3 + $0x460] sm:$0xff]  ;;  %v8850_v17 = vld [vmem:[%s15407_s3 + $0x470] sm:$0xf] }
 0x665   : > { %10117 = vmatpush1.bf16.msk.msra.mxu1 %vm13496_vm12, %v10115_v30  ;;  %v8816_v30 = vld [vmem:[%s15407_s3 + $0x380] sm:$0xff] }
 0x666   : > { %10119 = vmatprep.subr.bf16.mxu1 %v10118_v31  ;;  %v8818_v31 = vld [vmem:[%s15407_s3 + $0x390] sm:$0xff] }
 0x667   : > { %v10156_v33 = vpack.c.bf16 %v8818_v31, %v8816_v30  ;;  %v8856_v30 = vld [vmem:[%s15407_s3 + $0x480] sm:$0xff]  ;;  %v8858_v31 = vld [vmem:[%s15407_s3 + $0x490] sm:$0xff] }
 0x668   : > { %8774 = vmatmul.mubr.msk.f32.vlgmr.msra.gmra.mrb[8].mxu1 %vm4354_vm13, %v4771_v44  ;;  %v8827_v44 = vld [vmem:[%s15407_s3 + $0x3d8] sm:$0xff] }
 0x669   : > { %10121 = vmatpush1.bf16.msra.mxu1 %v10120_v35  ;;  %4854 = vmatprep.mubr.f32.mxu1 %v11037_v12  ;;  %v8820_v35 = vld [vmem:[%s15407_s3 + $0x3a0] sm:$0xff]  ;;  %v10162_v40 = vpack.c.bf16 %v8827_v44, %v8825_v38  ;;  %v8865_v38 = vld [vmem:[%s15407_s3 + $0x4c8] sm:$0xff]  ;;  %v8867_v44 = vld [vmem:[%s15407_s3 + $0x4d8] sm:$0xff] }
 0x66a   : > { %10123 = vmatprep.subr.bf16.mxu1 %v10122_v36  ;;  %v8822_v36 = vld [vmem:[%s15407_s3 + $0x3b0] sm:$0xff] }
 0x66b   : > { %v10160_v39 = vpack.c.bf16 %v8822_v36, %v8820_v35  ;;  %v8860_v35 = vld [vmem:[%s15407_s3 + $0x4a0] sm:$0xff]  ;;  %v8862_v36 = vld [vmem:[%s15407_s3 + $0x4b0] sm:$0xff] }
 0x66c   : > { %8775 = vmatmul.mubr.msk.f32.gmra.mrb[10].mxu1 %vm4354_vm13, %v4773_v45  ;;  %v8831_v45 = vld [vmem:[%s15407_s3 + $0x3f8] sm:$0xf] }
 0x66d   : > { %10125 = vmatpush1.bf16.msra.mxu1 %v10124_v42  ;;  %4959 = vmatprep.mubr.f32.mxu1 %v11037_v12  ;;  %v8824_v42 = vld [vmem:[%s15407_s3 + $0x3c0] sm:$0xff]  ;;  %v10166_v60 = vpack.c.bf16 %v8831_v45, %v8829_v23  ;;  %v8869_v23 = vld [vmem:[%s15407_s3 + $0x4e8] sm:$0xff]  ;;  %v8871_v45 = vld [vmem:[%s15407_s3 + $0x4f8] sm:$0xf] }
 0x66e   : > { %10127 = vmatprep.subr.bf16.mxu1 %v10126_v47  ;;  %v8826_v47 = vld [vmem:[%s15407_s3 + $0x3d0] sm:$0xff] }
 0x66f   : > { %v10164_v50 = vpack.c.bf16 %v8826_v47, %v8824_v42  ;;  %v8864_v42 = vld [vmem:[%s15407_s3 + $0x4c0] sm:$0xff]  ;;  %v8866_v47 = vld [vmem:[%s15407_s3 + $0x4d0] sm:$0xff] }
 0x671   : > { %10129 = vmatpush1.bf16.msra.mxu1 %v10128_v51  ;;  %v8828_v51 = vld [vmem:[%s15407_s3 + $0x3e0] sm:$0xff] }
 0x672   : > { %10132 = vmatprep.subr.msk.bf16.mxu1 %vm13496_vm12, %v10130_v52  ;;  %v8830_v52 = vld [vmem:[%s15407_s3 + $0x3f0] sm:$0xf] }
 0x673   : > { %v10169_v55 = vpack.c.bf16 %v8830_v52, %v8828_v51  ;;  %v8868_v51 = vld [vmem:[%s15407_s3 + $0x4e0] sm:$0xff]  ;;  %v8870_v52 = vld [vmem:[%s15407_s3 + $0x4f0] sm:$0xf] }
 0x675   : > { %10135 = vmatpush1.bf16.msk.msra.mxu1 %vm13496_vm12, %v10133_v15  ;;  %v8836_v15 = vld [vmem:[%s15407_s3 + $0x400] sm:$0xff] }
 0x676   : > { %10137 = vmatprep.subr.bf16.mxu1 %v10136_v57  ;;  %v8838_v57 = vld [vmem:[%s15407_s3 + $0x410] sm:$0xff] }
 0x677   : > { %v10174_v62 = vpack.c.bf16 %v8838_v57, %v8836_v15  ;;  %v8876_v15 = vld [vmem:[%s15407_s3 + $0x500] sm:$0xff]  ;;  %v8878_v57 = vld [vmem:[%s15407_s3 + $0x510] sm:$0xff] }
 0x678   : > { %8794 = vmatmul.mubr.msk.f32.vlgmr.msra.gmra.mrb[8].mxu1 %vm4354_vm13, %v13534_v46  ;;  %v8811_v46 = vld [vmem:[%s15407_s3 + $0x378] sm:$0xf] }
 0x679   : > { %10139 = vmatpush1.bf16.msra.mxu1 %v10138_v20  ;;  %4965 = vmatprep.mubr.f32.mxu1 %v11037_v12  ;;  %v10148_v49 = vpack.c.bf16 %v8811_v46, %v8809_v10  ;;  %v8840_v20 = vld [vmem:[%s15407_s3 + $0x420] sm:$0xff]  ;;  %v8849_v10 = vld [vmem:[%s15407_s3 + $0x468] sm:$0xff]  ;;  %v8851_v46 = vld [vmem:[%s15407_s3 + $0x478] sm:$0xf] }
 0x67a   : > { %10141 = vmatprep.subr.bf16.mxu1 %v10140_v2  ;;  %v8842_v2 = vld [vmem:[%s15407_s3 + $0x430] sm:$0xff] }
 0x67b   : > { %v10178_v6 = vpack.c.bf16 %v8842_v2, %v8840_v20  ;;  %v8880_v20 = vld [vmem:[%s15407_s3 + $0x520] sm:$0xff]  ;;  %v8882_v2 = vld [vmem:[%s15407_s3 + $0x530] sm:$0xff] }
 0x67c   : > { %8795 = vmatmul.mubr.msk.f32.gmra.mrb[10].mxu1 %vm4354_vm13, %v13525_v13  ;;  %v8819_v13 = vld [vmem:[%s15407_s3 + $0x398] sm:$0xff] }
 0x67d   : > { %10143 = vmatpush1.bf16.msra.mxu1 %v10142_v7  ;;  %5071 = vmatprep.mubr.f32.mxu1 %v11037_v12  ;;  %v10154_v19 = vpack.c.bf16 %v8819_v13, %v8817_v11  ;;  %v10180_v7 = vpack.c.bf16 %v8847_v5, %v8845_v61  ;;  %v8857_v11 = vld [vmem:[%s15407_s3 + $0x488] sm:$0xff]  ;;  %v8859_v13 = vld [vmem:[%s15407_s3 + $0x498] sm:$0xff] }
 0x67e   : > { %10145 = vmatprep.subr.bf16.mxu1 %v10144_v8  ;;  %v8844_v8 = vld [vmem:[%s15407_s3 + $0x440] sm:$0xff]  ;;  %v8885_v61 = vld [vmem:[%s15407_s3 + $0x548] sm:$0xff]  ;;  %v8887_v5 = vld [vmem:[%s15407_s3 + $0x558] sm:$0xff] }
 0x681   : > { %10147 = vmatpush1.bf16.msra.mxu1 %v10146_v1  ;;  %v10182_v1 = vpack.c.bf16 %v8846_v3, %v8844_v8  ;;  %v8884_v8 = vld [vmem:[%s15407_s3 + $0x540] sm:$0xff]  ;;  %v8886_v3 = vld [vmem:[%s15407_s3 + $0x550] sm:$0xff] }
 0x682   : > { %10150 = vmatprep.subr.msk.bf16.mxu1 %vm13496_vm12, %v10148_v49  ;;  %v10184_v49 = vpack.c.bf16 %v8851_v46, %v8849_v10  ;;  %v8889_v10 = vld [vmem:[%s15407_s3 + $0x568] sm:$0xff]  ;;  %v8891_v46 = vld [vmem:[%s15407_s3 + $0x578] sm:$0xf] }
 0x685   : > { %10153 = vmatpush1.bf16.msk.msra.mxu1 %vm13496_vm12, %v10151_v26  ;;  %v10187_v26 = vpack.c.bf16 %v8850_v17, %v8848_v14  ;;  %v8888_v14 = vld [vmem:[%s15407_s3 + $0x560] sm:$0xff]  ;;  %v8890_v17 = vld [vmem:[%s15407_s3 + $0x570] sm:$0xf] }
 0x686   : > { %10155 = vmatprep.subr.bf16.mxu1 %v10154_v19  ;;  %v10190_v19 = vpack.c.bf16 %v8859_v13, %v8857_v11  ;;  %v8897_v11 = vld [vmem:[%s15407_s3 + $0x588] sm:$0xff]  ;;  %v8899_v13 = vld [vmem:[%s15407_s3 + $0x598] sm:$0xff] }
 0x688   : > { %8814 = vmatmul.mubr.msk.f32.vlgmr.msra.gmra.mrb[8].mxu1 %vm4354_vm13, %v4994_v37  ;;  %v5218_v37 = vpop.permute.xlu0 %5217 }
 0x689   : > { %10157 = vmatpush1.bf16.msra.mxu1 %v10156_v33  ;;  %5077 = vmatprep.mubr.f32.mxu1 %v11037_v12  ;;  %v10192_v33 = vpack.c.bf16 %v8858_v31, %v8856_v30  ;;  %v8896_v30 = vld [vmem:[%s15407_s3 + $0x580] sm:$0xff]  ;;  %v8898_v31 = vld [vmem:[%s15407_s3 + $0x590] sm:$0xff] }
 0x68a   : > { %10159 = vmatprep.subr.bf16.mxu1 %v10158_v34  ;;  %v10194_v34 = vpack.c.bf16 %v8863_v43, %v8861_v32  ;;  %v8901_v32 = vld [vmem:[%s15407_s3 + $0x5a8] sm:$0xff]  ;;  %v8903_v43 = vld [vmem:[%s15407_s3 + $0x5b8] sm:$0xff] }
 0x68c   : > { %8815 = vmatmul.mubr.msk.f32.gmra.mrb[10].mxu1 %vm4354_vm13, %v4996_v48  ;;  %v5220_v48 = vpop.permute.xlu1 %5219 }
 0x68d   : > { %10161 = vmatpush1.bf16.msra.mxu1 %v10160_v39  ;;  %5183 = vmatprep.mubr.f32.mxu1 %v11037_v12  ;;  %v10196_v39 = vpack.c.bf16 %v8862_v36, %v8860_v35  ;;  %v8900_v35 = vld [vmem:[%s15407_s3 + $0x5a0] sm:$0xff]  ;;  %v8902_v36 = vld [vmem:[%s15407_s3 + $0x5b0] sm:$0xff] }
 0x68e   : > { %10163 = vmatprep.subr.bf16.mxu1 %v10162_v40  ;;  %v10198_v40 = vpack.c.bf16 %v8867_v44, %v8865_v38  ;;  %v8907_v38 = vld [vmem:[%s15407_s3 + $0x5d8] sm:$0xff]  ;;  %v10232_v44 = vpack.c.bf16 %v8902_v36, %v8900_v35 }
 0x68f   : > { %v8947_v35 = vld [vmem:[%s15407_s3 + $0x6d8] sm:$0xff] }
 0x691   : > { %10165 = vmatpush1.bf16.msra.mxu1 %v10164_v50  ;;  %v10200_v50 = vpack.c.bf16 %v8866_v47, %v8864_v42  ;;  %v8906_v42 = vld [vmem:[%s15407_s3 + $0x5d0] sm:$0xff]  ;;  %v8909_v47 = vld [vmem:[%s15407_s3 + $0x5e8] sm:$0xff] }
 0x692   : > { %10168 = vmatprep.subr.msk.bf16.mxu1 %vm13496_vm12, %v10166_v60  ;;  %v10202_v60 = vpack.c.bf16 %v8871_v45, %v8869_v23  ;;  %v8908_v45 = vld [vmem:[%s15407_s3 + $0x5e0] sm:$0xff] }
 0x695   : > { %10171 = vmatpush1.bf16.msk.msra.mxu1 %vm13496_vm12, %v10169_v55  ;;  %v10205_v55 = vpack.c.bf16 %v8870_v52, %v8868_v51 }
 0x696   : > { %10173 = vmatprep.subr.bf16.mxu1 %v10172_v56  ;;  %v10208_v56 = vpack.c.bf16 %v8879_v54, %v8877_v53  ;;  %v8916_v53 = vld [vmem:[%s15407_s3 + $0x600] sm:$0xff]  ;;  %v8918_v54 = vld [vmem:[%s15407_s3 + $0x610] sm:$0xff] }
 0x698   : > { %8834 = vmatmul.mubr.msk.f32.vlgmr.msra.gmra.mrb[8].mxu1 %vm4354_vm13, %v5106_v21  ;;  %v5330_v21 = vpop.permute.xlu0 %5329 }
 0x699   : > { %10175 = vmatpush1.bf16.msra.mxu1 %v10174_v62  ;;  %5189 = vmatprep.mubr.f32.mxu1 %v11037_v12  ;;  %v10210_v62 = vpack.c.bf16 %v8878_v57, %v8876_v15  ;;  %v10246_v15 = vpack.c.bf16 %v8918_v54, %v8916_v53  ;;  %v8961_v53 = vld [vmem:[%s15407_s3 + $0x728] sm:$0xff]  ;;  %v8963_v54 = vld [vmem:[%s15407_s3 + $0x738] sm:$0xff] }
 0x69a   : > { %10177 = vmatprep.subr.bf16.mxu1 %v10176_v63  ;;  %v10212_v63 = vpack.c.bf16 %v8883_v59, %v8881_v58  ;;  %v8920_v58 = vld [vmem:[%s15407_s3 + $0x620] sm:$0xff]  ;;  %v8922_v59 = vld [vmem:[%s15407_s3 + $0x630] sm:$0xff] }
 0x69c   : > { %8835 = vmatmul.mubr.msk.f32.gmra.mrb[10].mxu1 %vm4354_vm13, %v5108_v9  ;;  %v5332_v9 = vpop.permute.xlu1 %5331 }
 0x69d   : > { %10179 = vmatpush1.bf16.msra.mxu1 %v10178_v6  ;;  %5295 = vmatprep.mubr.f32.mxu1 %v11037_v12  ;;  %v10214_v6 = vpack.c.bf16 %v8882_v2, %v8880_v20  ;;  %v8927_v20 = vld [vmem:[%s15407_s3 + $0x658] sm:$0xff]  ;;  %v10250_v2 = vpack.c.bf16 %v8922_v59, %v8920_v58  ;;  %v8965_v59 = vld [vmem:[%s15407_s3 + $0x748] sm:$0xff] }
 0x69e   : > { %10181 = vmatprep.subr.bf16.mxu1 %v10180_v7  ;;  %v10216_v7 = vpack.c.bf16 %v8887_v5, %v8885_v61  ;;  %v8924_v61 = vld [vmem:[%s15407_s3 + $0x640] sm:$0xff]  ;;  %v8926_v5 = vld [vmem:[%s15407_s3 + $0x650] sm:$0xff] }
 0x6a1   : > { %10183 = vmatpush1.bf16.msra.mxu1 %v10182_v1  ;;  %v10218_v1 = vpack.c.bf16 %v8886_v3, %v8884_v8  ;;  %v8931_v8 = vld [vmem:[%s15407_s3 + $0x678] sm:$0xf]  ;;  %v10254_v3 = vpack.c.bf16 %v8926_v5, %v8924_v61  ;;  %v8969_v5 = vld [vmem:[%s15407_s3 + $0x768] sm:$0xff] }
 0x6a2   : > { %10186 = vmatprep.subr.msk.bf16.mxu1 %vm13496_vm12, %v10184_v49  ;;  %v10220_v49 = vpack.c.bf16 %v8891_v46, %v8889_v10  ;;  %v8928_v10 = vld [vmem:[%s15407_s3 + $0x660] sm:$0xff]  ;;  %v8930_v46 = vld [vmem:[%s15407_s3 + $0x670] sm:$0xf] }
 0x6a5   : > { %10189 = vmatpush1.bf16.msk.msra.mxu1 %vm13496_vm12, %v10187_v26  ;;  %v10223_v26 = vpack.c.bf16 %v8890_v17, %v8888_v14  ;;  %v10259_v14 = vpack.c.bf16 %v8930_v46, %v8928_v10  ;;  %v8977_v10 = vld [vmem:[%s15407_s3 + $0x788] sm:$0xff]  ;;  %v8979_v46 = vld [vmem:[%s15407_s3 + $0x798] sm:$0xff] }
 0x6a6   : > { %10191 = vmatprep.subr.bf16.mxu1 %v10190_v19  ;;  %v10226_v19 = vpack.c.bf16 %v8899_v13, %v8897_v11  ;;  %v8936_v11 = vld [vmem:[%s15407_s3 + $0x680] sm:$0xff]  ;;  %v8938_v13 = vld [vmem:[%s15407_s3 + $0x690] sm:$0xff] }
 0x6a8   : > { %8854 = vmatmul.mubr.msk.f32.vlgmr.msra.gmra.mrb[8].mxu1 %vm4354_vm13, %v5218_v37  ;;  %v8905_v37 = vld [vmem:[%s15407_s3 + $0x5c8] sm:$0xff] }
 0x6a9   : > { %10193 = vmatpush1.bf16.msra.mxu1 %v10192_v33  ;;  %5301 = vmatprep.mubr.f32.mxu1 %v11037_v12  ;;  %v10228_v33 = vpack.c.bf16 %v8898_v31, %v8896_v30  ;;  %v10264_v30 = vpack.c.bf16 %v8938_v13, %v8936_v11  ;;  %v8981_v11 = vld [vmem:[%s15407_s3 + $0x7a8] sm:$0xff]  ;;  %v8983_v13 = vld [vmem:[%s15407_s3 + $0x7b8] sm:$0xff] }
 0x6aa   : > { %10195 = vmatprep.subr.bf16.mxu1 %v10194_v34  ;;  %v10230_v34 = vpack.c.bf16 %v8903_v43, %v8901_v32  ;;  %v8940_v32 = vld [vmem:[%s15407_s3 + $0x6a0] sm:$0xff]  ;;  %v8942_v43 = vld [vmem:[%s15407_s3 + $0x6b0] sm:$0xff] }
 0x6ab   : > { %v10268_v36 = vpack.c.bf16 %v8942_v43, %v8940_v32  ;;  %v8985_v43 = vld [vmem:[%s15407_s3 + $0x7c8] sm:$0xff] }
 0x6ac   : > { %8855 = vmatmul.mubr.msk.f32.gmra.mrb[10].mxu1 %vm4354_vm13, %v5220_v48 }
 0x6ad   : > { %10197 = vmatpush1.bf16.msra.mxu1 %v10196_v39  ;;  %5407 = vmatprep.mubr.f32.mxu1 %v11037_v12  ;;  %v10234_v39 = vpack.c.bf16 %v8907_v38, %v8905_v37  ;;  %v8944_v38 = vld [vmem:[%s15407_s3 + $0x6c0] sm:$0xff] }
 0x6ae   : > { %10199 = vmatprep.subr.bf16.mxu1 %v10198_v40  ;;  %v8904_v40 = vld [vmem:[%s15407_s3 + $0x5c0] sm:$0xff] }
 0x6af   : > { %v10236_v48 = vpack.c.bf16 %v8906_v42, %v8904_v40  ;;  %v8949_v40 = vld [vmem:[%s15407_s3 + $0x6e8] sm:$0xff]  ;;  %v8951_v42 = vld [vmem:[%s15407_s3 + $0x6f8] sm:$0xf] }
 0x6b1   : > { %10201 = vmatpush1.bf16.msra.mxu1 %v10200_v50  ;;  %v8910_v50 = vld [vmem:[%s15407_s3 + $0x5f0] sm:$0xf] }
 0x6b2   : > { %10204 = vmatprep.subr.msk.bf16.mxu1 %vm13496_vm12, %v10202_v60  ;;  %v8917_v60 = vld [vmem:[%s15407_s3 + $0x608] sm:$0xff]  ;;  %v10241_v51 = vpack.c.bf16 %v8910_v50, %v8908_v45  ;;  %v8959_v50 = vld [vmem:[%s15407_s3 + $0x718] sm:$0xff] }
 0x6b3   : > { %v8957_v45 = vld [vmem:[%s15407_s3 + $0x708] sm:$0xff] }
 0x6b5   : > { %10207 = vmatpush1.bf16.msk.msra.mxu1 %vm13496_vm12, %v10205_v55  ;;  %v8921_v55 = vld [vmem:[%s15407_s3 + $0x628] sm:$0xff] }
 0x6b6   : > { %10209 = vmatprep.subr.bf16.mxu1 %v10208_v56  ;;  %v8923_v56 = vld [vmem:[%s15407_s3 + $0x638] sm:$0xff] }
 0x6b7   : > { %v10248_v57 = vpack.c.bf16 %v8923_v56, %v8921_v55  ;;  %v10284_v56 = vpack.c.bf16 %v8963_v54, %v8961_v53 }
 0x6b8   : > { %8874 = vmatmul.mubr.msk.f32.vlgmr.msra.gmra.mrb[8].mxu1 %vm4354_vm13, %v5330_v21 }
 0x6b9   : > { %10211 = vmatpush1.bf16.msra.mxu1 %v10210_v62  ;;  %5413 = vmatprep.mubr.f32.mxu1 %v11037_v12  ;;  %v5553_v62 = vpop.permute.xlu0 %5552 }
 0x6ba   : > { %10213 = vmatprep.subr.bf16.mxu1 %v10212_v63  ;;  %v8925_v63 = vld [vmem:[%s15407_s3 + $0x648] sm:$0xff] }
 0x6bb   : > { %v10252_v21 = vpack.c.bf16 %v8927_v20, %v8925_v63 }
 0x6bc   : > { %8875 = vmatmul.mubr.msk.f32.gmra.mrb[10].mxu1 %vm4354_vm13, %v5332_v9 }
 0x6bd   : > { %10215 = vmatpush1.bf16.msra.mxu1 %v10214_v6  ;;  %5518 = vmatprep.mubr.f32.mxu1 %v11037_v12  ;;  %v5555_v6 = vpop.permute.xlu1 %5554 }
 0x6be   : > { %10217 = vmatprep.subr.bf16.mxu1 %v10216_v7  ;;  %v8929_v7 = vld [vmem:[%s15407_s3 + $0x668] sm:$0xff] }
 0x6bf   : > { %v10256_v9 = vpack.c.bf16 %v8931_v8, %v8929_v7 }
 0x6c1   : > { %10219 = vmatpush1.bf16.msra.mxu1 %v10218_v1  ;;  %v8937_v1 = vld [vmem:[%s15407_s3 + $0x688] sm:$0xff] }
 0x6c2   : > { %10222 = vmatprep.subr.msk.bf16.mxu1 %vm13496_vm12, %v10220_v49  ;;  %v8939_v49 = vld [vmem:[%s15407_s3 + $0x698] sm:$0xff] }
 0x6c3   : > { %v10262_v17 = vpack.c.bf16 %v8939_v49, %v8937_v1  ;;  %v10298_v49 = vpack.c.bf16 %v8979_v46, %v8977_v10  ;;  %v9021_v10 = vld [vmem:[%s15407_s3 + $0x8a8] sm:$0xff]  ;;  %v9023_v46 = vld [vmem:[%s15407_s3 + $0x8b8] sm:$0xff] }
 0x6c5   : > { %10225 = vmatpush1.bf16.msk.msra.mxu1 %vm13496_vm12, %v10223_v26  ;;  %v8941_v26 = vld [vmem:[%s15407_s3 + $0x6a8] sm:$0xff] }
 0x6c6   : > { %10227 = vmatprep.subr.bf16.mxu1 %v10226_v19  ;;  %v8943_v19 = vld [vmem:[%s15407_s3 + $0x6b8] sm:$0xff] }
 0x6c7   : > { %v10266_v31 = vpack.c.bf16 %v8943_v19, %v8941_v26  ;;  %v10302_v19 = vpack.c.bf16 %v8983_v13, %v8981_v11  ;;  %v9025_v13 = vld [vmem:[%s15407_s3 + $0x8c8] sm:$0xff] }
 0x6c8   : > { %8894 = vmatmul.mubr.msk.f32.vlgmr.msra.gmra.mrb[8].mxu1 %vm4354_vm13, %v13558_v18  ;;  %v8911_v18 = vld [vmem:[%s15407_s3 + $0x5f8] sm:$0xf] }
 0x6c9   : > { %10229 = vmatpush1.bf16.msra.mxu1 %v10228_v33  ;;  %5524 = vmatprep.mubr.f32.mxu1 %v11037_v12  ;;  %v10238_v23 = vpack.c.bf16 %v8911_v18, %v8909_v47  ;;  %v5665_v33 = vpop.permute.xlu0 %5664  ;;  %v10274_v18 = vpack.c.bf16 %v8951_v42, %v8949_v40 }
 0x6ca   : > { %10231 = vmatprep.subr.bf16.mxu1 %v10230_v34  ;;  %v8945_v34 = vld [vmem:[%s15407_s3 + $0x6c8] sm:$0xff] }
 0x6cb   : > { %v10270_v37 = vpack.c.bf16 %v8947_v35, %v8945_v34 }
 0x6cc   : > { %8895 = vmatmul.mubr.msk.f32.gmra.mrb[10].mxu1 %vm4354_vm13, %v13549_v16  ;;  %v8919_v16 = vld [vmem:[%s15407_s3 + $0x618] sm:$0xff] }
 0x6cd   : > { %10233 = vmatpush1.bf16.msra.mxu1 %v10232_v44  ;;  %5630 = vmatprep.mubr.f32.mxu1 %v11037_v12  ;;  %v10244_v52 = vpack.c.bf16 %v8919_v16, %v8917_v60  ;;  %v8946_v44 = vld [vmem:[%s15407_s3 + $0x6d0] sm:$0xff]  ;;  %v10280_v16 = vpack.c.bf16 %v8959_v50, %v8957_v45  ;;  %v5777_v58 = vpop.permute.xlu0 %5776 }
 0x6ce   : > { %10235 = vmatprep.subr.bf16.mxu1 %v10234_v39  ;;  %v5667_v39 = vpop.permute.xlu1 %5666  ;;  %v10272_v47 = vpack.c.bf16 %v8946_v44, %v8944_v38  ;;  %v8989_v44 = vld [vmem:[%s15407_s3 + $0x7e8] sm:$0xff] }
 0x6d1   : > { %10237 = vmatpush1.bf16.msra.mxu1 %v10236_v48  ;;  %v8948_v48 = vld [vmem:[%s15407_s3 + $0x6e0] sm:$0xff]  ;;  %v5889_v32 = vpop.permute.xlu0 %5888 }
 0x6d2   : > { %10240 = vmatprep.subr.msk.bf16.mxu1 %vm13496_vm12, %v10238_v23  ;;  %v8950_v23 = vld [vmem:[%s15407_s3 + $0x6f0] sm:$0xf]  ;;  %v5779_v61 = vpop.permute.xlu1 %5778 }
 0x6d3   : > { %v10277_v60 = vpack.c.bf16 %v8950_v23, %v8948_v48  ;;  %v8997_v48 = vld [vmem:[%s15407_s3 + $0x808] sm:$0xff]  ;;  %v8999_v23 = vld [vmem:[%s15407_s3 + $0x818] sm:$0xff] }
 0x6d4   : > { %v10316_v50 = vpack.c.bf16 %v8999_v23, %v8997_v48  ;;  %v9041_v48 = vld [vmem:[%s15407_s3 + $0x928] sm:$0xff]  ;;  %v9043_v23 = vld [vmem:[%s15407_s3 + $0x938] sm:$0xff] }
 0x6d5   : > { %10243 = vmatpush1.bf16.msk.msra.mxu1 %vm13496_vm12, %v10241_v51  ;;  %v8956_v51 = vld [vmem:[%s15407_s3 + $0x700] sm:$0xff]  ;;  %v6112_v11 = vpop.permute.xlu0 %6111 }
 0x6d6   : > { %10245 = vmatprep.subr.bf16.mxu1 %v10244_v52  ;;  %v8958_v52 = vld [vmem:[%s15407_s3 + $0x710] sm:$0xff]  ;;  %v5891_v38 = vpop.permute.xlu1 %5890 }
 0x6d7   : > { %v10282_v55 = vpack.c.bf16 %v8958_v52, %v8956_v51  ;;  %v9001_v51 = vld [vmem:[%s15407_s3 + $0x828] sm:$0xff]  ;;  %v9003_v52 = vld [vmem:[%s15407_s3 + $0x838] sm:$0xff] }
 0x6d8   : > { %8914 = vmatmul.mubr.msk.f32.vlgmr.msra.gmra.mrb[8].mxu1 %vm4354_vm13, %v5553_v62  ;;  %v8967_v62 = vld [vmem:[%s15407_s3 + $0x758] sm:$0xff]  ;;  %v10320_v54 = vpack.c.bf16 %v9003_v52, %v9001_v51  ;;  %v9045_v52 = vld [vmem:[%s15407_s3 + $0x948] sm:$0xff] }
 0x6d9   : > { %10247 = vmatpush1.bf16.msra.mxu1 %v10246_v15  ;;  %5636 = vmatprep.mubr.f32.mxu1 %v11037_v12  ;;  %v8960_v15 = vld [vmem:[%s15407_s3 + $0x720] sm:$0xff]  ;;  %v10288_v20 = vpack.c.bf16 %v8967_v62, %v8965_v59  ;;  %v6224_v51 = vpop.permute.xlu0 %6223 }
 0x6da   : > { %10249 = vmatprep.subr.bf16.mxu1 %v10248_v57  ;;  %v8962_v57 = vld [vmem:[%s15407_s3 + $0x730] sm:$0xff]  ;;  %v9004_v62 = vld [vmem:[%s15407_s3 + $0x840] sm:$0xff] }
 0x6db   : > { %v10286_v63 = vpack.c.bf16 %v8962_v57, %v8960_v15  ;;  %v9005_v15 = vld [vmem:[%s15407_s3 + $0x848] sm:$0xff]  ;;  %v9007_v57 = vld [vmem:[%s15407_s3 + $0x858] sm:$0xff] }
 0x6dc   : > { %8915 = vmatmul.mubr.msk.f32.gmra.mrb[10].mxu1 %vm4354_vm13, %v5555_v6  ;;  %v8971_v6 = vld [vmem:[%s15407_s3 + $0x778] sm:$0xf]  ;;  %v10324_v59 = vpack.c.bf16 %v9007_v57, %v9005_v15  ;;  %v9046_v15 = vld [vmem:[%s15407_s3 + $0x950] sm:$0xff] }
 0x6dd   : > { %10251 = vmatpush1.bf16.msra.mxu1 %v10250_v2  ;;  %5742 = vmatprep.mubr.f32.mxu1 %v11037_v12  ;;  %v8964_v2 = vld [vmem:[%s15407_s3 + $0x740] sm:$0xff]  ;;  %v10292_v8 = vpack.c.bf16 %v8971_v6, %v8969_v5  ;;  %v9010_v5 = vld [vmem:[%s15407_s3 + $0x870] sm:$0xf]  ;;  %v9017_v6 = vld [vmem:[%s15407_s3 + $0x888] sm:$0xff] }
 0x6de   : > { %10253 = vmatprep.subr.bf16.mxu1 %v10252_v21  ;;  %v8966_v21 = vld [vmem:[%s15407_s3 + $0x750] sm:$0xff] }
 0x6df   : > { %v10290_v7 = vpack.c.bf16 %v8966_v21, %v8964_v2 }
 0x6e1   : > { %10255 = vmatpush1.bf16.msra.mxu1 %v10254_v3  ;;  %v8968_v3 = vld [vmem:[%s15407_s3 + $0x760] sm:$0xff] }
 0x6e2   : > { %10258 = vmatprep.subr.msk.bf16.mxu1 %vm13496_vm12, %v10256_v9  ;;  %v8970_v9 = vld [vmem:[%s15407_s3 + $0x770] sm:$0xf] }
 0x6e3   : > { %v10295_v1 = vpack.c.bf16 %v8970_v9, %v8968_v3  ;;  %v9016_v3 = vld [vmem:[%s15407_s3 + $0x880] sm:$0xff]  ;;  %v9018_v9 = vld [vmem:[%s15407_s3 + $0x890] sm:$0xff] }
 0x6e5   : > { %10261 = vmatpush1.bf16.msk.msra.mxu1 %vm13496_vm12, %v10259_v14  ;;  %v8976_v14 = vld [vmem:[%s15407_s3 + $0x780] sm:$0xff] }
 0x6e6   : > { %10263 = vmatprep.subr.bf16.mxu1 %v10262_v17  ;;  %v8978_v17 = vld [vmem:[%s15407_s3 + $0x790] sm:$0xff] }
 0x6e7   : > { %v10300_v26 = vpack.c.bf16 %v8978_v17, %v8976_v14  ;;  %v9020_v14 = vld [vmem:[%s15407_s3 + $0x8a0] sm:$0xff]  ;;  %v9022_v17 = vld [vmem:[%s15407_s3 + $0x8b0] sm:$0xff] }
 0x6e8   : > { %8934 = vmatmul.mubr.msk.f32.vlgmr.msra.gmra.mrb[8].mxu1 %vm4354_vm13, %v5665_v33  ;;  %v8987_v33 = vld [vmem:[%s15407_s3 + $0x7d8] sm:$0xff] }
 0x6e9   : > { %10265 = vmatpush1.bf16.msra.mxu1 %v10264_v30  ;;  %5748 = vmatprep.mubr.f32.mxu1 %v11037_v12  ;;  %v8980_v30 = vld [vmem:[%s15407_s3 + $0x7a0] sm:$0xff]  ;;  %v10306_v35 = vpack.c.bf16 %v8987_v33, %v8985_v43  ;;  %v6114_v43 = vpop.permute.xlu1 %6113  ;;  %v9029_v33 = vld [vmem:[%s15407_s3 + $0x8e8] sm:$0xff] }
 0x6ea   : > { %10267 = vmatprep.subr.bf16.mxu1 %v10266_v31  ;;  %v8982_v31 = vld [vmem:[%s15407_s3 + $0x7b0] sm:$0xff] }
 0x6eb   : > { %v10304_v34 = vpack.c.bf16 %v8982_v31, %v8980_v30  ;;  %v9024_v31 = vld [vmem:[%s15407_s3 + $0x8c0] sm:$0xff] }
 0x6ec   : > { %8935 = vmatmul.mubr.msk.f32.gmra.mrb[10].mxu1 %vm4354_vm13, %v5667_v39  ;;  %v8991_v39 = vld [vmem:[%s15407_s3 + $0x7f8] sm:$0xf] }
 0x6ed   : > { %10269 = vmatpush1.bf16.msra.mxu1 %v10268_v36  ;;  %5854 = vmatprep.mubr.f32.mxu1 %v11037_v12  ;;  %v8984_v36 = vld [vmem:[%s15407_s3 + $0x7c0] sm:$0xff]  ;;  %v10310_v42 = vpack.c.bf16 %v8991_v39, %v8989_v44  ;;  %v9037_v44 = vld [vmem:[%s15407_s3 + $0x908] sm:$0xff]  ;;  %v9039_v39 = vld [vmem:[%s15407_s3 + $0x918] sm:$0xff]  ;;  %v6226_v57 = vpop.permute.xlu1 %6225 }
 0x6ee   : > { %10271 = vmatprep.subr.bf16.mxu1 %v10270_v37  ;;  %v8986_v37 = vld [vmem:[%s15407_s3 + $0x7d0] sm:$0xff] }
 0x6ef   : > { %v10308_v40 = vpack.c.bf16 %v8986_v37, %v8984_v36  ;;  %v9028_v37 = vld [vmem:[%s15407_s3 + $0x8e0] sm:$0xff] }
 0x6f1   : > { %10273 = vmatpush1.bf16.msra.mxu1 %v10272_v47  ;;  %v8988_v47 = vld [vmem:[%s15407_s3 + $0x7e0] sm:$0xff] }
 0x6f2   : > { %10276 = vmatprep.subr.msk.bf16.mxu1 %vm13496_vm12, %v10274_v18  ;;  %v8990_v18 = vld [vmem:[%s15407_s3 + $0x7f0] sm:$0xf] }
 0x6f3   : > { %v10313_v45 = vpack.c.bf16 %v8990_v18, %v8988_v47  ;;  %v9036_v47 = vld [vmem:[%s15407_s3 + $0x900] sm:$0xff]  ;;  %v9038_v18 = vld [vmem:[%s15407_s3 + $0x910] sm:$0xff] }
 0x6f5   : > { %10279 = vmatpush1.bf16.msk.msra.mxu1 %vm13496_vm12, %v10277_v60  ;;  %v8996_v60 = vld [vmem:[%s15407_s3 + $0x800] sm:$0xff] }
 0x6f6   : > { %10281 = vmatprep.subr.bf16.mxu1 %v10280_v16  ;;  %v8998_v16 = vld [vmem:[%s15407_s3 + $0x810] sm:$0xff] }
 0x6f7   : > { %v10318_v53 = vpack.c.bf16 %v8998_v16, %v8996_v60  ;;  %v9040_v60 = vld [vmem:[%s15407_s3 + $0x920] sm:$0xff]  ;;  %v9042_v16 = vld [vmem:[%s15407_s3 + $0x930] sm:$0xff] }
 0x6f8   : > { %8954 = vmatmul.mubr.msk.f32.vlgmr.msra.gmra.mrb[8].mxu1 %vm4354_vm13, %v5777_v58 }
 0x6f9   : > { %10283 = vmatpush1.bf16.msra.mxu1 %v10282_v55  ;;  %5860 = vmatprep.mubr.f32.mxu1 %v11037_v12  ;;  %v9000_v55 = vld [vmem:[%s15407_s3 + $0x820] sm:$0xff] }
 0x6fa   : > { %10285 = vmatprep.subr.bf16.mxu1 %v10284_v56  ;;  %v9002_v56 = vld [vmem:[%s15407_s3 + $0x830] sm:$0xff] }
 0x6fb   : > { %v10322_v58 = vpack.c.bf16 %v9002_v56, %v9000_v55  ;;  %v9044_v56 = vld [vmem:[%s15407_s3 + $0x940] sm:$0xff] }
 0x6fc   : > { %8955 = vmatmul.mubr.msk.f32.gmra.mrb[10].mxu1 %vm4354_vm13, %v5779_v61  ;;  %v9008_v61 = vld [vmem:[%s15407_s3 + $0x860] sm:$0xff] }
 0x6fd   : > { %10287 = vmatpush1.bf16.msra.mxu1 %v10286_v63  ;;  %5966 = vmatprep.mubr.f32.mxu1 %v11037_v12  ;;  %v9006_v63 = vld [vmem:[%s15407_s3 + $0x850] sm:$0xff] }
 0x6fe   : > { %10289 = vmatprep.subr.bf16.mxu1 %v10288_v20  ;;  %v9009_v20 = vld [vmem:[%s15407_s3 + $0x868] sm:$0xff]  ;;  %v10326_v2 = vpack.c.bf16 %v9006_v63, %v9004_v62  ;;  %v10362_v62 = vpack.c.bf16 %v9046_v15, %v9044_v56  ;;  %v9091_v56 = vld [vmem:[%s15407_s3 + $0xa78] sm:$0xf] }
 0x701   : > { %10291 = vmatpush1.bf16.msra.mxu1 %v10290_v7  ;;  %v10331_v7 = vpack.c.bf16 %v9010_v5, %v9008_v61 }
 0x702   : > { %10294 = vmatprep.subr.msk.bf16.mxu1 %vm13496_vm12, %v10292_v8 }
 0x705   : > { %10297 = vmatpush1.bf16.msk.msra.mxu1 %vm13496_vm12, %v10295_v1  ;;  %v10336_v1 = vpack.c.bf16 %v9018_v9, %v9016_v3 }
 0x706   : > { %10299 = vmatprep.subr.bf16.mxu1 %v10298_v49  ;;  %v10338_v49 = vpack.c.bf16 %v9023_v46, %v9021_v10  ;;  %v9060_v10 = vld [vmem:[%s15407_s3 + $0x9a0] sm:$0xff]  ;;  %v9062_v46 = vld [vmem:[%s15407_s3 + $0x9b0] sm:$0xff] }
 0x708   : > { %8974 = vmatmul.mubr.msk.f32.vlgmr.msra.gmra.mrb[8].mxu1 %vm4354_vm13, %v5889_v32  ;;  %v9026_v32 = vld [vmem:[%s15407_s3 + $0x8d0] sm:$0xff] }
 0x709   : > { %10301 = vmatpush1.bf16.msra.mxu1 %v10300_v26  ;;  %5972 = vmatprep.mubr.f32.mxu1 %v11037_v12  ;;  %v9027_v26 = vld [vmem:[%s15407_s3 + $0x8d8] sm:$0xff] }
 0x70a   : > { %10303 = vmatprep.subr.bf16.mxu1 %v10302_v19  ;;  %v10340_v19 = vpack.c.bf16 %v9022_v17, %v9020_v14  ;;  %v10342_v30 = vpack.c.bf16 %v9027_v26, %v9025_v13  ;;  %v9067_v14 = vld [vmem:[%s15407_s3 + $0x9d8] sm:$0xff]  ;;  %v10376_v17 = vpack.c.bf16 %v9062_v46, %v9060_v10  ;;  %v9064_v13 = vld [vmem:[%s15407_s3 + $0x9c0] sm:$0xff]  ;;  %v9066_v26 = vld [vmem:[%s15407_s3 + $0x9d0] sm:$0xff] }
 0x70c   : > { %8975 = vmatmul.mubr.msk.f32.gmra.mrb[10].mxu1 %vm4354_vm13, %v5891_v38  ;;  %v9030_v38 = vld [vmem:[%s15407_s3 + $0x8f0] sm:$0xf] }
 0x70d   : > { %10305 = vmatpush1.bf16.msra.mxu1 %v10304_v34  ;;  %6077 = vmatprep.mubr.f32.mxu1 %v11037_v12  ;;  %v9031_v34 = vld [vmem:[%s15407_s3 + $0x8f8] sm:$0xf] }
 0x70e   : > { %10307 = vmatprep.subr.bf16.mxu1 %v10306_v35  ;;  %v10344_v35 = vpack.c.bf16 %v9026_v32, %v9024_v31  ;;  %v10346_v36 = vpack.c.bf16 %v9031_v34, %v9029_v33  ;;  %v9071_v31 = vld [vmem:[%s15407_s3 + $0x9f8] sm:$0xf]  ;;  %v10380_v32 = vpack.c.bf16 %v9066_v26, %v9064_v13  ;;  %v9068_v33 = vld [vmem:[%s15407_s3 + $0x9e0] sm:$0xff]  ;;  %v9070_v34 = vld [vmem:[%s15407_s3 + $0x9f0] sm:$0xf] }
 0x70f   : > { %v9108_v13 = vld [vmem:[%s15407_s3 + $0xae0] sm:$0xff]  ;;  %v9110_v26 = vld [vmem:[%s15407_s3 + $0xaf0] sm:$0xf] }
 0x711   : > { %10309 = vmatpush1.bf16.msra.mxu1 %v10308_v40  ;;  %v10349_v40 = vpack.c.bf16 %v9030_v38, %v9028_v37  ;;  %v10385_v37 = vpack.c.bf16 %v9070_v34, %v9068_v33  ;;  %v9121_v33 = vld [vmem:[%s15407_s3 + $0xb28] sm:$0xff]  ;;  %v9123_v34 = vld [vmem:[%s15407_s3 + $0xb38] sm:$0xff] }
 0x712   : > { %10312 = vmatprep.subr.msk.bf16.mxu1 %vm13496_vm12, %v10310_v42  ;;  %v10352_v42 = vpack.c.bf16 %v9039_v39, %v9037_v44  ;;  %v9076_v44 = vld [vmem:[%s15407_s3 + $0xa00] sm:$0xff]  ;;  %v9078_v39 = vld [vmem:[%s15407_s3 + $0xa10] sm:$0xff] }
 0x715   : > { %10315 = vmatpush1.bf16.msk.msra.mxu1 %vm13496_vm12, %v10313_v45  ;;  %v10354_v45 = vpack.c.bf16 %v9038_v18, %v9036_v47  ;;  %v10390_v47 = vpack.c.bf16 %v9078_v39, %v9076_v44  ;;  %v9125_v39 = vld [vmem:[%s15407_s3 + $0xb48] sm:$0xff] }
 0x716   : > { %10317 = vmatprep.subr.bf16.mxu1 %v10316_v50  ;;  %v10356_v50 = vpack.c.bf16 %v9043_v23, %v9041_v48  ;;  %v9080_v48 = vld [vmem:[%s15407_s3 + $0xa20] sm:$0xff]  ;;  %v9082_v23 = vld [vmem:[%s15407_s3 + $0xa30] sm:$0xff] }
 0x718   : > { %8994 = vmatmul.mubr.msk.f32.vlgmr.msra.gmra.mrb[8].mxu1 %vm4354_vm13, %v13582_v27  ;;  %v9011_v27 = vld [vmem:[%s15407_s3 + $0x878] sm:$0xf] }
 0x719   : > { %10319 = vmatpush1.bf16.msra.mxu1 %v10318_v53  ;;  %6083 = vmatprep.mubr.f32.mxu1 %v11037_v12  ;;  %v10328_v21 = vpack.c.bf16 %v9011_v27, %v9009_v20  ;;  %v9047_v53 = vld [vmem:[%s15407_s3 + $0x958] sm:$0xff]  ;;  %v9048_v20 = vld [vmem:[%s15407_s3 + $0x960] sm:$0xff]  ;;  %v9050_v27 = vld [vmem:[%s15407_s3 + $0x970] sm:$0xf] }
 0x71a   : > { %10321 = vmatprep.subr.bf16.mxu1 %v10320_v54  ;;  %v10358_v54 = vpack.c.bf16 %v9042_v16, %v9040_v60  ;;  %v10360_v55 = vpack.c.bf16 %v9047_v53, %v9045_v52  ;;  %v10367_v61 = vpack.c.bf16 %v9050_v27, %v9048_v20  ;;  %v9087_v60 = vld [vmem:[%s15407_s3 + $0xa58] sm:$0xff]  ;;  %v10394_v16 = vpack.c.bf16 %v9082_v23, %v9080_v48  ;;  %v9084_v52 = vld [vmem:[%s15407_s3 + $0xa40] sm:$0xff]  ;;  %v9086_v53 = vld [vmem:[%s15407_s3 + $0xa50] sm:$0xff] }
 0x71b   : > { %v10398_v15 = vpack.c.bf16 %v9086_v53, %v9084_v52  ;;  %v9126_v48 = vld [vmem:[%s15407_s3 + $0xb50] sm:$0xff]  ;;  %v9137_v53 = vld [vmem:[%s15407_s3 + $0xb88] sm:$0xff] }
 0x71c   : > { %8995 = vmatmul.mubr.msk.f32.gmra.mrb[10].mxu1 %vm4354_vm13, %v13573_v24  ;;  %v9019_v24 = vld [vmem:[%s15407_s3 + $0x898] sm:$0xff]  ;;  %v9130_v52 = vld [vmem:[%s15407_s3 + $0xb70] sm:$0xf] }
 0x71d   : > { %10323 = vmatpush1.bf16.msra.mxu1 %v10322_v58  ;;  %6189 = vmatprep.mubr.f32.mxu1 %v11037_v12  ;;  %v10334_v8 = vpack.c.bf16 %v9019_v24, %v9017_v6  ;;  %v9049_v58 = vld [vmem:[%s15407_s3 + $0x968] sm:$0xff]  ;;  %v9056_v6 = vld [vmem:[%s15407_s3 + $0x980] sm:$0xff]  ;;  %v9058_v24 = vld [vmem:[%s15407_s3 + $0x990] sm:$0xff] }
 0x71e   : > { %10325 = vmatprep.subr.bf16.mxu1 %v10324_v59  ;;  %v9051_v59 = vld [vmem:[%s15407_s3 + $0x978] sm:$0xf]  ;;  %v10372_v3 = vpack.c.bf16 %v9058_v24, %v9056_v6 }
 0x71f   : > { %v10364_v63 = vpack.c.bf16 %v9051_v59, %v9049_v58  ;;  %v9088_v58 = vld [vmem:[%s15407_s3 + $0xa60] sm:$0xff]  ;;  %v9090_v59 = vld [vmem:[%s15407_s3 + $0xa70] sm:$0xf] }
 0x720   : > { %v10403_v20 = vpack.c.bf16 %v9090_v59, %v9088_v58  ;;  %v9141_v58 = vld [vmem:[%s15407_s3 + $0xba8] sm:$0xff]  ;;  %v9143_v59 = vld [vmem:[%s15407_s3 + $0xbb8] sm:$0xff] }
 0x721   : > { %10327 = vmatpush1.bf16.msra.mxu1 %v10326_v2  ;;  %v9057_v2 = vld [vmem:[%s15407_s3 + $0x988] sm:$0xff] }
 0x722   : > { %10330 = vmatprep.subr.msk.bf16.mxu1 %vm13496_vm12, %v10328_v21  ;;  %v9059_v21 = vld [vmem:[%s15407_s3 + $0x998] sm:$0xff] }
 0x723   : > { %v10370_v5 = vpack.c.bf16 %v9059_v21, %v9057_v2  ;;  %v9096_v2 = vld [vmem:[%s15407_s3 + $0xa80] sm:$0xff]  ;;  %v9098_v21 = vld [vmem:[%s15407_s3 + $0xa90] sm:$0xff] }
 0x724   : > { %v10408_v6 = vpack.c.bf16 %v9098_v21, %v9096_v2  ;;  %v9145_v21 = vld [vmem:[%s15407_s3 + $0xbc8] sm:$0xff] }
 0x725   : > { %10333 = vmatpush1.bf16.msk.msra.mxu1 %vm13496_vm12, %v10331_v7  ;;  %v9061_v7 = vld [vmem:[%s15407_s3 + $0x9a8] sm:$0xff] }
 0x726   : > { %10335 = vmatprep.subr.bf16.mxu1 %v10334_v8  ;;  %v9063_v8 = vld [vmem:[%s15407_s3 + $0x9b8] sm:$0xff] }
 0x727   : > { %v10374_v9 = vpack.c.bf16 %v9063_v8, %v9061_v7  ;;  %v9100_v7 = vld [vmem:[%s15407_s3 + $0xaa0] sm:$0xff]  ;;  %v9102_v8 = vld [vmem:[%s15407_s3 + $0xab0] sm:$0xff] }
 0x728   : > { %9014 = vmatmul.mubr.msk.f32.vlgmr.msra.gmra.mrb[8].mxu1 %vm4354_vm13, %v6112_v11  ;;  %v10412_v10 = vpack.c.bf16 %v9102_v8, %v9100_v7  ;;  %v9146_v7 = vld [vmem:[%s15407_s3 + $0xbd0] sm:$0xff] }
 0x729   : > { %10337 = vmatpush1.bf16.msra.mxu1 %v10336_v1  ;;  %6195 = vmatprep.mubr.f32.mxu1 %v11037_v12  ;;  %v6336_v1 = vpop.permute.xlu0 %6335 }
 0x72a   : > { %10339 = vmatprep.subr.bf16.mxu1 %v10338_v49  ;;  %v9065_v49 = vld [vmem:[%s15407_s3 + $0x9c8] sm:$0xff] }
 0x72b   : > { %v10378_v11 = vpack.c.bf16 %v9067_v14, %v9065_v49  ;;  %v9106_v49 = vld [vmem:[%s15407_s3 + $0xad0] sm:$0xff]  ;;  %v9109_v14 = vld [vmem:[%s15407_s3 + $0xae8] sm:$0xff] }
 0x72c   : > { %9015 = vmatmul.mubr.msk.f32.gmra.mrb[10].mxu1 %vm4354_vm13, %v6114_v43 }
 0x72d   : > { %10341 = vmatpush1.bf16.msra.mxu1 %v10340_v19  ;;  %6301 = vmatprep.mubr.f32.mxu1 %v11037_v12  ;;  %v6338_v19 = vpop.permute.xlu1 %6337 }
 0x72e   : > { %10343 = vmatprep.subr.bf16.mxu1 %v10342_v30  ;;  %v9069_v30 = vld [vmem:[%s15407_s3 + $0x9e8] sm:$0xff] }
 0x72f   : > { %v10382_v43 = vpack.c.bf16 %v9071_v31, %v9069_v30  ;;  %v10421_v30 = vpack.c.bf16 %v9110_v26, %v9108_v13  ;;  %v9156_v13 = vld [vmem:[%s15407_s3 + $0xc00] sm:$0xff]  ;;  %v9158_v26 = vld [vmem:[%s15407_s3 + $0xc10] sm:$0xff] }
 0x731   : > { %10345 = vmatpush1.bf16.msra.mxu1 %v10344_v35  ;;  %v9077_v35 = vld [vmem:[%s15407_s3 + $0xa08] sm:$0xff] }
 0x732   : > { %10348 = vmatprep.subr.msk.bf16.mxu1 %vm13496_vm12, %v10346_v36  ;;  %v9079_v36 = vld [vmem:[%s15407_s3 + $0xa18] sm:$0xff] }
 0x733   : > { %v10388_v38 = vpack.c.bf16 %v9079_v36, %v9077_v35  ;;  %v10428_v36 = vpack.c.bf16 %v9123_v34, %v9121_v33  ;;  %v9165_v34 = vld [vmem:[%s15407_s3 + $0xc48] sm:$0xff] }
 0x735   : > { %10351 = vmatpush1.bf16.msk.msra.mxu1 %vm13496_vm12, %v10349_v40  ;;  %v9081_v40 = vld [vmem:[%s15407_s3 + $0xa28] sm:$0xff] }
 0x736   : > { %10353 = vmatprep.subr.bf16.mxu1 %v10352_v42  ;;  %v9083_v42 = vld [vmem:[%s15407_s3 + $0xa38] sm:$0xff] }
 0x737   : > { %v10392_v18 = vpack.c.bf16 %v9083_v42, %v9081_v40  ;;  %v9127_v40 = vld [vmem:[%s15407_s3 + $0xb58] sm:$0xff] }
 0x738   : > { %9034 = vmatmul.mubr.msk.f32.vlgmr.msra.gmra.mrb[8].mxu1 %vm4354_vm13, %v6224_v51 }
 0x739   : > { %10355 = vmatpush1.bf16.msra.mxu1 %v10354_v45  ;;  %6307 = vmatprep.mubr.f32.mxu1 %v11037_v12  ;;  %v6448_v45 = vpop.permute.xlu0 %6447 }
 0x73a   : > { %10357 = vmatprep.subr.bf16.mxu1 %v10356_v50  ;;  %v9085_v50 = vld [vmem:[%s15407_s3 + $0xa48] sm:$0xff] }
 0x73b   : > { %v10396_v51 = vpack.c.bf16 %v9087_v60, %v9085_v50  ;;  %v9131_v50 = vld [vmem:[%s15407_s3 + $0xb78] sm:$0xf] }
 0x73c   : > { %9035 = vmatmul.mubr.msk.f32.gmra.mrb[10].mxu1 %vm4354_vm13, %v6226_v57 }
 0x73d   : > { %10359 = vmatpush1.bf16.msra.mxu1 %v10358_v54  ;;  %6413 = vmatprep.mubr.f32.mxu1 %v11037_v12  ;;  %v6450_v54 = vpop.permute.xlu1 %6449  ;;  %v6671_v44 = vpop.permute.xlu0 %6670 }
 0x73e   : > { %10361 = vmatprep.subr.bf16.mxu1 %v10360_v55  ;;  %v9089_v55 = vld [vmem:[%s15407_s3 + $0xa68] sm:$0xff] }
 0x73f   : > { %v10400_v57 = vpack.c.bf16 %v9091_v56, %v9089_v55 }
 0x741   : > { %10363 = vmatpush1.bf16.msra.mxu1 %v10362_v62  ;;  %v9097_v62 = vld [vmem:[%s15407_s3 + $0xa88] sm:$0xff]  ;;  %v6673_v23 = vpop.permute.xlu1 %6672  ;;  %v6783_v2 = vpop.permute.xlu0 %6782 }
 0x742   : > { %10366 = vmatprep.subr.msk.bf16.mxu1 %vm13496_vm12, %v10364_v63  ;;  %v9099_v63 = vld [vmem:[%s15407_s3 + $0xa98] sm:$0xff] }
 0x743   : > { %v10406_v27 = vpack.c.bf16 %v9099_v63, %v9097_v62  ;;  %v10446_v63 = vpack.c.bf16 %v9143_v59, %v9141_v58 }
 0x745   : > { %10369 = vmatpush1.bf16.msk.msra.mxu1 %vm13496_vm12, %v10367_v61  ;;  %v9101_v61 = vld [vmem:[%s15407_s3 + $0xaa8] sm:$0xff]  ;;  %v6785_v8 = vpop.permute.xlu1 %6784  ;;  %v6895_v33 = vpop.permute.xlu0 %6894 }
 0x746   : > { %10371 = vmatprep.subr.bf16.mxu1 %v10370_v5  ;;  %v9103_v5 = vld [vmem:[%s15407_s3 + $0xab8] sm:$0xff] }
 0x747   : > { %v10410_v24 = vpack.c.bf16 %v9103_v5, %v9101_v61  ;;  %v9147_v61 = vld [vmem:[%s15407_s3 + $0xbd8] sm:$0xff] }
 0x748   : > { %9054 = vmatmul.mubr.msk.f32.vlgmr.msra.gmra.mrb[8].mxu1 %vm4354_vm13, %v6336_v1  ;;  %v9104_v1 = vld [vmem:[%s15407_s3 + $0xac0] sm:$0xff] }
 0x749   : > { %10373 = vmatpush1.bf16.msra.mxu1 %v10372_v3  ;;  %6419 = vmatprep.mubr.f32.mxu1 %v11037_v12  ;;  %v9105_v3 = vld [vmem:[%s15407_s3 + $0xac8] sm:$0xff] }
 0x74a   : > { %10375 = vmatprep.subr.bf16.mxu1 %v10374_v9  ;;  %v9107_v9 = vld [vmem:[%s15407_s3 + $0xad8] sm:$0xff] }
 0x74b   : > { %v10414_v46 = vpack.c.bf16 %v9107_v9, %v9105_v3  ;;  %v9149_v3 = vld [vmem:[%s15407_s3 + $0xbe8] sm:$0xff]  ;;  %v9151_v9 = vld [vmem:[%s15407_s3 + $0xbf8] sm:$0xf] }
 0x74c   : > { %9055 = vmatmul.mubr.msk.f32.gmra.mrb[10].mxu1 %vm4354_vm13, %v6338_v19  ;;  %v9117_v19 = vld [vmem:[%s15407_s3 + $0xb08] sm:$0xff] }
 0x74d   : > { %10377 = vmatpush1.bf16.msra.mxu1 %v10376_v17  ;;  %6525 = vmatprep.mubr.f32.mxu1 %v11037_v12  ;;  %v10416_v17 = vpack.c.bf16 %v9106_v49, %v9104_v1  ;;  %v9148_v1 = vld [vmem:[%s15407_s3 + $0xbe0] sm:$0xff]  ;;  %v9150_v49 = vld [vmem:[%s15407_s3 + $0xbf0] sm:$0xf] }
 0x74e   : > { %10379 = vmatprep.subr.bf16.mxu1 %v10378_v11 }
 0x751   : > { %10381 = vmatpush1.bf16.msra.mxu1 %v10380_v32  ;;  %v9116_v32 = vld [vmem:[%s15407_s3 + $0xb00] sm:$0xff] }
 0x752   : > { %10384 = vmatprep.subr.msk.bf16.mxu1 %vm13496_vm12, %v10382_v43  ;;  %v9118_v43 = vld [vmem:[%s15407_s3 + $0xb10] sm:$0xff] }
 0x753   : > { %v10426_v35 = vpack.c.bf16 %v9118_v43, %v9116_v32  ;;  %v9160_v32 = vld [vmem:[%s15407_s3 + $0xc20] sm:$0xff]  ;;  %v9162_v43 = vld [vmem:[%s15407_s3 + $0xc30] sm:$0xff] }
 0x755   : > { %10387 = vmatpush1.bf16.msk.msra.mxu1 %vm13496_vm12, %v10385_v37  ;;  %v9120_v37 = vld [vmem:[%s15407_s3 + $0xb20] sm:$0xff] }
 0x756   : > { %10389 = vmatprep.subr.bf16.mxu1 %v10388_v38  ;;  %v9122_v38 = vld [vmem:[%s15407_s3 + $0xb30] sm:$0xff] }
 0x757   : > { %v10430_v42 = vpack.c.bf16 %v9122_v38, %v9120_v37  ;;  %v9164_v38 = vld [vmem:[%s15407_s3 + $0xc40] sm:$0xff] }
 0x758   : > { %9074 = vmatmul.mubr.msk.f32.vlgmr.msra.gmra.mrb[8].mxu1 %vm4354_vm13, %v6448_v45  ;;  %v9129_v45 = vld [vmem:[%s15407_s3 + $0xb68] sm:$0xff] }
 0x759   : > { %10391 = vmatpush1.bf16.msra.mxu1 %v10390_v47  ;;  %6531 = vmatprep.mubr.f32.mxu1 %v11037_v12  ;;  %v10432_v47 = vpack.c.bf16 %v9127_v40, %v9125_v39  ;;  %v6897_v39 = vpop.permute.xlu1 %6896  ;;  %v9169_v40 = vld [vmem:[%s15407_s3 + $0xc68] sm:$0xff] }
 0x75a   : > { %10393 = vmatprep.subr.bf16.mxu1 %v10392_v18  ;;  %v9124_v18 = vld [vmem:[%s15407_s3 + $0xb40] sm:$0xff] }
 0x75b   : > { %v10434_v60 = vpack.c.bf16 %v9126_v48, %v9124_v18  ;;  %v9168_v48 = vld [vmem:[%s15407_s3 + $0xc60] sm:$0xff] }
 0x75c   : > { %9075 = vmatmul.mubr.msk.f32.gmra.mrb[10].mxu1 %vm4354_vm13, %v6450_v54  ;;  %v9139_v54 = vld [vmem:[%s15407_s3 + $0xb98] sm:$0xff] }
 0x75d   : > { %10395 = vmatpush1.bf16.msra.mxu1 %v10394_v16  ;;  %6636 = vmatprep.mubr.f32.mxu1 %v11037_v12  ;;  %v10436_v16 = vpack.c.bf16 %v9131_v50, %v9129_v45  ;;  %v10442_v56 = vpack.c.bf16 %v9139_v54, %v9137_v53  ;;  %v7007_v50 = vpop.permute.xlu0 %7006 }
 0x75e   : > { %10397 = vmatprep.subr.bf16.mxu1 %v10396_v51  ;;  %v9128_v51 = vld [vmem:[%s15407_s3 + $0xb60] sm:$0xff] }
 0x75f   : > { %v10439_v55 = vpack.c.bf16 %v9130_v52, %v9128_v51 }
 0x761   : > { %10399 = vmatpush1.bf16.msra.mxu1 %v10398_v15  ;;  %v9136_v15 = vld [vmem:[%s15407_s3 + $0xb80] sm:$0xff] }
 0x762   : > { %10402 = vmatprep.subr.msk.bf16.mxu1 %vm13496_vm12, %v10400_v57  ;;  %v9138_v57 = vld [vmem:[%s15407_s3 + $0xb90] sm:$0xff] }
 0x763   : > { %v10444_v62 = vpack.c.bf16 %v9138_v57, %v9136_v15 }
 0x765   : > { %10405 = vmatpush1.bf16.msk.msra.mxu1 %vm13496_vm12, %v10403_v20  ;;  %v9140_v20 = vld [vmem:[%s15407_s3 + $0xba0] sm:$0xff] }
 0x766   : > { %10407 = vmatprep.subr.bf16.mxu1 %v10406_v27  ;;  %v9142_v27 = vld [vmem:[%s15407_s3 + $0xbb0] sm:$0xff] }
 0x767   : > { %v10448_v5 = vpack.c.bf16 %v9142_v27, %v9140_v20 }
 0x768   : > { %9094 = vmatmul.mubr.msk.f32.vlgmr.msra.gmra.mrb[8].mxu1 %vm4354_vm13, %v13606_v29  ;;  %v9111_v29 = vld [vmem:[%s15407_s3 + $0xaf8] sm:$0xf] }
 0x769   : > { %10409 = vmatpush1.bf16.msra.mxu1 %v10408_v6  ;;  %6642 = vmatprep.mubr.f32.mxu1 %v11037_v12  ;;  %v10418_v11 = vpack.c.bf16 %v9111_v29, %v9109_v14  ;;  %v10450_v6 = vpack.c.bf16 %v9147_v61, %v9145_v21  ;;  %v9157_v14 = vld [vmem:[%s15407_s3 + $0xc08] sm:$0xff]  ;;  %v9159_v29 = vld [vmem:[%s15407_s3 + $0xc18] sm:$0xff] }
 0x76a   : > { %10411 = vmatprep.subr.bf16.mxu1 %v10410_v24  ;;  %v9144_v24 = vld [vmem:[%s15407_s3 + $0xbc0] sm:$0xff] }
 0x76c   : > { %9095 = vmatmul.mubr.msk.f32.gmra.mrb[10].mxu1 %vm4354_vm13, %v13597_v28  ;;  %v9119_v28 = vld [vmem:[%s15407_s3 + $0xb18] sm:$0xff] }
 0x76d   : > { %10413 = vmatpush1.bf16.msra.mxu1 %v10412_v10  ;;  %6748 = vmatprep.mubr.f32.mxu1 %v11037_v12  ;;  %v10424_v31 = vpack.c.bf16 %v9119_v28, %v9117_v19  ;;  %v10452_v10 = vpack.c.bf16 %v9146_v7, %v9144_v24  ;;  %v9161_v19 = vld [vmem:[%s15407_s3 + $0xc28] sm:$0xff]  ;;  %v9163_v28 = vld [vmem:[%s15407_s3 + $0xc38] sm:$0xff] }
 0x76e   : > { %10415 = vmatprep.subr.bf16.mxu1 %v10414_v46  ;;  %v10454_v46 = vpack.c.bf16 %v9151_v9, %v9149_v3  ;;  %v7139_v3 = vld [vmem:[%s15411_s7] sm:$0x1f] }
 0x76f   : > { %v7234_v9 = vld [vmem:[%s15412_s8] sm:$0xff] }
 0x771   : > { %10417 = vmatpush1.bf16.msra.mxu1 %v10416_v17  ;;  %v10457_v17 = vpack.c.bf16 %v9150_v49, %v9148_v1  ;;  %v7237_v49 = vld [vmem:[%s15412_s8 + $0x18] sm:$0xff] }
 0x772   : > { %10420 = vmatprep.subr.msk.bf16.mxu1 %vm13496_vm12, %v10418_v11  ;;  %v10460_v11 = vpack.c.bf16 %v9159_v29, %v9157_v14  ;;  %v7238_v29 = vld [vmem:[%s15412_s8 + $0x20] sm:$0xff] }
 0x775   : > { %10423 = vmatpush1.bf16.msk.msra.mxu1 %vm13496_vm12, %v10421_v30  ;;  %v10462_v30 = vpack.c.bf16 %v9158_v26, %v9156_v13  ;;  %v7240_v13 = vld [vmem:[%s15412_s8 + $0x30] sm:$0xff]  ;;  %v7241_v26 = vld [vmem:[%s15412_s8 + $0x38] sm:$0xff] }
 0x776   : > { %10425 = vmatprep.subr.bf16.mxu1 %v10424_v31  ;;  %v10464_v31 = vpack.c.bf16 %v9163_v28, %v9161_v19  ;;  %v10494_v19 = vpack.c.bf16 %v7241_v26, %v7240_v13  ;;  %v7242_v28 = vld [vmem:[%s15412_s8 + $0x40] sm:$0xff]  ;;  %v9184_v13 = vld [vmem:[%s15413_s9 + $0x68] sm:$0xff] }
 0x778   : > { %9114 = vmatmul.mubr.msk.f32.vlgmr.msra.gmra.mrb[8].mxu1 %vm4354_vm13, %v6671_v44  ;;  %v9166_v44 = vld [vmem:[%s15407_s3 + $0xc50] sm:$0xff] }
 0x779   : > { %10427 = vmatpush1.bf16.msra.mxu1 %v10426_v35  ;;  %6754 = vmatprep.mubr.f32.mxu1 %v11037_v12  ;;  %v9167_v35 = vld [vmem:[%s15407_s3 + $0xc58] sm:$0xff] }
 0x77a   : > { %10429 = vmatprep.subr.bf16.mxu1 %v10428_v36  ;;  %v10466_v36 = vpack.c.bf16 %v9162_v43, %v9160_v32  ;;  %v10468_v37 = vpack.c.bf16 %v9167_v35, %v9165_v34  ;;  %v7244_v32 = vld [vmem:[%s15412_s8 + $0x50] sm:$0xff]  ;;  %v7245_v43 = vld [vmem:[%s15412_s8 + $0x58] sm:$0xff]  ;;  %v7246_v34 = vld [vmem:[%s15412_s8 + $0x60] sm:$0xff] }
 0x77b   : > { %v7247_v35 = vld [vmem:[%s15412_s8 + $0x68] sm:$0xff] }
 0x77c   : > { %9115 = vmatmul.mubr.msk.f32.gmra.mrb[10].mxu1 %vm4354_vm13, %v6673_v23  ;;  %v9170_v23 = vld [vmem:[%s15407_s3 + $0xc70] sm:$0xf] }
 0x77d   : > { %10431 = vmatpush1.bf16.msra.mxu1 %v10430_v42  ;;  %6860 = vmatprep.mubr.f32.mxu1 %v11037_v12  ;;  %v9171_v42 = vld [vmem:[%s15407_s3 + $0xc78] sm:$0xf]  ;;  %v10475_v45 = vpack.c.bf16 %v9170_v23, %v9168_v48  ;;  %v7327_v48 = vld [vmem:[%s15413_s9] sm:$0xff]  ;;  %v7328_v23 = vld [vmem:[%s15413_s9 + $0x8] sm:$0xff] }
 0x77e   : > { %10433 = vmatprep.subr.bf16.mxu1 %v10432_v47  ;;  %v10470_v47 = vpack.c.bf16 %v9166_v44, %v9164_v38  ;;  %v10472_v18 = vpack.c.bf16 %v9171_v42, %v9169_v40  ;;  %v7249_v38 = vld [vmem:[%s15412_s8 + $0x78] sm:$0xff]  ;;  %v7251_v40 = vld [vmem:[%s15412_s8 + $0x88] sm:$0xff] }
 0x781   : > { %10435 = vmatpush1.bf16.msra.mxu1 %v10434_v60  ;;  %v7009_v60 = vpop.permute.xlu1 %7008 }
 0x782   : > { %10438 = vmatprep.subr.msk.bf16.mxu1 %vm13496_vm12, %v10436_v16  ;;  %v7101_v16 = vld [vmem:[%s15408_s4] sm:$0x3] }
 0x783   : > { %v7106_v51 = vrot.slane %v7101_v16, %v4030_v22  ;;  %v7110_v41 = vrot.slane %v7101_v16, %v4034_v4 }
 0x785   : > { %10441 = vmatpush1.bf16.msk.msra.mxu1 %vm13496_vm12, %v10439_v55 }
 0x786   : > { %10443 = vmatprep.subr.bf16.mxu1 %v10442_v56 }
 0x788   : > { %9134 = vmatmul.mubr.msk.f32.vlgmr.msra.gmra.mrb[8].mxu1 %vm4354_vm13, %v6783_v2 }
 0x789   : > { %10445 = vmatpush1.bf16.msra.mxu1 %v10444_v62  ;;  %6866 = vmatprep.mubr.f32.mxu1 %v11037_v12 }
 0x78a   : > { %10447 = vmatprep.subr.bf16.mxu1 %v10446_v63 }
 0x78c   : > { %9135 = vmatmul.mubr.msk.f32.gmra.mrb[10].mxu1 %vm4354_vm13, %v6785_v8 }
 0x78d   : > { %10449 = vmatpush1.bf16.msra.mxu1 %v10448_v5  ;;  %6972 = vmatprep.mubr.f32.mxu1 %v11037_v12 }
 0x78e   : > { %10451 = vmatprep.subr.bf16.mxu1 %v10450_v6 }
 0x791   : > { %10453 = vmatpush1.bf16.msra.mxu1 %v10452_v10  ;;  %v7235_v10 = vld [vmem:[%s15412_s8 + $0x8] sm:$0xff] }
 0x792   : > { %10456 = vmatprep.subr.msk.bf16.mxu1 %vm13496_vm12, %v10454_v46  ;;  %v7236_v46 = vld [vmem:[%s15412_s8 + $0x10] sm:$0xff]  ;;  %v10485_v1 = vpack.c.bf16 %v7235_v10, %v7234_v9  ;;  %v7762_v9 = vld [vmem:[%s15415_s11 + $0x48] sm:$0xff] }
 0x793   : > { %v10488_v14 = vpack.c.bf16 %v7237_v49, %v7236_v46  ;;  %v7763_v46 = vld [vmem:[%s15415_s11 + $0x50] sm:$0xff] }
 0x795   : > { %10459 = vmatpush1.bf16.msk.msra.mxu1 %vm13496_vm12, %v10457_v17  ;;  %v7239_v17 = vld [vmem:[%s15412_s8 + $0x28] sm:$0xff] }
 0x796   : > { %10461 = vmatprep.subr.bf16.mxu1 %v10460_v11  ;;  %v10491_v11 = vpack.c.bf16 %v7239_v17, %v7238_v29  ;;  %v9182_v29 = vld [vmem:[%s15413_s9 + $0x58] sm:$0xff] }
 0x798   : > { %9154 = vmatmul.mubr.msk.f32.vlgmr.msra.gmra.mrb[8].mxu1 %vm4354_vm13, %v6895_v33  ;;  %v10500_v33 = vpack.c.bf16 %v7245_v43, %v7244_v32  ;;  %v9187_v43 = vld [vmem:[%s15413_s9 + $0x80] sm:$0xff] }
 0x799   : > { %10463 = vmatpush1.bf16.msra.mxu1 %v10462_v30  ;;  %6978 = vmatprep.mubr.f32.mxu1 %v11037_v12  ;;  %v7243_v30 = vld [vmem:[%s15412_s8 + $0x48] sm:$0xff] }
 0x79a   : > { %10465 = vmatprep.subr.bf16.mxu1 %v10464_v31  ;;  %v10497_v31 = vpack.c.bf16 %v7243_v30, %v7242_v28  ;;  %v9185_v30 = vld [vmem:[%s15413_s9 + $0x70] sm:$0xff] }
 0x79c   : > { %9155 = vmatmul.mubr.msk.f32.gmra.mrb[10].mxu1 %vm4354_vm13, %v6897_v39  ;;  %v7250_v39 = vld [vmem:[%s15412_s8 + $0x80] sm:$0xff] }
 0x79d   : > { %10467 = vmatpush1.bf16.msra.mxu1 %v10466_v36  ;;  %7084 = vmatprep.mubr.f32.mxu1 %v11037_v12  ;;  %v10503_v36 = vpack.c.bf16 %v7247_v35, %v7246_v34  ;;  %v10509_v42 = vpack.c.bf16 %v7251_v40, %v7250_v39  ;;  %v9189_v35 = vld [vmem:[%s15413_s9 + $0x90] sm:$0xff] }
 0x79e   : > { %10469 = vmatprep.subr.bf16.mxu1 %v10468_v37  ;;  %v7248_v37 = vld [vmem:[%s15412_s8 + $0x70] sm:$0xff] }
 0x79f   : > { %v10506_v44 = vpack.c.bf16 %v7249_v38, %v7248_v37  ;;  %v9192_v38 = vld [vmem:[%s15413_s9 + $0xa0] sm:$0xff] }
 0x7a1   : > { %10471 = vmatpush1.bf16.msra.mxu1 %v10470_v47 }
 0x7a2   : > { %10474 = vmatprep.subr.msk.bf16.mxu1 %vm13496_vm12, %v10472_v18 }
 0x7a5   : > { %10477 = vmatpush1.bf16.msk.msra.mxu1 %vm13496_vm12, %v10475_v45 }
 0x7a8   : > { %9174 = vmatmul.mubr.msk.f32.vlgmr.msra.gmra.mrb[8].mxu1 %vm4354_vm13, %v7007_v50 }
 0x7a9   : > { %7090 = vmatprep.mubr.f32.mxu1 %v11037_v12 }
 0x7ac   : > { %9175 = vmatmul.mubr.msk.f32.gmra.mrb[10].mxu1 %vm4354_vm13, %v7009_v60 }
 0x7ad   : > { %7215 = vmatprep.mubr.f32.mxu1 %v11037_v12 }
 0x87b   : > { %v7086_v52 = vpop.f32.mrb[8].mxu1 }
 0x87c   : > { %v7113_v53 = vadd.f32 %v7106_v51, %v7086_v52  ;;  %v7088_v54 = vpop.f32.mrb[9].mxu1  ;;  %v7329_v52 = vld [vmem:[%s15413_s9 + $0x10] sm:$0xff] }
 0x87d   : > { %v7114_v55 = vadd.f32 %v7110_v41, %v7088_v54 }
 0x87e   : > { %v7117_v15 = vmax.f32 %v7113_v53, 0.0  ;;  %v7330_v53 = vld [vmem:[%s15413_s9 + $0x18] sm:$0xff] }
 0x87f   : > { %v7092_v56 = vpop.f32.mrb[10].mxu1  ;;  %v7118_v59 = vmax.f32 %v7114_v55, 0.0  ;;  %v10515_v54 = vpack.c.bf16 %v7330_v53, %v7329_v52  ;;  %v7331_v55 = vld [vmem:[%s15413_s9 + $0x20] sm:$0xff]  ;;  %v9203_v53 = vld [vmem:[%s15413_s9 + $0xf0] sm:$0xff] }
 0x880   : > { %v7115_v57 = vadd.f32 %v7106_v51, %v7092_v56  ;;  %v7094_v58 = vpop.f32.mrb[11].mxu1  ;;  %v7125_v27 = vrot.slane %v7117_v15, 1  ;;  %v10512_v51 = vpack.c.bf16 %v7328_v23, %v7327_v48  ;;  %v7332_v56 = vld [vmem:[%s15413_s9 + $0x28] sm:$0xff]  ;;  %v9196_v48 = vld [vmem:[%s15413_s9 + $0xc0] sm:$0xff] }
 0x881   : > { %v7116_v62 = vadd.f32 %v7110_v41, %v7094_v58  ;;  %v7128_v21 = vrot.slane %v7118_v59, 1  ;;  %v7334_v58 = vld [vmem:[%s15413_s9 + $0x38] sm:$0xff]  ;;  %v9197_v23 = vld [vmem:[%s15413_s9 + $0xc8] sm:$0xff] }
 0x882   : > { %v7119_v63 = vmax.f32 %v7115_v57, 0.0  ;;  %v7333_v57 = vld [vmem:[%s15413_s9 + $0x30] sm:$0xff] }
 0x883   : > { %v7120_v20 = vmax.f32 %v7116_v62, 0.0  ;;  %v7335_v62 = vld [vmem:[%s15413_s9 + $0x40] sm:$0xff] }
 0x884   : > { %v7126_v2 = vrot.slane %v7119_v63, 1 }
 0x885   : > { %v7129_v61 = vrot.slane %v7120_v20, 1 }
 0x886   : > { %v7127_v22 = vsel %vm1210_vm1, %v7125_v27, %v7126_v2  ;;  %v7137_v25 = vmax.f32 %v7119_v63, %v7126_v2  ;;  %v7336_v63 = vld [vmem:[%s15413_s9 + $0x48] sm:$0xff]  ;;  %v7753_v27 = vld [vmem:[%s15415_s11] sm:$0xff] }
 0x887   : > { %v7135_v4 = vmax.f32 %v7117_v15, %v7127_v22  ;;  %v7130_v5 = vsel %vm1210_vm1, %v7128_v21, %v7129_v61  ;;  %v7138_v6 = vmax.f32 %v7120_v20, %v7129_v61  ;;  %vm7228_vm1 = vcmask 916480   ;;  %v7754_v2 = vld [vmem:[%s15415_s11 + $0x8] sm:$0xff]  ;;  %v7755_v21 = vld [vmem:[%s15415_s11 + $0x10] sm:$0xff]  ;;  %v7756_v22 = vld [vmem:[%s15415_s11 + $0x18] sm:$0xff] }
 0x888   : > { %v7136_v24 = vmax.f32 %v7118_v59, %v7130_v5  ;;  %v10518_v15 = vpack.c.bf16 %v7332_v56, %v7331_v55  ;;  %v10521_v59 = vpack.c.bf16 %v7334_v58, %v7333_v57  ;;  %v10524_v20 = vpack.c.bf16 %v7336_v63, %v7335_v62  ;;  %v7758_v5 = vld [vmem:[%s15415_s11 + $0x28] sm:$0xff]  ;;  %v9208_v62 = vld [vmem:[%s15413_s9 + $0x118] sm:$0xff] }
 0x889   : > { %v10481_v7 = vpack.c.bf16 %v7137_v25, %v7135_v4  ;;  %v10587_v61 = vpack.c.bf16 %v7754_v2, %v7753_v27  ;;  %v10590_v25 = vpack.c.bf16 %v7756_v22, %v7755_v21  ;;  %v7757_v4 = vld [vmem:[%s15415_s11 + $0x20] sm:$0xff]  ;;  %v9206_v57 = vld [vmem:[%s15413_s9 + $0x108] sm:$0xff]  ;;  %v9211_v21 = vld [vmem:[%s15413_s9 + $0x130] sm:$0xff] }
 0x88a   : > { %v10478_v8 = vpack.c.bf16 %v7138_v6, %v7136_v24  ;;  %v10593_v6 = vpack.c.bf16 %v7758_v5, %v7757_v4  ;;  %v7759_v24 = vld [vmem:[%s15415_s11 + $0x30] sm:$0xff]  ;;  %v9210_v27 = vld [vmem:[%s15413_s9 + $0x128] sm:$0xff] }
 0x88b   : > { %10588 = vmatpush3.bf16.msra.mxu0 %v10587_v61  ;;  %v9212_v61 = vld [vmem:[%s15413_s9 + $0x138] sm:$0xff]  ;;  %v9215_v4 = vld [vmem:[%s15413_s9 + $0x148] sm:$0xff] }
 0x88c   : > { %10480 = vmatprep.subr.msk.bf16.mxu1 %vm10479_vm15, %v10478_v8  ;;  %10589 = vmatprep.subr.bf16.mxu0 %v11043_v0  ;;  %v10569_v22 = vpack.c.bf16 %v9212_v61, %v9211_v21 }
 0x88d   : > { %10483 = vmatpush1.bf16.msk.msra.mxu1 %vm10479_vm15, %v10481_v7  ;;  %v7760_v7 = vld [vmem:[%s15415_s11 + $0x38] sm:$0xff] }
 0x88e   : > { %10484 = vmatprep.subr.bf16.mxu1 %v11043_v0  ;;  %v10596_v8 = vpack.c.bf16 %v7760_v7, %v7759_v24  ;;  %v9216_v24 = vld [vmem:[%s15413_s9 + $0x150] sm:$0xff]  ;;  %v9217_v7 = vld [vmem:[%s15413_s9 + $0x158] sm:$0xff] }
 0x88f   : > { %10591 = vmatpush3.bf16.msra.mxu0 %v10590_v25  ;;  %v9214_v25 = vld [vmem:[%s15413_s9 + $0x140] sm:$0xff] }
 0x890   : > { %9178 = vmatmul.mubr.msk.f32.vlgmr.msra.gmra.mrb[12].mxu1 %vm7140_vm3, %v7139_v3  ;;  %10592 = vmatprep.subr.bf16.mxu0 %v11043_v0  ;;  %v7761_v3 = vld [vmem:[%s15415_s11 + $0x40] sm:$0xff]  ;;  %v10572_v5 = vpack.c.bf16 %v9215_v4, %v9214_v25 }
 0x891   : > { %10486 = vmatpush1.bf16.msra.mxu1 %v10485_v1  ;;  %v10599_v10 = vpack.c.bf16 %v7762_v9, %v7761_v3  ;;  %v7764_v1 = vld [vmem:[%s15415_s11 + $0x58] sm:$0xff]  ;;  %v9218_v3 = vld [vmem:[%s15413_s9 + $0x160] sm:$0xff]  ;;  %v9219_v9 = vld [vmem:[%s15413_s9 + $0x168] sm:$0xff] }
 0x892   : > { %10487 = vmatprep.subr.bf16.mxu1 %v11043_v0  ;;  %v10602_v49 = vpack.c.bf16 %v7764_v1, %v7763_v46  ;;  %v9220_v46 = vld [vmem:[%s15413_s9 + $0x170] sm:$0xff]  ;;  %v9221_v1 = vld [vmem:[%s15413_s9 + $0x178] sm:$0xff] }
 0x893   : > { %10594 = vmatpush3.bf16.msra.mxu0 %v10593_v6 }
 0x894   : > { %10595 = vmatprep.subr.bf16.mxu0 %v11043_v0 }
 0x895   : > { %10489 = vmatpush1.bf16.msra.mxu1 %v10488_v14  ;;  %v9181_v14 = vld [vmem:[%s15413_s9 + $0x50] sm:$0xff] }
 0x896   : > { %10490 = vmatprep.subr.bf16.mxu1 %v11043_v0  ;;  %v10527_v17 = vpack.c.bf16 %v9182_v29, %v9181_v14  ;;  %v9222_v14 = vld [vmem:[%s15413_s9 + $0x180] sm:$0xff]  ;;  %v9223_v29 = vld [vmem:[%s15413_s9 + $0x188] sm:$0xff] }
 0x897   : > { %10597 = vmatpush3.bf16.msra.mxu0 %v10596_v8  ;;  %v10575_v8 = vpack.c.bf16 %v9217_v7, %v9216_v24 }
 0x898   : > { %10598 = vmatprep.subr.bf16.mxu0 %v11043_v0 }
 0x899   : > { %10492 = vmatpush1.bf16.msra.mxu1 %v10491_v11  ;;  %v9183_v11 = vld [vmem:[%s15413_s9 + $0x60] sm:$0xff] }
 0x89a   : > { %10493 = vmatprep.subr.bf16.mxu1 %v11043_v0  ;;  %v10530_v28 = vpack.c.bf16 %v9184_v13, %v9183_v11  ;;  %v7765_v13 = vld [vmem:[%s15415_s11 + $0x60] sm:$0xff] }
 0x89b   : > { %10600 = vmatpush3.bf16.msra.mxu0 %v10599_v10  ;;  %v10578_v10 = vpack.c.bf16 %v9219_v9, %v9218_v3 }
 0x89c   : > { %10601 = vmatprep.subr.bf16.mxu0 %v11043_v0 }
 0x89d   : > { %10495 = vmatpush1.bf16.msra.mxu1 %v10494_v19 }
 0x89e   : > { %10496 = vmatprep.subr.bf16.mxu1 %v11043_v0 }
 0x89f   : > { %10603 = vmatpush3.bf16.msra.mxu0 %v10602_v49  ;;  %v10581_v49 = vpack.c.bf16 %v9221_v1, %v9220_v46 }
 0x8a0   : > { %10604 = vmatprep.subr.bf16.mxu0 %v11043_v0 }
 0x8a1   : > { %10498 = vmatpush1.bf16.msra.mxu1 %v10497_v31  ;;  %v9186_v31 = vld [vmem:[%s15413_s9 + $0x78] sm:$0xff] }
 0x8a2   : > { %10499 = vmatprep.subr.bf16.mxu1 %v11043_v0  ;;  %v10533_v32 = vpack.c.bf16 %v9186_v31, %v9185_v30  ;;  %v7767_v30 = vld [vmem:[%s15415_s11 + $0x70] sm:$0xff]  ;;  %v7844_v31 = vld [vmem:[%s15417_s13] sm:$0xff] }
 0x8a5   : > { %10501 = vmatpush1.bf16.msra.mxu1 %v10500_v33  ;;  %v9188_v33 = vld [vmem:[%s15413_s9 + $0x88] sm:$0xff] }
 0x8a6   : > { %10502 = vmatprep.subr.bf16.mxu1 %v11043_v0  ;;  %v10536_v34 = vpack.c.bf16 %v9188_v33, %v9187_v43 }
 0x8a9   : > { %10504 = vmatpush1.bf16.msra.mxu1 %v10503_v36  ;;  %v9190_v36 = vld [vmem:[%s15413_s9 + $0x98] sm:$0xff] }
 0x8aa   : > { %10505 = vmatprep.subr.bf16.mxu1 %v11043_v0  ;;  %v10539_v37 = vpack.c.bf16 %v9190_v36, %v9189_v35 }
 0x8ad   : > { %10507 = vmatpush1.bf16.msra.mxu1 %v10506_v44  ;;  %v9193_v44 = vld [vmem:[%s15413_s9 + $0xa8] sm:$0xff] }
 0x8ae   : > { %10508 = vmatprep.subr.bf16.mxu1 %v11043_v0  ;;  %v10542_v39 = vpack.c.bf16 %v9193_v44, %v9192_v38  ;;  %v7847_v38 = vld [vmem:[%s15417_s13 + $0x18] sm:$0xff] }
 0x8b1   : > { %10510 = vmatpush1.bf16.msra.mxu1 %v10509_v42  ;;  %v9194_v42 = vld [vmem:[%s15413_s9 + $0xb0] sm:$0xff] }
 0x8b2   : > { %10511 = vmatprep.subr.bf16.mxu1 %v11043_v0 }
 0x963   : > { %v7217_v47 = vpop.f32.mrb[12].mxu1 }
 0x964   : > { %v7219_v18 = vpop.f32.mrb[13].mxu1  ;;  %7224 = vrot.lane.b32.xlu0 %v7217_v47, %s11046_s25 }
 0x965   : > { %7226 = vrot.lane.b32.xlu1 %v7219_v18, %s11046_s25 }
 0x9d6   : > { %v7225_v45 = vpop.permute.xlu0 %7224 }
 0x9d7   : > { %v7227_v50 = vpop.permute.xlu1 %7226 }
 0x9d8   : > { %v7229_v60 = vsel %vm7228_vm1, %v7225_v45, %v7227_v50  ;;  %v7233_v16 = vmax.f32 %v7219_v18, %v7227_v50  ;;  %v10548_v45 = vpack.c.bf16 %v9197_v23, %v9196_v48  ;;  %v9198_v50 = vld [vmem:[%s15413_s9 + $0xd0] sm:$0xff]  ;;  %v7852_v23 = vld [vmem:[%s15417_s13 + $0x40] sm:$0xff] }
 0x9d9   : > { %v7232_v41 = vmax.f32 %v7217_v47, %v7229_v60  ;;  %v9195_v47 = vld [vmem:[%s15413_s9 + $0xb8] sm:$0xff] }
 0x9da   : > { %9179 = vmatprep.mubr.msk.f32.mxu1 %vm7252_vm4, %v7233_v16  ;;  %v10545_v18 = vpack.c.bf16 %v9195_v47, %v9194_v42  ;;  %v9199_v60 = vld [vmem:[%s15413_s9 + $0xd8] sm:$0xff]  ;;  %v7850_v47 = vld [vmem:[%s15417_s13 + $0x30] sm:$0xff] }
 0x9db   : > { %7321 = vmatmul.mubr.f32.vlgmr.msra.gmra.mrb[14].mxu1 %v7232_v41  ;;  %v10551_v16 = vpack.c.bf16 %v9199_v60, %v9198_v50  ;;  %v9201_v41 = vld [vmem:[%s15413_s9 + $0xe8] sm:$0xff]  ;;  %v7854_v60 = vld [vmem:[%s15417_s13 + $0x50] sm:$0xf] }
 0x9dc   : > { %10513 = vmatpush3.bf16.msra.mxu1 %v10512_v51  ;;  %9335 = vmatprep.mubr.msk.f32.mxu1 %vm11047_vm5, %v11037_v12  ;;  %v9200_v51 = vld [vmem:[%s15413_s9 + $0xe0] sm:$0xff] }
 0x9dd   : > { %10514 = vmatprep.subr.bf16.mxu1 %v11043_v0  ;;  %v10554_v52 = vpack.c.bf16 %v9201_v41, %v9200_v51 }
 0x9e0   : > { %10516 = vmatpush3.bf16.msra.mxu1 %v10515_v54  ;;  %v9204_v54 = vld [vmem:[%s15413_s9 + $0xf8] sm:$0xff] }
 0x9e1   : > { %10517 = vmatprep.subr.bf16.mxu1 %v11043_v0  ;;  %v10557_v55 = vpack.c.bf16 %v9204_v54, %v9203_v53 }
 0x9e4   : > { %10519 = vmatpush3.bf16.msra.mxu1 %v10518_v15  ;;  %v9205_v15 = vld [vmem:[%s15413_s9 + $0x100] sm:$0xff] }
 0x9e5   : > { %10520 = vmatprep.subr.bf16.mxu1 %v11043_v0  ;;  %v10560_v58 = vpack.c.bf16 %v9206_v57, %v9205_v15 }
 0x9e8   : > { %10522 = vmatpush3.bf16.msra.mxu1 %v10521_v59  ;;  %v9207_v59 = vld [vmem:[%s15413_s9 + $0x110] sm:$0xff] }
 0x9e9   : > { %10523 = vmatprep.subr.bf16.mxu1 %v11043_v0  ;;  %v10563_v63 = vpack.c.bf16 %v9208_v62, %v9207_v59 }
 0x9ec   : > { %10525 = vmatpush3.bf16.msra.mxu1 %v10524_v20  ;;  %v9209_v20 = vld [vmem:[%s15413_s9 + $0x120] sm:$0xff] }
 0x9ed   : > { %10526 = vmatprep.subr.bf16.mxu1 %v11043_v0  ;;  %v10566_v2 = vpack.c.bf16 %v9210_v27, %v9209_v20 }
 0xaae   : > { %v15148_v26 = vpop.f32.mrb[14].mxu1 }
 0xaaf   : > { %v7324_v19 = vpop.f32.mrb[15].mxu1  ;;  %9336 = vmatmul.mubr.msk.f32.vlgmr.msra.gmra.mrb[16].mxu1 %vm7337_vm6, %v15148_v26  ;;  %v7423_v40 = vrot.slane %v15148_v26, 1  ;;  %v7508_v56 = vrot.slane %v15148_v26, 2  ;;  %v7593_v6 = vrot.slane %v15148_v26, 3  ;;  %v7678_v11 = vrot.slane %v15148_v26, 4 }
 0xab0   : > { %10528 = vmatpush3.bf16.msra.mxu1 %v10527_v17  ;;  %9358 = vmatprep.mubr.msk.f32.mxu1 %vm11047_vm5, %v11037_v12  ;;  %v10584_v17 = vpack.c.bf16 %v9223_v29, %v9222_v14  ;;  %v7766_v19 = vld [vmem:[%s15415_s11 + $0x68] sm:$0xff]  ;;  %v7326_v26 = vld [vmem:[%s15414_s10] sm:$0x1] }
 0xab1   : > { %10529 = vmatprep.subr.bf16.mxu1 %v11043_v0 }
 0xab4   : > { %10531 = vmatpush3.bf16.msra.mxu1 %v10530_v28  ;;  %v10605_v28 = vpack.c.bf16 %v7766_v19, %v7765_v13 }
 0xab5   : > { %10532 = vmatprep.subr.bf16.mxu1 %v11043_v0 }
 0xab6   : > { %10606 = vmatpush3.bf16.msra.mxu0 %v10605_v28 }
 0xab7   : > { %9458 = vmatprep.subr.mxu0 %v11037_v12 }
 0xab8   : > { %10534 = vmatpush3.bf16.msra.mxu1 %v10533_v32  ;;  %v7845_v32 = vld [vmem:[%s15417_s13 + $0x8] sm:$0xff] }
 0xab9   : > { %10535 = vmatprep.subr.bf16.mxu1 %v11043_v0  ;;  %v10608_v35 = vpack.c.bf16 %v7845_v32, %v7844_v31 }
 0xaba   : > { %9459 = vmatpush3.msra.mxu0 %v7767_v30 }
 0xabb   : > { %10607 = vmatprep.subr.bf16.mxu0 %v11043_v0 }
 0xabc   : > { %10537 = vmatpush3.bf16.msra.mxu1 %v10536_v34 }
 0xabd   : > { %10538 = vmatprep.subr.bf16.mxu1 %v11043_v0 }
 0xac0   : > { %10540 = vmatpush3.bf16.msra.mxu1 %v10539_v37  ;;  %v7846_v37 = vld [vmem:[%s15417_s13 + $0x10] sm:$0xff] }
 0xac1   : > { %10541 = vmatprep.subr.bf16.mxu1 %v11043_v0  ;;  %v10611_v44 = vpack.c.bf16 %v7847_v38, %v7846_v37 }
 0xac3   : > { %9359 = vmatmul.mubr.msk.f32.vlgmr.msra.gmra.mrb[16].mxu1 %vm7337_vm6, %v7423_v40  ;;  %v7849_v40 = vld [vmem:[%s15417_s13 + $0x28] sm:$0xff] }
 0xac4   : > { %10543 = vmatpush3.bf16.msra.mxu1 %v10542_v39  ;;  %9381 = vmatprep.mubr.msk.f32.mxu1 %vm11047_vm5, %v11037_v12  ;;  %v7848_v39 = vld [vmem:[%s15417_s13 + $0x20] sm:$0xff] }
 0xac5   : > { %10544 = vmatprep.subr.bf16.mxu1 %v11043_v0  ;;  %v10614_v42 = vpack.c.bf16 %v7849_v40, %v7848_v39 }
 0xac8   : > { %10546 = vmatpush3.bf16.msra.mxu1 %v10545_v18  ;;  %v7851_v18 = vld [vmem:[%s15417_s13 + $0x38] sm:$0xff] }
 0xac9   : > { %10547 = vmatprep.subr.bf16.mxu1 %v11043_v0  ;;  %v10617_v48 = vpack.c.bf16 %v7851_v18, %v7850_v47 }
 0xacc   : > { %10549 = vmatpush3.bf16.msra.mxu1 %v10548_v45  ;;  %v7853_v45 = vld [vmem:[%s15417_s13 + $0x48] sm:$0xff] }
 0xacd   : > { %10550 = vmatprep.subr.bf16.mxu1 %v11043_v0  ;;  %v10620_v50 = vpack.c.bf16 %v7853_v45, %v7852_v23 }
 0xad0   : > { %10552 = vmatpush3.bf16.msra.mxu1 %v10551_v16 }
 0xad1   : > { %10553 = vmatprep.subr.bf16.mxu1 %v11043_v0 }
 0xad4   : > { %10555 = vmatpush3.bf16.msra.mxu1 %v10554_v52 }
 0xad5   : > { %10556 = vmatprep.subr.bf16.mxu1 %v11043_v0 }
 0xad7   : > { %9382 = vmatmul.mubr.msk.f32.vlgmr.msra.gmra.mrb[16].mxu1 %vm7337_vm6, %v7508_v56 }
 0xad8   : > { %10558 = vmatpush3.bf16.msra.mxu1 %v10557_v55  ;;  %9404 = vmatprep.mubr.msk.f32.mxu1 %vm11047_vm5, %v11037_v12 }
 0xad9   : > { %10559 = vmatprep.subr.bf16.mxu1 %v11043_v0 }
 0xadc   : > { %10561 = vmatpush3.bf16.msra.mxu1 %v10560_v58 }
 0xadd   : > { %10562 = vmatprep.subr.bf16.mxu1 %v11043_v0 }
 0xae0   : > { %10564 = vmatpush3.bf16.msra.mxu1 %v10563_v63 }
 0xae1   : > { %10565 = vmatprep.subr.bf16.mxu1 %v11043_v0 }
 0xae4   : > { %10567 = vmatpush3.bf16.msra.mxu1 %v10566_v2 }
 0xae5   : > { %10568 = vmatprep.subr.bf16.mxu1 %v11043_v0 }
 0xae8   : > { %10570 = vmatpush3.bf16.msra.mxu1 %v10569_v22 }
 0xae9   : > { %10571 = vmatprep.subr.bf16.mxu1 %v11043_v0 }
 0xaeb   : > { %9405 = vmatmul.mubr.msk.f32.vlgmr.msra.gmra.mrb[16].mxu1 %vm7337_vm6, %v7593_v6 }
 0xaec   : > { %10573 = vmatpush3.bf16.msra.mxu1 %v10572_v5  ;;  %9427 = vmatprep.mubr.msk.f32.mxu1 %vm11047_vm5, %v11037_v12 }
 0xaed   : > { %10574 = vmatprep.subr.bf16.mxu1 %v11043_v0 }
 0xaf0   : > { %10576 = vmatpush3.bf16.msra.mxu1 %v10575_v8 }
 0xaf1   : > { %10577 = vmatprep.subr.bf16.mxu1 %v11043_v0 }
 0xaf4   : > { %10579 = vmatpush3.bf16.msra.mxu1 %v10578_v10 }
 0xaf5   : > { %10580 = vmatprep.subr.bf16.mxu1 %v11043_v0 }
 0xaf8   : > { %10582 = vmatpush3.bf16.msra.mxu1 %v10581_v49 }
 0xaf9   : > { %10583 = vmatprep.subr.bf16.mxu1 %v11043_v0 }
 0xafc   : > { %10585 = vmatpush3.bf16.msra.mxu1 %v10584_v17 }
 0xaff   : > { %9428 = vmatmul.mubr.msk.f32.vlgmr.msra.gmra.mrb[16].mxu1 %vm7337_vm6, %v7678_v11 }
 0xbd2   : > { %v7747_v43 = vpop.f32.mrb[16].mxu1 }
 0xbd3   : > { %v10622_v33 = vadd.f32 %v7747_v43, %v7326_v26  ;;  %v9429_v34 = vpop.f32.mrb[17].mxu1 }
 0xbd5   : > { %v7752_v36 = vmax.f32 %v10622_v33, 0.0 }
 0xbd7   : > { %9461 = vmatmul.mubr.msk.f32.vlgmr.msra.gmra.mrb[8].mxu0 %vm7769_vm7, %v7752_v36 }
 0xbd8   : > { %10609 = vmatpush3.bf16.msra.mxu0 %v10608_v35  ;;  %9485 = vmatprep.mubr.msk.f32.mxu0 %vm11047_vm5, %v11037_v12 }
 0xbd9   : > { %10610 = vmatprep.subr.bf16.mxu0 %v11043_v0 }
 0xbdc   : > { %10612 = vmatpush3.bf16.msra.mxu0 %v10611_v44 }
 0xbdd   : > { %10613 = vmatprep.subr.bf16.mxu0 %v11043_v0 }
 0xbe0   : > { %10615 = vmatpush3.bf16.msra.mxu0 %v10614_v42 }
 0xbe1   : > { %10616 = vmatprep.subr.bf16.mxu0 %v11043_v0 }
 0xbe4   : > { %10618 = vmatpush3.bf16.msra.mxu0 %v10617_v48 }
 0xbe5   : > { %10619 = vmatprep.subr.bf16.mxu0 %v11043_v0  ;;  %v7768_v0 = vld [vmem:[%s15416_s12] sm:$0x1] }
 0xbe8   : > { %10621 = vmatpush3.bf16.msra.mxu0 %v10620_v50 }
 0xbe9   : > { %9483 = vmatprep.subr.mxu0 %v11037_v12  ;;  %v7855_v12 = vld [vmem:[%s15457_s17] sm:$0x1] }
 0xbec   : > { %9484 = vmatpush3.msk.msra.mxu0 %vm562_vm0, %v7854_v60 }
 0xcaa   : > { %v7839_v16 = vpop.f32.mrb[8].mxu0 }
 0xcab   : > { %v7840_v51 = vadd.f32 %v7839_v16, %v7768_v0  ;;  %v9462_v41 = vpop.f32.mrb[9].mxu0 }
 0xcad   : > { %v7843_v52 = vmax.f32 %v7840_v51, 0.0 }
 0xcaf   : > { %9486 = vmatmul.mubr.msk.f32.vlgmr.msra.gmra.mrb[10].mxu0 %vm553_vm2, %v7843_v52 }
 0xd82   : > { %v7928_v53 = vpop.f32.mrb[10].mxu0 }
 0xd83   : > { %v7929_v54 = vadd.f32 %v7928_v53, %v7855_v12  ;;  %v9487_v55 = vpop.f32.mrb[11].mxu0 }
 0xd85   : > { %7932 = vst [vmem:[%s486_s18] sm:$0x1] %v7929_v54 }
 0xd86   : > { %10986 = shalt.err (!%p10983_p3)
}
 0xd87   : > { %s10987_s28 = scalar_lea.hbm %s15362_s15, 16  ;;  %s10991_s17 = scalar_lea.hbm %s15458_s23, 32 }
 0xd88   : > { %p10988_p4 = scmp.ne.s32.totalorder %s15362_s15, %s10987_s28  ;;  %p10992_p9 = scmp.lt.u32.totalorder %s15362_s15, %s15458_s23 }
 0xd89   : > { %p10993_p10 = scmp.lt.u32.totalorder %s10991_s17, %s10987_s28  ;;  %p10995_p12 = scmp.lt.u32.totalorder %s10987_s28, %s15362_s15 }
 0xd8a   : > { %p10989_p7 = pnand %p10988_p4, %p11167_p5 }
 0xd8b   : > { %p10994_p11 = por %p10993_p10, %p10992_p9 }
 0xd8c   : > { %p10990_p8 = pneg %p10989_p7 }
 0xd8d   : > { %p10996_p13 = por %p10995_p12, %p10994_p11 }
 0xd8f   : > { %p10997_p0 = pnand %p10996_p13, %p10990_p8 }
 0xd91   : > { %11000 = shalt.err (!%p10997_p0)
}
 0xd92   : > { %10919 = dma.vmem_to_hbm [thread:$0]  (%p11167_p5), %s15364_s24, 16, %s15362_s15, %s7934_s21  }
 0xd93 PF: > { %s15459_s0 = sld [smem:[#allocation7_spill]]  ;;  %s15460_s20 = sld [smem:[#allocation5_spill]] }
 0xd99   : > { %p10925_p1 = scmp.ge.s32.totalorder %s15459_s0, 2  ;;  %s7958_s22 = sand.u32 1, %s15460_s20  }
 0xd9a   : > { %s7959_s16 = scalar_lea.sflag [#allocation3], %s7958_s22 }
 0xd9b   : > { %p10922_p2 = pnand %p10925_p1, %p11171_p6 }
 0xd9d   : > { %11018 = dma.done.wait (!%p10922_p2), %s7959_s16, 16  }
 0xd9e   : > { %11020 = vsyncadd (!%p10922_p2), %s7959_s16, 4294967280  ;;  %s15462_s21 = sld [smem:[#allocation8_spill]]  ;;  %s15463_s14 = sld [smem:[#allocation6_spill]] }
 0xd9f   : > { %s15464_s20 = sld [smem:[#allocation9_spill]]  ;;  %s15465_s18 = smov %s11027_s19 }
 0xda4   : > { %p25_p3 = scmp.ge.s32.totalorder %s15462_s21, 4   ;;  %s15466_s19 = smov %s15463_s14 }
 0xda6   :  { %27 = sbr.rel (!%p25_p3) target bundleno = 7 (0x7), region = 167 }
 0xdad   :  { %7963 = vsyncpa [#allocation3], 1 }
 0xdae   :  { %7965 = vsyncpa [#allocation3 + $0x1], 1 }

</bundles_post_ra>
